<compile_context>
chip_gen: v6e
topology: v6e:2x2x1
jax: 0.10.0
libtpu: 0.0.40
codegen_flags: <defaults>
</compile_context>

<pallas_src>
import jax
import jax.numpy as jnp
from jax.experimental import pallas as pl
from jax.experimental.pallas import tpu as pltpu

_VMEM_LIMIT = 64 * 1024 * 1024      # well above the 16/32 MiB scoped defaults


# ----------------------------------------------------------------------------
# Layout helpers (pure XLA glue, applied once at the block boundary).
#   phase p = 2*dr + dc  <->  high-res pixel (2*i + dr, 2*j + dc)
# ----------------------------------------------------------------------------
def phase_split(x):
    n, h, w, c = x.shape
    x = x.reshape(n, h // 2, 2, w // 2, 2, c)
    return x.transpose(0, 2, 4, 1, 3, 5).reshape(n, 4, h // 2, w // 2, c)


def phase_merge(x):
    n, _, hl, wl, c = x.shape
    x = x.reshape(n, 2, 2, hl, wl, c)
    return x.transpose(0, 3, 1, 4, 2, 5).reshape(n, 2 * hl, 2 * wl, c)


def _row_tile(hl, wsp, target=2048):
    """Largest divisor of hl whose low-res tile has <= target pixels."""
    best = 1
    for d in range(1, hl + 1):
        if hl % d == 0 and d * wsp <= target:
            best = d
    return best


# ----------------------------------------------------------------------------
# Kernel 1: OctaveCBR with 1x1 convs (both branches, BN + ReLU fused).
# All 4 high phases are fused into one MXU call; weights are merged along Cout
# ([h2h|h2l], [l2h|l2l]) so each input is read by exactly one matmul.
# ----------------------------------------------------------------------------
def _octave_cbr1_kernel(xh_ref, xl_ref, wh_ref, wl_ref,
                        sh_ref, bh_ref, sl_ref, bl_ref,
                        oh_ref, ol_ref):
    _, _, tl, wsp, ch = xh_ref.shape
    cl = xl_ref.shape[3]
    co_h = oh_ref.shape[4]
    co_l = ol_ref.shape[3]
    m = tl * wsp
    f32 = jnp.float32
    bf16 = jnp.bfloat16

    # low branch: one (m, cl) x (cl, co_h+co_l) MXU call -> [l2h | l2l]
    yl = jnp.dot(xl_ref[0].reshape(m, cl).astype(bf16), wl_ref[...],
                 preferred_element_type=f32)
    # high branch: all 4 phases fused into one (4m, ch) MXU call -> [h2h | h2l]
    yh = jnp.dot(xh_ref[0].reshape(4 * m, ch).astype(bf16), wh_ref[...],
                 preferred_element_type=f32)

    yh_h = yh[:, :co_h].reshape(4, m, co_h)
    yh_l = yh[:, co_h:].reshape(4, m, co_l)

    # x_h out = h2h + upsample(l2h); single fused BN + ReLU epilogue.
    out_h = jnp.maximum((yh_h + yl[:, :co_h][None]) * sh_ref[...] + bh_ref[...],
                        0.0)
    oh_ref[0] = out_h.reshape(4, tl, wsp, co_h).astype(oh_ref.dtype)

    # 1x1 conv commutes with 2x2 avg-pool: pool(x_h) @ w == mean_p(x_p @ w)
    acc_l = yl[:, co_h:] + 0.25 * (yh_l[0] + yh_l[1] + yh_l[2] + yh_l[3])
    out_l = jnp.maximum(acc_l * sl_ref[...] + bl_ref[...], 0.0)
    ol_ref[0] = out_l.reshape(tl, wsp, co_l).astype(ol_ref.dtype)


def octave_cbr1(xh_ph, xl, p):
    n, _, hl, wsp, ch = xh_ph.shape
    cl = xl.shape[3]
    co_h = p["bn_h_scale"].shape[1]
    co_l = p["bn_l_scale"].shape[1]
    tl = _row_tile(hl, wsp)
    grid = (n, hl // tl)

    def hi_map(ni, ti):
        return (ni, 0, ti, 0, 0)

    def lo_map(ni, ti):
        return (ni, ti, 0, 0)

    def w_map(ni, ti):
        return (0, 0)

    return pl.pallas_call(
        _octave_cbr1_kernel,
        grid=grid,
        in_specs=[
            pl.BlockSpec((1, 4, tl, wsp, ch), hi_map),
            pl.BlockSpec((1, tl, wsp, cl), lo_map),
            pl.BlockSpec((ch, co_h + co_l), w_map),
            pl.BlockSpec((cl, co_h + co_l), w_map),
            pl.BlockSpec((1, co_h), w_map),
            pl.BlockSpec((1, co_h), w_map),
            pl.BlockSpec((1, co_l), w_map),
            pl.BlockSpec((1, co_l), w_map),
        ],
        out_specs=[
            pl.BlockSpec((1, 4, tl, wsp, co_h), hi_map),
            pl.BlockSpec((1, tl, wsp, co_l), lo_map),
        ],
        out_shape=[
            # bf16 inter-kernel activations: halves HBM traffic to the 3x3 stage.
            jax.ShapeDtypeStruct((n, 4, hl, wsp, co_h), jnp.bfloat16),
            jax.ShapeDtypeStruct((n, hl, wsp, co_l), jnp.bfloat16),
        ],
        compiler_params=pltpu.CompilerParams(
            dimension_semantics=("parallel", "parallel"),
            vmem_limit_bytes=_VMEM_LIMIT),
    )(xh_ph, xl, p["w_h"], p["w_l"],
      p["bn_h_scale"], p["bn_h_bias"], p["bn_l_scale"], p["bn_l_bias"])


# ----------------------------------------------------------------------------
# Kernel 2: OctaveCBR with 3x3 convs (pad=1, stride=1), both branches fused.
#
# Each low-res image (x_l, avgpool(x_h), and the 4 x_h phases) is written once
# into a *flat* zero-padded scratch: padded pixel (r, s) lives at flat row
# r*wpad + s (+7), wpad = wsp+2 rounded up to a multiple of 8.  A 3x3 tap then
# becomes a single contiguous 2-D slice of that buffer (constant flat offset),
# feeding jnp.dot directly -- no im2col, no HBM upsample/pool intermediates and
# no per-tap reshape copies.  Rows whose column index >= wsp are junk and are
# dropped when the accumulator is written back.
# ----------------------------------------------------------------------------
def _octave_cbr3_kernel(xh_ref, xl_ref, whh_ref, whl_ref, wlc_ref,
                        sh_ref, bh_ref, sl_ref, bl_ref,
                        oh_ref, ol_ref,
                        hflat_ref, lflat_ref, pflat_ref):
    _, _, hl, wsp, ch = xh_ref.shape
    cl = xl_ref.shape[3]
    co_h = oh_ref.shape[4]
    co_l = ol_ref.shape[3]
    f32 = jnp.float32
    bf16 = jnp.bfloat16

    wpad = ((wsp + 2 + 7) // 8) * 8       # padded row length (sublane multiple)
    m2 = hl * wpad                        # rows of the flat accumulators
    base0 = 7                             # shift so every scratch store is 8-aligned
    lead = base0 + wpad + 1               # zero stripe before the interior
    pf = (hl + 3) * wpad + 8              # flat rows per padded image (+ guard)

    # ---- fill the flat zero-padded f32 scratch (interior + 2 border stripes) --
    def fill(dst, base, img):
        c = img.shape[-1]
        dst[base:base + lead, :] = jnp.zeros((lead, c), dst.dtype)
        body = jnp.concatenate(
            [img, jnp.zeros((hl, wpad - wsp, c), dst.dtype)], axis=1)
        dst[base + lead:base + lead + m2, :] = body.reshape(m2, c)
        dst[base + lead + m2:base + pf, :] = jnp.zeros((pf - lead - m2, c),
                                                       dst.dtype)

    xs = [xh_ref[0, q].astype(f32) for q in range(4)]
    pooled = 0.25 * (xs[0] + xs[1] + xs[2] + xs[3])       # avgpool2(x_h)
    for q in range(4):
        fill(hflat_ref, q * pf, xs[q])
    fill(pflat_ref, 0, pooled)
    fill(lflat_ref, 0, xl_ref[0].astype(f32))

    # ---- low-res 3x3 convs: x_l -> [l2h|l2l]  and  pool(x_h) -> h2l ----------
    acc_l = jnp.zeros((m2, co_h + co_l), f32)
    acc_p = jnp.zeros((m2, co_l), f32)
    for a in range(3):
        for b in range(3):
            k = a * 3 + b
            o = base0 + a * wpad + b
            acc_l = acc_l + jnp.dot(lflat_ref[o:o + m2, :].astype(bf16),
                                    wlc_ref[k, :, :],
                                    preferred_element_type=f32)
            acc_p = acc_p + jnp.dot(pflat_ref[o:o + m2, :].astype(bf16),
                                    whl_ref[k, :, :],
                                    preferred_element_type=f32)
    ylh = acc_l[:, :co_h]                 # low -> high, shared by all 4 phases
    out_l = jnp.maximum((acc_l[:, co_h:] + acc_p) * sl_ref[...] + bl_ref[...],
                        0.0)
    ol_ref[0] = out_l.reshape(hl, wpad, co_l)[:, :wsp, :].astype(ol_ref.dtype)

    # ---- high -> high 3x3 conv, decomposed per output phase ------------------
    sh = sh_ref[...]
    bh = bh_ref[...]
    for dr in range(2):
        for dc in range(2):
            acc = ylh
            for di in range(3):
                sr = dr + di - 1
                pr, r0 = sr % 2, sr // 2 + 1
                for dj in range(3):
                    sc = dc + dj - 1
                    pc, c0 = sc % 2, sc // 2 + 1
                    o = (2 * pr + pc) * pf + base0 + r0 * wpad + c0
                    acc = acc + jnp.dot(hflat_ref[o:o + m2, :].astype(bf16),
                                        whh_ref[di * 3 + dj, :, :],
                                        preferred_element_type=f32)
            out_h = jnp.maximum(acc * sh + bh, 0.0)
            oh_ref[0, 2 * dr + dc] = (
                out_h.reshape(hl, wpad, co_h)[:, :wsp, :].astype(oh_ref.dtype))


def octave_cbr3(xh_ph, xl, p):
    n, _, hl, wsp, ch = xh_ph.shape
    cl = xl.shape[3]
    co_h = p["bn_h_scale"].shape[1]
    co_l = p["bn_l_scale"].shape[1]
    wpad = ((wsp + 2 + 7) // 8) * 8
    pf = (hl + 3) * wpad + 8

    def hi_map(ni):
        return (ni, 0, 0, 0, 0)

    def lo_map(ni):
        return (ni, 0, 0, 0)

    def w3_map(ni):
        return (0, 0, 0)

    def v_map(ni):
        return (0, 0)

    return pl.pallas_call(
        _octave_cbr3_kernel,
        grid=(n,),
        in_specs=[
            pl.BlockSpec((1, 4, hl, wsp, ch), hi_map),
            pl.BlockSpec((1, hl, wsp, cl), lo_map),
            pl.BlockSpec((9, ch, co_h), w3_map),
            pl.BlockSpec((9, ch, co_l), w3_map),
            pl.BlockSpec((9, cl, co_h + co_l), w3_map),
            pl.BlockSpec((1, co_h), v_map),
            pl.BlockSpec((1, co_h), v_map),
            pl.BlockSpec((1, co_l), v_map),
            pl.BlockSpec((1, co_l), v_map),
        ],
        out_specs=[
            pl.BlockSpec((1, 4, hl, wsp, co_h), hi_map),
            pl.BlockSpec((1, hl, wsp, co_l), lo_map),
        ],
        out_shape=[
            jax.ShapeDtypeStruct((n, 4, hl, wsp, co_h), jnp.bfloat16),
            jax.ShapeDtypeStruct((n, hl, wsp, co_l), jnp.bfloat16),
        ],
        scratch_shapes=[
            pltpu.VMEM((4 * pf, ch), jnp.float32),    # 4 x_h phases, flat-padded
            pltpu.VMEM((pf, cl), jnp.float32),        # x_l, flat-padded
            pltpu.VMEM((pf, ch), jnp.float32),        # avgpool2(x_h), flat-padded
        ],
        compiler_params=pltpu.CompilerParams(
            dimension_semantics=("parallel",),
            vmem_limit_bytes=_VMEM_LIMIT),
    )(xh_ph, xl, p["w_h2h"], p["w_h2l"], p["w_l"],
      p["bn_h_scale"], p["bn_h_bias"], p["bn_l_scale"], p["bn_l_bias"])


# ----------------------------------------------------------------------------
# Kernel 3: LastOCtaveCB (1x1 conv + BN) fused with residual add + final ReLU.
# All 4 high phases fused into one MXU call; single epilogue.
# ----------------------------------------------------------------------------
def _last_cb_kernel(xh_ref, xl_ref, res_ref, wh_ref, wl_ref, s_ref, b_ref,
                    o_ref):
    _, _, tl, wsp, ch = xh_ref.shape
    cl = xl_ref.shape[3]
    co = o_ref.shape[4]
    m = tl * wsp
    f32 = jnp.float32

    ylh = jnp.dot(xl_ref[0].reshape(m, cl), wl_ref[...],
                  preferred_element_type=f32)
    yh = jnp.dot(xh_ref[0].reshape(4 * m, ch), wh_ref[...],
                 preferred_element_type=f32)
    y = (yh.reshape(4, m, co) + ylh[None]) * s_ref[...] + b_ref[...]
    y = y + res_ref[0].reshape(4, m, co)
    o_ref[0] = jnp.maximum(y, 0.0).reshape(4, tl, wsp, co).astype(o_ref.dtype)


def last_octave_cb(xh_ph, xl, res_ph, p):
    n, _, hl, wsp, ch = xh_ph.shape
    cl = xl.shape[3]
    co = p["bn_scale"].shape[1]
    assert res_ph.shape[-1] == co  # downsample=None requires C_h(input)==planes*4
    tl = _row_tile(hl, wsp)
    grid = (n, hl // tl)

    def hi_map(ni, ti):
        return (ni, 0, ti, 0, 0)

    def lo_map(ni, ti):
        return (ni, ti, 0, 0)

    def w_map(ni, ti):
        return (0, 0)

    return pl.pallas_call(
        _last_cb_kernel,
        grid=grid,
        in_specs=[
            pl.BlockSpec((1, 4, tl, wsp, ch), hi_map),
            pl.BlockSpec((1, tl, wsp, cl), lo_map),
            pl.BlockSpec((1, 4, tl, wsp, co), hi_map),
            pl.BlockSpec((ch, co), w_map),
            pl.BlockSpec((cl, co), w_map),
            pl.BlockSpec((1, co), w_map),
            pl.BlockSpec((1, co), w_map),
        ],
        out_specs=pl.BlockSpec((1, 4, tl, wsp, co), hi_map),
        out_shape=jax.ShapeDtypeStruct((n, 4, hl, wsp, co), jnp.float32),
        compiler_params=pltpu.CompilerParams(
            dimension_semantics=("parallel", "parallel"),
            vmem_limit_bytes=_VMEM_LIMIT),
    )(xh_ph, xl, res_ph, p["w_h2h"], p["w_l2h"], p["bn_scale"], p["bn_bias"])


# ----------------------------------------------------------------------------
# Full BottleneckLast forward (stride=1, downsample=None).
# ----------------------------------------------------------------------------
def bottleneck_last_forward(x_h, x_l, params):
    xh_ph = phase_split(x_h)                 # also reused as the residual
    xh1, xl1 = octave_cbr1(xh_ph, x_l, params["ocb1"])
    xh2, xl2 = octave_cbr3(xh1, xl1, params["ocb2"])
    out_ph = last_octave_cb(xh2, xl2, xh_ph, params["ocb3"])
    return phase_merge(out_ph)


# ----------------------------------------------------------------------------
# Deterministic parameter construction (inference BN folded into scale/bias).
# ----------------------------------------------------------------------------
def make_bn(key, c, eps=1e-5):
    k1, k2, k3, k4 = jax.random.split(key, 4)
    gamma = 1.0 + 0.1 * jax.random.normal(k1, (c,))
    beta = 0.1 * jax.random.normal(k2, (c,))
    mean = 0.1 * jax.random.normal(k3, (c,))
    var = 1.0 + 0.1 * jax.random.uniform(k4, (c,))
    scale = gamma / jnp.sqrt(var + eps)
    bias = beta - mean * scale
    return (scale.reshape(1, c).astype(jnp.float32),
            bias.reshape(1, c).astype(jnp.float32))


def init_params(key, inplanes, planes, base_width=64, groups=1):
    width = int(planes * (base_width / 64.0)) * groups
    in_h, in_l = inplanes - inplanes // 2, inplanes // 2
    wd_h, wd_l = width - width // 2, width // 2
    out_c = planes * 4  # expansion = 4
    keys = jax.random.split(key, 16)

    def w1(k, cin, cout):
        return (0.1 * jax.random.normal(k, (cin, cout))).astype(jnp.float32)

    def w3(k, cin, cout):
        # row index k = 3*di + dj of the 3x3 kernel (cross-correlation, PyTorch)
        return (0.1 * jax.random.normal(k, (9, cin, cout))).astype(jnp.float32)

    bn1h, bn1l = make_bn(keys[4], wd_h), make_bn(keys[5], wd_l)
    bn2h, bn2l = make_bn(keys[10], wd_h), make_bn(keys[11], wd_l)
    bn3 = make_bn(keys[14], out_c)

    return {
        "ocb1": {
            # merged along Cout: [h2h | h2l] and [l2h | l2l]; bf16 MXU operands
            "w_h": jnp.concatenate([w1(keys[0], in_h, wd_h),
                                    w1(keys[2], in_h, wd_l)],
                                   axis=1).astype(jnp.bfloat16),
            "w_l": jnp.concatenate([w1(keys[1], in_l, wd_h),
                                    w1(keys[3], in_l, wd_l)],
                                   axis=1).astype(jnp.bfloat16),
            "bn_h_scale": bn1h[0], "bn_h_bias": bn1h[1],
            "bn_l_scale": bn1l[0], "bn_l_bias": bn1l[1],
        },
        "ocb2": {
            "w_h2h": w3(keys[6], wd_h, wd_h).astype(jnp.bfloat16),
            "w_h2l": w3(keys[8], wd_h, wd_l).astype(jnp.bfloat16),
            "w_l": jnp.concatenate([w3(keys[7], wd_l, wd_h),
                                    w3(keys[9], wd_l, wd_l)],
                                   axis=2).astype(jnp.bfloat16),
            "bn_h_scale": bn2h[0], "bn_h_bias": bn2h[1],
            "bn_l_scale": bn2l[0], "bn_l_bias": bn2l[1],
        },
        "ocb3": {
            "w_h2h": w1(keys[12], wd_h, out_c).astype(jnp.bfloat16),
            "w_l2h": w1(keys[13], wd_l, out_c).astype(jnp.bfloat16),
            "bn_scale": bn3[0], "bn_bias": bn3[1],
        },
    }


# ----------------------------------------------------------------------------
if __name__ == "__main__":
    key = jax.random.PRNGKey(0)
    kx1, kx2, kp = jax.random.split(key, 3)

    # inplanes = 8 * planes so that C_h(input) == planes*expansion and the
    # residual add is shape-compatible with downsample=None (as in the module).
    N, inplanes, planes = 2, 256, 32
    H = W = 16
    x_h = jax.random.normal(kx1, (N, H, W, inplanes - inplanes // 2), jnp.float32)
    x_l = jax.random.normal(kx2, (N, H // 2, W // 2, inplanes // 2), jnp.float32)

    params = init_params(kp, inplanes, planes)

    fwd = jax.jit(bottleneck_last_forward)
    out = jax.block_until_ready(fwd(x_h, x_l, params))

    assert out.shape == (N, H, W, planes * 4), out.shape
    assert bool(jnp.all(jnp.isfinite(out)))
    assert bool(jnp.all(out >= 0.0))  # final ReLU
    print("KERNEL_OK")
</pallas_src>

<mosaic_0001>
module attributes {stable_mosaic.version = 11 : i64} {
  func.func @_octave_cbr1_kernel(%arg0: i32, %arg1: i32, %arg2: memref<1x4x8x8x128xf32, #tpu.memory_space<vmem>>, %arg3: memref<1x8x8x128xf32, #tpu.memory_space<vmem>>, %arg4: memref<128x32xbf16, #tpu.memory_space<vmem>>, %arg5: memref<128x32xbf16, #tpu.memory_space<vmem>>, %arg6: memref<1x16xf32, #tpu.memory_space<vmem>>, %arg7: memref<1x16xf32, #tpu.memory_space<vmem>>, %arg8: memref<1x16xf32, #tpu.memory_space<vmem>>, %arg9: memref<1x16xf32, #tpu.memory_space<vmem>>, %arg10: memref<1x4x8x8x16xbf16, #tpu.memory_space<vmem>>, %arg11: memref<1x8x8x16xbf16, #tpu.memory_space<vmem>>) attributes {dimension_semantics = [#tpu.dimension_semantics<parallel>, #tpu.dimension_semantics<parallel>], iteration_bounds = array<i64: 2, 1>, scalar_prefetch = 0 : i64, scratch_operands = 0 : i64, tpu.core_type = #tpu.core_type<tc>, window_params = [{transform_indices = @transform_0, window_bounds = array<i64: 1, 4, 8, 8, 128>}, {transform_indices = @transform_1, window_bounds = array<i64: 1, 8, 8, 128>}, {pipeline_mode = #tpu.pipeline_mode<synchronous>, transform_indices = @transform_2, window_bounds = array<i64: 128, 32>}, {pipeline_mode = #tpu.pipeline_mode<synchronous>, transform_indices = @transform_3, window_bounds = array<i64: 128, 32>}, {pipeline_mode = #tpu.pipeline_mode<synchronous>, transform_indices = @transform_4, window_bounds = array<i64: 1, 16>}, {pipeline_mode = #tpu.pipeline_mode<synchronous>, transform_indices = @transform_5, window_bounds = array<i64: 1, 16>}, {pipeline_mode = #tpu.pipeline_mode<synchronous>, transform_indices = @transform_6, window_bounds = array<i64: 1, 16>}, {pipeline_mode = #tpu.pipeline_mode<synchronous>, transform_indices = @transform_7, window_bounds = array<i64: 1, 16>}, {transform_indices = @transform_8, window_bounds = array<i64: 1, 4, 8, 8, 16>}, {transform_indices = @transform_9, window_bounds = array<i64: 1, 8, 8, 16>}]} {
    %c0 = arith.constant 0 : index
    %c0_0 = arith.constant 0 : index
    %c0_1 = arith.constant 0 : index
    %c0_2 = arith.constant 0 : index
    %0 = vector.load %arg3[%c0, %c0_0, %c0_1, %c0_2] : memref<1x8x8x128xf32, #tpu.memory_space<vmem>>, vector<1x8x8x128xf32>
    %1 = vector.shape_cast %0 : vector<1x8x8x128xf32> to vector<8x8x128xf32>
    %2 = vector.shape_cast %1 : vector<8x8x128xf32> to vector<64x128xf32>
    %3 = arith.truncf %2 : vector<64x128xf32> to vector<64x128xbf16>
    %c0_3 = arith.constant 0 : index
    %c0_4 = arith.constant 0 : index
    %4 = vector.load %arg5[%c0_3, %c0_4] : memref<128x32xbf16, #tpu.memory_space<vmem>>, vector<128x32xbf16>
    %cst = arith.constant dense<0.000000e+00> : vector<64x32xf32>
    %5 = tpu.matmul %3, %4, %cst {dimension_numbers = #tpu.dot_dimension_numbers<[1], [0], [0], [1], [0, 0, 1, 1], [], []>} : vector<64x128xbf16>, vector<128x32xbf16>, vector<64x32xf32> -> vector<64x32xf32>
    %c0_5 = arith.constant 0 : index
    %c0_6 = arith.constant 0 : index
    %c0_7 = arith.constant 0 : index
    %c0_8 = arith.constant 0 : index
    %c0_9 = arith.constant 0 : index
    %6 = vector.load %arg2[%c0_5, %c0_6, %c0_7, %c0_8, %c0_9] : memref<1x4x8x8x128xf32, #tpu.memory_space<vmem>>, vector<1x4x8x8x128xf32>
    %7 = vector.shape_cast %6 : vector<1x4x8x8x128xf32> to vector<4x8x8x128xf32>
    %8 = vector.shape_cast %7 : vector<4x8x8x128xf32> to vector<256x128xf32>
    %9 = arith.truncf %8 : vector<256x128xf32> to vector<256x128xbf16>
    %c0_10 = arith.constant 0 : index
    %c0_11 = arith.constant 0 : index
    %10 = vector.load %arg4[%c0_10, %c0_11] : memref<128x32xbf16, #tpu.memory_space<vmem>>, vector<128x32xbf16>
    %cst_12 = arith.constant dense<0.000000e+00> : vector<256x32xf32>
    %11 = tpu.matmul %9, %10, %cst_12 {dimension_numbers = #tpu.dot_dimension_numbers<[1], [0], [0], [1], [0, 0, 1, 1], [], []>} : vector<256x128xbf16>, vector<128x32xbf16>, vector<256x32xf32> -> vector<256x32xf32>
    %12 = vector.extract_strided_slice %11 {offsets = [0, 0], sizes = [256, 16], strides = [1, 1]} : vector<256x32xf32> to vector<256x16xf32>
    %13 = vector.shape_cast %12 : vector<256x16xf32> to vector<4x64x16xf32>
    %14 = vector.extract_strided_slice %11 {offsets = [0, 16], sizes = [256, 16], strides = [1, 1]} : vector<256x32xf32> to vector<256x16xf32>
    %15 = vector.shape_cast %14 : vector<256x16xf32> to vector<4x64x16xf32>
    %16 = vector.extract_strided_slice %5 {offsets = [0, 0], sizes = [64, 16], strides = [1, 1]} : vector<64x32xf32> to vector<64x16xf32>
    %17 = vector.shape_cast %16 : vector<64x16xf32> to vector<1x64x16xf32>
    %18 = vector.broadcast %17 : vector<1x64x16xf32> to vector<4x64x16xf32>
    %19 = arith.addf %13, %18 : vector<4x64x16xf32>
    %c0_13 = arith.constant 0 : index
    %c0_14 = arith.constant 0 : index
    %20 = vector.load %arg6[%c0_13, %c0_14] : memref<1x16xf32, #tpu.memory_space<vmem>>, vector<1x16xf32>
    %21 = vector.shape_cast %20 : vector<1x16xf32> to vector<1x1x16xf32>
    %22 = vector.broadcast %21 : vector<1x1x16xf32> to vector<4x64x16xf32>
    %23 = arith.mulf %19, %22 : vector<4x64x16xf32>
    %c0_15 = arith.constant 0 : index
    %c0_16 = arith.constant 0 : index
    %24 = vector.load %arg7[%c0_15, %c0_16] : memref<1x16xf32, #tpu.memory_space<vmem>>, vector<1x16xf32>
    %25 = vector.shape_cast %24 : vector<1x16xf32> to vector<1x1x16xf32>
    %26 = vector.broadcast %25 : vector<1x1x16xf32> to vector<4x64x16xf32>
    %27 = arith.addf %23, %26 : vector<4x64x16xf32>
    %cst_17 = arith.constant 0.000000e+00 : f32
    %28 = vector.broadcast %cst_17 : f32 to vector<4x64x16xf32>
    %29 = arith.maximumf %27, %28 : vector<4x64x16xf32>
    %30 = vector.shape_cast %29 : vector<4x64x16xf32> to vector<4x8x8x16xf32>
    %31 = arith.truncf %30 : vector<4x8x8x16xf32> to vector<4x8x8x16xbf16>
    %c0_18 = arith.constant 0 : index
    %c0_19 = arith.constant 0 : index
    %c0_20 = arith.constant 0 : index
    %c0_21 = arith.constant 0 : index
    %c0_22 = arith.constant 0 : index
    %32 = vector.load %arg10[%c0_18, %c0_19, %c0_20, %c0_21, %c0_22] : memref<1x4x8x8x16xbf16, #tpu.memory_space<vmem>>, vector<1x4x8x8x16xbf16>
    %33 = vector.shape_cast %32 : vector<1x4x8x8x16xbf16> to vector<4x8x8x16xbf16>
    %34 = vector.shape_cast %31 : vector<4x8x8x16xbf16> to vector<1x4x8x8x16xbf16>
    tpu.vector_store %arg10[%c0_18, %c0_19, %c0_20, %c0_21, %c0_22], %34 {strides = array<i32>} : memref<1x4x8x8x16xbf16, #tpu.memory_space<vmem>>, vector<1x4x8x8x16xbf16>,
    %35 = vector.extract_strided_slice %5 {offsets = [0, 16], sizes = [64, 16], strides = [1, 1]} : vector<64x32xf32> to vector<64x16xf32>
    %36 = vector.extract_strided_slice %15 {offsets = [0, 0, 0], sizes = [1, 64, 16], strides = [1, 1, 1]} : vector<4x64x16xf32> to vector<1x64x16xf32>
    %37 = vector.shape_cast %36 : vector<1x64x16xf32> to vector<64x16xf32>
    %38 = vector.extract_strided_slice %15 {offsets = [1, 0, 0], sizes = [1, 64, 16], strides = [1, 1, 1]} : vector<4x64x16xf32> to vector<1x64x16xf32>
    %39 = vector.shape_cast %38 : vector<1x64x16xf32> to vector<64x16xf32>
    %40 = arith.addf %37, %39 : vector<64x16xf32>
    %41 = vector.extract_strided_slice %15 {offsets = [2, 0, 0], sizes = [1, 64, 16], strides = [1, 1, 1]} : vector<4x64x16xf32> to vector<1x64x16xf32>
    %42 = vector.shape_cast %41 : vector<1x64x16xf32> to vector<64x16xf32>
    %43 = arith.addf %40, %42 : vector<64x16xf32>
    %44 = vector.extract_strided_slice %15 {offsets = [3, 0, 0], sizes = [1, 64, 16], strides = [1, 1, 1]} : vector<4x64x16xf32> to vector<1x64x16xf32>
    %45 = vector.shape_cast %44 : vector<1x64x16xf32> to vector<64x16xf32>
    %46 = arith.addf %43, %45 : vector<64x16xf32>
    %cst_23 = arith.constant 2.500000e-01 : f32
    %47 = vector.broadcast %cst_23 : f32 to vector<64x16xf32>
    %48 = arith.mulf %47, %46 : vector<64x16xf32>
    %49 = arith.addf %35, %48 : vector<64x16xf32>
    %c0_24 = arith.constant 0 : index
    %c0_25 = arith.constant 0 : index
    %50 = vector.load %arg8[%c0_24, %c0_25] : memref<1x16xf32, #tpu.memory_space<vmem>>, vector<1x16xf32>
    %51 = vector.broadcast %50 : vector<1x16xf32> to vector<64x16xf32>
    %52 = arith.mulf %49, %51 : vector<64x16xf32>
    %c0_26 = arith.constant 0 : index
    %c0_27 = arith.constant 0 : index
    %53 = vector.load %arg9[%c0_26, %c0_27] : memref<1x16xf32, #tpu.memory_space<vmem>>, vector<1x16xf32>
    %54 = vector.broadcast %53 : vector<1x16xf32> to vector<64x16xf32>
    %55 = arith.addf %52, %54 : vector<64x16xf32>
    %cst_28 = arith.constant 0.000000e+00 : f32
    %56 = vector.broadcast %cst_28 : f32 to vector<64x16xf32>
    %57 = arith.maximumf %55, %56 : vector<64x16xf32>
    %58 = vector.shape_cast %57 : vector<64x16xf32> to vector<8x8x16xf32>
    %59 = arith.truncf %58 : vector<8x8x16xf32> to vector<8x8x16xbf16>
    %c0_29 = arith.constant 0 : index
    %c0_30 = arith.constant 0 : index
    %c0_31 = arith.constant 0 : index
    %c0_32 = arith.constant 0 : index
    %60 = vector.load %arg11[%c0_29, %c0_30, %c0_31, %c0_32] : memref<1x8x8x16xbf16, #tpu.memory_space<vmem>>, vector<1x8x8x16xbf16>
    %61 = vector.shape_cast %60 : vector<1x8x8x16xbf16> to vector<8x8x16xbf16>
    %62 = vector.shape_cast %59 : vector<8x8x16xbf16> to vector<1x8x8x16xbf16>
    tpu.vector_store %arg11[%c0_29, %c0_30, %c0_31, %c0_32], %62 {strides = array<i32>} : memref<1x8x8x16xbf16, #tpu.memory_space<vmem>>, vector<1x8x8x16xbf16>,
    return
  }
  func.func @transform_0(%arg0: i32, %arg1: i32) -> (i32, i32, i32, i32, i32) {
    %c0_i32 = arith.constant 0 : i32
    %c0_i32_0 = arith.constant 0 : i32
    %c0_i32_1 = arith.constant 0 : i32
    %c0_i32_2 = arith.constant 0 : i32
    return %arg0, %c0_i32, %arg1, %c0_i32_0, %c0_i32_1 : i32, i32, i32, i32, i32
  }
  func.func @transform_1(%arg0: i32, %arg1: i32) -> (i32, i32, i32, i32) {
    %c0_i32 = arith.constant 0 : i32
    %c0_i32_0 = arith.constant 0 : i32
    %c0_i32_1 = arith.constant 0 : i32
    return %arg0, %arg1, %c0_i32, %c0_i32_0 : i32, i32, i32, i32
  }
  func.func @transform_2(%arg0: i32, %arg1: i32) -> (i32, i32) {
    %c0_i32 = arith.constant 0 : i32
    %c0_i32_0 = arith.constant 0 : i32
    %c0_i32_1 = arith.constant 0 : i32
    return %c0_i32, %c0_i32_0 : i32, i32
  }
  func.func @transform_3(%arg0: i32, %arg1: i32) -> (i32, i32) {
    %c0_i32 = arith.constant 0 : i32
    %c0_i32_0 = arith.constant 0 : i32
    %c0_i32_1 = arith.constant 0 : i32
    return %c0_i32, %c0_i32_0 : i32, i32
  }
  func.func @transform_4(%arg0: i32, %arg1: i32) -> (i32, i32) {
    %c0_i32 = arith.constant 0 : i32
    %c0_i32_0 = arith.constant 0 : i32
    %c0_i32_1 = arith.constant 0 : i32
    return %c0_i32, %c0_i32_0 : i32, i32
  }
  func.func @transform_5(%arg0: i32, %arg1: i32) -> (i32, i32) {
    %c0_i32 = arith.constant 0 : i32
    %c0_i32_0 = arith.constant 0 : i32
    %c0_i32_1 = arith.constant 0 : i32
    return %c0_i32, %c0_i32_0 : i32, i32
  }
  func.func @transform_6(%arg0: i32, %arg1: i32) -> (i32, i32) {
    %c0_i32 = arith.constant 0 : i32
    %c0_i32_0 = arith.constant 0 : i32
    %c0_i32_1 = arith.constant 0 : i32
    return %c0_i32, %c0_i32_0 : i32, i32
  }
  func.func @transform_7(%arg0: i32, %arg1: i32) -> (i32, i32) {
    %c0_i32 = arith.constant 0 : i32
    %c0_i32_0 = arith.constant 0 : i32
    %c0_i32_1 = arith.constant 0 : i32
    return %c0_i32, %c0_i32_0 : i32, i32
  }
  func.func @transform_8(%arg0: i32, %arg1: i32) -> (i32, i32, i32, i32, i32) {
    %c0_i32 = arith.constant 0 : i32
    %c0_i32_0 = arith.constant 0 : i32
    %c0_i32_1 = arith.constant 0 : i32
    %c0_i32_2 = arith.constant 0 : i32
    return %arg0, %c0_i32, %arg1, %c0_i32_0, %c0_i32_1 : i32, i32, i32, i32, i32
  }
  func.func @transform_9(%arg0: i32, %arg1: i32) -> (i32, i32, i32, i32) {
    %c0_i32 = arith.constant 0 : i32
    %c0_i32_0 = arith.constant 0 : i32
    %c0_i32_1 = arith.constant 0 : i32
    return %arg0, %arg1, %c0_i32, %c0_i32_0 : i32, i32, i32, i32
  }
}

module attributes {stable_mosaic.version = 11 : i64} {
  func.func @_octave_cbr3_kernel(%arg0: i32, %arg1: memref<1x4x8x8x16xbf16, #tpu.memory_space<vmem>>, %arg2: memref<1x8x8x16xbf16, #tpu.memory_space<vmem>>, %arg3: memref<9x16x16xbf16, #tpu.memory_space<vmem>>, %arg4: memref<9x16x16xbf16, #tpu.memory_space<vmem>>, %arg5: memref<9x16x32xbf16, #tpu.memory_space<vmem>>, %arg6: memref<1x16xf32, #tpu.memory_space<vmem>>, %arg7: memref<1x16xf32, #tpu.memory_space<vmem>>, %arg8: memref<1x16xf32, #tpu.memory_space<vmem>>, %arg9: memref<1x16xf32, #tpu.memory_space<vmem>>, %arg10: memref<1x4x8x8x16xbf16, #tpu.memory_space<vmem>>, %arg11: memref<1x8x8x16xbf16, #tpu.memory_space<vmem>>, %arg12: memref<736x16xf32, #tpu.memory_space<vmem>>, %arg13: memref<184x16xf32, #tpu.memory_space<vmem>>, %arg14: memref<184x16xf32, #tpu.memory_space<vmem>>) attributes {dimension_semantics = [#tpu.dimension_semantics<parallel>], iteration_bounds = array<i64: 2>, scalar_prefetch = 0 : i64, scratch_operands = 3 : i64, tpu.core_type = #tpu.core_type<tc>, window_params = [{transform_indices = @transform_0, window_bounds = array<i64: 1, 4, 8, 8, 16>}, {transform_indices = @transform_1, window_bounds = array<i64: 1, 8, 8, 16>}, {pipeline_mode = #tpu.pipeline_mode<synchronous>, transform_indices = @transform_2, window_bounds = array<i64: 9, 16, 16>}, {pipeline_mode = #tpu.pipeline_mode<synchronous>, transform_indices = @transform_3, window_bounds = array<i64: 9, 16, 16>}, {pipeline_mode = #tpu.pipeline_mode<synchronous>, transform_indices = @transform_4, window_bounds = array<i64: 9, 16, 32>}, {pipeline_mode = #tpu.pipeline_mode<synchronous>, transform_indices = @transform_5, window_bounds = array<i64: 1, 16>}, {pipeline_mode = #tpu.pipeline_mode<synchronous>, transform_indices = @transform_6, window_bounds = array<i64: 1, 16>}, {pipeline_mode = #tpu.pipeline_mode<synchronous>, transform_indices = @transform_7, window_bounds = array<i64: 1, 16>}, {pipeline_mode = #tpu.pipeline_mode<synchronous>, transform_indices = @transform_8, window_bounds = array<i64: 1, 16>}, {transform_indices = @transform_9, window_bounds = array<i64: 1, 4, 8, 8, 16>}, {transform_indices = @transform_10, window_bounds = array<i64: 1, 8, 8, 16>}]} {
    %c0 = arith.constant 0 : index
    %c0_0 = arith.constant 0 : index
    %c0_1 = arith.constant 0 : index
    %c0_2 = arith.constant 0 : index
    %c0_3 = arith.constant 0 : index
    %0 = vector.load %arg1[%c0, %c0_0, %c0_1, %c0_2, %c0_3] : memref<1x4x8x8x16xbf16, #tpu.memory_space<vmem>>, vector<1x1x8x8x16xbf16>
    %1 = vector.shape_cast %0 : vector<1x1x8x8x16xbf16> to vector<8x8x16xbf16>
    %2 = arith.extf %1 : vector<8x8x16xbf16> to vector<8x8x16xf32>
    %c0_4 = arith.constant 0 : index
    %c1 = arith.constant 1 : index
    %c0_5 = arith.constant 0 : index
    %c0_6 = arith.constant 0 : index
    %c0_7 = arith.constant 0 : index
    %3 = vector.load %arg1[%c0_4, %c1, %c0_5, %c0_6, %c0_7] : memref<1x4x8x8x16xbf16, #tpu.memory_space<vmem>>, vector<1x1x8x8x16xbf16>
    %4 = vector.shape_cast %3 : vector<1x1x8x8x16xbf16> to vector<8x8x16xbf16>
    %5 = arith.extf %4 : vector<8x8x16xbf16> to vector<8x8x16xf32>
    %c0_8 = arith.constant 0 : index
    %c2 = arith.constant 2 : index
    %c0_9 = arith.constant 0 : index
    %c0_10 = arith.constant 0 : index
    %c0_11 = arith.constant 0 : index
    %6 = vector.load %arg1[%c0_8, %c2, %c0_9, %c0_10, %c0_11] : memref<1x4x8x8x16xbf16, #tpu.memory_space<vmem>>, vector<1x1x8x8x16xbf16>
    %7 = vector.shape_cast %6 : vector<1x1x8x8x16xbf16> to vector<8x8x16xbf16>
    %8 = arith.extf %7 : vector<8x8x16xbf16> to vector<8x8x16xf32>
    %c0_12 = arith.constant 0 : index
    %c3 = arith.constant 3 : index
    %c0_13 = arith.constant 0 : index
    %c0_14 = arith.constant 0 : index
    %c0_15 = arith.constant 0 : index
    %9 = vector.load %arg1[%c0_12, %c3, %c0_13, %c0_14, %c0_15] : memref<1x4x8x8x16xbf16, #tpu.memory_space<vmem>>, vector<1x1x8x8x16xbf16>
    %10 = vector.shape_cast %9 : vector<1x1x8x8x16xbf16> to vector<8x8x16xbf16>
    %11 = arith.extf %10 : vector<8x8x16xbf16> to vector<8x8x16xf32>
    %12 = arith.addf %2, %5 : vector<8x8x16xf32>
    %13 = arith.addf %12, %8 : vector<8x8x16xf32>
    %14 = arith.addf %13, %11 : vector<8x8x16xf32>
    %cst = arith.constant 2.500000e-01 : f32
    %15 = vector.broadcast %cst : f32 to vector<8x8x16xf32>
    %16 = arith.mulf %15, %14 : vector<8x8x16xf32>
    %cst_16 = arith.constant 0.000000e+00 : f32
    %17 = vector.broadcast %cst_16 : f32 to vector<24x16xf32>
    %c0_17 = arith.constant 0 : index
    %c0_18 = arith.constant 0 : index
    %18 = vector.load %arg12[%c0_17, %c0_18] : memref<736x16xf32, #tpu.memory_space<vmem>>, vector<24x16xf32>
    tpu.vector_store %arg12[%c0_17, %c0_18], %17 {strides = array<i32>} : memref<736x16xf32, #tpu.memory_space<vmem>>, vector<24x16xf32>,
    %cst_19 = arith.constant 0.000000e+00 : f32
    %19 = vector.broadcast %cst_19 : f32 to vector<8x8x16xf32>
    %20 = tpu.concatenate %2, %19 in 1 : vector<8x8x16xf32>, vector<8x8x16xf32> -> vector<8x16x16xf32>
    %21 = vector.shape_cast %20 : vector<8x16x16xf32> to vector<128x16xf32>
    %c24 = arith.constant 24 : index
    %c0_20 = arith.constant 0 : index
    %22 = vector.load %arg12[%c24, %c0_20] : memref<736x16xf32, #tpu.memory_space<vmem>>, vector<128x16xf32>
    tpu.vector_store %arg12[%c24, %c0_20], %21 {strides = array<i32>} : memref<736x16xf32, #tpu.memory_space<vmem>>, vector<128x16xf32>,
    %cst_21 = arith.constant 0.000000e+00 : f32
    %23 = vector.broadcast %cst_21 : f32 to vector<32x16xf32>
    %c152 = arith.constant 152 : index
    %c0_22 = arith.constant 0 : index
    %24 = vector.load %arg12[%c152, %c0_22] : memref<736x16xf32, #tpu.memory_space<vmem>>, vector<32x16xf32>
    tpu.vector_store %arg12[%c152, %c0_22], %23 {strides = array<i32>} : memref<736x16xf32, #tpu.memory_space<vmem>>, vector<32x16xf32>,
    %cst_23 = arith.constant 0.000000e+00 : f32
    %25 = vector.broadcast %cst_23 : f32 to vector<24x16xf32>
    %c184 = arith.constant 184 : index
    %c0_24 = arith.constant 0 : index
    %26 = vector.load %arg12[%c184, %c0_24] : memref<736x16xf32, #tpu.memory_space<vmem>>, vector<24x16xf32>
    tpu.vector_store %arg12[%c184, %c0_24], %25 {strides = array<i32>} : memref<736x16xf32, #tpu.memory_space<vmem>>, vector<24x16xf32>,
    %cst_25 = arith.constant 0.000000e+00 : f32
    %27 = vector.broadcast %cst_25 : f32 to vector<8x8x16xf32>
    %28 = tpu.concatenate %5, %27 in 1 : vector<8x8x16xf32>, vector<8x8x16xf32> -> vector<8x16x16xf32>
    %29 = vector.shape_cast %28 : vector<8x16x16xf32> to vector<128x16xf32>
    %c208 = arith.constant 208 : index
    %c0_26 = arith.constant 0 : index
    %30 = vector.load %arg12[%c208, %c0_26] : memref<736x16xf32, #tpu.memory_space<vmem>>, vector<128x16xf32>
    tpu.vector_store %arg12[%c208, %c0_26], %29 {strides = array<i32>} : memref<736x16xf32, #tpu.memory_space<vmem>>, vector<128x16xf32>,
    %cst_27 = arith.constant 0.000000e+00 : f32
    %31 = vector.broadcast %cst_27 : f32 to vector<32x16xf32>
    %c336 = arith.constant 336 : index
    %c0_28 = arith.constant 0 : index
    %32 = vector.load %arg12[%c336, %c0_28] : memref<736x16xf32, #tpu.memory_space<vmem>>, vector<32x16xf32>
    tpu.vector_store %arg12[%c336, %c0_28], %31 {strides = array<i32>} : memref<736x16xf32, #tpu.memory_space<vmem>>, vector<32x16xf32>,
    %cst_29 = arith.constant 0.000000e+00 : f32
    %33 = vector.broadcast %cst_29 : f32 to vector<24x16xf32>
    %c368 = arith.constant 368 : index
    %c0_30 = arith.constant 0 : index
    %34 = vector.load %arg12[%c368, %c0_30] : memref<736x16xf32, #tpu.memory_space<vmem>>, vector<24x16xf32>
    tpu.vector_store %arg12[%c368, %c0_30], %33 {strides = array<i32>} : memref<736x16xf32, #tpu.memory_space<vmem>>, vector<24x16xf32>,
    %cst_31 = arith.constant 0.000000e+00 : f32
    %35 = vector.broadcast %cst_31 : f32 to vector<8x8x16xf32>
    %36 = tpu.concatenate %8, %35 in 1 : vector<8x8x16xf32>, vector<8x8x16xf32> -> vector<8x16x16xf32>
    %37 = vector.shape_cast %36 : vector<8x16x16xf32> to vector<128x16xf32>
    %c392 = arith.constant 392 : index
    %c0_32 = arith.constant 0 : index
    %38 = vector.load %arg12[%c392, %c0_32] : memref<736x16xf32, #tpu.memory_space<vmem>>, vector<128x16xf32>
    tpu.vector_store %arg12[%c392, %c0_32], %37 {strides = array<i32>} : memref<736x16xf32, #tpu.memory_space<vmem>>, vector<128x16xf32>,
    %cst_33 = arith.constant 0.000000e+00 : f32
    %39 = vector.broadcast %cst_33 : f32 to vector<32x16xf32>
    %c520 = arith.constant 520 : index
    %c0_34 = arith.constant 0 : index
    %40 = vector.load %arg12[%c520, %c0_34] : memref<736x16xf32, #tpu.memory_space<vmem>>, vector<32x16xf32>
    tpu.vector_store %arg12[%c520, %c0_34], %39 {strides = array<i32>} : memref<736x16xf32, #tpu.memory_space<vmem>>, vector<32x16xf32>,
    %cst_35 = arith.constant 0.000000e+00 : f32
    %41 = vector.broadcast %cst_35 : f32 to vector<24x16xf32>
    %c552 = arith.constant 552 : index
    %c0_36 = arith.constant 0 : index
    %42 = vector.load %arg12[%c552, %c0_36] : memref<736x16xf32, #tpu.memory_space<vmem>>, vector<24x16xf32>
    tpu.vector_store %arg12[%c552, %c0_36], %41 {strides = array<i32>} : memref<736x16xf32, #tpu.memory_space<vmem>>, vector<24x16xf32>,
    %cst_37 = arith.constant 0.000000e+00 : f32
    %43 = vector.broadcast %cst_37 : f32 to vector<8x8x16xf32>
    %44 = tpu.concatenate %11, %43 in 1 : vector<8x8x16xf32>, vector<8x8x16xf32> -> vector<8x16x16xf32>
    %45 = vector.shape_cast %44 : vector<8x16x16xf32> to vector<128x16xf32>
    %c576 = arith.constant 576 : index
    %c0_38 = arith.constant 0 : index
    %46 = vector.load %arg12[%c576, %c0_38] : memref<736x16xf32, #tpu.memory_space<vmem>>, vector<128x16xf32>
    tpu.vector_store %arg12[%c576, %c0_38], %45 {strides = array<i32>} : memref<736x16xf32, #tpu.memory_space<vmem>>, vector<128x16xf32>,
    %cst_39 = arith.constant 0.000000e+00 : f32
    %47 = vector.broadcast %cst_39 : f32 to vector<32x16xf32>
    %c704 = arith.constant 704 : index
    %c0_40 = arith.constant 0 : index
    %48 = vector.load %arg12[%c704, %c0_40] : memref<736x16xf32, #tpu.memory_space<vmem>>, vector<32x16xf32>
    tpu.vector_store %arg12[%c704, %c0_40], %47 {strides = array<i32>} : memref<736x16xf32, #tpu.memory_space<vmem>>, vector<32x16xf32>,
    %cst_41 = arith.constant 0.000000e+00 : f32
    %49 = vector.broadcast %cst_41 : f32 to vector<24x16xf32>
    %c0_42 = arith.constant 0 : index
    %c0_43 = arith.constant 0 : index
    %50 = vector.load %arg14[%c0_42, %c0_43] : memref<184x16xf32, #tpu.memory_space<vmem>>, vector<24x16xf32>
    tpu.vector_store %arg14[%c0_42, %c0_43], %49 {strides = array<i32>} : memref<184x16xf32, #tpu.memory_space<vmem>>, vector<24x16xf32>,
    %cst_44 = arith.constant 0.000000e+00 : f32
    %51 = vector.broadcast %cst_44 : f32 to vector<8x8x16xf32>
    %52 = tpu.concatenate %16, %51 in 1 : vector<8x8x16xf32>, vector<8x8x16xf32> -> vector<8x16x16xf32>
    %53 = vector.shape_cast %52 : vector<8x16x16xf32> to vector<128x16xf32>
    %c24_45 = arith.constant 24 : index
    %c0_46 = arith.constant 0 : index
    %54 = vector.load %arg14[%c24_45, %c0_46] : memref<184x16xf32, #tpu.memory_space<vmem>>, vector<128x16xf32>
    tpu.vector_store %arg14[%c24_45, %c0_46], %53 {strides = array<i32>} : memref<184x16xf32, #tpu.memory_space<vmem>>, vector<128x16xf32>,
    %cst_47 = arith.constant 0.000000e+00 : f32
    %55 = vector.broadcast %cst_47 : f32 to vector<32x16xf32>
    %c152_48 = arith.constant 152 : index
    %c0_49 = arith.constant 0 : index
    %56 = vector.load %arg14[%c152_48, %c0_49] : memref<184x16xf32, #tpu.memory_space<vmem>>, vector<32x16xf32>
    tpu.vector_store %arg14[%c152_48, %c0_49], %55 {strides = array<i32>} : memref<184x16xf32, #tpu.memory_space<vmem>>, vector<32x16xf32>,
    %c0_50 = arith.constant 0 : index
    %c0_51 = arith.constant 0 : index
    %c0_52 = arith.constant 0 : index
    %c0_53 = arith.constant 0 : index
    %57 = vector.load %arg2[%c0_50, %c0_51, %c0_52, %c0_53] : memref<1x8x8x16xbf16, #tpu.memory_space<vmem>>, vector<1x8x8x16xbf16>
    %58 = vector.shape_cast %57 : vector<1x8x8x16xbf16> to vector<8x8x16xbf16>
    %59 = arith.extf %58 : vector<8x8x16xbf16> to vector<8x8x16xf32>
    %cst_54 = arith.constant 0.000000e+00 : f32
    %60 = vector.broadcast %cst_54 : f32 to vector<24x16xf32>
    %c0_55 = arith.constant 0 : index
    %c0_56 = arith.constant 0 : index
    %61 = vector.load %arg13[%c0_55, %c0_56] : memref<184x16xf32, #tpu.memory_space<vmem>>, vector<24x16xf32>
    tpu.vector_store %arg13[%c0_55, %c0_56], %60 {strides = array<i32>} : memref<184x16xf32, #tpu.memory_space<vmem>>, vector<24x16xf32>,
    %cst_57 = arith.constant 0.000000e+00 : f32
    %62 = vector.broadcast %cst_57 : f32 to vector<8x8x16xf32>
    %63 = tpu.concatenate %59, %62 in 1 : vector<8x8x16xf32>, vector<8x8x16xf32> -> vector<8x16x16xf32>
    %64 = vector.shape_cast %63 : vector<8x16x16xf32> to vector<128x16xf32>
    %c24_58 = arith.constant 24 : index
    %c0_59 = arith.constant 0 : index
    %65 = vector.load %arg13[%c24_58, %c0_59] : memref<184x16xf32, #tpu.memory_space<vmem>>, vector<128x16xf32>
    tpu.vector_store %arg13[%c24_58, %c0_59], %64 {strides = array<i32>} : memref<184x16xf32, #tpu.memory_space<vmem>>, vector<128x16xf32>,
    %cst_60 = arith.constant 0.000000e+00 : f32
    %66 = vector.broadcast %cst_60 : f32 to vector<32x16xf32>
    %c152_61 = arith.constant 152 : index
    %c0_62 = arith.constant 0 : index
    %67 = vector.load %arg13[%c152_61, %c0_62] : memref<184x16xf32, #tpu.memory_space<vmem>>, vector<32x16xf32>
    tpu.vector_store %arg13[%c152_61, %c0_62], %66 {strides = array<i32>} : memref<184x16xf32, #tpu.memory_space<vmem>>, vector<32x16xf32>,
    %cst_63 = arith.constant 0.000000e+00 : f32
    %68 = vector.broadcast %cst_63 : f32 to vector<128x32xf32>
    %cst_64 = arith.constant 0.000000e+00 : f32
    %69 = vector.broadcast %cst_64 : f32 to vector<128x16xf32>
    %c7 = arith.constant 7 : index
    %c0_65 = arith.constant 0 : index
    %70 = vector.load %arg13[%c7, %c0_65] : memref<184x16xf32, #tpu.memory_space<vmem>>, vector<128x16xf32>
    %71 = arith.truncf %70 : vector<128x16xf32> to vector<128x16xbf16>
    %c0_66 = arith.constant 0 : index
    %c0_67 = arith.constant 0 : index
    %c0_68 = arith.constant 0 : index
    %72 = vector.load %arg5[%c0_66, %c0_67, %c0_68] : memref<9x16x32xbf16, #tpu.memory_space<vmem>>, vector<1x16x32xbf16>
    %73 = vector.shape_cast %72 : vector<1x16x32xbf16> to vector<16x32xbf16>
    %cst_69 = arith.constant dense<0.000000e+00> : vector<128x32xf32>
    %74 = tpu.matmul %71, %73, %cst_69 {dimension_numbers = #tpu.dot_dimension_numbers<[1], [0], [0], [1], [0, 0, 1, 1], [], []>} : vector<128x16xbf16>, vector<16x32xbf16>, vector<128x32xf32> -> vector<128x32xf32>
    %75 = arith.addf %68, %74 : vector<128x32xf32>
    %c7_70 = arith.constant 7 : index
    %c0_71 = arith.constant 0 : index
    %76 = vector.load %arg14[%c7_70, %c0_71] : memref<184x16xf32, #tpu.memory_space<vmem>>, vector<128x16xf32>
    %77 = arith.truncf %76 : vector<128x16xf32> to vector<128x16xbf16>
    %c0_72 = arith.constant 0 : index
    %c0_73 = arith.constant 0 : index
    %c0_74 = arith.constant 0 : index
    %78 = vector.load %arg4[%c0_72, %c0_73, %c0_74] : memref<9x16x16xbf16, #tpu.memory_space<vmem>>, vector<1x16x16xbf16>
    %79 = vector.shape_cast %78 : vector<1x16x16xbf16> to vector<16x16xbf16>
    %cst_75 = arith.constant dense<0.000000e+00> : vector<128x16xf32>
    %80 = tpu.matmul %77, %79, %cst_75 {dimension_numbers = #tpu.dot_dimension_numbers<[1], [0], [0], [1], [0, 0, 1, 1], [], []>} : vector<128x16xbf16>, vector<16x16xbf16>, vector<128x16xf32> -> vector<128x16xf32>
    %81 = arith.addf %69, %80 : vector<128x16xf32>
    %c8 = arith.constant 8 : index
    %c0_76 = arith.constant 0 : index
    %82 = vector.load %arg13[%c8, %c0_76] : memref<184x16xf32, #tpu.memory_space<vmem>>, vector<128x16xf32>
    %83 = arith.truncf %82 : vector<128x16xf32> to vector<128x16xbf16>
    %c1_77 = arith.constant 1 : index
    %c0_78 = arith.constant 0 : index
    %c0_79 = arith.constant 0 : index
    %84 = vector.load %arg5[%c1_77, %c0_78, %c0_79] : memref<9x16x32xbf16, #tpu.memory_space<vmem>>, vector<1x16x32xbf16>
    %85 = vector.shape_cast %84 : vector<1x16x32xbf16> to vector<16x32xbf16>
    %cst_80 = arith.constant dense<0.000000e+00> : vector<128x32xf32>
    %86 = tpu.matmul %83, %85, %cst_80 {dimension_numbers = #tpu.dot_dimension_numbers<[1], [0], [0], [1], [0, 0, 1, 1], [], []>} : vector<128x16xbf16>, vector<16x32xbf16>, vector<128x32xf32> -> vector<128x32xf32>
    %87 = arith.addf %75, %86 : vector<128x32xf32>
    %c8_81 = arith.constant 8 : index
    %c0_82 = arith.constant 0 : index
    %88 = vector.load %arg14[%c8_81, %c0_82] : memref<184x16xf32, #tpu.memory_space<vmem>>, vector<128x16xf32>
    %89 = arith.truncf %88 : vector<128x16xf32> to vector<128x16xbf16>
    %c1_83 = arith.constant 1 : index
    %c0_84 = arith.constant 0 : index
    %c0_85 = arith.constant 0 : index
    %90 = vector.load %arg4[%c1_83, %c0_84, %c0_85] : memref<9x16x16xbf16, #tpu.memory_space<vmem>>, vector<1x16x16xbf16>
    %91 = vector.shape_cast %90 : vector<1x16x16xbf16> to vector<16x16xbf16>
    %cst_86 = arith.constant dense<0.000000e+00> : vector<128x16xf32>
    %92 = tpu.matmul %89, %91, %cst_86 {dimension_numbers = #tpu.dot_dimension_numbers<[1], [0], [0], [1], [0, 0, 1, 1], [], []>} : vector<128x16xbf16>, vector<16x16xbf16>, vector<128x16xf32> -> vector<128x16xf32>
    %93 = arith.addf %81, %92 : vector<128x16xf32>
    %c9 = arith.constant 9 : index
    %c0_87 = arith.constant 0 : index
    %94 = vector.load %arg13[%c9, %c0_87] : memref<184x16xf32, #tpu.memory_space<vmem>>, vector<128x16xf32>
    %95 = arith.truncf %94 : vector<128x16xf32> to vector<128x16xbf16>
    %c2_88 = arith.constant 2 : index
    %c0_89 = arith.constant 0 : index
    %c0_90 = arith.constant 0 : index
    %96 = vector.load %arg5[%c2_88, %c0_89, %c0_90] : memref<9x16x32xbf16, #tpu.memory_space<vmem>>, vector<1x16x32xbf16>
    %97 = vector.shape_cast %96 : vector<1x16x32xbf16> to vector<16x32xbf16>
    %cst_91 = arith.constant dense<0.000000e+00> : vector<128x32xf32>
    %98 = tpu.matmul %95, %97, %cst_91 {dimension_numbers = #tpu.dot_dimension_numbers<[1], [0], [0], [1], [0, 0, 1, 1], [], []>} : vector<128x16xbf16>, vector<16x32xbf16>, vector<128x32xf32> -> vector<128x32xf32>
    %99 = arith.addf %87, %98 : vector<128x32xf32>
    %c9_92 = arith.constant 9 : index
    %c0_93 = arith.constant 0 : index
    %100 = vector.load %arg14[%c9_92, %c0_93] : memref<184x16xf32, #tpu.memory_space<vmem>>, vector<128x16xf32>
    %101 = arith.truncf %100 : vector<128x16xf32> to vector<128x16xbf16>
    %c2_94 = arith.constant 2 : index
    %c0_95 = arith.constant 0 : index
    %c0_96 = arith.constant 0 : index
    %102 = vector.load %arg4[%c2_94, %c0_95, %c0_96] : memref<9x16x16xbf16, #tpu.memory_space<vmem>>, vector<1x16x16xbf16>
    %103 = vector.shape_cast %102 : vector<1x16x16xbf16> to vector<16x16xbf16>
    %cst_97 = arith.constant dense<0.000000e+00> : vector<128x16xf32>
    %104 = tpu.matmul %101, %103, %cst_97 {dimension_numbers = #tpu.dot_dimension_numbers<[1], [0], [0], [1], [0, 0, 1, 1], [], []>} : vector<128x16xbf16>, vector<16x16xbf16>, vector<128x16xf32> -> vector<128x16xf32>
    %105 = arith.addf %93, %104 : vector<128x16xf32>
    %c23 = arith.constant 23 : index
    %c0_98 = arith.constant 0 : index
    %106 = vector.load %arg13[%c23, %c0_98] : memref<184x16xf32, #tpu.memory_space<vmem>>, vector<128x16xf32>
    %107 = arith.truncf %106 : vector<128x16xf32> to vector<128x16xbf16>
    %c3_99 = arith.constant 3 : index
    %c0_100 = arith.constant 0 : index
    %c0_101 = arith.constant 0 : index
    %108 = vector.load %arg5[%c3_99, %c0_100, %c0_101] : memref<9x16x32xbf16, #tpu.memory_space<vmem>>, vector<1x16x32xbf16>
    %109 = vector.shape_cast %108 : vector<1x16x32xbf16> to vector<16x32xbf16>
    %cst_102 = arith.constant dense<0.000000e+00> : vector<128x32xf32>
    %110 = tpu.matmul %107, %109, %cst_102 {dimension_numbers = #tpu.dot_dimension_numbers<[1], [0], [0], [1], [0, 0, 1, 1], [], []>} : vector<128x16xbf16>, vector<16x32xbf16>, vector<128x32xf32> -> vector<128x32xf32>
    %111 = arith.addf %99, %110 : vector<128x32xf32>
    %c23_103 = arith.constant 23 : index
    %c0_104 = arith.constant 0 : index
    %112 = vector.load %arg14[%c23_103, %c0_104] : memref<184x16xf32, #tpu.memory_space<vmem>>, vector<128x16xf32>
    %113 = arith.truncf %112 : vector<128x16xf32> to vector<128x16xbf16>
    %c3_105 = arith.constant 3 : index
    %c0_106 = arith.constant 0 : index
    %c0_107 = arith.constant 0 : index
    %114 = vector.load %arg4[%c3_105, %c0_106, %c0_107] : memref<9x16x16xbf16, #tpu.memory_space<vmem>>, vector<1x16x16xbf16>
    %115 = vector.shape_cast %114 : vector<1x16x16xbf16> to vector<16x16xbf16>
    %cst_108 = arith.constant dense<0.000000e+00> : vector<128x16xf32>
    %116 = tpu.matmul %113, %115, %cst_108 {dimension_numbers = #tpu.dot_dimension_numbers<[1], [0], [0], [1], [0, 0, 1, 1], [], []>} : vector<128x16xbf16>, vector<16x16xbf16>, vector<128x16xf32> -> vector<128x16xf32>
    %117 = arith.addf %105, %116 : vector<128x16xf32>
    %c24_109 = arith.constant 24 : index
    %c0_110 = arith.constant 0 : index
    %118 = vector.load %arg13[%c24_109, %c0_110] : memref<184x16xf32, #tpu.memory_space<vmem>>, vector<128x16xf32>
    %119 = arith.truncf %118 : vector<128x16xf32> to vector<128x16xbf16>
    %c4 = arith.constant 4 : index
    %c0_111 = arith.constant 0 : index
    %c0_112 = arith.constant 0 : index
    %120 = vector.load %arg5[%c4, %c0_111, %c0_112] : memref<9x16x32xbf16, #tpu.memory_space<vmem>>, vector<1x16x32xbf16>
    %121 = vector.shape_cast %120 : vector<1x16x32xbf16> to vector<16x32xbf16>
    %cst_113 = arith.constant dense<0.000000e+00> : vector<128x32xf32>
    %122 = tpu.matmul %119, %121, %cst_113 {dimension_numbers = #tpu.dot_dimension_numbers<[1], [0], [0], [1], [0, 0, 1, 1], [], []>} : vector<128x16xbf16>, vector<16x32xbf16>, vector<128x32xf32> -> vector<128x32xf32>
    %123 = arith.addf %111, %122 : vector<128x32xf32>
    %c24_114 = arith.constant 24 : index
    %c0_115 = arith.constant 0 : index
    %124 = vector.load %arg14[%c24_114, %c0_115] : memref<184x16xf32, #tpu.memory_space<vmem>>, vector<128x16xf32>
    %125 = arith.truncf %124 : vector<128x16xf32> to vector<128x16xbf16>
    %c4_116 = arith.constant 4 : index
    %c0_117 = arith.constant 0 : index
    %c0_118 = arith.constant 0 : index
    %126 = vector.load %arg4[%c4_116, %c0_117, %c0_118] : memref<9x16x16xbf16, #tpu.memory_space<vmem>>, vector<1x16x16xbf16>
    %127 = vector.shape_cast %126 : vector<1x16x16xbf16> to vector<16x16xbf16>
    %cst_119 = arith.constant dense<0.000000e+00> : vector<128x16xf32>
    %128 = tpu.matmul %125, %127, %cst_119 {dimension_numbers = #tpu.dot_dimension_numbers<[1], [0], [0], [1], [0, 0, 1, 1], [], []>} : vector<128x16xbf16>, vector<16x16xbf16>, vector<128x16xf32> -> vector<128x16xf32>
    %129 = arith.addf %117, %128 : vector<128x16xf32>
    %c25 = arith.constant 25 : index
    %c0_120 = arith.constant 0 : index
    %130 = vector.load %arg13[%c25, %c0_120] : memref<184x16xf32, #tpu.memory_space<vmem>>, vector<128x16xf32>
    %131 = arith.truncf %130 : vector<128x16xf32> to vector<128x16xbf16>
    %c5 = arith.constant 5 : index
    %c0_121 = arith.constant 0 : index
    %c0_122 = arith.constant 0 : index
    %132 = vector.load %arg5[%c5, %c0_121, %c0_122] : memref<9x16x32xbf16, #tpu.memory_space<vmem>>, vector<1x16x32xbf16>
    %133 = vector.shape_cast %132 : vector<1x16x32xbf16> to vector<16x32xbf16>
    %cst_123 = arith.constant dense<0.000000e+00> : vector<128x32xf32>
    %134 = tpu.matmul %131, %133, %cst_123 {dimension_numbers = #tpu.dot_dimension_numbers<[1], [0], [0], [1], [0, 0, 1, 1], [], []>} : vector<128x16xbf16>, vector<16x32xbf16>, vector<128x32xf32> -> vector<128x32xf32>
    %135 = arith.addf %123, %134 : vector<128x32xf32>
    %c25_124 = arith.constant 25 : index
    %c0_125 = arith.constant 0 : index
    %136 = vector.load %arg14[%c25_124, %c0_125] : memref<184x16xf32, #tpu.memory_space<vmem>>, vector<128x16xf32>
    %137 = arith.truncf %136 : vector<128x16xf32> to vector<128x16xbf16>
    %c5_126 = arith.constant 5 : index
    %c0_127 = arith.constant 0 : index
    %c0_128 = arith.constant 0 : index
    %138 = vector.load %arg4[%c5_126, %c0_127, %c0_128] : memref<9x16x16xbf16, #tpu.memory_space<vmem>>, vector<1x16x16xbf16>
    %139 = vector.shape_cast %138 : vector<1x16x16xbf16> to vector<16x16xbf16>
    %cst_129 = arith.constant dense<0.000000e+00> : vector<128x16xf32>
    %140 = tpu.matmul %137, %139, %cst_129 {dimension_numbers = #tpu.dot_dimension_numbers<[1], [0], [0], [1], [0, 0, 1, 1], [], []>} : vector<128x16xbf16>, vector<16x16xbf16>, vector<128x16xf32> -> vector<128x16xf32>
    %141 = arith.addf %129, %140 : vector<128x16xf32>
    %c39 = arith.constant 39 : index
    %c0_130 = arith.constant 0 : index
    %142 = vector.load %arg13[%c39, %c0_130] : memref<184x16xf32, #tpu.memory_space<vmem>>, vector<128x16xf32>
    %143 = arith.truncf %142 : vector<128x16xf32> to vector<128x16xbf16>
    %c6 = arith.constant 6 : index
    %c0_131 = arith.constant 0 : index
    %c0_132 = arith.constant 0 : index
    %144 = vector.load %arg5[%c6, %c0_131, %c0_132] : memref<9x16x32xbf16, #tpu.memory_space<vmem>>, vector<1x16x32xbf16>
    %145 = vector.shape_cast %144 : vector<1x16x32xbf16> to vector<16x32xbf16>
    %cst_133 = arith.constant dense<0.000000e+00> : vector<128x32xf32>
    %146 = tpu.matmul %143, %145, %cst_133 {dimension_numbers = #tpu.dot_dimension_numbers<[1], [0], [0], [1], [0, 0, 1, 1], [], []>} : vector<128x16xbf16>, vector<16x32xbf16>, vector<128x32xf32> -> vector<128x32xf32>
    %147 = arith.addf %135, %146 : vector<128x32xf32>
    %c39_134 = arith.constant 39 : index
    %c0_135 = arith.constant 0 : index
    %148 = vector.load %arg14[%c39_134, %c0_135] : memref<184x16xf32, #tpu.memory_space<vmem>>, vector<128x16xf32>
    %149 = arith.truncf %148 : vector<128x16xf32> to vector<128x16xbf16>
    %c6_136 = arith.constant 6 : index
    %c0_137 = arith.constant 0 : index
    %c0_138 = arith.constant 0 : index
    %150 = vector.load %arg4[%c6_136, %c0_137, %c0_138] : memref<9x16x16xbf16, #tpu.memory_space<vmem>>, vector<1x16x16xbf16>
    %151 = vector.shape_cast %150 : vector<1x16x16xbf16> to vector<16x16xbf16>
    %cst_139 = arith.constant dense<0.000000e+00> : vector<128x16xf32>
    %152 = tpu.matmul %149, %151, %cst_139 {dimension_numbers = #tpu.dot_dimension_numbers<[1], [0], [0], [1], [0, 0, 1, 1], [], []>} : vector<128x16xbf16>, vector<16x16xbf16>, vector<128x16xf32> -> vector<128x16xf32>
    %153 = arith.addf %141, %152 : vector<128x16xf32>
    %c40 = arith.constant 40 : index
    %c0_140 = arith.constant 0 : index
    %154 = vector.load %arg13[%c40, %c0_140] : memref<184x16xf32, #tpu.memory_space<vmem>>, vector<128x16xf32>
    %155 = arith.truncf %154 : vector<128x16xf32> to vector<128x16xbf16>
    %c7_141 = arith.constant 7 : index
    %c0_142 = arith.constant 0 : index
    %c0_143 = arith.constant 0 : index
    %156 = vector.load %arg5[%c7_141, %c0_142, %c0_143] : memref<9x16x32xbf16, #tpu.memory_space<vmem>>, vector<1x16x32xbf16>
    %157 = vector.shape_cast %156 : vector<1x16x32xbf16> to vector<16x32xbf16>
    %cst_144 = arith.constant dense<0.000000e+00> : vector<128x32xf32>
    %158 = tpu.matmul %155, %157, %cst_144 {dimension_numbers = #tpu.dot_dimension_numbers<[1], [0], [0], [1], [0, 0, 1, 1], [], []>} : vector<128x16xbf16>, vector<16x32xbf16>, vector<128x32xf32> -> vector<128x32xf32>
    %159 = arith.addf %147, %158 : vector<128x32xf32>
    %c40_145 = arith.constant 40 : index
    %c0_146 = arith.constant 0 : index
    %160 = vector.load %arg14[%c40_145, %c0_146] : memref<184x16xf32, #tpu.memory_space<vmem>>, vector<128x16xf32>
    %161 = arith.truncf %160 : vector<128x16xf32> to vector<128x16xbf16>
    %c7_147 = arith.constant 7 : index
    %c0_148 = arith.constant 0 : index
    %c0_149 = arith.constant 0 : index
    %162 = vector.load %arg4[%c7_147, %c0_148, %c0_149] : memref<9x16x16xbf16, #tpu.memory_space<vmem>>, vector<1x16x16xbf16>
    %163 = vector.shape_cast %162 : vector<1x16x16xbf16> to vector<16x16xbf16>
    %cst_150 = arith.constant dense<0.000000e+00> : vector<128x16xf32>
    %164 = tpu.matmul %161, %163, %cst_150 {dimension_numbers = #tpu.dot_dimension_numbers<[1], [0], [0], [1], [0, 0, 1, 1], [], []>} : vector<128x16xbf16>, vector<16x16xbf16>, vector<128x16xf32> -> vector<128x16xf32>
    %165 = arith.addf %153, %164 : vector<128x16xf32>
    %c41 = arith.constant 41 : index
    %c0_151 = arith.constant 0 : index
    %166 = vector.load %arg13[%c41, %c0_151] : memref<184x16xf32, #tpu.memory_space<vmem>>, vector<128x16xf32>
    %167 = arith.truncf %166 : vector<128x16xf32> to vector<128x16xbf16>
    %c8_152 = arith.constant 8 : index
    %c0_153 = arith.constant 0 : index
    %c0_154 = arith.constant 0 : index
    %168 = vector.load %arg5[%c8_152, %c0_153, %c0_154] : memref<9x16x32xbf16, #tpu.memory_space<vmem>>, vector<1x16x32xbf16>
    %169 = vector.shape_cast %168 : vector<1x16x32xbf16> to vector<16x32xbf16>
    %cst_155 = arith.constant dense<0.000000e+00> : vector<128x32xf32>
    %170 = tpu.matmul %167, %169, %cst_155 {dimension_numbers = #tpu.dot_dimension_numbers<[1], [0], [0], [1], [0, 0, 1, 1], [], []>} : vector<128x16xbf16>, vector<16x32xbf16>, vector<128x32xf32> -> vector<128x32xf32>
    %171 = arith.addf %159, %170 : vector<128x32xf32>
    %c41_156 = arith.constant 41 : index
    %c0_157 = arith.constant 0 : index
    %172 = vector.load %arg14[%c41_156, %c0_157] : memref<184x16xf32, #tpu.memory_space<vmem>>, vector<128x16xf32>
    %173 = arith.truncf %172 : vector<128x16xf32> to vector<128x16xbf16>
    %c8_158 = arith.constant 8 : index
    %c0_159 = arith.constant 0 : index
    %c0_160 = arith.constant 0 : index
    %174 = vector.load %arg4[%c8_158, %c0_159, %c0_160] : memref<9x16x16xbf16, #tpu.memory_space<vmem>>, vector<1x16x16xbf16>
    %175 = vector.shape_cast %174 : vector<1x16x16xbf16> to vector<16x16xbf16>
    %cst_161 = arith.constant dense<0.000000e+00> : vector<128x16xf32>
    %176 = tpu.matmul %173, %175, %cst_161 {dimension_numbers = #tpu.dot_dimension_numbers<[1], [0], [0], [1], [0, 0, 1, 1], [], []>} : vector<128x16xbf16>, vector<16x16xbf16>, vector<128x16xf32> -> vector<128x16xf32>
    %177 = arith.addf %165, %176 : vector<128x16xf32>
    %178 = vector.extract_strided_slice %171 {offsets = [0, 0], sizes = [128, 16], strides = [1, 1]} : vector<128x32xf32> to vector<128x16xf32>
    %179 = vector.extract_strided_slice %171 {offsets = [0, 16], sizes = [128, 16], strides = [1, 1]} : vector<128x32xf32> to vector<128x16xf32>
    %180 = arith.addf %179, %177 : vector<128x16xf32>
    %c0_162 = arith.constant 0 : index
    %c0_163 = arith.constant 0 : index
    %181 = vector.load %arg8[%c0_162, %c0_163] : memref<1x16xf32, #tpu.memory_space<vmem>>, vector<1x16xf32>
    %182 = vector.broadcast %181 : vector<1x16xf32> to vector<128x16xf32>
    %183 = arith.mulf %180, %182 : vector<128x16xf32>
    %c0_164 = arith.constant 0 : index
    %c0_165 = arith.constant 0 : index
    %184 = vector.load %arg9[%c0_164, %c0_165] : memref<1x16xf32, #tpu.memory_space<vmem>>, vector<1x16xf32>
    %185 = vector.broadcast %184 : vector<1x16xf32> to vector<128x16xf32>
    %186 = arith.addf %183, %185 : vector<128x16xf32>
    %cst_166 = arith.constant 0.000000e+00 : f32
    %187 = vector.broadcast %cst_166 : f32 to vector<128x16xf32>
    %188 = arith.maximumf %186, %187 : vector<128x16xf32>
    %189 = vector.shape_cast %188 : vector<128x16xf32> to vector<8x16x16xf32>
    %190 = vector.extract_strided_slice %189 {offsets = [0, 0, 0], sizes = [8, 8, 16], strides = [1, 1, 1]} : vector<8x16x16xf32> to vector<8x8x16xf32>
    %191 = arith.truncf %190 : vector<8x8x16xf32> to vector<8x8x16xbf16>
    %c0_167 = arith.constant 0 : index
    %c0_168 = arith.constant 0 : index
    %c0_169 = arith.constant 0 : index
    %c0_170 = arith.constant 0 : index
    %192 = vector.load %arg11[%c0_167, %c0_168, %c0_169, %c0_170] : memref<1x8x8x16xbf16, #tpu.memory_space<vmem>>, vector<1x8x8x16xbf16>
    %193 = vector.shape_cast %192 : vector<1x8x8x16xbf16> to vector<8x8x16xbf16>
    %194 = vector.shape_cast %191 : vector<8x8x16xbf16> to vector<1x8x8x16xbf16>
    tpu.vector_store %arg11[%c0_167, %c0_168, %c0_169, %c0_170], %194 {strides = array<i32>} : memref<1x8x8x16xbf16, #tpu.memory_space<vmem>>, vector<1x8x8x16xbf16>,
    %c0_171 = arith.constant 0 : index
    %c0_172 = arith.constant 0 : index
    %195 = vector.load %arg6[%c0_171, %c0_172] : memref<1x16xf32, #tpu.memory_space<vmem>>, vector<1x16xf32>
    %c0_173 = arith.constant 0 : index
    %c0_174 = arith.constant 0 : index
    %196 = vector.load %arg7[%c0_173, %c0_174] : memref<1x16xf32, #tpu.memory_space<vmem>>, vector<1x16xf32>
    %c559 = arith.constant 559 : index
    %c0_175 = arith.constant 0 : index
    %197 = vector.load %arg12[%c559, %c0_175] : memref<736x16xf32, #tpu.memory_space<vmem>>, vector<128x16xf32>
    %198 = arith.truncf %197 : vector<128x16xf32> to vector<128x16xbf16>
    %c0_176 = arith.constant 0 : index
    %c0_177 = arith.constant 0 : index
    %c0_178 = arith.constant 0 : index
    %199 = vector.load %arg3[%c0_176, %c0_177, %c0_178] : memref<9x16x16xbf16, #tpu.memory_space<vmem>>, vector<1x16x16xbf16>
    %200 = vector.shape_cast %199 : vector<1x16x16xbf16> to vector<16x16xbf16>
    %cst_179 = arith.constant dense<0.000000e+00> : vector<128x16xf32>
    %201 = tpu.matmul %198, %200, %cst_179 {dimension_numbers = #tpu.dot_dimension_numbers<[1], [0], [0], [1], [0, 0, 1, 1], [], []>} : vector<128x16xbf16>, vector<16x16xbf16>, vector<128x16xf32> -> vector<128x16xf32>
    %202 = arith.addf %178, %201 : vector<128x16xf32>
    %c376 = arith.constant 376 : index
    %c0_180 = arith.constant 0 : index
    %203 = vector.load %arg12[%c376, %c0_180] : memref<736x16xf32, #tpu.memory_space<vmem>>, vector<128x16xf32>
    %204 = arith.truncf %203 : vector<128x16xf32> to vector<128x16xbf16>
    %c1_181 = arith.constant 1 : index
    %c0_182 = arith.constant 0 : index
    %c0_183 = arith.constant 0 : index
    %205 = vector.load %arg3[%c1_181, %c0_182, %c0_183] : memref<9x16x16xbf16, #tpu.memory_space<vmem>>, vector<1x16x16xbf16>
    %206 = vector.shape_cast %205 : vector<1x16x16xbf16> to vector<16x16xbf16>
    %cst_184 = arith.constant dense<0.000000e+00> : vector<128x16xf32>
    %207 = tpu.matmul %204, %206, %cst_184 {dimension_numbers = #tpu.dot_dimension_numbers<[1], [0], [0], [1], [0, 0, 1, 1], [], []>} : vector<128x16xbf16>, vector<16x16xbf16>, vector<128x16xf32> -> vector<128x16xf32>
    %208 = arith.addf %202, %207 : vector<128x16xf32>
    %c560 = arith.constant 560 : index
    %c0_185 = arith.constant 0 : index
    %209 = vector.load %arg12[%c560, %c0_185] : memref<736x16xf32, #tpu.memory_space<vmem>>, vector<128x16xf32>
    %210 = arith.truncf %209 : vector<128x16xf32> to vector<128x16xbf16>
    %c2_186 = arith.constant 2 : index
    %c0_187 = arith.constant 0 : index
    %c0_188 = arith.constant 0 : index
    %211 = vector.load %arg3[%c2_186, %c0_187, %c0_188] : memref<9x16x16xbf16, #tpu.memory_space<vmem>>, vector<1x16x16xbf16>
    %212 = vector.shape_cast %211 : vector<1x16x16xbf16> to vector<16x16xbf16>
    %cst_189 = arith.constant dense<0.000000e+00> : vector<128x16xf32>
    %213 = tpu.matmul %210, %212, %cst_189 {dimension_numbers = #tpu.dot_dimension_numbers<[1], [0], [0], [1], [0, 0, 1, 1], [], []>} : vector<128x16xbf16>, vector<16x16xbf16>, vector<128x16xf32> -> vector<128x16xf32>
    %214 = arith.addf %208, %213 : vector<128x16xf32>
    %c207 = arith.constant 207 : index
    %c0_190 = arith.constant 0 : index
    %215 = vector.load %arg12[%c207, %c0_190] : memref<736x16xf32, #tpu.memory_space<vmem>>, vector<128x16xf32>
    %216 = arith.truncf %215 : vector<128x16xf32> to vector<128x16xbf16>
    %c3_191 = arith.constant 3 : index
    %c0_192 = arith.constant 0 : index
    %c0_193 = arith.constant 0 : index
    %217 = vector.load %arg3[%c3_191, %c0_192, %c0_193] : memref<9x16x16xbf16, #tpu.memory_space<vmem>>, vector<1x16x16xbf16>
    %218 = vector.shape_cast %217 : vector<1x16x16xbf16> to vector<16x16xbf16>
    %cst_194 = arith.constant dense<0.000000e+00> : vector<128x16xf32>
    %219 = tpu.matmul %216, %218, %cst_194 {dimension_numbers = #tpu.dot_dimension_numbers<[1], [0], [0], [1], [0, 0, 1, 1], [], []>} : vector<128x16xbf16>, vector<16x16xbf16>, vector<128x16xf32> -> vector<128x16xf32>
    %220 = arith.addf %214, %219 : vector<128x16xf32>
    %c24_195 = arith.constant 24 : index
    %c0_196 = arith.constant 0 : index
    %221 = vector.load %arg12[%c24_195, %c0_196] : memref<736x16xf32, #tpu.memory_space<vmem>>, vector<128x16xf32>
    %222 = arith.truncf %221 : vector<128x16xf32> to vector<128x16xbf16>
    %c4_197 = arith.constant 4 : index
    %c0_198 = arith.constant 0 : index
    %c0_199 = arith.constant 0 : index
    %223 = vector.load %arg3[%c4_197, %c0_198, %c0_199] : memref<9x16x16xbf16, #tpu.memory_space<vmem>>, vector<1x16x16xbf16>
    %224 = vector.shape_cast %223 : vector<1x16x16xbf16> to vector<16x16xbf16>
    %cst_200 = arith.constant dense<0.000000e+00> : vector<128x16xf32>
    %225 = tpu.matmul %222, %224, %cst_200 {dimension_numbers = #tpu.dot_dimension_numbers<[1], [0], [0], [1], [0, 0, 1, 1], [], []>} : vector<128x16xbf16>, vector<16x16xbf16>, vector<128x16xf32> -> vector<128x16xf32>
    %226 = arith.addf %220, %225 : vector<128x16xf32>
    %c208_201 = arith.constant 208 : index
    %c0_202 = arith.constant 0 : index
    %227 = vector.load %arg12[%c208_201, %c0_202] : memref<736x16xf32, #tpu.memory_space<vmem>>, vector<128x16xf32>
    %228 = arith.truncf %227 : vector<128x16xf32> to vector<128x16xbf16>
    %c5_203 = arith.constant 5 : index
    %c0_204 = arith.constant 0 : index
    %c0_205 = arith.constant 0 : index
    %229 = vector.load %arg3[%c5_203, %c0_204, %c0_205] : memref<9x16x16xbf16, #tpu.memory_space<vmem>>, vector<1x16x16xbf16>
    %230 = vector.shape_cast %229 : vector<1x16x16xbf16> to vector<16x16xbf16>
    %cst_206 = arith.constant dense<0.000000e+00> : vector<128x16xf32>
    %231 = tpu.matmul %228, %230, %cst_206 {dimension_numbers = #tpu.dot_dimension_numbers<[1], [0], [0], [1], [0, 0, 1, 1], [], []>} : vector<128x16xbf16>, vector<16x16xbf16>, vector<128x16xf32> -> vector<128x16xf32>
    %232 = arith.addf %226, %231 : vector<128x16xf32>
    %c575 = arith.constant 575 : index
    %c0_207 = arith.constant 0 : index
    %233 = vector.load %arg12[%c575, %c0_207] : memref<736x16xf32, #tpu.memory_space<vmem>>, vector<128x16xf32>
    %234 = arith.truncf %233 : vector<128x16xf32> to vector<128x16xbf16>
    %c6_208 = arith.constant 6 : index
    %c0_209 = arith.constant 0 : index
    %c0_210 = arith.constant 0 : index
    %235 = vector.load %arg3[%c6_208, %c0_209, %c0_210] : memref<9x16x16xbf16, #tpu.memory_space<vmem>>, vector<1x16x16xbf16>
    %236 = vector.shape_cast %235 : vector<1x16x16xbf16> to vector<16x16xbf16>
    %cst_211 = arith.constant dense<0.000000e+00> : vector<128x16xf32>
    %237 = tpu.matmul %234, %236, %cst_211 {dimension_numbers = #tpu.dot_dimension_numbers<[1], [0], [0], [1], [0, 0, 1, 1], [], []>} : vector<128x16xbf16>, vector<16x16xbf16>, vector<128x16xf32> -> vector<128x16xf32>
    %238 = arith.addf %232, %237 : vector<128x16xf32>
    %c392_212 = arith.constant 392 : index
    %c0_213 = arith.constant 0 : index
    %239 = vector.load %arg12[%c392_212, %c0_213] : memref<736x16xf32, #tpu.memory_space<vmem>>, vector<128x16xf32>
    %240 = arith.truncf %239 : vector<128x16xf32> to vector<128x16xbf16>
    %c7_214 = arith.constant 7 : index
    %c0_215 = arith.constant 0 : index
    %c0_216 = arith.constant 0 : index
    %241 = vector.load %arg3[%c7_214, %c0_215, %c0_216] : memref<9x16x16xbf16, #tpu.memory_space<vmem>>, vector<1x16x16xbf16>
    %242 = vector.shape_cast %241 : vector<1x16x16xbf16> to vector<16x16xbf16>
    %cst_217 = arith.constant dense<0.000000e+00> : vector<128x16xf32>
    %243 = tpu.matmul %240, %242, %cst_217 {dimension_numbers = #tpu.dot_dimension_numbers<[1], [0], [0], [1], [0, 0, 1, 1], [], []>} : vector<128x16xbf16>, vector<16x16xbf16>, vector<128x16xf32> -> vector<128x16xf32>
    %244 = arith.addf %238, %243 : vector<128x16xf32>
    %c576_218 = arith.constant 576 : index
    %c0_219 = arith.constant 0 : index
    %245 = vector.load %arg12[%c576_218, %c0_219] : memref<736x16xf32, #tpu.memory_space<vmem>>, vector<128x16xf32>
    %246 = arith.truncf %245 : vector<128x16xf32> to vector<128x16xbf16>
    %c8_220 = arith.constant 8 : index
    %c0_221 = arith.constant 0 : index
    %c0_222 = arith.constant 0 : index
    %247 = vector.load %arg3[%c8_220, %c0_221, %c0_222] : memref<9x16x16xbf16, #tpu.memory_space<vmem>>, vector<1x16x16xbf16>
    %248 = vector.shape_cast %247 : vector<1x16x16xbf16> to vector<16x16xbf16>
    %cst_223 = arith.constant dense<0.000000e+00> : vector<128x16xf32>
    %249 = tpu.matmul %246, %248, %cst_223 {dimension_numbers = #tpu.dot_dimension_numbers<[1], [0], [0], [1], [0, 0, 1, 1], [], []>} : vector<128x16xbf16>, vector<16x16xbf16>, vector<128x16xf32> -> vector<128x16xf32>
    %250 = arith.addf %244, %249 : vector<128x16xf32>
    %251 = vector.broadcast %195 : vector<1x16xf32> to vector<128x16xf32>
    %252 = arith.mulf %250, %251 : vector<128x16xf32>
    %253 = vector.broadcast %196 : vector<1x16xf32> to vector<128x16xf32>
    %254 = arith.addf %252, %253 : vector<128x16xf32>
    %cst_224 = arith.constant 0.000000e+00 : f32
    %255 = vector.broadcast %cst_224 : f32 to vector<128x16xf32>
    %256 = arith.maximumf %254, %255 : vector<128x16xf32>
    %257 = vector.shape_cast %256 : vector<128x16xf32> to vector<8x16x16xf32>
    %258 = vector.extract_strided_slice %257 {offsets = [0, 0, 0], sizes = [8, 8, 16], strides = [1, 1, 1]} : vector<8x16x16xf32> to vector<8x8x16xf32>
    %259 = arith.truncf %258 : vector<8x8x16xf32> to vector<8x8x16xbf16>
    %c0_225 = arith.constant 0 : index
    %c0_226 = arith.constant 0 : index
    %c0_227 = arith.constant 0 : index
    %c0_228 = arith.constant 0 : index
    %c0_229 = arith.constant 0 : index
    %260 = vector.load %arg10[%c0_225, %c0_226, %c0_227, %c0_228, %c0_229] : memref<1x4x8x8x16xbf16, #tpu.memory_space<vmem>>, vector<1x1x8x8x16xbf16>
    %261 = vector.shape_cast %260 : vector<1x1x8x8x16xbf16> to vector<8x8x16xbf16>
    %262 = vector.shape_cast %259 : vector<8x8x16xbf16> to vector<1x1x8x8x16xbf16>
    tpu.vector_store %arg10[%c0_225, %c0_226, %c0_227, %c0_228, %c0_229], %262 {strides = array<i32>} : memref<1x4x8x8x16xbf16, #tpu.memory_space<vmem>>, vector<1x1x8x8x16xbf16>,
    %c376_230 = arith.constant 376 : index
    %c0_231 = arith.constant 0 : index
    %263 = vector.load %arg12[%c376_230, %c0_231] : memref<736x16xf32, #tpu.memory_space<vmem>>, vector<128x16xf32>
    %264 = arith.truncf %263 : vector<128x16xf32> to vector<128x16xbf16>
    %c0_232 = arith.constant 0 : index
    %c0_233 = arith.constant 0 : index
    %c0_234 = arith.constant 0 : index
    %265 = vector.load %arg3[%c0_232, %c0_233, %c0_234] : memref<9x16x16xbf16, #tpu.memory_space<vmem>>, vector<1x16x16xbf16>
    %266 = vector.shape_cast %265 : vector<1x16x16xbf16> to vector<16x16xbf16>
    %cst_235 = arith.constant dense<0.000000e+00> : vector<128x16xf32>
    %267 = tpu.matmul %264, %266, %cst_235 {dimension_numbers = #tpu.dot_dimension_numbers<[1], [0], [0], [1], [0, 0, 1, 1], [], []>} : vector<128x16xbf16>, vector<16x16xbf16>, vector<128x16xf32> -> vector<128x16xf32>
    %268 = arith.addf %178, %267 : vector<128x16xf32>
    %c560_236 = arith.constant 560 : index
    %c0_237 = arith.constant 0 : index
    %269 = vector.load %arg12[%c560_236, %c0_237] : memref<736x16xf32, #tpu.memory_space<vmem>>, vector<128x16xf32>
    %270 = arith.truncf %269 : vector<128x16xf32> to vector<128x16xbf16>
    %c1_238 = arith.constant 1 : index
    %c0_239 = arith.constant 0 : index
    %c0_240 = arith.constant 0 : index
    %271 = vector.load %arg3[%c1_238, %c0_239, %c0_240] : memref<9x16x16xbf16, #tpu.memory_space<vmem>>, vector<1x16x16xbf16>
    %272 = vector.shape_cast %271 : vector<1x16x16xbf16> to vector<16x16xbf16>
    %cst_241 = arith.constant dense<0.000000e+00> : vector<128x16xf32>
    %273 = tpu.matmul %270, %272, %cst_241 {dimension_numbers = #tpu.dot_dimension_numbers<[1], [0], [0], [1], [0, 0, 1, 1], [], []>} : vector<128x16xbf16>, vector<16x16xbf16>, vector<128x16xf32> -> vector<128x16xf32>
    %274 = arith.addf %268, %273 : vector<128x16xf32>
    %c377 = arith.constant 377 : index
    %c0_242 = arith.constant 0 : index
    %275 = vector.load %arg12[%c377, %c0_242] : memref<736x16xf32, #tpu.memory_space<vmem>>, vector<128x16xf32>
    %276 = arith.truncf %275 : vector<128x16xf32> to vector<128x16xbf16>
    %c2_243 = arith.constant 2 : index
    %c0_244 = arith.constant 0 : index
    %c0_245 = arith.constant 0 : index
    %277 = vector.load %arg3[%c2_243, %c0_244, %c0_245] : memref<9x16x16xbf16, #tpu.memory_space<vmem>>, vector<1x16x16xbf16>
    %278 = vector.shape_cast %277 : vector<1x16x16xbf16> to vector<16x16xbf16>
    %cst_246 = arith.constant dense<0.000000e+00> : vector<128x16xf32>
    %279 = tpu.matmul %276, %278, %cst_246 {dimension_numbers = #tpu.dot_dimension_numbers<[1], [0], [0], [1], [0, 0, 1, 1], [], []>} : vector<128x16xbf16>, vector<16x16xbf16>, vector<128x16xf32> -> vector<128x16xf32>
    %280 = arith.addf %274, %279 : vector<128x16xf32>
    %c24_247 = arith.constant 24 : index
    %c0_248 = arith.constant 0 : index
    %281 = vector.load %arg12[%c24_247, %c0_248] : memref<736x16xf32, #tpu.memory_space<vmem>>, vector<128x16xf32>
    %282 = arith.truncf %281 : vector<128x16xf32> to vector<128x16xbf16>
    %c3_249 = arith.constant 3 : index
    %c0_250 = arith.constant 0 : index
    %c0_251 = arith.constant 0 : index
    %283 = vector.load %arg3[%c3_249, %c0_250, %c0_251] : memref<9x16x16xbf16, #tpu.memory_space<vmem>>, vector<1x16x16xbf16>
    %284 = vector.shape_cast %283 : vector<1x16x16xbf16> to vector<16x16xbf16>
    %cst_252 = arith.constant dense<0.000000e+00> : vector<128x16xf32>
    %285 = tpu.matmul %282, %284, %cst_252 {dimension_numbers = #tpu.dot_dimension_numbers<[1], [0], [0], [1], [0, 0, 1, 1], [], []>} : vector<128x16xbf16>, vector<16x16xbf16>, vector<128x16xf32> -> vector<128x16xf32>
    %286 = arith.addf %280, %285 : vector<128x16xf32>
    %c208_253 = arith.constant 208 : index
    %c0_254 = arith.constant 0 : index
    %287 = vector.load %arg12[%c208_253, %c0_254] : memref<736x16xf32, #tpu.memory_space<vmem>>, vector<128x16xf32>
    %288 = arith.truncf %287 : vector<128x16xf32> to vector<128x16xbf16>
    %c4_255 = arith.constant 4 : index
    %c0_256 = arith.constant 0 : index
    %c0_257 = arith.constant 0 : index
    %289 = vector.load %arg3[%c4_255, %c0_256, %c0_257] : memref<9x16x16xbf16, #tpu.memory_space<vmem>>, vector<1x16x16xbf16>
    %290 = vector.shape_cast %289 : vector<1x16x16xbf16> to vector<16x16xbf16>
    %cst_258 = arith.constant dense<0.000000e+00> : vector<128x16xf32>
    %291 = tpu.matmul %288, %290, %cst_258 {dimension_numbers = #tpu.dot_dimension_numbers<[1], [0], [0], [1], [0, 0, 1, 1], [], []>} : vector<128x16xbf16>, vector<16x16xbf16>, vector<128x16xf32> -> vector<128x16xf32>
    %292 = arith.addf %286, %291 : vector<128x16xf32>
    %c25_259 = arith.constant 25 : index
    %c0_260 = arith.constant 0 : index
    %293 = vector.load %arg12[%c25_259, %c0_260] : memref<736x16xf32, #tpu.memory_space<vmem>>, vector<128x16xf32>
    %294 = arith.truncf %293 : vector<128x16xf32> to vector<128x16xbf16>
    %c5_261 = arith.constant 5 : index
    %c0_262 = arith.constant 0 : index
    %c0_263 = arith.constant 0 : index
    %295 = vector.load %arg3[%c5_261, %c0_262, %c0_263] : memref<9x16x16xbf16, #tpu.memory_space<vmem>>, vector<1x16x16xbf16>
    %296 = vector.shape_cast %295 : vector<1x16x16xbf16> to vector<16x16xbf16>
    %cst_264 = arith.constant dense<0.000000e+00> : vector<128x16xf32>
    %297 = tpu.matmul %294, %296, %cst_264 {dimension_numbers = #tpu.dot_dimension_numbers<[1], [0], [0], [1], [0, 0, 1, 1], [], []>} : vector<128x16xbf16>, vector<16x16xbf16>, vector<128x16xf32> -> vector<128x16xf32>
    %298 = arith.addf %292, %297 : vector<128x16xf32>
    %c392_265 = arith.constant 392 : index
    %c0_266 = arith.constant 0 : index
    %299 = vector.load %arg12[%c392_265, %c0_266] : memref<736x16xf32, #tpu.memory_space<vmem>>, vector<128x16xf32>
    %300 = arith.truncf %299 : vector<128x16xf32> to vector<128x16xbf16>
    %c6_267 = arith.constant 6 : index
    %c0_268 = arith.constant 0 : index
    %c0_269 = arith.constant 0 : index
    %301 = vector.load %arg3[%c6_267, %c0_268, %c0_269] : memref<9x16x16xbf16, #tpu.memory_space<vmem>>, vector<1x16x16xbf16>
    %302 = vector.shape_cast %301 : vector<1x16x16xbf16> to vector<16x16xbf16>
    %cst_270 = arith.constant dense<0.000000e+00> : vector<128x16xf32>
    %303 = tpu.matmul %300, %302, %cst_270 {dimension_numbers = #tpu.dot_dimension_numbers<[1], [0], [0], [1], [0, 0, 1, 1], [], []>} : vector<128x16xbf16>, vector<16x16xbf16>, vector<128x16xf32> -> vector<128x16xf32>
    %304 = arith.addf %298, %303 : vector<128x16xf32>
    %c576_271 = arith.constant 576 : index
    %c0_272 = arith.constant 0 : index
    %305 = vector.load %arg12[%c576_271, %c0_272] : memref<736x16xf32, #tpu.memory_space<vmem>>, vector<128x16xf32>
    %306 = arith.truncf %305 : vector<128x16xf32> to vector<128x16xbf16>
    %c7_273 = arith.constant 7 : index
    %c0_274 = arith.constant 0 : index
    %c0_275 = arith.constant 0 : index
    %307 = vector.load %arg3[%c7_273, %c0_274, %c0_275] : memref<9x16x16xbf16, #tpu.memory_space<vmem>>, vector<1x16x16xbf16>
    %308 = vector.shape_cast %307 : vector<1x16x16xbf16> to vector<16x16xbf16>
    %cst_276 = arith.constant dense<0.000000e+00> : vector<128x16xf32>
    %309 = tpu.matmul %306, %308, %cst_276 {dimension_numbers = #tpu.dot_dimension_numbers<[1], [0], [0], [1], [0, 0, 1, 1], [], []>} : vector<128x16xbf16>, vector<16x16xbf16>, vector<128x16xf32> -> vector<128x16xf32>
    %310 = arith.addf %304, %309 : vector<128x16xf32>
    %c393 = arith.constant 393 : index
    %c0_277 = arith.constant 0 : index
    %311 = vector.load %arg12[%c393, %c0_277] : memref<736x16xf32, #tpu.memory_space<vmem>>, vector<128x16xf32>
    %312 = arith.truncf %311 : vector<128x16xf32> to vector<128x16xbf16>
    %c8_278 = arith.constant 8 : index
    %c0_279 = arith.constant 0 : index
    %c0_280 = arith.constant 0 : index
    %313 = vector.load %arg3[%c8_278, %c0_279, %c0_280] : memref<9x16x16xbf16, #tpu.memory_space<vmem>>, vector<1x16x16xbf16>
    %314 = vector.shape_cast %313 : vector<1x16x16xbf16> to vector<16x16xbf16>
    %cst_281 = arith.constant dense<0.000000e+00> : vector<128x16xf32>
    %315 = tpu.matmul %312, %314, %cst_281 {dimension_numbers = #tpu.dot_dimension_numbers<[1], [0], [0], [1], [0, 0, 1, 1], [], []>} : vector<128x16xbf16>, vector<16x16xbf16>, vector<128x16xf32> -> vector<128x16xf32>
    %316 = arith.addf %310, %315 : vector<128x16xf32>
    %317 = vector.broadcast %195 : vector<1x16xf32> to vector<128x16xf32>
    %318 = arith.mulf %316, %317 : vector<128x16xf32>
    %319 = vector.broadcast %196 : vector<1x16xf32> to vector<128x16xf32>
    %320 = arith.addf %318, %319 : vector<128x16xf32>
    %cst_282 = arith.constant 0.000000e+00 : f32
    %321 = vector.broadcast %cst_282 : f32 to vector<128x16xf32>
    %322 = arith.maximumf %320, %321 : vector<128x16xf32>
    %323 = vector.shape_cast %322 : vector<128x16xf32> to vector<8x16x16xf32>
    %324 = vector.extract_strided_slice %323 {offsets = [0, 0, 0], sizes = [8, 8, 16], strides = [1, 1, 1]} : vector<8x16x16xf32> to vector<8x8x16xf32>
    %325 = arith.truncf %324 : vector<8x8x16xf32> to vector<8x8x16xbf16>
    %c0_283 = arith.constant 0 : index
    %c1_284 = arith.constant 1 : index
    %c0_285 = arith.constant 0 : index
    %c0_286 = arith.constant 0 : index
    %c0_287 = arith.constant 0 : index
    %326 = vector.load %arg10[%c0_283, %c1_284, %c0_285, %c0_286, %c0_287] : memref<1x4x8x8x16xbf16, #tpu.memory_space<vmem>>, vector<1x1x8x8x16xbf16>
    %327 = vector.shape_cast %326 : vector<1x1x8x8x16xbf16> to vector<8x8x16xbf16>
    %328 = vector.shape_cast %325 : vector<8x8x16xbf16> to vector<1x1x8x8x16xbf16>
    tpu.vector_store %arg10[%c0_283, %c1_284, %c0_285, %c0_286, %c0_287], %328 {strides = array<i32>} : memref<1x4x8x8x16xbf16, #tpu.memory_space<vmem>>, vector<1x1x8x8x16xbf16>,
    %c207_288 = arith.constant 207 : index
    %c0_289 = arith.constant 0 : index
    %329 = vector.load %arg12[%c207_288, %c0_289] : memref<736x16xf32, #tpu.memory_space<vmem>>, vector<128x16xf32>
    %330 = arith.truncf %329 : vector<128x16xf32> to vector<128x16xbf16>
    %c0_290 = arith.constant 0 : index
    %c0_291 = arith.constant 0 : index
    %c0_292 = arith.constant 0 : index
    %331 = vector.load %arg3[%c0_290, %c0_291, %c0_292] : memref<9x16x16xbf16, #tpu.memory_space<vmem>>, vector<1x16x16xbf16>
    %332 = vector.shape_cast %331 : vector<1x16x16xbf16> to vector<16x16xbf16>
    %cst_293 = arith.constant dense<0.000000e+00> : vector<128x16xf32>
    %333 = tpu.matmul %330, %332, %cst_293 {dimension_numbers = #tpu.dot_dimension_numbers<[1], [0], [0], [1], [0, 0, 1, 1], [], []>} : vector<128x16xbf16>, vector<16x16xbf16>, vector<128x16xf32> -> vector<128x16xf32>
    %334 = arith.addf %178, %333 : vector<128x16xf32>
    %c24_294 = arith.constant 24 : index
    %c0_295 = arith.constant 0 : index
    %335 = vector.load %arg12[%c24_294, %c0_295] : memref<736x16xf32, #tpu.memory_space<vmem>>, vector<128x16xf32>
    %336 = arith.truncf %335 : vector<128x16xf32> to vector<128x16xbf16>
    %c1_296 = arith.constant 1 : index
    %c0_297 = arith.constant 0 : index
    %c0_298 = arith.constant 0 : index
    %337 = vector.load %arg3[%c1_296, %c0_297, %c0_298] : memref<9x16x16xbf16, #tpu.memory_space<vmem>>, vector<1x16x16xbf16>
    %338 = vector.shape_cast %337 : vector<1x16x16xbf16> to vector<16x16xbf16>
    %cst_299 = arith.constant dense<0.000000e+00> : vector<128x16xf32>
    %339 = tpu.matmul %336, %338, %cst_299 {dimension_numbers = #tpu.dot_dimension_numbers<[1], [0], [0], [1], [0, 0, 1, 1], [], []>} : vector<128x16xbf16>, vector<16x16xbf16>, vector<128x16xf32> -> vector<128x16xf32>
    %340 = arith.addf %334, %339 : vector<128x16xf32>
    %c208_300 = arith.constant 208 : index
    %c0_301 = arith.constant 0 : index
    %341 = vector.load %arg12[%c208_300, %c0_301] : memref<736x16xf32, #tpu.memory_space<vmem>>, vector<128x16xf32>
    %342 = arith.truncf %341 : vector<128x16xf32> to vector<128x16xbf16>
    %c2_302 = arith.constant 2 : index
    %c0_303 = arith.constant 0 : index
    %c0_304 = arith.constant 0 : index
    %343 = vector.load %arg3[%c2_302, %c0_303, %c0_304] : memref<9x16x16xbf16, #tpu.memory_space<vmem>>, vector<1x16x16xbf16>
    %344 = vector.shape_cast %343 : vector<1x16x16xbf16> to vector<16x16xbf16>
    %cst_305 = arith.constant dense<0.000000e+00> : vector<128x16xf32>
    %345 = tpu.matmul %342, %344, %cst_305 {dimension_numbers = #tpu.dot_dimension_numbers<[1], [0], [0], [1], [0, 0, 1, 1], [], []>} : vector<128x16xbf16>, vector<16x16xbf16>, vector<128x16xf32> -> vector<128x16xf32>
    %346 = arith.addf %340, %345 : vector<128x16xf32>
    %c575_306 = arith.constant 575 : index
    %c0_307 = arith.constant 0 : index
    %347 = vector.load %arg12[%c575_306, %c0_307] : memref<736x16xf32, #tpu.memory_space<vmem>>, vector<128x16xf32>
    %348 = arith.truncf %347 : vector<128x16xf32> to vector<128x16xbf16>
    %c3_308 = arith.constant 3 : index
    %c0_309 = arith.constant 0 : index
    %c0_310 = arith.constant 0 : index
    %349 = vector.load %arg3[%c3_308, %c0_309, %c0_310] : memref<9x16x16xbf16, #tpu.memory_space<vmem>>, vector<1x16x16xbf16>
    %350 = vector.shape_cast %349 : vector<1x16x16xbf16> to vector<16x16xbf16>
    %cst_311 = arith.constant dense<0.000000e+00> : vector<128x16xf32>
    %351 = tpu.matmul %348, %350, %cst_311 {dimension_numbers = #tpu.dot_dimension_numbers<[1], [0], [0], [1], [0, 0, 1, 1], [], []>} : vector<128x16xbf16>, vector<16x16xbf16>, vector<128x16xf32> -> vector<128x16xf32>
    %352 = arith.addf %346, %351 : vector<128x16xf32>
    %c392_312 = arith.constant 392 : index
    %c0_313 = arith.constant 0 : index
    %353 = vector.load %arg12[%c392_312, %c0_313] : memref<736x16xf32, #tpu.memory_space<vmem>>, vector<128x16xf32>
    %354 = arith.truncf %353 : vector<128x16xf32> to vector<128x16xbf16>
    %c4_314 = arith.constant 4 : index
    %c0_315 = arith.constant 0 : index
    %c0_316 = arith.constant 0 : index
    %355 = vector.load %arg3[%c4_314, %c0_315, %c0_316] : memref<9x16x16xbf16, #tpu.memory_space<vmem>>, vector<1x16x16xbf16>
    %356 = vector.shape_cast %355 : vector<1x16x16xbf16> to vector<16x16xbf16>
    %cst_317 = arith.constant dense<0.000000e+00> : vector<128x16xf32>
    %357 = tpu.matmul %354, %356, %cst_317 {dimension_numbers = #tpu.dot_dimension_numbers<[1], [0], [0], [1], [0, 0, 1, 1], [], []>} : vector<128x16xbf16>, vector<16x16xbf16>, vector<128x16xf32> -> vector<128x16xf32>
    %358 = arith.addf %352, %357 : vector<128x16xf32>
    %c576_318 = arith.constant 576 : index
    %c0_319 = arith.constant 0 : index
    %359 = vector.load %arg12[%c576_318, %c0_319] : memref<736x16xf32, #tpu.memory_space<vmem>>, vector<128x16xf32>
    %360 = arith.truncf %359 : vector<128x16xf32> to vector<128x16xbf16>
    %c5_320 = arith.constant 5 : index
    %c0_321 = arith.constant 0 : index
    %c0_322 = arith.constant 0 : index
    %361 = vector.load %arg3[%c5_320, %c0_321, %c0_322] : memref<9x16x16xbf16, #tpu.memory_space<vmem>>, vector<1x16x16xbf16>
    %362 = vector.shape_cast %361 : vector<1x16x16xbf16> to vector<16x16xbf16>
    %cst_323 = arith.constant dense<0.000000e+00> : vector<128x16xf32>
    %363 = tpu.matmul %360, %362, %cst_323 {dimension_numbers = #tpu.dot_dimension_numbers<[1], [0], [0], [1], [0, 0, 1, 1], [], []>} : vector<128x16xbf16>, vector<16x16xbf16>, vector<128x16xf32> -> vector<128x16xf32>
    %364 = arith.addf %358, %363 : vector<128x16xf32>
    %c223 = arith.constant 223 : index
    %c0_324 = arith.constant 0 : index
    %365 = vector.load %arg12[%c223, %c0_324] : memref<736x16xf32, #tpu.memory_space<vmem>>, vector<128x16xf32>
    %366 = arith.truncf %365 : vector<128x16xf32> to vector<128x16xbf16>
    %c6_325 = arith.constant 6 : index
    %c0_326 = arith.constant 0 : index
    %c0_327 = arith.constant 0 : index
    %367 = vector.load %arg3[%c6_325, %c0_326, %c0_327] : memref<9x16x16xbf16, #tpu.memory_space<vmem>>, vector<1x16x16xbf16>
    %368 = vector.shape_cast %367 : vector<1x16x16xbf16> to vector<16x16xbf16>
    %cst_328 = arith.constant dense<0.000000e+00> : vector<128x16xf32>
    %369 = tpu.matmul %366, %368, %cst_328 {dimension_numbers = #tpu.dot_dimension_numbers<[1], [0], [0], [1], [0, 0, 1, 1], [], []>} : vector<128x16xbf16>, vector<16x16xbf16>, vector<128x16xf32> -> vector<128x16xf32>
    %370 = arith.addf %364, %369 : vector<128x16xf32>
    %c40_329 = arith.constant 40 : index
    %c0_330 = arith.constant 0 : index
    %371 = vector.load %arg12[%c40_329, %c0_330] : memref<736x16xf32, #tpu.memory_space<vmem>>, vector<128x16xf32>
    %372 = arith.truncf %371 : vector<128x16xf32> to vector<128x16xbf16>
    %c7_331 = arith.constant 7 : index
    %c0_332 = arith.constant 0 : index
    %c0_333 = arith.constant 0 : index
    %373 = vector.load %arg3[%c7_331, %c0_332, %c0_333] : memref<9x16x16xbf16, #tpu.memory_space<vmem>>, vector<1x16x16xbf16>
    %374 = vector.shape_cast %373 : vector<1x16x16xbf16> to vector<16x16xbf16>
    %cst_334 = arith.constant dense<0.000000e+00> : vector<128x16xf32>
    %375 = tpu.matmul %372, %374, %cst_334 {dimension_numbers = #tpu.dot_dimension_numbers<[1], [0], [0], [1], [0, 0, 1, 1], [], []>} : vector<128x16xbf16>, vector<16x16xbf16>, vector<128x16xf32> -> vector<128x16xf32>
    %376 = arith.addf %370, %375 : vector<128x16xf32>
    %c224 = arith.constant 224 : index
    %c0_335 = arith.constant 0 : index
    %377 = vector.load %arg12[%c224, %c0_335] : memref<736x16xf32, #tpu.memory_space<vmem>>, vector<128x16xf32>
    %378 = arith.truncf %377 : vector<128x16xf32> to vector<128x16xbf16>
    %c8_336 = arith.constant 8 : index
    %c0_337 = arith.constant 0 : index
    %c0_338 = arith.constant 0 : index
    %379 = vector.load %arg3[%c8_336, %c0_337, %c0_338] : memref<9x16x16xbf16, #tpu.memory_space<vmem>>, vector<1x16x16xbf16>
    %380 = vector.shape_cast %379 : vector<1x16x16xbf16> to vector<16x16xbf16>
    %cst_339 = arith.constant dense<0.000000e+00> : vector<128x16xf32>
    %381 = tpu.matmul %378, %380, %cst_339 {dimension_numbers = #tpu.dot_dimension_numbers<[1], [0], [0], [1], [0, 0, 1, 1], [], []>} : vector<128x16xbf16>, vector<16x16xbf16>, vector<128x16xf32> -> vector<128x16xf32>
    %382 = arith.addf %376, %381 : vector<128x16xf32>
    %383 = vector.broadcast %195 : vector<1x16xf32> to vector<128x16xf32>
    %384 = arith.mulf %382, %383 : vector<128x16xf32>
    %385 = vector.broadcast %196 : vector<1x16xf32> to vector<128x16xf32>
    %386 = arith.addf %384, %385 : vector<128x16xf32>
    %cst_340 = arith.constant 0.000000e+00 : f32
    %387 = vector.broadcast %cst_340 : f32 to vector<128x16xf32>
    %388 = arith.maximumf %386, %387 : vector<128x16xf32>
    %389 = vector.shape_cast %388 : vector<128x16xf32> to vector<8x16x16xf32>
    %390 = vector.extract_strided_slice %389 {offsets = [0, 0, 0], sizes = [8, 8, 16], strides = [1, 1, 1]} : vector<8x16x16xf32> to vector<8x8x16xf32>
    %391 = arith.truncf %390 : vector<8x8x16xf32> to vector<8x8x16xbf16>
    %c0_341 = arith.constant 0 : index
    %c2_342 = arith.constant 2 : index
    %c0_343 = arith.constant 0 : index
    %c0_344 = arith.constant 0 : index
    %c0_345 = arith.constant 0 : index
    %392 = vector.load %arg10[%c0_341, %c2_342, %c0_343, %c0_344, %c0_345] : memref<1x4x8x8x16xbf16, #tpu.memory_space<vmem>>, vector<1x1x8x8x16xbf16>
    %393 = vector.shape_cast %392 : vector<1x1x8x8x16xbf16> to vector<8x8x16xbf16>
    %394 = vector.shape_cast %391 : vector<8x8x16xbf16> to vector<1x1x8x8x16xbf16>
    tpu.vector_store %arg10[%c0_341, %c2_342, %c0_343, %c0_344, %c0_345], %394 {strides = array<i32>} : memref<1x4x8x8x16xbf16, #tpu.memory_space<vmem>>, vector<1x1x8x8x16xbf16>,
    %c24_346 = arith.constant 24 : index
    %c0_347 = arith.constant 0 : index
    %395 = vector.load %arg12[%c24_346, %c0_347] : memref<736x16xf32, #tpu.memory_space<vmem>>, vector<128x16xf32>
    %396 = arith.truncf %395 : vector<128x16xf32> to vector<128x16xbf16>
    %c0_348 = arith.constant 0 : index
    %c0_349 = arith.constant 0 : index
    %c0_350 = arith.constant 0 : index
    %397 = vector.load %arg3[%c0_348, %c0_349, %c0_350] : memref<9x16x16xbf16, #tpu.memory_space<vmem>>, vector<1x16x16xbf16>
    %398 = vector.shape_cast %397 : vector<1x16x16xbf16> to vector<16x16xbf16>
    %cst_351 = arith.constant dense<0.000000e+00> : vector<128x16xf32>
    %399 = tpu.matmul %396, %398, %cst_351 {dimension_numbers = #tpu.dot_dimension_numbers<[1], [0], [0], [1], [0, 0, 1, 1], [], []>} : vector<128x16xbf16>, vector<16x16xbf16>, vector<128x16xf32> -> vector<128x16xf32>
    %400 = arith.addf %178, %399 : vector<128x16xf32>
    %c208_352 = arith.constant 208 : index
    %c0_353 = arith.constant 0 : index
    %401 = vector.load %arg12[%c208_352, %c0_353] : memref<736x16xf32, #tpu.memory_space<vmem>>, vector<128x16xf32>
    %402 = arith.truncf %401 : vector<128x16xf32> to vector<128x16xbf16>
    %c1_354 = arith.constant 1 : index
    %c0_355 = arith.constant 0 : index
    %c0_356 = arith.constant 0 : index
    %403 = vector.load %arg3[%c1_354, %c0_355, %c0_356] : memref<9x16x16xbf16, #tpu.memory_space<vmem>>, vector<1x16x16xbf16>
    %404 = vector.shape_cast %403 : vector<1x16x16xbf16> to vector<16x16xbf16>
    %cst_357 = arith.constant dense<0.000000e+00> : vector<128x16xf32>
    %405 = tpu.matmul %402, %404, %cst_357 {dimension_numbers = #tpu.dot_dimension_numbers<[1], [0], [0], [1], [0, 0, 1, 1], [], []>} : vector<128x16xbf16>, vector<16x16xbf16>, vector<128x16xf32> -> vector<128x16xf32>
    %406 = arith.addf %400, %405 : vector<128x16xf32>
    %c25_358 = arith.constant 25 : index
    %c0_359 = arith.constant 0 : index
    %407 = vector.load %arg12[%c25_358, %c0_359] : memref<736x16xf32, #tpu.memory_space<vmem>>, vector<128x16xf32>
    %408 = arith.truncf %407 : vector<128x16xf32> to vector<128x16xbf16>
    %c2_360 = arith.constant 2 : index
    %c0_361 = arith.constant 0 : index
    %c0_362 = arith.constant 0 : index
    %409 = vector.load %arg3[%c2_360, %c0_361, %c0_362] : memref<9x16x16xbf16, #tpu.memory_space<vmem>>, vector<1x16x16xbf16>
    %410 = vector.shape_cast %409 : vector<1x16x16xbf16> to vector<16x16xbf16>
    %cst_363 = arith.constant dense<0.000000e+00> : vector<128x16xf32>
    %411 = tpu.matmul %408, %410, %cst_363 {dimension_numbers = #tpu.dot_dimension_numbers<[1], [0], [0], [1], [0, 0, 1, 1], [], []>} : vector<128x16xbf16>, vector<16x16xbf16>, vector<128x16xf32> -> vector<128x16xf32>
    %412 = arith.addf %406, %411 : vector<128x16xf32>
    %c392_364 = arith.constant 392 : index
    %c0_365 = arith.constant 0 : index
    %413 = vector.load %arg12[%c392_364, %c0_365] : memref<736x16xf32, #tpu.memory_space<vmem>>, vector<128x16xf32>
    %414 = arith.truncf %413 : vector<128x16xf32> to vector<128x16xbf16>
    %c3_366 = arith.constant 3 : index
    %c0_367 = arith.constant 0 : index
    %c0_368 = arith.constant 0 : index
    %415 = vector.load %arg3[%c3_366, %c0_367, %c0_368] : memref<9x16x16xbf16, #tpu.memory_space<vmem>>, vector<1x16x16xbf16>
    %416 = vector.shape_cast %415 : vector<1x16x16xbf16> to vector<16x16xbf16>
    %cst_369 = arith.constant dense<0.000000e+00> : vector<128x16xf32>
    %417 = tpu.matmul %414, %416, %cst_369 {dimension_numbers = #tpu.dot_dimension_numbers<[1], [0], [0], [1], [0, 0, 1, 1], [], []>} : vector<128x16xbf16>, vector<16x16xbf16>, vector<128x16xf32> -> vector<128x16xf32>
    %418 = arith.addf %412, %417 : vector<128x16xf32>
    %c576_370 = arith.constant 576 : index
    %c0_371 = arith.constant 0 : index
    %419 = vector.load %arg12[%c576_370, %c0_371] : memref<736x16xf32, #tpu.memory_space<vmem>>, vector<128x16xf32>
    %420 = arith.truncf %419 : vector<128x16xf32> to vector<128x16xbf16>
    %c4_372 = arith.constant 4 : index
    %c0_373 = arith.constant 0 : index
    %c0_374 = arith.constant 0 : index
    %421 = vector.load %arg3[%c4_372, %c0_373, %c0_374] : memref<9x16x16xbf16, #tpu.memory_space<vmem>>, vector<1x16x16xbf16>
    %422 = vector.shape_cast %421 : vector<1x16x16xbf16> to vector<16x16xbf16>
    %cst_375 = arith.constant dense<0.000000e+00> : vector<128x16xf32>
    %423 = tpu.matmul %420, %422, %cst_375 {dimension_numbers = #tpu.dot_dimension_numbers<[1], [0], [0], [1], [0, 0, 1, 1], [], []>} : vector<128x16xbf16>, vector<16x16xbf16>, vector<128x16xf32> -> vector<128x16xf32>
    %424 = arith.addf %418, %423 : vector<128x16xf32>
    %c393_376 = arith.constant 393 : index
    %c0_377 = arith.constant 0 : index
    %425 = vector.load %arg12[%c393_376, %c0_377] : memref<736x16xf32, #tpu.memory_space<vmem>>, vector<128x16xf32>
    %426 = arith.truncf %425 : vector<128x16xf32> to vector<128x16xbf16>
    %c5_378 = arith.constant 5 : index
    %c0_379 = arith.constant 0 : index
    %c0_380 = arith.constant 0 : index
    %427 = vector.load %arg3[%c5_378, %c0_379, %c0_380] : memref<9x16x16xbf16, #tpu.memory_space<vmem>>, vector<1x16x16xbf16>
    %428 = vector.shape_cast %427 : vector<1x16x16xbf16> to vector<16x16xbf16>
    %cst_381 = arith.constant dense<0.000000e+00> : vector<128x16xf32>
    %429 = tpu.matmul %426, %428, %cst_381 {dimension_numbers = #tpu.dot_dimension_numbers<[1], [0], [0], [1], [0, 0, 1, 1], [], []>} : vector<128x16xbf16>, vector<16x16xbf16>, vector<128x16xf32> -> vector<128x16xf32>
    %430 = arith.addf %424, %429 : vector<128x16xf32>
    %c40_382 = arith.constant 40 : index
    %c0_383 = arith.constant 0 : index
    %431 = vector.load %arg12[%c40_382, %c0_383] : memref<736x16xf32, #tpu.memory_space<vmem>>, vector<128x16xf32>
    %432 = arith.truncf %431 : vector<128x16xf32> to vector<128x16xbf16>
    %c6_384 = arith.constant 6 : index
    %c0_385 = arith.constant 0 : index
    %c0_386 = arith.constant 0 : index
    %433 = vector.load %arg3[%c6_384, %c0_385, %c0_386] : memref<9x16x16xbf16, #tpu.memory_space<vmem>>, vector<1x16x16xbf16>
    %434 = vector.shape_cast %433 : vector<1x16x16xbf16> to vector<16x16xbf16>
    %cst_387 = arith.constant dense<0.000000e+00> : vector<128x16xf32>
    %435 = tpu.matmul %432, %434, %cst_387 {dimension_numbers = #tpu.dot_dimension_numbers<[1], [0], [0], [1], [0, 0, 1, 1], [], []>} : vector<128x16xbf16>, vector<16x16xbf16>, vector<128x16xf32> -> vector<128x16xf32>
    %436 = arith.addf %430, %435 : vector<128x16xf32>
    %c224_388 = arith.constant 224 : index
    %c0_389 = arith.constant 0 : index
    %437 = vector.load %arg12[%c224_388, %c0_389] : memref<736x16xf32, #tpu.memory_space<vmem>>, vector<128x16xf32>
    %438 = arith.truncf %437 : vector<128x16xf32> to vector<128x16xbf16>
    %c7_390 = arith.constant 7 : index
    %c0_391 = arith.constant 0 : index
    %c0_392 = arith.constant 0 : index
    %439 = vector.load %arg3[%c7_390, %c0_391, %c0_392] : memref<9x16x16xbf16, #tpu.memory_space<vmem>>, vector<1x16x16xbf16>
    %440 = vector.shape_cast %439 : vector<1x16x16xbf16> to vector<16x16xbf16>
    %cst_393 = arith.constant dense<0.000000e+00> : vector<128x16xf32>
    %441 = tpu.matmul %438, %440, %cst_393 {dimension_numbers = #tpu.dot_dimension_numbers<[1], [0], [0], [1], [0, 0, 1, 1], [], []>} : vector<128x16xbf16>, vector<16x16xbf16>, vector<128x16xf32> -> vector<128x16xf32>
    %442 = arith.addf %436, %441 : vector<128x16xf32>
    %c41_394 = arith.constant 41 : index
    %c0_395 = arith.constant 0 : index
    %443 = vector.load %arg12[%c41_394, %c0_395] : memref<736x16xf32, #tpu.memory_space<vmem>>, vector<128x16xf32>
    %444 = arith.truncf %443 : vector<128x16xf32> to vector<128x16xbf16>
    %c8_396 = arith.constant 8 : index
    %c0_397 = arith.constant 0 : index
    %c0_398 = arith.constant 0 : index
    %445 = vector.load %arg3[%c8_396, %c0_397, %c0_398] : memref<9x16x16xbf16, #tpu.memory_space<vmem>>, vector<1x16x16xbf16>
    %446 = vector.shape_cast %445 : vector<1x16x16xbf16> to vector<16x16xbf16>
    %cst_399 = arith.constant dense<0.000000e+00> : vector<128x16xf32>
    %447 = tpu.matmul %444, %446, %cst_399 {dimension_numbers = #tpu.dot_dimension_numbers<[1], [0], [0], [1], [0, 0, 1, 1], [], []>} : vector<128x16xbf16>, vector<16x16xbf16>, vector<128x16xf32> -> vector<128x16xf32>
    %448 = arith.addf %442, %447 : vector<128x16xf32>
    %449 = vector.broadcast %195 : vector<1x16xf32> to vector<128x16xf32>
    %450 = arith.mulf %448, %449 : vector<128x16xf32>
    %451 = vector.broadcast %196 : vector<1x16xf32> to vector<128x16xf32>
    %452 = arith.addf %450, %451 : vector<128x16xf32>
    %cst_400 = arith.constant 0.000000e+00 : f32
    %453 = vector.broadcast %cst_400 : f32 to vector<128x16xf32>
    %454 = arith.maximumf %452, %453 : vector<128x16xf32>
    %455 = vector.shape_cast %454 : vector<128x16xf32> to vector<8x16x16xf32>
    %456 = vector.extract_strided_slice %455 {offsets = [0, 0, 0], sizes = [8, 8, 16], strides = [1, 1, 1]} : vector<8x16x16xf32> to vector<8x8x16xf32>
    %457 = arith.truncf %456 : vector<8x8x16xf32> to vector<8x8x16xbf16>
    %c0_401 = arith.constant 0 : index
    %c3_402 = arith.constant 3 : index
    %c0_403 = arith.constant 0 : index
    %c0_404 = arith.constant 0 : index
    %c0_405 = arith.constant 0 : index
    %458 = vector.load %arg10[%c0_401, %c3_402, %c0_403, %c0_404, %c0_405] : memref<1x4x8x8x16xbf16, #tpu.memory_space<vmem>>, vector<1x1x8x8x16xbf16>
    %459 = vector.shape_cast %458 : vector<1x1x8x8x16xbf16> to vector<8x8x16xbf16>
    %460 = vector.shape_cast %457 : vector<8x8x16xbf16> to vector<1x1x8x8x16xbf16>
    tpu.vector_store %arg10[%c0_401, %c3_402, %c0_403, %c0_404, %c0_405], %460 {strides = array<i32>} : memref<1x4x8x8x16xbf16, #tpu.memory_space<vmem>>, vector<1x1x8x8x16xbf16>,
    return
  }
  func.func @transform_0(%arg0: i32) -> (i32, i32, i32, i32, i32) {
    %c0_i32 = arith.constant 0 : i32
    %c0_i32_0 = arith.constant 0 : i32
    %c0_i32_1 = arith.constant 0 : i32
    %c0_i32_2 = arith.constant 0 : i32
    %c0_i32_3 = arith.constant 0 : i32
    return %arg0, %c0_i32, %c0_i32_0, %c0_i32_1, %c0_i32_2 : i32, i32, i32, i32, i32
  }
  func.func @transform_1(%arg0: i32) -> (i32, i32, i32, i32) {
    %c0_i32 = arith.constant 0 : i32
    %c0_i32_0 = arith.constant 0 : i32
    %c0_i32_1 = arith.constant 0 : i32
    %c0_i32_2 = arith.constant 0 : i32
    return %arg0, %c0_i32, %c0_i32_0, %c0_i32_1 : i32, i32, i32, i32
  }
  func.func @transform_2(%arg0: i32) -> (i32, i32, i32) {
    %c0_i32 = arith.constant 0 : i32
    %c0_i32_0 = arith.constant 0 : i32
    %c0_i32_1 = arith.constant 0 : i32
    %c0_i32_2 = arith.constant 0 : i32
    return %c0_i32, %c0_i32_0, %c0_i32_1 : i32, i32, i32
  }
  func.func @transform_3(%arg0: i32) -> (i32, i32, i32) {
    %c0_i32 = arith.constant 0 : i32
    %c0_i32_0 = arith.constant 0 : i32
    %c0_i32_1 = arith.constant 0 : i32
    %c0_i32_2 = arith.constant 0 : i32
    return %c0_i32, %c0_i32_0, %c0_i32_1 : i32, i32, i32
  }
  func.func @transform_4(%arg0: i32) -> (i32, i32, i32) {
    %c0_i32 = arith.constant 0 : i32
    %c0_i32_0 = arith.constant 0 : i32
    %c0_i32_1 = arith.constant 0 : i32
    %c0_i32_2 = arith.constant 0 : i32
    return %c0_i32, %c0_i32_0, %c0_i32_1 : i32, i32, i32
  }
  func.func @transform_5(%arg0: i32) -> (i32, i32) {
    %c0_i32 = arith.constant 0 : i32
    %c0_i32_0 = arith.constant 0 : i32
    %c0_i32_1 = arith.constant 0 : i32
    return %c0_i32, %c0_i32_0 : i32, i32
  }
  func.func @transform_6(%arg0: i32) -> (i32, i32) {
    %c0_i32 = arith.constant 0 : i32
    %c0_i32_0 = arith.constant 0 : i32
    %c0_i32_1 = arith.constant 0 : i32
    return %c0_i32, %c0_i32_0 : i32, i32
  }
  func.func @transform_7(%arg0: i32) -> (i32, i32) {
    %c0_i32 = arith.constant 0 : i32
    %c0_i32_0 = arith.constant 0 : i32
    %c0_i32_1 = arith.constant 0 : i32
    return %c0_i32, %c0_i32_0 : i32, i32
  }
  func.func @transform_8(%arg0: i32) -> (i32, i32) {
    %c0_i32 = arith.constant 0 : i32
    %c0_i32_0 = arith.constant 0 : i32
    %c0_i32_1 = arith.constant 0 : i32
    return %c0_i32, %c0_i32_0 : i32, i32
  }
  func.func @transform_9(%arg0: i32) -> (i32, i32, i32, i32, i32) {
    %c0_i32 = arith.constant 0 : i32
    %c0_i32_0 = arith.constant 0 : i32
    %c0_i32_1 = arith.constant 0 : i32
    %c0_i32_2 = arith.constant 0 : i32
    %c0_i32_3 = arith.constant 0 : i32
    return %arg0, %c0_i32, %c0_i32_0, %c0_i32_1, %c0_i32_2 : i32, i32, i32, i32, i32
  }
  func.func @transform_10(%arg0: i32) -> (i32, i32, i32, i32) {
    %c0_i32 = arith.constant 0 : i32
    %c0_i32_0 = arith.constant 0 : i32
    %c0_i32_1 = arith.constant 0 : i32
    %c0_i32_2 = arith.constant 0 : i32
    return %arg0, %c0_i32, %c0_i32_0, %c0_i32_1 : i32, i32, i32, i32
  }
}

module attributes {stable_mosaic.version = 11 : i64} {
  func.func @_last_cb_kernel(%arg0: i32, %arg1: i32, %arg2: memref<1x4x8x8x16xbf16, #tpu.memory_space<vmem>>, %arg3: memref<1x8x8x16xbf16, #tpu.memory_space<vmem>>, %arg4: memref<1x4x8x8x128xf32, #tpu.memory_space<vmem>>, %arg5: memref<16x128xbf16, #tpu.memory_space<vmem>>, %arg6: memref<16x128xbf16, #tpu.memory_space<vmem>>, %arg7: memref<1x128xf32, #tpu.memory_space<vmem>>, %arg8: memref<1x128xf32, #tpu.memory_space<vmem>>, %arg9: memref<1x4x8x8x128xf32, #tpu.memory_space<vmem>>) attributes {dimension_semantics = [#tpu.dimension_semantics<parallel>, #tpu.dimension_semantics<parallel>], iteration_bounds = array<i64: 2, 1>, scalar_prefetch = 0 : i64, scratch_operands = 0 : i64, tpu.core_type = #tpu.core_type<tc>, window_params = [{transform_indices = @transform_0, window_bounds = array<i64: 1, 4, 8, 8, 16>}, {transform_indices = @transform_1, window_bounds = array<i64: 1, 8, 8, 16>}, {transform_indices = @transform_2, window_bounds = array<i64: 1, 4, 8, 8, 128>}, {pipeline_mode = #tpu.pipeline_mode<synchronous>, transform_indices = @transform_3, window_bounds = array<i64: 16, 128>}, {pipeline_mode = #tpu.pipeline_mode<synchronous>, transform_indices = @transform_4, window_bounds = array<i64: 16, 128>}, {pipeline_mode = #tpu.pipeline_mode<synchronous>, transform_indices = @transform_5, window_bounds = array<i64: 1, 128>}, {pipeline_mode = #tpu.pipeline_mode<synchronous>, transform_indices = @transform_6, window_bounds = array<i64: 1, 128>}, {transform_indices = @transform_7, window_bounds = array<i64: 1, 4, 8, 8, 128>}]} {
    %c0 = arith.constant 0 : index
    %c0_0 = arith.constant 0 : index
    %c0_1 = arith.constant 0 : index
    %c0_2 = arith.constant 0 : index
    %0 = vector.load %arg3[%c0, %c0_0, %c0_1, %c0_2] : memref<1x8x8x16xbf16, #tpu.memory_space<vmem>>, vector<1x8x8x16xbf16>
    %1 = vector.shape_cast %0 : vector<1x8x8x16xbf16> to vector<8x8x16xbf16>
    %2 = vector.shape_cast %1 : vector<8x8x16xbf16> to vector<64x16xbf16>
    %c0_3 = arith.constant 0 : index
    %c0_4 = arith.constant 0 : index
    %3 = vector.load %arg6[%c0_3, %c0_4] : memref<16x128xbf16, #tpu.memory_space<vmem>>, vector<16x128xbf16>
    %cst = arith.constant dense<0.000000e+00> : vector<64x128xf32>
    %4 = tpu.matmul %2, %3, %cst {dimension_numbers = #tpu.dot_dimension_numbers<[1], [0], [0], [1], [0, 0, 1, 1], [], []>} : vector<64x16xbf16>, vector<16x128xbf16>, vector<64x128xf32> -> vector<64x128xf32>
    %c0_5 = arith.constant 0 : index
    %c0_6 = arith.constant 0 : index
    %c0_7 = arith.constant 0 : index
    %c0_8 = arith.constant 0 : index
    %c0_9 = arith.constant 0 : index
    %5 = vector.load %arg2[%c0_5, %c0_6, %c0_7, %c0_8, %c0_9] : memref<1x4x8x8x16xbf16, #tpu.memory_space<vmem>>, vector<1x4x8x8x16xbf16>
    %6 = vector.shape_cast %5 : vector<1x4x8x8x16xbf16> to vector<4x8x8x16xbf16>
    %7 = vector.shape_cast %6 : vector<4x8x8x16xbf16> to vector<256x16xbf16>
    %c0_10 = arith.constant 0 : index
    %c0_11 = arith.constant 0 : index
    %8 = vector.load %arg5[%c0_10, %c0_11] : memref<16x128xbf16, #tpu.memory_space<vmem>>, vector<16x128xbf16>
    %cst_12 = arith.constant dense<0.000000e+00> : vector<256x128xf32>
    %9 = tpu.matmul %7, %8, %cst_12 {dimension_numbers = #tpu.dot_dimension_numbers<[1], [0], [0], [1], [0, 0, 1, 1], [], []>} : vector<256x16xbf16>, vector<16x128xbf16>, vector<256x128xf32> -> vector<256x128xf32>
    %10 = vector.shape_cast %9 : vector<256x128xf32> to vector<4x64x128xf32>
    %11 = vector.shape_cast %4 : vector<64x128xf32> to vector<1x64x128xf32>
    %12 = vector.broadcast %11 : vector<1x64x128xf32> to vector<4x64x128xf32>
    %13 = arith.addf %10, %12 : vector<4x64x128xf32>
    %c0_13 = arith.constant 0 : index
    %c0_14 = arith.constant 0 : index
    %14 = vector.load %arg7[%c0_13, %c0_14] : memref<1x128xf32, #tpu.memory_space<vmem>>, vector<1x128xf32>
    %15 = vector.shape_cast %14 : vector<1x128xf32> to vector<1x1x128xf32>
    %16 = vector.broadcast %15 : vector<1x1x128xf32> to vector<4x64x128xf32>
    %17 = arith.mulf %13, %16 : vector<4x64x128xf32>
    %c0_15 = arith.constant 0 : index
    %c0_16 = arith.constant 0 : index
    %18 = vector.load %arg8[%c0_15, %c0_16] : memref<1x128xf32, #tpu.memory_space<vmem>>, vector<1x128xf32>
    %19 = vector.shape_cast %18 : vector<1x128xf32> to vector<1x1x128xf32>
    %20 = vector.broadcast %19 : vector<1x1x128xf32> to vector<4x64x128xf32>
    %21 = arith.addf %17, %20 : vector<4x64x128xf32>
    %c0_17 = arith.constant 0 : index
    %c0_18 = arith.constant 0 : index
    %c0_19 = arith.constant 0 : index
    %c0_20 = arith.constant 0 : index
    %c0_21 = arith.constant 0 : index
    %22 = vector.load %arg4[%c0_17, %c0_18, %c0_19, %c0_20, %c0_21] : memref<1x4x8x8x128xf32, #tpu.memory_space<vmem>>, vector<1x4x8x8x128xf32>
    %23 = vector.shape_cast %22 : vector<1x4x8x8x128xf32> to vector<4x8x8x128xf32>
    %24 = vector.shape_cast %23 : vector<4x8x8x128xf32> to vector<4x64x128xf32>
    %25 = arith.addf %21, %24 : vector<4x64x128xf32>
    %cst_22 = arith.constant 0.000000e+00 : f32
    %26 = vector.broadcast %cst_22 : f32 to vector<4x64x128xf32>
    %27 = arith.maximumf %25, %26 : vector<4x64x128xf32>
    %28 = vector.shape_cast %27 : vector<4x64x128xf32> to vector<4x8x8x128xf32>
    %c0_23 = arith.constant 0 : index
    %c0_24 = arith.constant 0 : index
    %c0_25 = arith.constant 0 : index
    %c0_26 = arith.constant 0 : index
    %c0_27 = arith.constant 0 : index
    %29 = vector.load %arg9[%c0_23, %c0_24, %c0_25, %c0_26, %c0_27] : memref<1x4x8x8x128xf32, #tpu.memory_space<vmem>>, vector<1x4x8x8x128xf32>
    %30 = vector.shape_cast %29 : vector<1x4x8x8x128xf32> to vector<4x8x8x128xf32>
    %31 = vector.shape_cast %28 : vector<4x8x8x128xf32> to vector<1x4x8x8x128xf32>
    tpu.vector_store %arg9[%c0_23, %c0_24, %c0_25, %c0_26, %c0_27], %31 {strides = array<i32>} : memref<1x4x8x8x128xf32, #tpu.memory_space<vmem>>, vector<1x4x8x8x128xf32>,
    return
  }
  func.func @transform_0(%arg0: i32, %arg1: i32) -> (i32, i32, i32, i32, i32) {
    %c0_i32 = arith.constant 0 : i32
    %c0_i32_0 = arith.constant 0 : i32
    %c0_i32_1 = arith.constant 0 : i32
    %c0_i32_2 = arith.constant 0 : i32
    return %arg0, %c0_i32, %arg1, %c0_i32_0, %c0_i32_1 : i32, i32, i32, i32, i32
  }
  func.func @transform_1(%arg0: i32, %arg1: i32) -> (i32, i32, i32, i32) {
    %c0_i32 = arith.constant 0 : i32
    %c0_i32_0 = arith.constant 0 : i32
    %c0_i32_1 = arith.constant 0 : i32
    return %arg0, %arg1, %c0_i32, %c0_i32_0 : i32, i32, i32, i32
  }
  func.func @transform_2(%arg0: i32, %arg1: i32) -> (i32, i32, i32, i32, i32) {
    %c0_i32 = arith.constant 0 : i32
    %c0_i32_0 = arith.constant 0 : i32
    %c0_i32_1 = arith.constant 0 : i32
    %c0_i32_2 = arith.constant 0 : i32
    return %arg0, %c0_i32, %arg1, %c0_i32_0, %c0_i32_1 : i32, i32, i32, i32, i32
  }
  func.func @transform_3(%arg0: i32, %arg1: i32) -> (i32, i32) {
    %c0_i32 = arith.constant 0 : i32
    %c0_i32_0 = arith.constant 0 : i32
    %c0_i32_1 = arith.constant 0 : i32
    return %c0_i32, %c0_i32_0 : i32, i32
  }
  func.func @transform_4(%arg0: i32, %arg1: i32) -> (i32, i32) {
    %c0_i32 = arith.constant 0 : i32
    %c0_i32_0 = arith.constant 0 : i32
    %c0_i32_1 = arith.constant 0 : i32
    return %c0_i32, %c0_i32_0 : i32, i32
  }
  func.func @transform_5(%arg0: i32, %arg1: i32) -> (i32, i32) {
    %c0_i32 = arith.constant 0 : i32
    %c0_i32_0 = arith.constant 0 : i32
    %c0_i32_1 = arith.constant 0 : i32
    return %c0_i32, %c0_i32_0 : i32, i32
  }
  func.func @transform_6(%arg0: i32, %arg1: i32) -> (i32, i32) {
    %c0_i32 = arith.constant 0 : i32
    %c0_i32_0 = arith.constant 0 : i32
    %c0_i32_1 = arith.constant 0 : i32
    return %c0_i32, %c0_i32_0 : i32, i32
  }
  func.func @transform_7(%arg0: i32, %arg1: i32) -> (i32, i32, i32, i32, i32) {
    %c0_i32 = arith.constant 0 : i32
    %c0_i32_0 = arith.constant 0 : i32
    %c0_i32_1 = arith.constant 0 : i32
    %c0_i32_2 = arith.constant 0 : i32
    return %arg0, %c0_i32, %arg1, %c0_i32_0, %c0_i32_1 : i32, i32, i32, i32, i32
  }
}

</mosaic_0001>

<bundles_post_ra>
// kernel: bottleneck_last_forward.3
= control target key start
LH: loop header
LB: loop body
LE: loop exit
PB: predicated region body
PF: predicated region fallthrough
CT: control target
= control target key end

     0   :  { %s1652_s30 = smov 0   ;;  %s1654_s10 = smov 0   ;;  %s2130_s0 = inlined_call_operand.vmem [shape: f32[2,4,8,8,128], index: 0, kind: input, shape index: {}]   ;;  %s2131_s1 = inlined_call_operand.vmem [shape: f32[2,8,8,128], index: 1, kind: input, shape index: {}]   ;;  %s2132_s2 = inlined_call_operand.vmem [shape: bf16[128,32], index: 2, kind: input, shape index: {}]   ;;  %s2133_s3 = inlined_call_operand.vmem [shape: bf16[128,32], index: 3, kind: input, shape index: {}]   ;;  %s2134_s4 = inlined_call_operand.vmem [shape: f32[1,16], index: 4, kind: input, shape index: {}]   ;;  %s2135_s5 = inlined_call_operand.vmem [shape: f32[1,16], index: 5, kind: input, shape index: {}]   ;;  %s2136_s6 = inlined_call_operand.vmem [shape: f32[1,16], index: 6, kind: input, shape index: {}]   ;;  %s2137_s7 = inlined_call_operand.vmem [shape: f32[1,16], index: 7, kind: input, shape index: {}]   ;;  %s2138_s8 = inlined_call_operand.vmem [shape: bf16[2,4,8,8,16], index: 8, kind: output, shape index: {0}]   ;;  %s2139_s9 = inlined_call_operand.vmem [shape: bf16[2,8,8,16], index: 9, kind: output, shape index: {1}]  }
   0x1   :  { %s1656_s11 = smov 0  }
   0x2 LB: > { %s32_s12 = sadd.s32 1, %s1594_s10  ;;  %p1359_p0 = scmp.ge.s32.totalorder %s1598_s11, 1  ;;  %s1598_s11 = sphi %s1656_s11, %s20_s11   ;;  %s1594_s10 = sphi %s1654_s10, %s2141_s10   ;;  %s1590_s30 = sphi %s1652_s30, %s2140_s30  }
   0x3   : > { %p34_p1 = scmp.ge.s32.totalorder %s32_s12, 2  ;;  %p330_p2 = scmp.lt.s32.totalorder %s1598_s11, 3 }
   0x5   : > { %s2143_s12 = smov (%p34_p1, %s32_s12), 0  ;;  %p331_p3 = pnand %p1359_p0, %p330_p2 }
   0x6   : > { %p393_p4 = scmp.lt.s32.totalorder (!%p331_p3), %s1590_s30, 1  ;;  %s1600_s22 = smov (!%p331_p3), 16  }
   0x7   : > { %334 = sbr.rel (%p331_p3) target bundleno = 441 (0x1b9), region = 52  ;;  %s1601_s15 = smov (!%p331_p3), 112  }
   0xc   : > { %v1560_v0 = vld [vmem:[%s2133_s3 + $0x38] sm:$0xff]   ;;  %v1562_v2 = vld [vmem:[%s2133_s3 + $0x30] sm:$0xff]   ;;  %v1564_v4 = vld [vmem:[%s2133_s3 + $0x28] sm:$0xff]   ;;  %s2145_s30 = smov (!%p393_p4, %s1590_s30), 1  ;;  %vm1021_vm0 = vcmask 125952  }
   0xd   : > { %v1676_v1 = vld [vmem:[%s2132_s2 + $0x38] sm:$0xff]   ;;  %1446 = vmatprep.subr.bf16.mxu0 %v1560_v0  ;;  %v1685_v3 = vld [vmem:[%s2132_s2 + $0x30] sm:$0xff]   ;;  %v1695_v5 = vld [vmem:[%s2132_s2 + $0x28] sm:$0xff]   ;;  %s1398_s29 = sshll.u32 %s2145_s30, 8  ;;  %s1399_s13 = sshll.u32 %s2145_s30, 6 }
   0xe   : > { %1518 = vmatprep.subr.bf16.mxu1 %v1676_v1  ;;  %1447 = vmatpush3.bf16.msra.mxu0 %v1560_v0  ;;  %v1566_v6 = vld [vmem:[%s2133_s3 + $0x20] sm:$0xff]   ;;  %v1568_v8 = vld [vmem:[%s2133_s3 + $0x18] sm:$0xff]   ;;  %s1724_s20 = scalar_lea.vmem %s2130_s0, %s1398_s29  ;;  %s1729_s23 = scalar_lea.vmem %s2131_s1, %s1399_s13  ;;  %v1570_v10 = vld [vmem:[%s2133_s3 + $0x10] sm:$0xff]  }
   0xf   : > { %1526 = vmatpush3.bf16.msra.mxu1 %v1676_v1  ;;  %1448 = vmatprep.subr.bf16.mxu0 %v1562_v2  ;;  %v1707_v7 = vld [vmem:[%s2132_s2 + $0x20] sm:$0xff]   ;;  %v1719_v9 = vld [vmem:[%s2132_s2 + $0x18] sm:$0xff]   ;;  %v434_v12 = vld [vmem:[%s1729_s23 + $0x8] sm:$0xff]  ;;  %s1400_s28 = sshll.u32 %s2145_s30, 7  ;;  %s1401_s16 = sshll.u32 %s2145_s30, 5 }
  0x10   : > { %1519 = vmatprep.subr.bf16.mxu1 %v1685_v3  ;;  %v433_v11 = vld [vmem:[%s1729_s23] sm:$0xff]  ;;  %v1742_v14 = vld [vmem:[%s2132_s2 + $0x10] sm:$0xff]   ;;  %v583_v16 = vld [vmem:[%s1724_s20 + $0x48] sm:$0xff]  ;;  %s1871_s14 = scalar_lea.vmem %s2138_s8, %s1400_s28  ;;  %s430_s19 = scalar_lea.vmem %s2139_s9, %s1401_s16 }
  0x11   : > { %v582_v13 = vld [vmem:[%s1724_s20 + $0x40] sm:$0xff]  ;;  %v441_v15 = vpack.c.bf16 %v434_v12, %v433_v11  ;;  %v1572_v18 = vld [vmem:[%s2133_s3 + $0x8] sm:$0xff]   ;;  %v435_v22 = vld [vmem:[%s1729_s23 + $0x10] sm:$0xff] }
  0x12   : > { %1449 = vmatpush3.bf16.msra.mxu0 %v1562_v2  ;;  %v610_v17 = vpack.c.bf16 %v583_v16, %v582_v13  ;;  %v1753_v19 = vld [vmem:[%s2132_s2 + $0x8] sm:$0xff]   ;;  %v1574_v20 = vld [vmem:[%s2133_s3] sm:$0xff]   ;;  %v436_v23 = vld [vmem:[%s1729_s23 + $0x18] sm:$0xff] }
  0x13   : > { %1527 = vmatpush3.bf16.msra.mxu1 %v1685_v3  ;;  %1450 = vmatprep.subr.bf16.mxu0 %v1564_v4  ;;  %v1763_v21 = vld [vmem:[%s2132_s2] sm:$0xff]   ;;  %v584_v24 = vld [vmem:[%s1724_s20 + $0x50] sm:$0xff]  ;;  %v585_v25 = vld [vmem:[%s1724_s20 + $0x58] sm:$0xff]  ;;  %v442_v29 = vpack.c.bf16 %v436_v23, %v435_v22 }
  0x14   : > { %1520 = vmatprep.subr.bf16.mxu1 %v1695_v5  ;;  %1462 = vmatprep.mubr.bf16.mxu0 %v441_v15  ;;  %v437_v26 = vld [vmem:[%s1729_s23 + $0x20] sm:$0xff]  ;;  %v438_v27 = vld [vmem:[%s1729_s23 + $0x28] sm:$0xff]  ;;  %v611_v32 = vpack.c.bf16 %v585_v25, %v584_v24  ;;  %v439_v36 = vld [vmem:[%s1729_s23 + $0x30] sm:$0xff] }
  0x15   : > { %1494 = vmatprep.mubr.bf16.mxu1 %v610_v17  ;;  %v1386_v28 = vld [vmem:[%s2136_s6] ss:$0 sm:$0xff]  ;;  %v587_v31 = vld [vmem:[%s1724_s20 + $0x68] sm:$0xff]  ;;  %v443_v34 = vpack.c.bf16 %v438_v27, %v437_v26  ;;  %v440_v37 = vld [vmem:[%s1729_s23 + $0x38] sm:$0xff] }
  0x16   : > { %1451 = vmatpush3.bf16.msra.mxu0 %v1564_v4  ;;  %v586_v30 = vld [vmem:[%s1724_s20 + $0x60] sm:$0xff]  ;;  %1100 = vrot.lane.b32.xlu0 %v1386_v28, %s1600_s22  ;;  %v588_v38 = vld [vmem:[%s1724_s20 + $0x70] sm:$0xff]  ;;  %v589_v39 = vld [vmem:[%s1724_s20 + $0x78] sm:$0xff]  ;;  %v444_v42 = vpack.c.bf16 %v440_v37, %v439_v36 }
  0x17   : > { %1528 = vmatpush3.bf16.msra.mxu1 %v1695_v5  ;;  %1452 = vmatprep.subr.bf16.mxu0 %v1566_v6  ;;  %v1387_v33 = vld [vmem:[%s2137_s7] ss:$0 sm:$0xff]  ;;  %v612_v35 = vpack.c.bf16 %v587_v31, %v586_v30  ;;  %v591_v41 = vld [vmem:[%s1724_s20 + $0x88] sm:$0xff]  ;;  %v613_v45 = vpack.c.bf16 %v589_v39, %v588_v38  ;;  %v592_v48 = vld [vmem:[%s1724_s20 + $0x90] sm:$0xff] }
  0x18   : > { %1521 = vmatprep.subr.bf16.mxu1 %v1707_v7  ;;  %v590_v40 = vld [vmem:[%s1724_s20 + $0x80] sm:$0xff]  ;;  %v575_v44 = vld [vmem:[%s1724_s20 + $0x8] sm:$0xff]  ;;  %v593_v49 = vld [vmem:[%s1724_s20 + $0x98] sm:$0xff] }
  0x19   : > { %v574_v43 = vld [vmem:[%s1724_s20] sm:$0xff]  ;;  %v614_v46 = vpack.c.bf16 %v591_v41, %v590_v40  ;;  %v595_v51 = vld [vmem:[%s1724_s20 + $0xa8] sm:$0xff]  ;;  %v615_v52 = vpack.c.bf16 %v593_v49, %v592_v48  ;;  %v596_v54 = vld [vmem:[%s1724_s20 + $0xb0] sm:$0xff] }
  0x1a   : > { %1453 = vmatpush3.bf16.msra.mxu0 %v1566_v6  ;;  %1117 = vrot.lane.b32.xlu0 %v1387_v33, %s1600_s22  ;;  %v606_v47 = vpack.c.bf16 %v575_v44, %v574_v43  ;;  %v594_v50 = vld [vmem:[%s1724_s20 + $0xa0] sm:$0xff]  ;;  %v597_v55 = vld [vmem:[%s1724_s20 + $0xb8] sm:$0xff]  ;;  %v599_v57 = vld [vmem:[%s1724_s20 + $0xc8] sm:$0xff] }
  0x1b   : > { %1529 = vmatpush3.bf16.msra.mxu1 %v1707_v7  ;;  %1454 = vmatprep.subr.bf16.mxu0 %v1568_v8  ;;  %v616_v53 = vpack.c.bf16 %v595_v51, %v594_v50  ;;  %v598_v56 = vld [vmem:[%s1724_s20 + $0xc0] sm:$0xff]  ;;  %v617_v58 = vpack.c.bf16 %v597_v55, %v596_v54  ;;  %v576_v60 = vld [vmem:[%s1724_s20 + $0x10] sm:$0xff]  ;;  %v577_v61 = vld [vmem:[%s1724_s20 + $0x18] sm:$0xff] }
  0x1c   : > { %1522 = vmatprep.subr.bf16.mxu1 %v1719_v9  ;;  %v618_v59 = vpack.c.bf16 %v599_v57, %v598_v56  ;;  %v600_v62 = vld [vmem:[%s1724_s20 + $0xd0] sm:$0xff]  ;;  %v601_v63 = vld [vmem:[%s1724_s20 + $0xd8] sm:$0xff]  ;;  %v578_v0 = vld [vmem:[%s1724_s20 + $0x20] sm:$0xff]  ;;  %v607_v4 = vpack.c.bf16 %v577_v61, %v576_v60 }
  0x1d   : > { %v602_v2 = vld [vmem:[%s1724_s20 + $0xe0] sm:$0xff]  ;;  %v605_v11 = vld [vmem:[%s1724_s20 + $0xf8] sm:$0xff] }
  0x1e   : > { %1455 = vmatpush3.bf16.msra.mxu0 %v1568_v8  ;;  %v580_v8 = vld [vmem:[%s1724_s20 + $0x30] sm:$0xff]  ;;  %v1833_v16 = vld [vmem:[%s2134_s4] ss:$0 sm:$0xff] }
  0x1f   : > { %1530 = vmatpush3.bf16.msra.mxu1 %v1719_v9  ;;  %1456 = vmatprep.subr.bf16.mxu0 %v1570_v10 }
  0x20   : > { %1523 = vmatprep.subr.bf16.mxu1 %v1742_v14 }
  0x22   : > { %1457 = vmatpush3.bf16.msra.mxu0 %v1570_v10  ;;  %v604_v10 = vld [vmem:[%s1724_s20 + $0xf0] sm:$0xff] }
  0x23   : > { %1531 = vmatpush3.bf16.msra.mxu1 %v1742_v14  ;;  %1458 = vmatprep.subr.bf16.mxu0 %v1572_v18  ;;  %v621_v13 = vpack.c.bf16 %v605_v11, %v604_v10 }
  0x24   : > { %1524 = vmatprep.subr.bf16.mxu1 %v1753_v19 }
  0x26   : > { %1459 = vmatpush3.bf16.msra.mxu0 %v1572_v18 }
  0x27   : > { %1532 = vmatpush3.bf16.msra.mxu1 %v1753_v19  ;;  %1460 = vmatprep.subr.bf16.mxu0 %v1574_v20 }
  0x28   : > { %1525 = vmatprep.subr.bf16.mxu1 %v1763_v21 }
  0x2a   : > { %1461 = vmatpush3.bf16.msra.mxu0 %v1574_v20 }
  0x2b   : > { %1533 = vmatpush3.bf16.msra.mxu1 %v1763_v21  ;;  %1470 = vmatprep.subr.bf16.mxu0 %v1676_v1 }
  0x2d   : > { %1463 = vmatmul.mubr.bf16.vlgmr.msra.gmra.mxu0 %v442_v29 }
  0x2e   : > { %1495 = vmatmul.mubr.bf16.vlgmr.msra.gmra.mxu1 %v611_v32  ;;  %1471 = vmatpush3.bf16.msra.mxu0 %v1676_v1  ;;  %v579_v1 = vld [vmem:[%s1724_s20 + $0x28] sm:$0xff] }
  0x2f   : > { %1472 = vmatprep.subr.bf16.mxu0 %v1685_v3  ;;  %1466 = vmatprep.mubr.bf16.mxu0 %v443_v34  ;;  %v608_v6 = vpack.c.bf16 %v579_v1, %v578_v0 }
  0x30   : > { %1498 = vmatprep.mubr.bf16.mxu1 %v612_v35 }
  0x32   : > { %1473 = vmatpush3.bf16.msra.mxu0 %v1685_v3  ;;  %v603_v3 = vld [vmem:[%s1724_s20 + $0xe8] sm:$0xff] }
  0x33   : > { %1474 = vmatprep.subr.bf16.mxu0 %v1695_v5 }
  0x35   : > { %1467 = vmatmul.mubr.bf16.gmra.mxu0 %v444_v42 }
  0x36   : > { %1499 = vmatmul.mubr.bf16.gmra.mxu1 %v613_v45  ;;  %1475 = vmatpush3.bf16.msra.mxu0 %v1695_v5  ;;  %v619_v5 = vpack.c.bf16 %v601_v63, %v600_v62 }
  0x37   : > { %1476 = vmatprep.subr.bf16.mxu0 %v1707_v7  ;;  %1502 = vmatprep.mubr.bf16.mxu1 %v614_v46 }
  0x38   : > { %1486 = vmatprep.mubr.bf16.mxu0 %v606_v47 }
  0x3a   : > { %1477 = vmatpush3.bf16.msra.mxu0 %v1707_v7  ;;  %v620_v7 = vpack.c.bf16 %v603_v3, %v602_v2 }
  0x3b   : > { %1478 = vmatprep.subr.bf16.mxu0 %v1719_v9 }
  0x3e   : > { %1503 = vmatmul.mubr.bf16.gmra.mxu1 %v615_v52  ;;  %1479 = vmatpush3.bf16.msra.mxu0 %v1719_v9  ;;  %v581_v9 = vld [vmem:[%s1724_s20 + $0x38] sm:$0xff] }
  0x3f   : > { %1480 = vmatprep.subr.bf16.mxu0 %v1742_v14  ;;  %1506 = vmatprep.mubr.bf16.mxu1 %v616_v53  ;;  %v609_v12 = vpack.c.bf16 %v581_v9, %v580_v8 }
  0x42   : > { %1481 = vmatpush3.bf16.msra.mxu0 %v1742_v14 }
  0x43   : > { %1482 = vmatprep.subr.bf16.mxu0 %v1753_v19 }
  0x46   : > { %1507 = vmatmul.mubr.bf16.gmra.mxu1 %v617_v58  ;;  %1483 = vmatpush3.bf16.msra.mxu0 %v1753_v19  ;;  %v1842_v19 = vld [vmem:[%s2135_s5] ss:$0 sm:$0xff] }
  0x47   : > { %1484 = vmatprep.subr.bf16.mxu0 %v1763_v21  ;;  %1510 = vmatprep.mubr.bf16.mxu1 %v618_v59 }
  0x4a   : > { %1485 = vmatpush3.bf16.msra.mxu0 %v1763_v21 }
  0x4d   : > { %1487 = vmatmul.mubr.bf16.vlgmr.msra.gmra.mxu0 %v607_v4 }
  0x4e   : > { %1511 = vmatmul.mubr.bf16.gmra.mxu1 %v619_v5  ;;  %1490 = vmatprep.mubr.bf16.mxu0 %v608_v6 }
  0x4f   : > { %1514 = vmatprep.mubr.bf16.mxu1 %v620_v7 }
  0x55   : > { %1491 = vmatmul.mubr.bf16.gmra.mxu0 %v609_v12 }
  0x56   : > { %1515 = vmatmul.mubr.bf16.gmra.mxu1 %v621_v13 }
  0xed   : > { %v1826_v14 = vpop.f32.mrf.mxu0 }
  0xee   : > { %v1828_v15 = vpop.f32.mrf.mxu1 }
  0xef   : > { %v857_v17 = vadd.f32 %v1828_v15, %v1826_v14  ;;  %v1837_v18 = vpop.f32.mrf.mxu0 }
  0xf0   : > { %v1844_v20 = vpop.f32.mrf.mxu1 }
  0xf1   : > { %v896_v21 = vmul.f32 %v1833_v16, %v857_v17  ;;  %v855_v22 = vadd.f32 %v1844_v20, %v1837_v18  ;;  %v1849_v23 = vpop.f32.mrf.mxu0 }
  0xf2   : > { %v1851_v24 = vpop.f32.mrf.mxu1 }
  0xf3   : > { %v935_v25 = vadd.f32 %v1842_v19, %v896_v21  ;;  %v894_v26 = vmul.f32 %v1833_v16, %v855_v22  ;;  %v858_v27 = vadd.f32 %v1851_v24, %v1849_v23  ;;  %v1858_v28 = vpop.f32.mrf.mxu0 }
  0xf4   : > { %v1860_v29 = vpop.f32.mrf.mxu1 }
  0xf5   : > { %v967_v30 = vmax.f32 %v935_v25, 0.0  ;;  %v933_v31 = vadd.f32 %v1842_v19, %v894_v26  ;;  %v897_v32 = vmul.f32 %v1833_v16, %v858_v27  ;;  %v856_v33 = vadd.f32 %v1860_v29, %v1858_v28  ;;  %v1866_v34 = vpop.f32.mrf.mxu0 }
  0xf6   : > { %v1873_v35 = vpop.f32.mrf.mxu1 }
  0xf7   : > { %v999_v36 = vpack.c.bf16 %v967_v30, %v967_v30  ;;  %v965_v37 = vmax.f32 %v933_v31, 0.0  ;;  %v936_v38 = vadd.f32 %v1842_v19, %v897_v32  ;;  %v895_v39 = vmul.f32 %v1833_v16, %v856_v33  ;;  %v1877_v40 = vpop.f32.mrf.mxu0 }
  0xf8   : > { %v861_v41 = vadd.f32 %v1873_v35, %v1866_v34  ;;  %v1881_v42 = vpop.f32.mrf.mxu1 }
  0xf9   : > { %1032 = vst.msk [vmem:[%s1871_s14 + $0x28] sm:$0xf] %vm1021_vm0, %v999_v36  ;;  %v997_v43 = vpack.c.bf16 %v965_v37, %v965_v37  ;;  %v968_v44 = vmax.f32 %v936_v38, 0.0  ;;  %v934_v45 = vadd.f32 %v1842_v19, %v895_v39  ;;  %v859_v46 = vadd.f32 %v1881_v42, %v1877_v40  ;;  %v1888_v47 = vpop.f32.mrf.mxu0 }
  0xfa   : > { %v900_v48 = vmul.f32 %v1833_v16, %v861_v41  ;;  %v1891_v49 = vpop.f32.mrf.mxu1 }
  0xfb   : > { %1030 = vst.msk [vmem:[%s1871_s14 + $0x20] sm:$0xf] %vm1021_vm0, %v997_v43  ;;  %v1000_v50 = vpack.c.bf16 %v968_v44, %v968_v44  ;;  %v966_v51 = vmax.f32 %v934_v45, 0.0  ;;  %v898_v52 = vmul.f32 %v1833_v16, %v859_v46  ;;  %v862_v53 = vadd.f32 %v1891_v49, %v1888_v47  ;;  %v1898_v54 = vpop.f32.mrf.mxu0 }
  0xfc   : > { %v939_v55 = vadd.f32 %v1842_v19, %v900_v48  ;;  %v1901_v56 = vpop.f32.mrf.mxu1 }
  0xfd   : > { %1033 = vst.msk [vmem:[%s1871_s14 + $0x2c] sm:$0xf] %vm1021_vm0, %v1000_v50  ;;  %v998_v57 = vpack.c.bf16 %v966_v51, %v966_v51  ;;  %v937_v58 = vadd.f32 %v1842_v19, %v898_v52  ;;  %v901_v59 = vmul.f32 %v1833_v16, %v862_v53  ;;  %v860_v60 = vadd.f32 %v1901_v56, %v1898_v54 }
  0xfe   : > { %v971_v61 = vmax.f32 %v939_v55, 0.0  ;;  %v1909_v62 = vpop.f32.mrf.mxu1 }
  0xff   : > { %1031 = vst.msk [vmem:[%s1871_s14 + $0x24] sm:$0xf] %vm1021_vm0, %v998_v57  ;;  %v969_v63 = vmax.f32 %v937_v58, 0.0  ;;  %v940_v0 = vadd.f32 %v1842_v19, %v901_v59  ;;  %v899_v1 = vmul.f32 %v1833_v16, %v860_v60  ;;  %v865_v2 = vadd.f32 %v1909_v62, %v1826_v14 }
 0x100   : > { %v1003_v3 = vpack.c.bf16 %v971_v61, %v971_v61  ;;  %v1917_v4 = vpop.f32.mrf.mxu1 }
 0x101   : > { %v1001_v5 = vpack.c.bf16 %v969_v63, %v969_v63  ;;  %v972_v6 = vmax.f32 %v940_v0, 0.0  ;;  %v938_v7 = vadd.f32 %v1842_v19, %v899_v1  ;;  %v904_v8 = vmul.f32 %v1833_v16, %v865_v2 }
 0x102   : > { %1036 = vst.msk [vmem:[%s1871_s14 + $0x38] sm:$0xf] %vm1021_vm0, %v1003_v3  ;;  %v863_v9 = vadd.f32 %v1917_v4, %v1837_v18  ;;  %v1925_v10 = vpop.f32.mrf.mxu1 }
 0x103   : > { %1034 = vst.msk [vmem:[%s1871_s14 + $0x30] sm:$0xf] %vm1021_vm0, %v1001_v5  ;;  %v1004_v11 = vpack.c.bf16 %v972_v6, %v972_v6  ;;  %v970_v12 = vmax.f32 %v938_v7, 0.0  ;;  %v943_v13 = vadd.f32 %v1842_v19, %v904_v8  ;;  %v866_v17 = vadd.f32 %v1925_v10, %v1849_v23 }
 0x104   : > { %v902_v21 = vmul.f32 %v1833_v16, %v863_v9  ;;  %v1933_v22 = vpop.f32.mrf.mxu1 }
 0x105   : > { %1037 = vst.msk [vmem:[%s1871_s14 + $0x3c] sm:$0xf] %vm1021_vm0, %v1004_v11  ;;  %v1002_v25 = vpack.c.bf16 %v970_v12, %v970_v12  ;;  %v975_v26 = vmax.f32 %v943_v13, 0.0  ;;  %v905_v27 = vmul.f32 %v1833_v16, %v866_v17  ;;  %v864_v30 = vadd.f32 %v1933_v22, %v1858_v28 }
 0x106   : > { %v941_v31 = vadd.f32 %v1842_v19, %v902_v21  ;;  %v1941_v32 = vpop.f32.mrf.mxu1 }
 0x107   : > { %1035 = vst.msk [vmem:[%s1871_s14 + $0x34] sm:$0xf] %vm1021_vm0, %v1002_v25  ;;  %v1007_v33 = vpack.c.bf16 %v975_v26, %v975_v26  ;;  %v944_v36 = vadd.f32 %v1842_v19, %v905_v27  ;;  %v903_v37 = vmul.f32 %v1833_v16, %v864_v30  ;;  %v869_v38 = vadd.f32 %v1941_v32, %v1866_v34 }
 0x108   : > { %v973_v39 = vmax.f32 %v941_v31, 0.0  ;;  %v1949_v41 = vpop.f32.mrf.mxu1 }
 0x109   : > { %1040 = vst.msk [vmem:[%s1871_s14 + $0x48] sm:$0xf] %vm1021_vm0, %v1007_v33  ;;  %v976_v43 = vmax.f32 %v944_v36, 0.0  ;;  %v942_v44 = vadd.f32 %v1842_v19, %v903_v37  ;;  %v908_v45 = vmul.f32 %v1833_v16, %v869_v38  ;;  %v867_v46 = vadd.f32 %v1949_v41, %v1877_v40 }
 0x10a   : > { %v1005_v48 = vpack.c.bf16 %v973_v39, %v973_v39  ;;  %v1957_v50 = vpop.f32.mrf.mxu1 }
 0x10b   : > { %v1008_v51 = vpack.c.bf16 %v976_v43, %v976_v43  ;;  %v974_v52 = vmax.f32 %v942_v44, 0.0  ;;  %v947_v53 = vadd.f32 %v1842_v19, %v908_v45  ;;  %v906_v55 = vmul.f32 %v1833_v16, %v867_v46 }
 0x10c   : > { %1038 = vst.msk [vmem:[%s1871_s14 + $0x40] sm:$0xf] %vm1021_vm0, %v1005_v48  ;;  %v870_v57 = vadd.f32 %v1957_v50, %v1888_v47  ;;  %v1965_v58 = vpop.f32.mrf.mxu1 }
 0x10d   : > { %1041 = vst.msk [vmem:[%s1871_s14 + $0x4c] sm:$0xf] %vm1021_vm0, %v1008_v51  ;;  %v1006_v59 = vpack.c.bf16 %v974_v52, %v974_v52  ;;  %v979_v60 = vmax.f32 %v947_v53, 0.0  ;;  %v945_v61 = vadd.f32 %v1842_v19, %v906_v55  ;;  %v868_v63 = vadd.f32 %v1965_v58, %v1898_v54  ;;  %v1488_v0 = vpop.f32.mrf.mxu0 }
 0x10e   : > { %v909_v1 = vmul.f32 %v1833_v16, %v870_v57  ;;  %v849_v2 = vadd.f32 %v1488_v0, %v1826_v14  ;;  %v1056_v3 = vadd.f32 %v1828_v15, %v1488_v0  ;;  %v1512_v5 = vpop.f32.mrf.mxu1 }
 0x10f   : > { %1039 = vst.msk [vmem:[%s1871_s14 + $0x44] sm:$0xf] %vm1021_vm0, %v1006_v59  ;;  %v1011_v6 = vpack.c.bf16 %v979_v60, %v979_v60  ;;  %v977_v7 = vmax.f32 %v945_v61, 0.0  ;;  %v907_v8 = vmul.f32 %v1833_v16, %v868_v63  ;;  %v873_v9 = vadd.f32 %v1512_v5, %v1826_v14  ;;  %v720_v11 = vpop.f32.mrf.mxu0 }
 0x110   : > { %v948_v12 = vadd.f32 %v1842_v19, %v909_v1  ;;  %v888_v13 = vmul.f32 %v1833_v16, %v849_v2  ;;  %v1064_v17 = vadd.f32 %v1909_v62, %v1056_v3  ;;  %v847_v21 = vadd.f32 %v720_v11, %v1837_v18  ;;  %v816_v15 = vpop.f32.mrf.mxu1 }
 0x111   : > { %1044 = vst.msk [vmem:[%s1871_s14 + $0x58] sm:$0xf] %vm1021_vm0, %v1011_v6  ;;  %v1009_v25 = vpack.c.bf16 %v977_v7, %v977_v7  ;;  %v946_v26 = vadd.f32 %v1842_v19, %v907_v8  ;;  %v912_v27 = vmul.f32 %v1833_v16, %v873_v9  ;;  %v1054_v30 = vadd.f32 %v1844_v20, %v720_v11  ;;  %v1489_v31 = vpop.f32.mrf.mxu0 }
 0x112   : > { %v980_v33 = vmax.f32 %v948_v12, 0.0  ;;  %v927_v36 = vadd.f32 %v1842_v19, %v888_v13  ;;  %v1072_v37 = vadd.f32 %v1512_v5, %v1064_v17  ;;  %v886_v62 = vmul.f32 %v1833_v16, %v847_v21  ;;  %v1513_v38 = vpop.f32.mrf.mxu1 }
 0x113   : > { %1042 = vst.msk [vmem:[%s1871_s14 + $0x50] sm:$0xf] %vm1021_vm0, %v1009_v25  ;;  %v978_v39 = vmax.f32 %v946_v26, 0.0  ;;  %v951_v43 = vadd.f32 %v1842_v19, %v912_v27  ;;  %v871_v44 = vadd.f32 %v816_v15, %v1837_v18  ;;  %v1062_v45 = vadd.f32 %v1054_v30, %v1917_v4  ;;  %v723_v51 = vpop.f32.mrf.mxu0 }
 0x114   : > { %v1012_v20 = vpack.c.bf16 %v980_v33, %v980_v33  ;;  %v959_v46 = vmax.f32 %v927_v36, 0.0  ;;  %v925_v48 = vadd.f32 %v1842_v19, %v886_v62  ;;  %v850_v61 = vadd.f32 %v1489_v31, %v1849_v23  ;;  %v819_v63 = vpop.f32.mrf.mxu1 }
 0x115   : > { %v1010_v52 = vpack.c.bf16 %v978_v39, %v978_v39  ;;  %v983_v53 = vmax.f32 %v951_v43, 0.0  ;;  %v910_v55 = vmul.f32 %v1833_v16, %v871_v44  ;;  %v1070_v57 = vadd.f32 %v1062_v45, %v816_v15  ;;  %v1492_v8 = vpop.f32.mrf.mxu0 }
 0x116   : > { %1045 = vst.msk [vmem:[%s1871_s14 + $0x5c] sm:$0xf] %vm1021_vm0, %v1012_v20  ;;  %v991_v59 = vpack.c.bf16 %v959_v46, %v959_v46  ;;  %v957_v60 = vmax.f32 %v925_v48, 0.0  ;;  %v1080_v0 = vmul.f32 0.25, %v1072_v37  ;;  %v1057_v2 = vadd.f32 %v1851_v24, %v1489_v31  ;;  %v1516_v25 = vpop.f32.mrf.mxu1 }
 0x117   : > { %1043 = vst.msk [vmem:[%s1871_s14 + $0x54] sm:$0xf] %vm1021_vm0, %v1010_v52  ;;  %v1015_v4 = vpack.c.bf16 %v983_v53, %v983_v53  ;;  %v949_v1 = vadd.f32 %v1842_v19, %v910_v55  ;;  %v889_v5 = vmul.f32 %v1833_v16, %v850_v61  ;;  %v874_v6 = vadd.f32 %v1513_v38, %v1849_v23  ;;  %v736_v37 = vpop.f32.mrf.mxu0 }
 0x118   : > { %1024 = vst.msk [vmem:[%s1871_s14 + $0x8] sm:$0xf] %vm1021_vm0, %v991_v59  ;;  %v989_v3 = vpack.c.bf16 %v957_v60, %v957_v60  ;;  %v848_v7 = vadd.f32 %v723_v51, %v1858_v28  ;;  %v1078_v11 = vmul.f32 0.25, %v1070_v57  ;;  %v1065_v12 = vadd.f32 %v1925_v10, %v1057_v2  ;;  %v832_v46 = vpop.f32.mrf.mxu1 }
 0x119   : > { %1048 = vst.msk [vmem:[%s1871_s14 + $0x68] sm:$0xf] %vm1021_vm0, %v1015_v4  ;;  %v981_v9 = vmax.f32 %v949_v1, 0.0  ;;  %v1055_v13 = vadd.f32 %v1860_v29, %v723_v51  ;;  %v928_v24 = vadd.f32 %v1842_v19, %v889_v5  ;;  %v913_v17 = vmul.f32 %v1833_v16, %v874_v6  ;;  %v1493_v59 = vpop.f32.mrf.mxu0 }
 0x11a   : > { %1022 = vst.msk [vmem:[%s1871_s14] sm:$0xf] %vm1021_vm0, %v989_v3  ;;  %v887_v21 = vmul.f32 %v1833_v16, %v848_v7  ;;  %v872_v15 = vadd.f32 %v819_v63, %v1858_v28  ;;  %v1073_v27 = vadd.f32 %v1513_v38, %v1065_v12  ;;  %v853_v10 = vadd.f32 %v1492_v8, %v1866_v34  ;;  %v1517_v2 = vpop.f32.mrf.mxu1 }
 0x11b   : > { %v1013_v26 = vpack.c.bf16 %v981_v9, %v981_v9  ;;  %v1063_v30 = vadd.f32 %v1055_v13, %v1933_v22  ;;  %v960_v31 = vmax.f32 %v928_v24, 0.0  ;;  %v952_v29 = vadd.f32 %v1842_v19, %v913_v17 }
 0x11c   : > { %v926_v33 = vadd.f32 %v1842_v19, %v887_v21  ;;  %v911_v36 = vmul.f32 %v1833_v16, %v872_v15  ;;  %v2025_v62 = vadd.f32 %v1826_v14, %v1080_v0  ;;  %v1081_v39 = vmul.f32 0.25, %v1073_v27 }
 0x11d   : > { %1046 = vst.msk [vmem:[%s1871_s14 + $0x60] sm:$0xf] %vm1021_vm0, %v1013_v26  ;;  %v892_v38 = vmul.f32 %v1833_v16, %v853_v10  ;;  %v1060_v22 = vadd.f32 %v1873_v35, %v1492_v8  ;;  %v992_v43 = vpack.c.bf16 %v960_v31, %v960_v31  ;;  %v984_v44 = vmax.f32 %v952_v29, 0.0  ;;  %v739_v26 = vpop.f32.mrf.mxu0 }
 0x11e   : > { %v958_v45 = vmax.f32 %v926_v33, 0.0  ;;  %v950_v20 = vadd.f32 %v1842_v19, %v911_v36  ;;  %v2033_v48 = vadd.f32 %v1078_v11, %v1837_v18  ;;  %v1071_v14 = vadd.f32 %v1063_v30, %v819_v63 }
 0x11f   : > { %v931_v51 = vadd.f32 %v1842_v19, %v892_v38  ;;  %v877_v52 = vadd.f32 %v1516_v25, %v1866_v34  ;;  %1025 = vst.msk [vmem:[%s1871_s14 + $0xc] sm:$0xf] %vm1021_vm0, %v992_v43  ;;  %v1016_v53 = vpack.c.bf16 %v984_v44, %v984_v44  ;;  %v1068_v57 = vadd.f32 %v1941_v32, %v1060_v22 }
 0x120   : > { %v990_v35 = vpack.c.bf16 %v958_v45, %v958_v45  ;;  %v982_v55 = vmax.f32 %v950_v20, 0.0  ;;  %v2041_v60 = vadd.f32 %v1849_v23, %v1081_v39  ;;  %v851_v63 = vadd.f32 %v736_v37, %v1877_v40 }
 0x121   : > { %v963_v61 = vmax.f32 %v931_v51, 0.0  ;;  %v916_v18 = vmul.f32 %v1833_v16, %v877_v52  ;;  %1049 = vst.msk [vmem:[%s1871_s14 + $0x6c] sm:$0xf] %vm1021_vm0, %v1016_v53  ;;  %v1076_v0 = vadd.f32 %v1516_v25, %v1068_v57  ;;  %v1058_v1 = vadd.f32 %v1881_v42, %v736_v37  ;;  %v2059_v42 = vpop.permute.xlu0 %1100  ;;  %v835_v37 = vpop.f32.mrf.mxu1 }
 0x122   : > { %1023 = vst.msk [vmem:[%s1871_s14 + $0x4] sm:$0xf] %vm1021_vm0, %v990_v35  ;;  %v1014_v4 = vpack.c.bf16 %v982_v55, %v982_v55  ;;  %v875_v32 = vadd.f32 %v832_v46, %v1877_v40  ;;  %v890_v5 = vmul.f32 %v1833_v16, %v851_v63  ;;  %v854_v6 = vadd.f32 %v1493_v59, %v1888_v47 }
 0x123   : > { %v995_v3 = vpack.c.bf16 %v963_v61, %v963_v61  ;;  %v955_v23 = vadd.f32 %v1842_v19, %v916_v18  ;;  %v1079_v7 = vmul.f32 0.25, %v1071_v14  ;;  %v1066_v9 = vadd.f32 %v1058_v1, %v1949_v41 }
 0x124   : > { %1047 = vst.msk [vmem:[%s1871_s14 + $0x64] sm:$0xf] %vm1021_vm0, %v1014_v4  ;;  %v914_v8 = vmul.f32 %v1833_v16, %v875_v32  ;;  %v1061_v11 = vadd.f32 %v1891_v49, %v1493_v59  ;;  %v929_v13 = vadd.f32 %v1842_v19, %v890_v5  ;;  %v893_v24 = vmul.f32 %v1833_v16, %v854_v6 }
 0x125   : > { %1028 = vst.msk [vmem:[%s1871_s14 + $0x18] sm:$0xf] %vm1021_vm0, %v995_v3  ;;  %v987_v12 = vmax.f32 %v955_v23, 0.0  ;;  %v878_v17 = vadd.f32 %v1517_v2, %v1888_v47  ;;  %v1084_v21 = vmul.f32 0.25, %v1076_v0  ;;  %v1074_v25 = vadd.f32 %v1066_v9, %v832_v46  ;;  %v1118_v20 = vpop.permute.xlu0 %1117 }
 0x126   : > { %v953_v15 = vadd.f32 %v1842_v19, %v914_v8  ;;  %v1069_v41 = vadd.f32 %v1957_v50, %v1061_v11  ;;  %v961_v27 = vmax.f32 %v929_v13, 0.0  ;;  %v932_v30 = vadd.f32 %v1842_v19, %v893_v24 }
 0x127   : > { %v1019_v49 = vpack.c.bf16 %v987_v12, %v987_v12  ;;  %v917_v10 = vmul.f32 %v1833_v16, %v878_v17  ;;  %v1087_v31 = vadd.f32 %v1079_v7, %v1858_v28  ;;  %v1082_v33 = vmul.f32 0.25, %v1074_v25 }
 0x128   : > { %v985_v29 = vmax.f32 %v953_v15, 0.0  ;;  %v1077_v36 = vadd.f32 %v1517_v2, %v1069_v41  ;;  %v993_v39 = vpack.c.bf16 %v961_v27, %v961_v27  ;;  %v964_v38 = vmax.f32 %v932_v30, 0.0 }
 0x129   : > { %1052 = vst.msk [vmem:[%s1871_s14 + $0x78] sm:$0xf] %vm1021_vm0, %v1019_v49  ;;  %v956_v50 = vadd.f32 %v1842_v19, %v917_v10  ;;  %v852_v22 = vadd.f32 %v739_v26, %v1898_v54  ;;  %v1092_v43 = vadd.f32 %v1866_v34, %v1084_v21  ;;  %v1090_v45 = vadd.f32 %v1082_v33, %v1877_v40 }
 0x12a   : > { %v1017_v44 = vpack.c.bf16 %v985_v29, %v985_v29  ;;  %v1059_v28 = vadd.f32 %v1901_v56, %v739_v26  ;;  %1026 = vst.msk [vmem:[%s1871_s14 + $0x10] sm:$0xf] %vm1021_vm0, %v993_v39  ;;  %v996_v46 = vpack.c.bf16 %v964_v38, %v964_v38  ;;  %v876_v52 = vadd.f32 %v835_v37, %v1898_v54 }
 0x12b   : > { %v988_v14 = vmax.f32 %v956_v50, 0.0  ;;  %v891_v51 = vmul.f32 %v1833_v16, %v852_v22  ;;  %v1107_v53 = vmul.f32 %v2059_v42, %v1090_v45  ;;  %v1085_v34 = vmul.f32 0.25, %v1077_v36 }
 0x12c   : > { %1050 = vst.msk [vmem:[%s1871_s14 + $0x70] sm:$0xf] %vm1021_vm0, %v1017_v44  ;;  %v1067_v35 = vadd.f32 %v1059_v28, %v1965_v58  ;;  %v1105_v40 = vmul.f32 %v2059_v42, %v2025_v62  ;;  %1029 = vst.msk [vmem:[%s1871_s14 + $0x1c] sm:$0xf] %vm1021_vm0, %v996_v46  ;;  %v915_v57 = vmul.f32 %v1833_v16, %v876_v52 }
 0x12d   : > { %v1020_v56 = vpack.c.bf16 %v988_v14, %v988_v14  ;;  %v930_v55 = vadd.f32 %v1842_v19, %v891_v51  ;;  %v1103_v59 = vmul.f32 %v2059_v42, %v2033_v48  ;;  %v1109_v61 = vmul.f32 %v2059_v42, %v1092_v43 }
 0x12e   : > { %v1075_v18 = vadd.f32 %v1067_v35, %v835_v37  ;;  %v1122_v63 = vadd.f32 %v1118_v20, %v1105_v40  ;;  %v1106_v58 = vmul.f32 %v2059_v42, %v2041_v60  ;;  %v954_v4 = vadd.f32 %v1842_v19, %v915_v57 }
 0x12f   : > { %1053 = vst.msk [vmem:[%s1871_s14 + $0x7c] sm:$0xf] %vm1021_vm0, %v1020_v56  ;;  %v962_v62 = vmax.f32 %v930_v55, 0.0  ;;  %v1120_v0 = vadd.f32 %v1118_v20, %v1103_v59  ;;  %v1104_v1 = vmul.f32 %v2059_v42, %v1087_v31  ;;  %v1124_v48 = vadd.f32 %v1118_v20, %v1107_v53 }
 0x130   : > { %v1083_v16 = vmul.f32 0.25, %v1075_v18  ;;  %v1130_v32 = vmax.f32 %v1122_v63, 0.0  ;;  %v1123_v2 = vadd.f32 %v1118_v20, %v1106_v58  ;;  %v1093_v3 = vadd.f32 %v1888_v47, %v1085_v34 }
 0x131   : > { %v994_v23 = vpack.c.bf16 %v962_v62, %v962_v62  ;;  %v986_v5 = vmax.f32 %v954_v4, 0.0  ;;  %v1128_v6 = vmax.f32 %v1120_v0, 0.0  ;;  %v1121_v8 = vadd.f32 %v1118_v20, %v1104_v1 }
 0x132   : > { %v1091_v60 = vadd.f32 %v1083_v16, %v1898_v54  ;;  %v1404_v7 = vpack.c.bf16 %v1130_v32, %v1130_v32  ;;  %v1132_v9 = vmax.f32 %v1124_v48, 0.0  ;;  %v1131_v12 = vmax.f32 %v1123_v2, 0.0 }
 0x133   : > { %1027 = vst.msk [vmem:[%s1871_s14 + $0x14] sm:$0xf] %vm1021_vm0, %v994_v23  ;;  %v1018_v19 = vpack.c.bf16 %v986_v5, %v986_v5  ;;  %v1402_v11 = vpack.c.bf16 %v1128_v6, %v1128_v6  ;;  %v1126_v13 = vadd.f32 %v1118_v20, %v1109_v61  ;;  %v1110_v54 = vmul.f32 %v2059_v42, %v1093_v3 }
 0x134   : > { %v1108_v24 = vmul.f32 %v2059_v42, %v1091_v60  ;;  %1172 = vrot.lane.b32.xlu0 %v1404_v7, %s1601_s15  ;;  %v1406_v47 = vpack.c.bf16 %v1132_v9, %v1132_v9  ;;  %v1405_v15 = vpack.c.bf16 %v1131_v12, %v1131_v12  ;;  %v1129_v25 = vmax.f32 %v1121_v8, 0.0 }
 0x135   : > { %1051 = vst.msk [vmem:[%s1871_s14 + $0x74] sm:$0xf] %vm1021_vm0, %v1018_v19  ;;  %1168 = vrot.lane.b32.xlu1 %v1402_v11, %s1601_s15  ;;  %v1134_v17 = vmax.f32 %v1126_v13, 0.0  ;;  %v1127_v27 = vadd.f32 %v1118_v20, %v1110_v54 }
 0x136   : > { %v1125_v21 = vadd.f32 %v1118_v20, %v1108_v24  ;;  %v1403_v49 = vpack.c.bf16 %v1129_v25, %v1129_v25 }
 0x137   : > { %v1408_v26 = vpack.c.bf16 %v1134_v17, %v1134_v17  ;;  %v1135_v10 = vmax.f32 %v1127_v27, 0.0 }
 0x138   : > { %1176 = vrot.lane.b32.xlu0 %v1406_v47, %s1601_s15  ;;  %v1133_v41 = vmax.f32 %v1125_v21, 0.0 }
 0x139   : > { %1174 = vrot.lane.b32.xlu1 %v1405_v15, %s1601_s15  ;;  %v1409_v31 = vpack.c.bf16 %v1135_v10, %v1135_v10 }
 0x13a   : > { %v1407_v30 = vpack.c.bf16 %v1133_v41, %v1133_v41 }
 0x13c   : > { %1180 = vrot.lane.b32.xlu0 %v1408_v26, %s1601_s15 }
 0x13d   : > { %1170 = vrot.lane.b32.xlu1 %v1403_v49, %s1601_s15 }
 0x141   : > { %1178 = vrot.lane.b32.xlu1 %v1407_v30, %s1601_s15 }
 0x145   : > { %1182 = vrot.lane.b32.xlu1 %v1409_v31, %s1601_s15 }
 0x1a6   : > { %v1173_v42 = vpop.permute.xlu0 %1172 }
 0x1a7   : > { %1194 = vst.msk [vmem:[%s430_s19 + $0x8] sm:$0xf] %vm1021_vm0, %v1173_v42  ;;  %v1169_v29 = vpop.permute.xlu1 %1168 }
 0x1a8   : > { %1192 = vst.msk [vmem:[%s430_s19] sm:$0xf] %vm1021_vm0, %v1169_v29 }
 0x1aa   : > { %v1177_v33 = vpop.permute.xlu0 %1176 }
 0x1ab   : > { %v1175_v36 = vpop.permute.xlu1 %1174  ;;  %1196 = vst.msk [vmem:[%s430_s19 + $0x10] sm:$0xf] %vm1021_vm0, %v1177_v33 }
 0x1ac   : > { %1195 = vst.msk [vmem:[%s430_s19 + $0xc] sm:$0xf] %vm1021_vm0, %v1175_v36 }
 0x1ae   : > { %v1181_v37 = vpop.permute.xlu0 %1180 }
 0x1af   : > { %v1171_v39 = vpop.permute.xlu1 %1170  ;;  %1198 = vst.msk [vmem:[%s430_s19 + $0x18] sm:$0xf] %vm1021_vm0, %v1181_v37 }
 0x1b0   : > { %1193 = vst.msk [vmem:[%s430_s19 + $0x4] sm:$0xf] %vm1021_vm0, %v1171_v39 }
 0x1b3   : > { %v1179_v38 = vpop.permute.xlu1 %1178 }
 0x1b4   : > { %1197 = vst.msk [vmem:[%s430_s19 + $0x14] sm:$0xf] %vm1021_vm0, %v1179_v38 }
 0x1b7   : > { %v1183_v50 = vpop.permute.xlu1 %1182 }
 0x1b8   : > { %1199 = vst.msk [vmem:[%s430_s19 + $0x1c] sm:$0xf] %vm1021_vm0, %v1183_v50 }
 0x1b9 PF: > { %s20_s11 = sadd.s32 1, %s1598_s11   ;;  %s2140_s30 = smov %s1594_s10 }
 0x1ba   : > { %p17_p5 = scmp.ge.s32.totalorder %s20_s11, 4   ;;  %s2141_s10 = smov %s2143_s12 }
 0x1bc   :  { %19 = sbr.rel (!%p17_p5) target bundleno = 2 (0x2), region = 97 }

// kernel: bottleneck_last_forward.5
= control target key start
LH: loop header
LB: loop body
LE: loop exit
PB: predicated region body
PF: predicated region fallthrough
CT: control target
= control target key end

     0   :  { %s1436_s24 = smov 0   ;;  %s1438_s25 = smov 0   ;;  %s1718_s0 = inlined_call_operand.vmem [shape: bf16[2,4,8,8,16], index: 0, kind: input, shape index: {}]   ;;  %s1719_s1 = inlined_call_operand.vmem [shape: bf16[2,8,8,16], index: 1, kind: input, shape index: {}]   ;;  %s1720_s2 = inlined_call_operand.vmem [shape: f32[2,4,8,8,128], index: 2, kind: input, shape index: {}]   ;;  %s1721_s3 = inlined_call_operand.vmem [shape: bf16[16,128], index: 3, kind: input, shape index: {}]   ;;  %s1722_s4 = inlined_call_operand.vmem [shape: bf16[16,128], index: 4, kind: input, shape index: {}]   ;;  %s1723_s5 = inlined_call_operand.vmem [shape: f32[1,128], index: 5, kind: input, shape index: {}]   ;;  %s1724_s6 = inlined_call_operand.vmem [shape: f32[1,128], index: 6, kind: input, shape index: {}]   ;;  %s1725_s7 = inlined_call_operand.vmem [shape: f32[2,4,8,8,128], index: 7, kind: output, shape index: {}]  }
   0x1   :  { %s1440_s26 = smov 0  }
   0x2 LB: > { %s29_s27 = sadd.s32 1, %s1390_s25  ;;  %p1199_p0 = scmp.ge.s32.totalorder %s1394_s26, 1  ;;  %s1394_s26 = sphi %s1440_s26, %s17_s26   ;;  %s1390_s25 = sphi %s1438_s25, %s1727_s25   ;;  %s1386_s24 = sphi %s1436_s24, %s1726_s24  }
   0x3   : > { %p31_p1 = scmp.ge.s32.totalorder %s29_s27, 2  ;;  %p292_p2 = scmp.lt.s32.totalorder %s1394_s26, 3 }
   0x5   : > { %s1729_s27 = smov (%p31_p1, %s29_s27), 0  ;;  %p293_p3 = pnand %p1199_p0, %p292_p2 }
   0x6   : > { %p351_p4 = scmp.lt.s32.totalorder (!%p293_p3), %s1386_s24, 1 }
   0x7   : > { %296 = sbr.rel (%p293_p3) target bundleno = 266 (0x10a), region = 48 }
   0xc   : > { %v1350_v0 = vld [vmem:[%s1722_s4] sm:$0xff]   ;;  %s1731_s24 = smov (!%p351_p4, %s1386_s24), 1  ;;  %vm427_vm0 = vcmask 130048  }
   0xd   : > { %v1351_v1 = vld [vmem:[%s1721_s3] sm:$0xff]   ;;  %1280 = vmatprep.subr.bf16.mxu0 %v1350_v0  ;;  %s1254_s9 = sshll.u32 %s1731_s24, 7  ;;  %s1255_s10 = sshll.u32 %s1731_s24, 5 }
   0xe   : > { %1281 = vmatpush3.bf16.msra.mxu0 %v1350_v0  ;;  %1324 = vmatprep.subr.bf16.mxu1 %v1351_v1  ;;  %s1467_s13 = scalar_lea.vmem %s1718_s0, %s1254_s9  ;;  %s368_s16 = scalar_lea.vmem %s1719_s1, %s1255_s10  ;;  %v1522_v31 = vld [vmem:[%s1723_s5] ss:$0 sm:$0xff] }
   0xf   : > { %1325 = vmatpush3.bf16.msra.mxu1 %v1351_v1  ;;  %1290 = vmatprep.subr.bf16.mxu0 %v1351_v1  ;;  %v1352_v2 = vld [vmem:[%s368_s16] sm:$0xff]   ;;  %v1353_v3 = vld [vmem:[%s1467_s13 + $0x30] sm:$0xff]   ;;  %v1354_v4 = vld [vmem:[%s368_s16 + $0x8] sm:$0xff]   ;;  %s1256_s17 = sshll.u32 %s1731_s24, 8 }
  0x10   : > { %1282 = vmatprep.mubr.msk.bf16.mxu0 %vm427_vm0, %v1352_v2  ;;  %1304 = vmatprep.mubr.msk.bf16.mxu1 %vm427_vm0, %v1353_v3  ;;  %v1355_v5 = vld [vmem:[%s1467_s13 + $0x38] sm:$0xff]   ;;  %v1356_v6 = vld [vmem:[%s368_s16 + $0x10] sm:$0xff]   ;;  %v1357_v7 = vld [vmem:[%s1467_s13 + $0x40] sm:$0xff]   ;;  %s1529_s22 = scalar_lea.vmem %s1720_s2, %s1256_s17  ;;  %s1566_s8 = scalar_lea.vmem %s1725_s7, %s1256_s17 }
  0x11   : > { %1283 = vmatmul.mubr.msk.bf16.vlgmr.msra.gmra.mxu0 %vm427_vm0, %v1354_v4  ;;  %v1358_v8 = vld [vmem:[%s368_s16 + $0x18] sm:$0xff]   ;;  %v1359_v9 = vld [vmem:[%s1467_s13 + $0x48] sm:$0xff]   ;;  %v1360_v10 = vld [vmem:[%s1467_s13] sm:$0xff]  }
  0x12   : > { %1291 = vmatpush3.bf16.msra.mxu0 %v1351_v1  ;;  %1305 = vmatmul.mubr.msk.bf16.vlgmr.msra.gmra.mxu1 %vm427_vm0, %v1355_v5  ;;  %v1361_v11 = vld [vmem:[%s1467_s13 + $0x50] sm:$0xff]   ;;  %v1362_v12 = vld [vmem:[%s1467_s13 + $0x8] sm:$0xff]   ;;  %v1363_v13 = vld [vmem:[%s1467_s13 + $0x58] sm:$0xff]  }
  0x13   : > { %1286 = vmatprep.mubr.msk.bf16.mxu0 %vm427_vm0, %v1356_v6  ;;  %1308 = vmatprep.mubr.msk.bf16.mxu1 %vm427_vm0, %v1357_v7  ;;  %v1364_v14 = vld [vmem:[%s1467_s13 + $0x10] sm:$0xff]   ;;  %v1365_v15 = vld [vmem:[%s1467_s13 + $0x60] sm:$0xff]   ;;  %v1366_v16 = vld [vmem:[%s1467_s13 + $0x18] sm:$0xff]  }
  0x14   : > { %v1367_v17 = vld [vmem:[%s1467_s13 + $0x68] sm:$0xff]   ;;  %v1368_v18 = vld [vmem:[%s1467_s13 + $0x20] sm:$0xff]   ;;  %v1369_v19 = vld [vmem:[%s1467_s13 + $0x70] sm:$0xff]  }
  0x15   : > { %v1370_v20 = vld [vmem:[%s1467_s13 + $0x28] sm:$0xff]   ;;  %v1371_v21 = vld [vmem:[%s1467_s13 + $0x78] sm:$0xff]   ;;  %v1535_v34 = vld [vmem:[%s1724_s6] ss:$0 sm:$0xff] }
  0x16   : > { %v958_v40 = vld [vmem:[%s1529_s22 + $0x70] sm:$0xff]  ;;  %v956_v50 = vld [vmem:[%s1529_s22 + $0x60] sm:$0xff]  ;;  %v959_v62 = vld [vmem:[%s1529_s22 + $0x78] sm:$0xff] }
  0x17   : > { %v962_v45 = vld [vmem:[%s1529_s22 + $0x90] sm:$0xff]  ;;  %v960_v56 = vld [vmem:[%s1529_s22 + $0x80] sm:$0xff]  ;;  %v963_v5 = vld [vmem:[%s1529_s22 + $0x98] sm:$0xff] }
  0x19   : > { %1287 = vmatmul.mubr.msk.bf16.gmra.mxu0 %vm427_vm0, %v1358_v8 }
  0x1a   : > { %1309 = vmatmul.mubr.msk.bf16.gmra.mxu1 %vm427_vm0, %v1359_v9  ;;  %1292 = vmatprep.mubr.msk.bf16.mxu0 %vm427_vm0, %v1360_v10 }
  0x1b   : > { %1312 = vmatprep.mubr.msk.bf16.mxu1 %vm427_vm0, %v1361_v11  ;;  %v957_v11 = vld [vmem:[%s1529_s22 + $0x68] sm:$0xff] }
  0x21   : > { %1293 = vmatmul.mubr.msk.bf16.vlgmr.msra.gmra.mxu0 %vm427_vm0, %v1362_v12 }
  0x22   : > { %1313 = vmatmul.mubr.msk.bf16.gmra.mxu1 %vm427_vm0, %v1363_v13  ;;  %1296 = vmatprep.mubr.msk.bf16.mxu0 %vm427_vm0, %v1364_v14 }
  0x23   : > { %1316 = vmatprep.mubr.msk.bf16.mxu1 %vm427_vm0, %v1365_v15 }
  0x29   : > { %1297 = vmatmul.mubr.msk.bf16.gmra.mxu0 %vm427_vm0, %v1366_v16 }
  0x2a   : > { %1317 = vmatmul.mubr.msk.bf16.gmra.mxu1 %vm427_vm0, %v1367_v17  ;;  %1300 = vmatprep.mubr.msk.bf16.mxu0 %vm427_vm0, %v1368_v18  ;;  %v961_v17 = vld [vmem:[%s1529_s22 + $0x88] sm:$0xff] }
  0x2b   : > { %1320 = vmatprep.mubr.msk.bf16.mxu1 %vm427_vm0, %v1369_v19 }
  0x31   : > { %1301 = vmatmul.mubr.msk.bf16.gmra.mxu0 %vm427_vm0, %v1370_v20 }
  0x32   : > { %1321 = vmatmul.mubr.msk.bf16.gmra.mxu1 %vm427_vm0, %v1371_v21 }
  0xd1   : > { %v1508_v22 = vpop.f32.mrf.mxu0 }
  0xd2   : > { %v1306_v23 = vpop.f32.mrf.mxu1 }
  0xd3   : > { %v1510_v24 = vpop.f32.mrf.mxu0 }
  0xd4   : > { %v755_v25 = vpop.f32.mrf.mxu1 }
  0xd5   : > { %v1512_v26 = vpop.f32.mrf.mxu0 }
  0xd6   : > { %v1307_v27 = vpop.f32.mrf.mxu1 }
  0xd7   : > { %v1515_v28 = vpop.f32.mrf.mxu0 }
  0xd8   : > { %v758_v29 = vpop.f32.mrf.mxu1 }
  0xd9   : > { %v1517_v30 = vpop.f32.mrf.mxu0 }
  0xda   : > { %v848_v32 = vadd.f32 %v1306_v23, %v1517_v30  ;;  %v1310_v33 = vpop.f32.mrf.mxu1 }
  0xdb   : > { %v852_v35 = vadd.f32 %v1310_v33, %v1508_v22  ;;  %v1538_v36 = vpop.f32.mrf.mxu0 }
  0xdc   : > { %v887_v37 = vmul.f32 %v1522_v31, %v848_v32  ;;  %v846_v38 = vadd.f32 %v755_v25, %v1538_v36  ;;  %v771_v39 = vpop.f32.mrf.mxu1 }
  0xdd   : > { %v891_v41 = vmul.f32 %v1522_v31, %v852_v35  ;;  %v850_v42 = vadd.f32 %v771_v39, %v1510_v24  ;;  %v1545_v43 = vpop.f32.mrf.mxu0 }
  0xde   : > { %v926_v44 = vadd.f32 %v1535_v34, %v887_v37  ;;  %v885_v46 = vmul.f32 %v1522_v31, %v846_v38  ;;  %v849_v47 = vadd.f32 %v1307_v27, %v1545_v43  ;;  %v1311_v48 = vpop.f32.mrf.mxu1 }
  0xdf   : > { %v930_v49 = vadd.f32 %v1535_v34, %v891_v41  ;;  %v889_v51 = vmul.f32 %v1522_v31, %v850_v42  ;;  %v853_v52 = vadd.f32 %v1311_v48, %v1512_v26  ;;  %v1555_v53 = vpop.f32.mrf.mxu0 }
  0xe0   : > { %v990_v54 = vadd.f32 %v958_v40, %v926_v44  ;;  %v924_v55 = vadd.f32 %v1535_v34, %v885_v46  ;;  %v888_v57 = vmul.f32 %v1522_v31, %v849_v47  ;;  %v847_v58 = vadd.f32 %v758_v29, %v1555_v53  ;;  %v774_v59 = vpop.f32.mrf.mxu1  ;;  %v946_v40 = vld [vmem:[%s1529_s22 + $0x10] sm:$0xff] }
  0xe1   : > { %v994_v60 = vadd.f32 %v962_v45, %v930_v49  ;;  %v928_v61 = vadd.f32 %v1535_v34, %v889_v51  ;;  %v892_v63 = vmul.f32 %v1522_v31, %v853_v52  ;;  %v851_v0 = vadd.f32 %v774_v59, %v1515_v28  ;;  %v1294_v1 = vpop.f32.mrf.mxu0  ;;  %v966_v47 = vld [vmem:[%s1529_s22 + $0xb0] sm:$0xff] }
  0xe2   : > { %v1022_v2 = vmax.f32 %v990_v54, 0.0  ;;  %v988_v3 = vadd.f32 %v956_v50, %v924_v55  ;;  %v927_v4 = vadd.f32 %v1535_v34, %v888_v57  ;;  %v886_v6 = vmul.f32 %v1522_v31, %v847_v58  ;;  %v1314_v7 = vpop.f32.mrf.mxu1  ;;  %v944_v54 = vld [vmem:[%s1529_s22] sm:$0xff] }
  0xe3   : > { %v1026_v8 = vmax.f32 %v994_v60, 0.0  ;;  %v992_v9 = vadd.f32 %v960_v56, %v928_v61  ;;  %v931_v10 = vadd.f32 %v1535_v34, %v892_v63  ;;  %v890_v12 = vmul.f32 %v1522_v31, %v851_v0  ;;  %v707_v13 = vpop.f32.mrf.mxu0  ;;  %v964_v60 = vld [vmem:[%s1529_s22 + $0xa0] sm:$0xff] }
  0xe4   : > { %1054 = vst [vmem:[%s1566_s8 + $0x70] sm:$0xff] %v1022_v2  ;;  %v1020_v14 = vmax.f32 %v988_v3, 0.0  ;;  %v991_v15 = vadd.f32 %v959_v62, %v927_v4  ;;  %v925_v16 = vadd.f32 %v1535_v34, %v886_v6  ;;  %v836_v18 = vadd.f32 %v1294_v1, %v1508_v22  ;;  %v787_v19 = vpop.f32.mrf.mxu1  ;;  %v947_v2 = vld [vmem:[%s1529_s22 + $0x18] sm:$0xff] }
  0xe5   : > { %1058 = vst [vmem:[%s1566_s8 + $0x90] sm:$0xff] %v1026_v8  ;;  %v1024_v20 = vmax.f32 %v992_v9, 0.0  ;;  %v995_v21 = vadd.f32 %v963_v5, %v931_v10  ;;  %v929_v23 = vadd.f32 %v1535_v34, %v890_v12  ;;  %v856_v25 = vadd.f32 %v1314_v7, %v1517_v30  ;;  %v1295_v27 = vpop.f32.mrf.mxu0  ;;  %v967_v9 = vld [vmem:[%s1529_s22 + $0xb8] sm:$0xff] }
  0xe6   : > { %1052 = vst [vmem:[%s1566_s8 + $0x60] sm:$0xff] %v1020_v14  ;;  %v1023_v29 = vmax.f32 %v991_v15, 0.0  ;;  %v989_v32 = vadd.f32 %v957_v11, %v925_v16  ;;  %v875_v33 = vmul.f32 %v1522_v31, %v836_v18  ;;  %v834_v35 = vadd.f32 %v707_v13, %v1510_v24  ;;  %v1315_v37 = vpop.f32.mrf.mxu1  ;;  %v945_v15 = vld [vmem:[%s1529_s22 + $0x8] sm:$0xff] }
  0xe7   : > { %1056 = vst [vmem:[%s1566_s8 + $0x80] sm:$0xff] %v1024_v20  ;;  %v1027_v38 = vmax.f32 %v995_v21, 0.0  ;;  %v993_v39 = vadd.f32 %v961_v17, %v929_v23  ;;  %v895_v41 = vmul.f32 %v1522_v31, %v856_v25  ;;  %v854_v42 = vadd.f32 %v787_v19, %v1538_v36  ;;  %v710_v44 = vpop.f32.mrf.mxu0  ;;  %v965_v21 = vld [vmem:[%s1529_s22 + $0xa8] sm:$0xff] }
  0xe8   : > { %1055 = vst [vmem:[%s1566_s8 + $0x78] sm:$0xff] %v1023_v29  ;;  %v1021_v45 = vmax.f32 %v989_v32, 0.0  ;;  %v914_v46 = vadd.f32 %v1535_v34, %v875_v33  ;;  %v873_v48 = vmul.f32 %v1522_v31, %v834_v35  ;;  %v837_v49 = vadd.f32 %v1295_v27, %v1512_v26  ;;  %v790_v50 = vpop.f32.mrf.mxu1 }
  0xe9   : > { %1059 = vst [vmem:[%s1566_s8 + $0x98] sm:$0xff] %v1027_v38  ;;  %v1025_v51 = vmax.f32 %v993_v39, 0.0  ;;  %v934_v52 = vadd.f32 %v1535_v34, %v895_v41  ;;  %v893_v55 = vmul.f32 %v1522_v31, %v854_v42  ;;  %v857_v56 = vadd.f32 %v1315_v37, %v1545_v43  ;;  %v1298_v57 = vpop.f32.mrf.mxu0 }
  0xea   : > { %1053 = vst [vmem:[%s1566_s8 + $0x68] sm:$0xff] %v1021_v45  ;;  %v978_v58 = vadd.f32 %v946_v40, %v914_v46  ;;  %v912_v59 = vadd.f32 %v1535_v34, %v873_v48  ;;  %v876_v61 = vmul.f32 %v1522_v31, %v837_v49  ;;  %v835_v62 = vadd.f32 %v710_v44, %v1515_v28  ;;  %v1318_v63 = vpop.f32.mrf.mxu1  ;;  %v950_v45 = vld [vmem:[%s1529_s22 + $0x30] sm:$0xff] }
  0xeb   : > { %1057 = vst [vmem:[%s1566_s8 + $0x88] sm:$0xff] %v1025_v51  ;;  %v998_v0 = vadd.f32 %v966_v47, %v934_v52  ;;  %v932_v1 = vadd.f32 %v1535_v34, %v893_v55  ;;  %v896_v3 = vmul.f32 %v1522_v31, %v857_v56  ;;  %v855_v4 = vadd.f32 %v790_v50, %v1555_v53  ;;  %v723_v5 = vpop.f32.mrf.mxu0  ;;  %v970_v51 = vld [vmem:[%s1529_s22 + $0xd0] sm:$0xff] }
  0xec   : > { %v1010_v6 = vmax.f32 %v978_v58, 0.0  ;;  %v976_v7 = vadd.f32 %v944_v54, %v912_v59  ;;  %v915_v8 = vadd.f32 %v1535_v34, %v876_v61  ;;  %v874_v10 = vmul.f32 %v1522_v31, %v835_v62  ;;  %v803_v11 = vpop.f32.mrf.mxu1  ;;  %v948_v58 = vld [vmem:[%s1529_s22 + $0x20] sm:$0xff] }
  0xed   : > { %v1030_v12 = vmax.f32 %v998_v0, 0.0  ;;  %v996_v13 = vadd.f32 %v964_v60, %v932_v1  ;;  %v935_v14 = vadd.f32 %v1535_v34, %v896_v3  ;;  %v894_v16 = vmul.f32 %v1522_v31, %v855_v4  ;;  %v1299_v17 = vpop.f32.mrf.mxu0  ;;  %v968_v0 = vld [vmem:[%s1529_s22 + $0xc0] sm:$0xff] }
  0xee   : > { %1042 = vst [vmem:[%s1566_s8 + $0x10] sm:$0xff] %v1010_v6  ;;  %v1008_v18 = vmax.f32 %v976_v7, 0.0  ;;  %v979_v19 = vadd.f32 %v947_v2, %v915_v8  ;;  %v913_v20 = vadd.f32 %v1535_v34, %v874_v10  ;;  %v840_v23 = vadd.f32 %v1298_v57, %v1517_v30  ;;  %v1319_v25 = vpop.f32.mrf.mxu1  ;;  %v951_v6 = vld [vmem:[%s1529_s22 + $0x38] sm:$0xff] }
  0xef   : > { %1062 = vst [vmem:[%s1566_s8 + $0xb0] sm:$0xff] %v1030_v12  ;;  %v1028_v27 = vmax.f32 %v996_v13, 0.0  ;;  %v999_v29 = vadd.f32 %v967_v9, %v935_v14  ;;  %v933_v32 = vadd.f32 %v1535_v34, %v894_v16  ;;  %v860_v33 = vadd.f32 %v1318_v63, %v1508_v22  ;;  %v726_v35 = vpop.f32.mrf.mxu0  ;;  %v971_v12 = vld [vmem:[%s1529_s22 + $0xd8] sm:$0xff] }
  0xf0   : > { %1040 = vst [vmem:[%s1566_s8] sm:$0xff] %v1008_v18  ;;  %v1011_v37 = vmax.f32 %v979_v19, 0.0  ;;  %v977_v38 = vadd.f32 %v945_v15, %v913_v20  ;;  %v879_v39 = vmul.f32 %v1522_v31, %v840_v23  ;;  %v838_v40 = vadd.f32 %v723_v5, %v1538_v36  ;;  %v806_v41 = vpop.f32.mrf.mxu1 }
  0xf1   : > { %1060 = vst [vmem:[%s1566_s8 + $0xa0] sm:$0xff] %v1028_v27  ;;  %v1031_v42 = vmax.f32 %v999_v29, 0.0  ;;  %v997_v44 = vadd.f32 %v965_v21, %v933_v32  ;;  %v899_v46 = vmul.f32 %v1522_v31, %v860_v33  ;;  %v858_v47 = vadd.f32 %v803_v11, %v1510_v24  ;;  %v1302_v48 = vpop.f32.mrf.mxu0 }
  0xf2   : > { %1043 = vst [vmem:[%s1566_s8 + $0x18] sm:$0xff] %v1011_v37  ;;  %v1009_v49 = vmax.f32 %v977_v38, 0.0  ;;  %v918_v50 = vadd.f32 %v1535_v34, %v879_v39  ;;  %v877_v52 = vmul.f32 %v1522_v31, %v838_v40  ;;  %v841_v54 = vadd.f32 %v1299_v17, %v1545_v43  ;;  %v1322_v55 = vpop.f32.mrf.mxu1  ;;  %v949_v17 = vld [vmem:[%s1529_s22 + $0x28] sm:$0xff] }
  0xf3   : > { %1063 = vst [vmem:[%s1566_s8 + $0xb8] sm:$0xff] %v1031_v42  ;;  %v1029_v56 = vmax.f32 %v997_v44, 0.0  ;;  %v938_v57 = vadd.f32 %v1535_v34, %v899_v46  ;;  %v897_v59 = vmul.f32 %v1522_v31, %v858_v47  ;;  %v861_v60 = vadd.f32 %v1319_v25, %v1512_v26  ;;  %v739_v61 = vpop.f32.mrf.mxu0  ;;  %v969_v25 = vld [vmem:[%s1529_s22 + $0xc8] sm:$0xff]  ;;  %v954_v44 = vld [vmem:[%s1529_s22 + $0x50] sm:$0xff] }
  0xf4   : > { %1041 = vst [vmem:[%s1566_s8 + $0x8] sm:$0xff] %v1009_v49  ;;  %v982_v62 = vadd.f32 %v950_v45, %v918_v50  ;;  %v916_v63 = vadd.f32 %v1535_v34, %v877_v52  ;;  %v880_v1 = vmul.f32 %v1522_v31, %v841_v54  ;;  %v839_v2 = vadd.f32 %v726_v35, %v1555_v53  ;;  %v819_v3 = vpop.f32.mrf.mxu1  ;;  %v974_v49 = vld [vmem:[%s1529_s22 + $0xf0] sm:$0xff] }
  0xf5   : > { %1061 = vst [vmem:[%s1566_s8 + $0xa8] sm:$0xff] %v1029_v56  ;;  %v1002_v4 = vadd.f32 %v970_v51, %v938_v57  ;;  %v936_v5 = vadd.f32 %v1535_v34, %v897_v59  ;;  %v900_v7 = vmul.f32 %v1522_v31, %v861_v60  ;;  %v859_v8 = vadd.f32 %v806_v41, %v1515_v28  ;;  %v1303_v19 = vpop.f32.mrf.mxu0  ;;  %v972_v59 = vld [vmem:[%s1529_s22 + $0xe0] sm:$0xff] }
  0xf6   : > { %v1014_v9 = vmax.f32 %v982_v62, 0.0  ;;  %v980_v10 = vadd.f32 %v948_v58, %v916_v63  ;;  %v919_v11 = vadd.f32 %v1535_v34, %v880_v1  ;;  %v878_v13 = vmul.f32 %v1522_v31, %v839_v2  ;;  %v1323_v29 = vpop.f32.mrf.mxu1  ;;  %v955_v63 = vld [vmem:[%s1529_s22 + $0x58] sm:$0xff] }
  0xf7   : > { %v1034_v14 = vmax.f32 %v1002_v4, 0.0  ;;  %v1000_v15 = vadd.f32 %v968_v0, %v936_v5  ;;  %v939_v16 = vadd.f32 %v1535_v34, %v900_v7  ;;  %v898_v18 = vmul.f32 %v1522_v31, %v859_v8  ;;  %v975_v4 = vld [vmem:[%s1529_s22 + $0xf8] sm:$0xff]  ;;  %v953_v8 = vld [vmem:[%s1529_s22 + $0x48] sm:$0xff] }
  0xf8   : > { %1046 = vst [vmem:[%s1566_s8 + $0x30] sm:$0xff] %v1014_v9  ;;  %v1012_v20 = vmax.f32 %v980_v10, 0.0  ;;  %v983_v21 = vadd.f32 %v951_v6, %v919_v11  ;;  %v917_v23 = vadd.f32 %v1535_v34, %v878_v13  ;;  %v844_v27 = vadd.f32 %v1302_v48, %v1508_v22  ;;  %v822_v51 = vpop.f32.mrf.mxu1 }
  0xf9   : > { %1066 = vst [vmem:[%s1566_s8 + $0xd0] sm:$0xff] %v1034_v14  ;;  %v1032_v32 = vmax.f32 %v1000_v15, 0.0  ;;  %v1003_v33 = vadd.f32 %v971_v12, %v939_v16  ;;  %v937_v35 = vadd.f32 %v1535_v34, %v898_v18  ;;  %v864_v37 = vadd.f32 %v1322_v55, %v1517_v30  ;;  %v742_v30 = vpop.f32.mrf.mxu0  ;;  %v952_v55 = vld [vmem:[%s1529_s22 + $0x40] sm:$0xff]  ;;  %v973_v12 = vld [vmem:[%s1529_s22 + $0xe8] sm:$0xff] }
  0xfa   : > { %1044 = vst [vmem:[%s1566_s8 + $0x20] sm:$0xff] %v1012_v20  ;;  %v1015_v38 = vmax.f32 %v983_v21, 0.0  ;;  %v981_v39 = vadd.f32 %v949_v17, %v917_v23  ;;  %v883_v40 = vmul.f32 %v1522_v31, %v844_v27  ;;  %v842_v41 = vadd.f32 %v739_v61, %v1510_v24 }
  0xfb   : > { %1064 = vst [vmem:[%s1566_s8 + $0xc0] sm:$0xff] %v1032_v32  ;;  %v1035_v22 = vmax.f32 %v1003_v33, 0.0  ;;  %v1001_v42 = vadd.f32 %v969_v25, %v937_v35  ;;  %v903_v45 = vmul.f32 %v1522_v31, %v864_v37  ;;  %v862_v46 = vadd.f32 %v819_v3, %v1538_v36 }
  0xfc   : > { %1047 = vst [vmem:[%s1566_s8 + $0x38] sm:$0xff] %v1015_v38  ;;  %v1013_v47 = vmax.f32 %v981_v39, 0.0  ;;  %v922_v48 = vadd.f32 %v1535_v34, %v883_v40  ;;  %v881_v24 = vmul.f32 %v1522_v31, %v842_v41  ;;  %v845_v50 = vadd.f32 %v1303_v19, %v1512_v26 }
  0xfd   : > { %1067 = vst [vmem:[%s1566_s8 + $0xd8] sm:$0xff] %v1035_v22  ;;  %v1033_v52 = vmax.f32 %v1001_v42, 0.0  ;;  %v942_v54 = vadd.f32 %v1535_v34, %v903_v45  ;;  %v901_v36 = vmul.f32 %v1522_v31, %v862_v46  ;;  %v865_v56 = vadd.f32 %v1323_v29, %v1545_v43 }
  0xfe   : > { %1045 = vst [vmem:[%s1566_s8 + $0x28] sm:$0xff] %v1013_v47  ;;  %v986_v57 = vadd.f32 %v954_v44, %v922_v48  ;;  %v920_v58 = vadd.f32 %v1535_v34, %v881_v24  ;;  %v884_v60 = vmul.f32 %v1522_v31, %v845_v50  ;;  %v843_v26 = vadd.f32 %v742_v30, %v1515_v28 }
  0xff   : > { %1065 = vst [vmem:[%s1566_s8 + $0xc8] sm:$0xff] %v1033_v52  ;;  %v1006_v61 = vadd.f32 %v974_v49, %v942_v54  ;;  %v940_v62 = vadd.f32 %v1535_v34, %v901_v36  ;;  %v904_v0 = vmul.f32 %v1522_v31, %v865_v56  ;;  %v863_v43 = vadd.f32 %v822_v51, %v1555_v53 }
 0x100   : > { %v1018_v1 = vmax.f32 %v986_v57, 0.0  ;;  %v984_v2 = vadd.f32 %v952_v55, %v920_v58  ;;  %v923_v3 = vadd.f32 %v1535_v34, %v884_v60  ;;  %v882_v28 = vmul.f32 %v1522_v31, %v843_v26 }
 0x101   : > { %v1038_v5 = vmax.f32 %v1006_v61, 0.0  ;;  %v1004_v6 = vadd.f32 %v972_v59, %v940_v62  ;;  %v943_v7 = vadd.f32 %v1535_v34, %v904_v0  ;;  %v902_v9 = vmul.f32 %v1522_v31, %v863_v43 }
 0x102   : > { %1050 = vst [vmem:[%s1566_s8 + $0x50] sm:$0xff] %v1018_v1  ;;  %v1016_v53 = vmax.f32 %v984_v2, 0.0  ;;  %v987_v10 = vadd.f32 %v955_v63, %v923_v3  ;;  %v921_v11 = vadd.f32 %v1535_v34, %v882_v28 }
 0x103   : > { %1070 = vst [vmem:[%s1566_s8 + $0xf0] sm:$0xff] %v1038_v5  ;;  %v1036_v13 = vmax.f32 %v1004_v6, 0.0  ;;  %v1007_v14 = vadd.f32 %v975_v4, %v943_v7  ;;  %v941_v15 = vadd.f32 %v1535_v34, %v902_v9 }
 0x104   : > { %1048 = vst [vmem:[%s1566_s8 + $0x40] sm:$0xff] %v1016_v53  ;;  %v1019_v16 = vmax.f32 %v987_v10, 0.0  ;;  %v985_v17 = vadd.f32 %v953_v8, %v921_v11 }
 0x105   : > { %1068 = vst [vmem:[%s1566_s8 + $0xe0] sm:$0xff] %v1036_v13  ;;  %v1039_v31 = vmax.f32 %v1007_v14, 0.0  ;;  %v1005_v18 = vadd.f32 %v973_v12, %v941_v15 }
 0x106   : > { %1051 = vst [vmem:[%s1566_s8 + $0x58] sm:$0xff] %v1019_v16  ;;  %v1017_v19 = vmax.f32 %v985_v17, 0.0 }
 0x107   : > { %1071 = vst [vmem:[%s1566_s8 + $0xf8] sm:$0xff] %v1039_v31  ;;  %v1037_v20 = vmax.f32 %v1005_v18, 0.0 }
 0x108   : > { %1049 = vst [vmem:[%s1566_s8 + $0x48] sm:$0xff] %v1017_v19 }
 0x109   : > { %1069 = vst [vmem:[%s1566_s8 + $0xe8] sm:$0xff] %v1037_v20 }
 0x10a PF: > { %s17_s26 = sadd.s32 1, %s1394_s26   ;;  %s1726_s24 = smov %s1390_s25 }
 0x10b   : > { %p14_p5 = scmp.ge.s32.totalorder %s17_s26, 4   ;;  %s1727_s25 = smov %s1729_s27 }
 0x10d   :  { %16 = sbr.rel (!%p14_p5) target bundleno = 2 (0x2), region = 84 }

// kernel: bottleneck_last_forward.4
= control target key start
LH: loop header
LB: loop body
LE: loop exit
PB: predicated region body
PF: predicated region fallthrough
CT: control target
= control target key end

     0   :  { %s11686_s13 = smov 0   ;;  %s14449_s0 = inlined_call_operand.vmem [shape: bf16[2,4,8,8,16], index: 0, kind: input, shape index: {}]   ;;  %s14450_s1 = inlined_call_operand.vmem [shape: bf16[2,8,8,16], index: 1, kind: input, shape index: {}]   ;;  %s14451_s2 = inlined_call_operand.vmem [shape: bf16[9,16,16], index: 2, kind: input, shape index: {}]   ;;  %s14452_s3 = inlined_call_operand.vmem [shape: bf16[9,16,16], index: 3, kind: input, shape index: {}]   ;;  %s14453_s4 = inlined_call_operand.vmem [shape: bf16[9,16,32], index: 4, kind: input, shape index: {}]   ;;  %s14454_s5 = inlined_call_operand.vmem [shape: f32[1,16], index: 5, kind: input, shape index: {}]   ;;  %s14455_s6 = inlined_call_operand.vmem [shape: f32[1,16], index: 6, kind: input, shape index: {}]   ;;  %s14456_s7 = inlined_call_operand.vmem [shape: f32[1,16], index: 7, kind: input, shape index: {}]   ;;  %s14457_s8 = inlined_call_operand.vmem [shape: f32[1,16], index: 8, kind: input, shape index: {}]   ;;  %s14458_s9 = inlined_call_operand.vmem [shape: bf16[2,4,8,8,16], index: 9, kind: output, shape index: {0}]   ;;  %s14459_s10 = inlined_call_operand.vmem [shape: bf16[2,8,8,16], index: 10, kind: output, shape index: {1}]  }
   0x1 LB: > { %s9326_s14 = sadd.s32 4294967295, %s11626_s13   ;;  %p9330_p0 = scmp.ge.s32.totalorder %s11626_s13, 1  ;;  %s11626_s13 = sphi %s11686_s13, %s21_s13  }
   0x2   : > { %p325_p1 = scmp.lt.s32.totalorder %s11626_s13, 3 }
   0x4   : > { %p326_p2 = pnand %p9330_p0, %p325_p1 }
   0x6   : > { %329 = sbr.rel (%p326_p2) target bundleno = 1123 (0x463), region = 56 }
   0xb   : > { %v11697_v0 = vld [vmem:[%s14453_s4 + $0x8] sm:$0xff]   ;;  %vm493_vm0 = vcmask 130048   ;;  %v11702_v1 = vld [vmem:[%s14453_s4] sm:$0xff]   ;;  %v11628_v2 = vmov 0.0   ;;  %p373_p3 = scmp.lt.s32.totalorder %s9326_s14, 1  ;;  %v11922_v47 = vld [vmem:[%s14453_s4 + $0x10] sm:$0xff]  }
   0xc   : > { %10579 = vmatprep.subr.bf16.mxu0 %v11697_v0  ;;  %626 = vst.msk [vmem:[#allocation3 + $0x8] sm:$0xff] %vm493_vm0, %v11628_v2  ;;  %627 = vst.msk [vmem:[#allocation3 + $0x10] sm:$0xff] %vm493_vm0, %v11628_v2  ;;  %v11852_v3 = vld [vmem:[%s14452_s3 + $0x8] sm:$0xff]   ;;  %10597 = vmatprep.subr.bf16.mxu1 %v11702_v1  ;;  %v11861_v4 = vld [vmem:[%s14452_s3] sm:$0xff]   ;;  %s11630_s12 = smov 112   ;;  %vm3524_vm1 = vcmask 125952  }
   0xd   : > { %498 = vst.msk [vmem:[#allocation2 + $0x20] sm:$0xff] %vm493_vm0, %v11628_v2  ;;  %500 = vst.msk [vmem:[#allocation2 + $0x30] sm:$0xff] %vm493_vm0, %v11628_v2  ;;  %10580 = vmatpush3.bf16.msra.mxu0 %v11697_v0  ;;  %10598 = vmatpush3.bf16.msra.mxu1 %v11702_v1  ;;  %s14618_s14 = smov (!%p373_p3, %s9326_s14), 1  ;;  %v11945_v63 = vld [vmem:[%s14452_s3 + $0x10] sm:$0xff]  }
   0xe   : > { %502 = vst.msk [vmem:[#allocation2 + $0x40] sm:$0xff] %vm493_vm0, %v11628_v2  ;;  %504 = vst.msk [vmem:[#allocation2 + $0x50] sm:$0xff] %vm493_vm0, %v11628_v2  ;;  %10615 = vmatprep.subr.bf16.mxu0 %v11852_v3  ;;  %10633 = vmatprep.subr.bf16.mxu1 %v11861_v4  ;;  %s9984_s23 = sshll.u32 %s14618_s14, 5  ;;  %s9983_s27 = sshll.u32 %s14618_s14, 7 }
   0xf   : > { %506 = vst.msk [vmem:[#allocation2 + $0x60] sm:$0xff] %vm493_vm0, %v11628_v2  ;;  %508 = vst.msk [vmem:[#allocation2 + $0x70] sm:$0xff] %vm493_vm0, %v11628_v2  ;;  %s382_s26 = scalar_lea.vmem %s14450_s1, %s9984_s23  ;;  %s11882_s30 = scalar_lea.vmem %s14449_s0, %s9983_s27 }
  0x10   : > { %510 = vst.msk [vmem:[#allocation2 + $0x80] sm:$0xff] %vm493_vm0, %v11628_v2  ;;  %512 = vst.msk [vmem:[#allocation2 + $0x90] sm:$0xff] %vm493_vm0, %v11628_v2  ;;  %v10060_v5 = vld [vmem:[%s382_s26] sm:$0xff]   ;;  %v10090_v6 = vld [vmem:[%s382_s26 + $0x8] sm:$0xff]   ;;  %s13858_s24 = scalar_lea.vmem %s14459_s10, %s9984_s23 }
  0x11   : > { %513 = vst.msk [vmem:[#allocation2 + $0x98] sm:$0xff] %vm493_vm0, %v11628_v2  ;;  %514 = vst.msk [vmem:[#allocation2 + $0xa0] sm:$0xff] %vm493_vm0, %v11628_v2  ;;  %v10091_v7 = vld [vmem:[%s382_s26 + $0x10] sm:$0xff]   ;;  %v10061_v11 = vunpack.c.l.bf16 %v10060_v5  ;;  %v10062_v12 = vunpack.c.h.bf16 %v10060_v5  ;;  %v10065_v13 = vunpack.c.l.bf16 %v10090_v6  ;;  %v10066_v14 = vunpack.c.h.bf16 %v10090_v6  ;;  %v10092_v20 = vld [vmem:[%s382_s26 + $0x18] sm:$0xff]   ;;  %s11629_s26 = smov 16  }
  0x12   : > { %515 = vst.msk [vmem:[#allocation2 + $0xa8] sm:$0xff] %vm493_vm0, %v11628_v2  ;;  %519 = vst.msk [vmem:[#allocation2 + $0xc8] sm:$0xff] %vm493_vm0, %v11628_v2  ;;  %v10069_v17 = vunpack.c.l.bf16 %v10091_v7  ;;  %v10070_v18 = vunpack.c.h.bf16 %v10091_v7  ;;  %v10073_v21 = vunpack.c.l.bf16 %v10092_v20  ;;  %v10074_v22 = vunpack.c.h.bf16 %v10092_v20  ;;  %v9996_v23 = vld [vmem:[%s11882_s30] sm:$0xff]   ;;  %v11902_v35 = vld [vmem:[%s11882_s30 + $0x8] sm:$0xff]  }
  0x13   : > { %521 = vst.msk [vmem:[#allocation2 + $0xd8] sm:$0xff] %vm493_vm0, %v11628_v2  ;;  %523 = vst.msk [vmem:[#allocation2 + $0xe8] sm:$0xff] %vm493_vm0, %v11628_v2  ;;  %v700_v8 = vld [vmem:[#allocation3 + $0x8] sm:$0xff]  ;;  %v701_v9 = vld [vmem:[#allocation3 + $0x10] sm:$0xff]  ;;  %v9997_v25 = vunpack.c.l.bf16 %v9996_v23  ;;  %v9998_v29 = vunpack.c.h.bf16 %v9996_v23  ;;  %v10001_v40 = vunpack.c.l.bf16 %v11902_v35  ;;  %v10002_v51 = vunpack.c.h.bf16 %v11902_v35 }
  0x14   : > { %525 = vst.msk [vmem:[#allocation2 + $0xf8] sm:$0xff] %vm493_vm0, %v11628_v2  ;;  %527 = vst.msk [vmem:[#allocation2 + $0x108] sm:$0xff] %vm493_vm0, %v11628_v2  ;;  %v716_v15 = vpack.c.bf16 %v701_v9, %v700_v8  ;;  %v649_v16 = vld [vmem:[#allocation3 + $0xf] sm:$0xff]  ;;  %v10078_v24 = vld [vmem:[%s11882_s30 + $0x20] sm:$0xff]  }
  0x15   : > { %529 = vst.msk [vmem:[#allocation2 + $0x118] sm:$0xff] %vm493_vm0, %v11628_v2  ;;  %531 = vst.msk [vmem:[#allocation2 + $0x128] sm:$0xff] %vm493_vm0, %v11628_v2  ;;  %v10013_v26 = vunpack.c.l.bf16 %v10078_v24  ;;  %v10082_v27 = vld [vmem:[%s11882_s30 + $0x40] sm:$0xff]   ;;  %v10014_v33 = vunpack.c.h.bf16 %v10078_v24  ;;  %v11905_v36 = vld [vmem:[%s11882_s30 + $0x28] sm:$0xff]  }
  0x16   : > { %533 = vst.msk [vmem:[#allocation2 + $0x138] sm:$0xff] %vm493_vm0, %v11628_v2  ;;  %535 = vst.msk [vmem:[#allocation2 + $0x148] sm:$0xff] %vm493_vm0, %v11628_v2  ;;  %10581 = vmatprep.mubr.msk.bf16.mxu0 %vm493_vm0, %v716_v15  ;;  %v11897_v28 = vld [vmem:[%s11882_s30 + $0x60] sm:$0xff]   ;;  %v10029_v31 = vunpack.c.l.bf16 %v10082_v27  ;;  %v10030_v34 = vunpack.c.h.bf16 %v10082_v27  ;;  %v10017_v41 = vunpack.c.l.bf16 %v11905_v36  ;;  %v11914_v42 = vld [vmem:[%s11882_s30 + $0x48] sm:$0xff]   ;;  %v10018_v1 = vunpack.c.h.bf16 %v11905_v36 }
  0x17   : > { %536 = vst.msk [vmem:[#allocation2 + $0x150] sm:$0xff] %vm493_vm0, %v11628_v2  ;;  %537 = vst.msk [vmem:[#allocation2 + $0x158] sm:$0xff] %vm493_vm0, %v11628_v2  ;;  %v10045_v32 = vunpack.c.l.bf16 %v11897_v28  ;;  %v461_v38 = vadd.f32 %v10013_v26, %v9997_v25  ;;  %v10046_v39 = vunpack.c.h.bf16 %v11897_v28  ;;  %v11917_v43 = vld [vmem:[%s11882_s30 + $0x68] sm:$0xff]   ;;  %v462_v48 = vadd.f32 %v10014_v33, %v9998_v29  ;;  %v10088_v27 = vld [vmem:[%s11882_s30 + $0x70] sm:$0xff]  }
  0x18   : > { %541 = vst.msk [vmem:[#allocation2 + $0x178] sm:$0xff] %vm493_vm0, %v11628_v2  ;;  %542 = vst.msk [vmem:[#allocation2 + $0x180] sm:$0xff] %vm493_vm0, %v11628_v2  ;;  %v10033_v49 = vunpack.c.l.bf16 %v11914_v42  ;;  %v10049_v50 = vunpack.c.l.bf16 %v11917_v43  ;;  %v463_v58 = vadd.f32 %v10017_v41, %v10001_v40  ;;  %v10034_v8 = vunpack.c.h.bf16 %v11914_v42 }
  0x19   : > { %544 = vst.msk [vmem:[#allocation2 + $0x190] sm:$0xff] %vm493_vm0, %v11628_v2  ;;  %546 = vst.msk [vmem:[#allocation2 + $0x1a0] sm:$0xff] %vm493_vm0, %v11628_v2  ;;  %v469_v57 = vadd.f32 %v10029_v31, %v461_v38  ;;  %v470_v0 = vadd.f32 %v10030_v34, %v462_v48  ;;  %v10054_v38 = vunpack.c.h.bf16 %v10088_v27 }
  0x1a   : > { %548 = vst.msk [vmem:[#allocation2 + $0x1b0] sm:$0xff] %vm493_vm0, %v11628_v2  ;;  %550 = vst.msk [vmem:[#allocation2 + $0x1c0] sm:$0xff] %vm493_vm0, %v11628_v2 }
  0x1b   : > { %552 = vst.msk [vmem:[#allocation2 + $0x1d0] sm:$0xff] %vm493_vm0, %v11628_v2  ;;  %554 = vst.msk [vmem:[#allocation2 + $0x1e0] sm:$0xff] %vm493_vm0, %v11628_v2  ;;  %v477_v7 = vadd.f32 %v10045_v32, %v469_v57 }
  0x1c   : > { %556 = vst.msk [vmem:[#allocation2 + $0x1f0] sm:$0xff] %vm493_vm0, %v11628_v2  ;;  %558 = vst.msk [vmem:[#allocation2 + $0x200] sm:$0xff] %vm493_vm0, %v11628_v2 }
  0x1d   : > { %559 = vst.msk [vmem:[#allocation2 + $0x208] sm:$0xff] %vm493_vm0, %v11628_v2  ;;  %563 = vst.msk [vmem:[#allocation2 + $0x228] sm:$0xff] %vm493_vm0, %v11628_v2 }
  0x1e   : > { %564 = vst.msk [vmem:[#allocation2 + $0x230] sm:$0xff] %vm493_vm0, %v11628_v2  ;;  %565 = vst.msk [vmem:[#allocation2 + $0x238] sm:$0xff] %vm493_vm0, %v11628_v2 }
  0x1f   : > { %567 = vst.msk [vmem:[#allocation2 + $0x248] sm:$0xff] %vm493_vm0, %v11628_v2  ;;  %569 = vst.msk [vmem:[#allocation2 + $0x258] sm:$0xff] %vm493_vm0, %v11628_v2 }
  0x20   : > { %571 = vst.msk [vmem:[#allocation2 + $0x268] sm:$0xff] %vm493_vm0, %v11628_v2  ;;  %573 = vst.msk [vmem:[#allocation2 + $0x278] sm:$0xff] %vm493_vm0, %v11628_v2 }
  0x21   : > { %575 = vst.msk [vmem:[#allocation2 + $0x288] sm:$0xff] %vm493_vm0, %v11628_v2  ;;  %577 = vst.msk [vmem:[#allocation2 + $0x298] sm:$0xff] %vm493_vm0, %v11628_v2 }
  0x22   : > { %579 = vst.msk [vmem:[#allocation2 + $0x2a8] sm:$0xff] %vm493_vm0, %v11628_v2  ;;  %581 = vst.msk [vmem:[#allocation2 + $0x2b8] sm:$0xff] %vm493_vm0, %v11628_v2 }
  0x23   : > { %586 = vst.msk [vmem:[#allocation4] sm:$0xff] %vm493_vm0, %v11628_v2  ;;  %587 = vst.msk [vmem:[#allocation4 + $0x8] sm:$0xff] %vm493_vm0, %v11628_v2 }
  0x24   : > { %588 = vst.msk [vmem:[#allocation4 + $0x10] sm:$0xff] %vm493_vm0, %v11628_v2  ;;  %590 = vst.msk [vmem:[#allocation4 + $0x20] sm:$0xff] %vm493_vm0, %v11628_v2 }
  0x25   : > { %592 = vst.msk [vmem:[#allocation4 + $0x30] sm:$0xff] %vm493_vm0, %v11628_v2  ;;  %594 = vst.msk [vmem:[#allocation4 + $0x40] sm:$0xff] %vm493_vm0, %v11628_v2 }
  0x26   : > { %596 = vst.msk [vmem:[#allocation4 + $0x50] sm:$0xff] %vm493_vm0, %v11628_v2  ;;  %598 = vst.msk [vmem:[#allocation4 + $0x60] sm:$0xff] %vm493_vm0, %v11628_v2 }
  0x27   : > { %600 = vst.msk [vmem:[#allocation4 + $0x70] sm:$0xff] %vm493_vm0, %v11628_v2  ;;  %602 = vst.msk [vmem:[#allocation4 + $0x80] sm:$0xff] %vm493_vm0, %v11628_v2 }
  0x28   : > { %604 = vst.msk [vmem:[#allocation4 + $0x90] sm:$0xff] %vm493_vm0, %v11628_v2  ;;  %605 = vst.msk [vmem:[#allocation4 + $0x98] sm:$0xff] %vm493_vm0, %v11628_v2 }
  0x29   : > { %606 = vst.msk [vmem:[#allocation4 + $0xa0] sm:$0xff] %vm493_vm0, %v11628_v2  ;;  %607 = vst.msk [vmem:[#allocation4 + $0xa8] sm:$0xff] %vm493_vm0, %v11628_v2 }
  0x2a   : > { %625 = vst.msk [vmem:[#allocation3] sm:$0xff] %vm493_vm0, %v11628_v2  ;;  %629 = vst.msk [vmem:[#allocation3 + $0x20] sm:$0xff] %vm493_vm0, %v11628_v2 }
  0x2b   : > { %631 = vst.msk [vmem:[#allocation3 + $0x30] sm:$0xff] %vm493_vm0, %v11628_v2  ;;  %633 = vst.msk [vmem:[#allocation3 + $0x40] sm:$0xff] %vm493_vm0, %v11628_v2 }
  0x2c   : > { %635 = vst.msk [vmem:[#allocation3 + $0x50] sm:$0xff] %vm493_vm0, %v11628_v2  ;;  %637 = vst.msk [vmem:[#allocation3 + $0x60] sm:$0xff] %vm493_vm0, %v11628_v2 }
  0x2d   : > { %639 = vst.msk [vmem:[#allocation3 + $0x70] sm:$0xff] %vm493_vm0, %v11628_v2  ;;  %641 = vst.msk [vmem:[#allocation3 + $0x80] sm:$0xff] %vm493_vm0, %v11628_v2 }
  0x2e   : > { %643 = vst.msk [vmem:[#allocation3 + $0x90] sm:$0xff] %vm493_vm0, %v11628_v2  ;;  %644 = vst.msk [vmem:[#allocation3 + $0x98] sm:$0xff] %vm493_vm0, %v11628_v2 }
  0x2f   : > { %645 = vst.msk [vmem:[#allocation3 + $0xa0] sm:$0xff] %vm493_vm0, %v11628_v2  ;;  %646 = vst.msk [vmem:[#allocation3 + $0xa8] sm:$0xff] %vm493_vm0, %v11628_v2 }
  0x30   : > { %628 = vst.msk [vmem:[#allocation3 + $0x18] sm:$0xff] %vm493_vm0, %v10061_v11  ;;  %630 = vst.msk [vmem:[#allocation3 + $0x28] sm:$0xff] %vm493_vm0, %v10062_v12  ;;  %v478_v12 = vadd.f32 %v10046_v39, %v470_v0 }
  0x31   : > { %v648_v10 = vld [vmem:[#allocation3 + $0x7] sm:$0xff]  ;;  %632 = vst.msk [vmem:[#allocation3 + $0x38] sm:$0xff] %vm493_vm0, %v10065_v13  ;;  %634 = vst.msk [vmem:[#allocation3 + $0x48] sm:$0xff] %vm493_vm0, %v10066_v14  ;;  %v10050_v13 = vunpack.c.h.bf16 %v11917_v43  ;;  %v485_v14 = vmul.f32 0.25, %v477_v7 }
  0x32   : > { %v664_v19 = vpack.c.bf16 %v649_v16, %v648_v10  ;;  %636 = vst.msk [vmem:[#allocation3 + $0x58] sm:$0xff] %vm493_vm0, %v10069_v17  ;;  %638 = vst.msk [vmem:[#allocation3 + $0x68] sm:$0xff] %vm493_vm0, %v10070_v18  ;;  %v703_v30 = vld [vmem:[#allocation3 + $0x20] sm:$0xff]  ;;  %v705_v37 = vld [vmem:[#allocation3 + $0x30] sm:$0xff]  ;;  %v486_v15 = vmul.f32 0.25, %v478_v12  ;;  %v464_v16 = vadd.f32 %v10018_v1, %v10002_v51 }
  0x33   : > { %640 = vst.msk [vmem:[#allocation3 + $0x78] sm:$0xff] %vm493_vm0, %v10073_v21  ;;  %642 = vst.msk [vmem:[#allocation3 + $0x88] sm:$0xff] %vm493_vm0, %v10074_v22  ;;  %v707_v61 = vld [vmem:[#allocation3 + $0x40] sm:$0xff]  ;;  %v709_v62 = vld [vmem:[#allocation3 + $0x50] sm:$0xff] }
  0x34   : > { %10599 = vmatprep.mubr.msk.bf16.mxu1 %vm493_vm0, %v664_v19  ;;  %497 = vst.msk [vmem:[#allocation2 + $0x18] sm:$0xff] %vm493_vm0, %v9997_v25  ;;  %520 = vst.msk [vmem:[#allocation2 + $0xd0] sm:$0xff] %vm493_vm0, %v10013_v26  ;;  %v10076_v21 = vld [vmem:[%s11882_s30 + $0x10] sm:$0xff]   ;;  %v472_v23 = vadd.f32 %v10034_v8, %v464_v16  ;;  %v715_v16 = vld [vmem:[#allocation3 + $0x80] sm:$0xff] }
  0x35   : > { %499 = vst.msk [vmem:[#allocation2 + $0x28] sm:$0xff] %vm493_vm0, %v9998_v29  ;;  %543 = vst.msk [vmem:[#allocation2 + $0x188] sm:$0xff] %vm493_vm0, %v10029_v31  ;;  %v10080_v22 = vld [vmem:[%s11882_s30 + $0x30] sm:$0xff]   ;;  %v10005_v24 = vunpack.c.l.bf16 %v10076_v21  ;;  %v10006_v28 = vunpack.c.h.bf16 %v10076_v21  ;;  %v10053_v31 = vunpack.c.l.bf16 %v10088_v27  ;;  %v674_v27 = vld [vmem:[#allocation4 + $0x7] sm:$0xff] }
  0x36   : > { %566 = vst.msk [vmem:[#allocation2 + $0x240] sm:$0xff] %vm493_vm0, %v10045_v32  ;;  %522 = vst.msk [vmem:[#allocation2 + $0xe0] sm:$0xff] %vm493_vm0, %v10014_v33  ;;  %v10021_v25 = vunpack.c.l.bf16 %v10080_v22  ;;  %v10084_v26 = vld [vmem:[%s11882_s30 + $0x50] sm:$0xff]   ;;  %v10022_v32 = vunpack.c.h.bf16 %v10080_v22  ;;  %v10077_v33 = vld [vmem:[%s11882_s30 + $0x18] sm:$0xff]   ;;  %v480_v35 = vadd.f32 %v10050_v13, %v472_v23 }
  0x37   : > { %v702_v44 = vld [vmem:[#allocation3 + $0x18] sm:$0xff]  ;;  %545 = vst.msk [vmem:[#allocation2 + $0x198] sm:$0xff] %vm493_vm0, %v10030_v34  ;;  %v704_v54 = vld [vmem:[#allocation3 + $0x28] sm:$0xff]  ;;  %568 = vst.msk [vmem:[#allocation2 + $0x250] sm:$0xff] %vm493_vm0, %v10046_v39  ;;  %v10010_v0 = vunpack.c.h.bf16 %v10077_v33 }
  0x38   : > { %v650_v45 = vld [vmem:[#allocation3 + $0x17] sm:$0xff]  ;;  %v651_v46 = vld [vmem:[#allocation3 + $0x1f] sm:$0xff]  ;;  %v11931_v52 = vpack.c.bf16 %v703_v30, %v702_v44  ;;  %v652_v55 = vld [vmem:[#allocation3 + $0x27] sm:$0xff]  ;;  %501 = vst.msk [vmem:[#allocation2 + $0x38] sm:$0xff] %vm493_vm0, %v10001_v40  ;;  %v11938_v59 = vpack.c.bf16 %v705_v37, %v704_v54  ;;  %v10037_v30 = vunpack.c.l.bf16 %v10084_v26  ;;  %v465_v36 = vadd.f32 %v10021_v25, %v10005_v24 }
  0x39   : > { %v11933_v53 = vpack.c.bf16 %v651_v46, %v650_v45  ;;  %v653_v56 = vld [vmem:[#allocation3 + $0x2f] sm:$0xff]  ;;  %524 = vst.msk [vmem:[#allocation2 + $0xf0] sm:$0xff] %vm493_vm0, %v10017_v41  ;;  %547 = vst.msk [vmem:[#allocation2 + $0x1a8] sm:$0xff] %vm493_vm0, %v10033_v49  ;;  %v706_v2 = vld [vmem:[#allocation3 + $0x38] sm:$0xff]  ;;  %v10038_v37 = vunpack.c.h.bf16 %v10084_v26  ;;  %v466_v43 = vadd.f32 %v10022_v32, %v10006_v28  ;;  %v10009_v44 = vunpack.c.l.bf16 %v10077_v33 }
  0x3a   : > { %v11940_v60 = vpack.c.bf16 %v653_v56, %v652_v55  ;;  %570 = vst.msk [vmem:[#allocation2 + $0x260] sm:$0xff] %vm493_vm0, %v10049_v50  ;;  %503 = vst.msk [vmem:[#allocation2 + $0x48] sm:$0xff] %vm493_vm0, %v10002_v51  ;;  %10582 = vmatmul.mubr.msk.bf16.vlgmr.msra.gmra.mxu0 %vm493_vm0, %v11931_v52  ;;  %v654_v5 = vld [vmem:[#allocation3 + $0x37] sm:$0xff]  ;;  %v655_v6 = vld [vmem:[#allocation3 + $0x3f] sm:$0xff]  ;;  %v488_v51 = vmul.f32 0.25, %v480_v35  ;;  %v473_v54 = vadd.f32 %v10037_v30, %v465_v36 }
  0x3b   : > { %10600 = vmatmul.mubr.msk.bf16.vlgmr.msra.gmra.mxu1 %vm493_vm0, %v11933_v53  ;;  %10616 = vmatpush3.bf16.msra.mxu0 %v11852_v3  ;;  %v708_v9 = vld [vmem:[#allocation3 + $0x48] sm:$0xff]  ;;  %526 = vst.msk [vmem:[#allocation2 + $0x100] sm:$0xff] %vm493_vm0, %v10018_v1  ;;  %v471_v3 = vadd.f32 %v10033_v49, %v463_v58  ;;  %549 = vst.msk [vmem:[#allocation2 + $0x1b8] sm:$0xff] %vm493_vm0, %v10034_v8  ;;  %v11970_v17 = vpack.c.bf16 %v655_v6, %v654_v5  ;;  %v10081_v34 = vld [vmem:[%s11882_s30 + $0x38] sm:$0xff]  }
  0x3c   : > { %10634 = vmatpush3.bf16.msra.mxu1 %v11861_v4  ;;  %v656_v10 = vld [vmem:[#allocation3 + $0x47] sm:$0xff]  ;;  %v657_v11 = vld [vmem:[#allocation3 + $0x4f] sm:$0xff]  ;;  %10585 = vmatprep.mubr.msk.bf16.mxu0 %vm493_vm0, %v11938_v59  ;;  %v11965_v4 = vpack.c.bf16 %v707_v61, %v706_v2  ;;  %572 = vst.msk [vmem:[#allocation2 + $0x270] sm:$0xff] %vm493_vm0, %v10050_v13  ;;  %v11972_v18 = vpack.c.bf16 %v709_v62, %v708_v9  ;;  %589 = vst.msk [vmem:[#allocation4 + $0x18] sm:$0xff] %vm493_vm0, %v485_v14  ;;  %v10025_v45 = vunpack.c.l.bf16 %v10081_v34 }
  0x3d   : > { %10603 = vmatprep.mubr.msk.bf16.mxu1 %vm493_vm0, %v11940_v60  ;;  %10651 = vmatprep.subr.bf16.mxu0 %v11922_v47  ;;  %v11974_v19 = vpack.c.bf16 %v657_v11, %v656_v10  ;;  %v479_v20 = vadd.f32 %v10049_v50, %v471_v3  ;;  %591 = vst.msk [vmem:[#allocation4 + $0x28] sm:$0xff] %vm493_vm0, %v486_v15  ;;  %505 = vst.msk [vmem:[#allocation2 + $0x58] sm:$0xff] %vm493_vm0, %v10005_v24  ;;  %v11988_v39 = vld [vmem:[%s11882_s30 + $0x58] sm:$0xff]   ;;  %v711_v41 = vld [vmem:[#allocation3 + $0x60] sm:$0xff]  ;;  %v10026_v2 = vunpack.c.h.bf16 %v10081_v34 }
  0x3e   : > { %10669 = vmatprep.subr.bf16.mxu1 %v11945_v63  ;;  %528 = vst.msk [vmem:[#allocation2 + $0x110] sm:$0xff] %vm493_vm0, %v10021_v25  ;;  %507 = vst.msk [vmem:[#allocation2 + $0x68] sm:$0xff] %vm493_vm0, %v10006_v28  ;;  %v11991_v40 = vld [vmem:[%s11882_s30 + $0x78] sm:$0xff]   ;;  %v713_v42 = vld [vmem:[#allocation3 + $0x70] sm:$0xff]  ;;  %v10041_v46 = vunpack.c.l.bf16 %v11988_v39  ;;  %v474_v61 = vadd.f32 %v10038_v37, %v466_v43  ;;  %v467_v62 = vadd.f32 %v10025_v45, %v10009_v44  ;;  %v10042_v5 = vunpack.c.h.bf16 %v11988_v39 }
  0x3f   : > { %v487_v29 = vmul.f32 0.25, %v479_v20  ;;  %551 = vst.msk [vmem:[#allocation2 + $0x1c8] sm:$0xff] %vm493_vm0, %v10037_v30  ;;  %574 = vst.msk [vmem:[#allocation2 + $0x280] sm:$0xff] %vm493_vm0, %v10053_v31  ;;  %v710_v48 = vld [vmem:[#allocation3 + $0x58] sm:$0xff]  ;;  %v10057_v55 = vunpack.c.l.bf16 %v11991_v40  ;;  %v712_v56 = vld [vmem:[#allocation3 + $0x68] sm:$0xff]  ;;  %v481_v1 = vadd.f32 %v10053_v31, %v473_v54  ;;  %v10058_v13 = vunpack.c.h.bf16 %v11991_v40 }
  0x40   : > { %530 = vst.msk [vmem:[#allocation2 + $0x120] sm:$0xff] %vm493_vm0, %v10022_v32  ;;  %v658_v49 = vld [vmem:[#allocation3 + $0x57] sm:$0xff]  ;;  %v659_v50 = vld [vmem:[#allocation3 + $0x5f] sm:$0xff]  ;;  %553 = vst.msk [vmem:[#allocation2 + $0x1d8] sm:$0xff] %vm493_vm0, %v10038_v37  ;;  %v12015_v6 = vpack.c.bf16 %v711_v41, %v710_v48  ;;  %v482_v8 = vadd.f32 %v10054_v38, %v474_v61  ;;  %v475_v9 = vadd.f32 %v10041_v46, %v467_v62 }
  0x41   : > { %593 = vst.msk [vmem:[#allocation4 + $0x38] sm:$0xff] %vm493_vm0, %v487_v29  ;;  %576 = vst.msk [vmem:[#allocation2 + $0x290] sm:$0xff] %vm493_vm0, %v10054_v38  ;;  %v660_v57 = vld [vmem:[#allocation3 + $0x67] sm:$0xff]  ;;  %v661_v58 = vld [vmem:[#allocation3 + $0x6f] sm:$0xff]  ;;  %v12017_v7 = vpack.c.bf16 %v659_v50, %v658_v49  ;;  %v12020_v10 = vpack.c.bf16 %v713_v42, %v712_v56  ;;  %v489_v12 = vmul.f32 0.25, %v481_v1  ;;  %v468_v15 = vadd.f32 %v10026_v2, %v10010_v0 }
  0x42   : > { %10586 = vmatmul.mubr.msk.bf16.gmra.mxu0 %vm493_vm0, %v11965_v4  ;;  %509 = vst.msk [vmem:[#allocation2 + $0x78] sm:$0xff] %vm493_vm0, %v10009_v44  ;;  %532 = vst.msk [vmem:[#allocation2 + $0x130] sm:$0xff] %vm493_vm0, %v10025_v45  ;;  %v12022_v11 = vpack.c.bf16 %v661_v58, %v660_v57  ;;  %v490_v14 = vmul.f32 0.25, %v482_v8  ;;  %v483_v3 = vadd.f32 %v10057_v55, %v475_v9  ;;  %v965_v20 = vld [vmem:[#allocation4 + $0x8] sm:$0xff]  ;;  %v714_v22 = vld [vmem:[#allocation3 + $0x78] sm:$0xff] }
  0x43   : > { %10604 = vmatmul.mubr.msk.bf16.gmra.mxu1 %vm493_vm0, %v11970_v17  ;;  %10589 = vmatprep.mubr.msk.bf16.mxu0 %vm493_vm0, %v11972_v18  ;;  %555 = vst.msk [vmem:[#allocation2 + $0x1e8] sm:$0xff] %vm493_vm0, %v10041_v46  ;;  %595 = vst.msk [vmem:[#allocation4 + $0x48] sm:$0xff] %vm493_vm0, %v488_v51  ;;  %v662_v23 = vld [vmem:[#allocation3 + $0x77] sm:$0xff]  ;;  %v663_v24 = vld [vmem:[#allocation3 + $0x7f] sm:$0xff]  ;;  %v476_v25 = vadd.f32 %v10042_v5, %v468_v15  ;;  %v12039_v30 = vpack.c.bf16 %v715_v16, %v714_v22 }
  0x44   : > { %10607 = vmatprep.mubr.msk.bf16.mxu1 %vm493_vm0, %v11974_v19  ;;  %578 = vst.msk [vmem:[#allocation2 + $0x2a0] sm:$0xff] %vm493_vm0, %v10057_v55  ;;  %511 = vst.msk [vmem:[#allocation2 + $0x88] sm:$0xff] %vm493_vm0, %v10010_v0  ;;  %v491_v21 = vmul.f32 0.25, %v483_v3  ;;  %v966_v26 = vld [vmem:[#allocation4 + $0x10] sm:$0xff]  ;;  %v12041_v31 = vpack.c.bf16 %v663_v24, %v662_v23  ;;  %v968_v35 = vld [vmem:[#allocation4 + $0x20] sm:$0xff] }
  0x45   : > { %534 = vst.msk [vmem:[#allocation2 + $0x140] sm:$0xff] %vm493_vm0, %v10026_v2  ;;  %557 = vst.msk [vmem:[#allocation2 + $0x1f8] sm:$0xff] %vm493_vm0, %v10042_v5  ;;  %v675_v28 = vld [vmem:[#allocation4 + $0xf] sm:$0xff]  ;;  %v484_v29 = vadd.f32 %v10058_v13, %v476_v25  ;;  %v981_v32 = vpack.c.bf16 %v966_v26, %v965_v20  ;;  %v967_v36 = vld [vmem:[#allocation4 + $0x18] sm:$0xff] }
  0x46   : > { %597 = vst.msk [vmem:[#allocation4 + $0x58] sm:$0xff] %vm493_vm0, %v489_v12  ;;  %580 = vst.msk [vmem:[#allocation2 + $0x2b0] sm:$0xff] %vm493_vm0, %v10058_v13  ;;  %v690_v33 = vpack.c.bf16 %v675_v28, %v674_v27  ;;  %v676_v37 = vld [vmem:[#allocation4 + $0x17] sm:$0xff]  ;;  %v677_v38 = vld [vmem:[#allocation4 + $0x1f] sm:$0xff]  ;;  %v12050_v43 = vpack.c.bf16 %v968_v35, %v967_v36 }
  0x47   : > { %599 = vst.msk [vmem:[#allocation4 + $0x68] sm:$0xff] %vm493_vm0, %v490_v14  ;;  %601 = vst.msk [vmem:[#allocation4 + $0x78] sm:$0xff] %vm493_vm0, %v491_v21  ;;  %v492_v34 = vmul.f32 0.25, %v484_v29  ;;  %v969_v39 = vld [vmem:[#allocation4 + $0x28] sm:$0xff]  ;;  %v970_v40 = vld [vmem:[#allocation4 + $0x30] sm:$0xff]  ;;  %v12052_v44 = vpack.c.bf16 %v677_v38, %v676_v37 }
  0x48   : > { %v678_v41 = vld [vmem:[#allocation4 + $0x27] sm:$0xff]  ;;  %v679_v42 = vld [vmem:[#allocation4 + $0x2f] sm:$0xff]  ;;  %v12054_v45 = vpack.c.bf16 %v970_v40, %v969_v39  ;;  %v971_v49 = vld [vmem:[#allocation4 + $0x38] sm:$0xff] }
  0x49   : > { %603 = vst.msk [vmem:[#allocation4 + $0x88] sm:$0xff] %vm493_vm0, %v492_v34  ;;  %v12056_v46 = vpack.c.bf16 %v679_v42, %v678_v41  ;;  %v12061_v48 = vld [vmem:[%s14453_s4 + $0x18] sm:$0xff]   ;;  %v680_v51 = vld [vmem:[#allocation4 + $0x37] sm:$0xff]  ;;  %v1384_v25 = vld [vmem:[#allocation4 + $0x9] sm:$0xff] }
  0x4a   : > { %10590 = vmatmul.mubr.msk.bf16.gmra.mxu0 %vm493_vm0, %v12015_v6  ;;  %v972_v50 = vld [vmem:[#allocation4 + $0x40] sm:$0xff]  ;;  %v973_v56 = vld [vmem:[#allocation4 + $0x48] sm:$0xff]  ;;  %v974_v57 = vld [vmem:[#allocation4 + $0x50] sm:$0xff] }
  0x4b   : > { %10608 = vmatmul.mubr.msk.bf16.gmra.mxu1 %vm493_vm0, %v12017_v7  ;;  %10593 = vmatprep.mubr.msk.bf16.mxu0 %vm493_vm0, %v12020_v10  ;;  %v12066_v54 = vld [vmem:[%s14452_s3 + $0x18] sm:$0xff]   ;;  %v683_v61 = vld [vmem:[#allocation4 + $0x4f] sm:$0xff]  ;;  %v12080_v62 = vpack.c.bf16 %v972_v50, %v971_v49  ;;  %v12084_v1 = vpack.c.bf16 %v974_v57, %v973_v56 }
  0x4c   : > { %10611 = vmatprep.mubr.msk.bf16.mxu1 %vm493_vm0, %v12022_v11  ;;  %v681_v55 = vld [vmem:[#allocation4 + $0x3f] sm:$0xff]  ;;  %v682_v58 = vld [vmem:[#allocation4 + $0x47] sm:$0xff]  ;;  %v978_v12 = vld [vmem:[#allocation4 + $0x70] sm:$0xff] }
  0x4d   : > { %v12082_v0 = vpack.c.bf16 %v681_v55, %v680_v51  ;;  %v976_v2 = vld [vmem:[#allocation4 + $0x60] sm:$0xff]  ;;  %v684_v5 = vld [vmem:[#allocation4 + $0x57] sm:$0xff]  ;;  %v1233_v36 = vld [vmem:[#allocation3 + $0x21] sm:$0xff] }
  0x4e   : > { %v685_v8 = vld [vmem:[#allocation4 + $0x5f] sm:$0xff]  ;;  %v977_v9 = vld [vmem:[#allocation4 + $0x68] sm:$0xff]  ;;  %v1230_v23 = vld [vmem:[#allocation3 + $0x9] sm:$0xff] }
  0x4f   : > { %v686_v13 = vld [vmem:[#allocation4 + $0x67] sm:$0xff]  ;;  %v687_v14 = vld [vmem:[#allocation4 + $0x6f] sm:$0xff]  ;;  %v12098_v15 = vpack.c.bf16 %v685_v8, %v684_v5  ;;  %v12100_v16 = vpack.c.bf16 %v978_v12, %v977_v9  ;;  %v979_v21 = vld [vmem:[#allocation4 + $0x78] sm:$0xff] }
  0x50   : > { %v12102_v20 = vpack.c.bf16 %v687_v14, %v686_v13  ;;  %v980_v22 = vld [vmem:[#allocation4 + $0x80] sm:$0xff]  ;;  %v1385_v26 = vld [vmem:[#allocation4 + $0x11] sm:$0xff]  ;;  %v1388_v41 = vld [vmem:[#allocation4 + $0x29] sm:$0xff] }
  0x51   : > { %v1231_v24 = vld [vmem:[#allocation3 + $0x11] sm:$0xff]  ;;  %v12112_v29 = vpack.c.bf16 %v980_v22, %v979_v21  ;;  %v1400_v34 = vpack.c.bf16 %v1385_v26, %v1384_v25  ;;  %v1232_v35 = vld [vmem:[#allocation3 + $0x19] sm:$0xff]  ;;  %v1234_v39 = vld [vmem:[#allocation3 + $0x29] sm:$0xff] }
  0x52   : > { %10594 = vmatmul.mubr.msk.bf16.gmra.mxu0 %vm493_vm0, %v12039_v30  ;;  %v688_v27 = vld [vmem:[#allocation4 + $0x77] sm:$0xff]  ;;  %v689_v28 = vld [vmem:[#allocation4 + $0x7f] sm:$0xff]  ;;  %v12122_v49 = vpack.c.bf16 %v1233_v36, %v1232_v35  ;;  %v11570_v51 = vld [vmem:[%s14453_s4 + $0x20] sm:$0xff]  }
  0x53   : > { %10612 = vmatmul.mubr.msk.bf16.gmra.mxu1 %vm493_vm0, %v12041_v31  ;;  %10617 = vmatprep.mubr.msk.bf16.mxu0 %vm493_vm0, %v981_v32  ;;  %v12114_v32 = vpack.c.bf16 %v689_v28, %v688_v27  ;;  %v1386_v37 = vld [vmem:[#allocation4 + $0x19] sm:$0xff]  ;;  %v1387_v38 = vld [vmem:[#allocation4 + $0x21] sm:$0xff]  ;;  %v1389_v42 = vld [vmem:[#allocation4 + $0x31] sm:$0xff] }
  0x54   : > { %10635 = vmatprep.mubr.msk.bf16.mxu1 %vm493_vm0, %v690_v33  ;;  %v1246_v33 = vpack.c.bf16 %v1231_v24, %v1230_v23  ;;  %v1235_v40 = vld [vmem:[#allocation3 + $0x31] sm:$0xff]  ;;  %v12124_v50 = vpack.c.bf16 %v1387_v38, %v1386_v37  ;;  %v11571_v55 = vld [vmem:[%s14452_s3 + $0x20] sm:$0xff]   ;;  %v12134_v57 = vpack.c.bf16 %v1389_v42, %v1388_v41  ;;  %v1238_v5 = vld [vmem:[#allocation3 + $0x49] sm:$0xff] }
  0x55   : > { %v12132_v56 = vpack.c.bf16 %v1235_v40, %v1234_v39  ;;  %v1239_v8 = vld [vmem:[#allocation3 + $0x51] sm:$0xff]  ;;  %v1392_v9 = vld [vmem:[#allocation4 + $0x49] sm:$0xff]  ;;  %v1393_v12 = vld [vmem:[#allocation4 + $0x51] sm:$0xff] }
  0x56   : > { %v1240_v21 = vld [vmem:[#allocation3 + $0x59] sm:$0xff]  ;;  %v1241_v22 = vld [vmem:[#allocation3 + $0x61] sm:$0xff]  ;;  %v1394_v23 = vld [vmem:[#allocation4 + $0x59] sm:$0xff] }
  0x57   : > { %v1395_v24 = vld [vmem:[#allocation4 + $0x61] sm:$0xff]  ;;  %v1242_v25 = vld [vmem:[#allocation3 + $0x69] sm:$0xff]  ;;  %v1243_v26 = vld [vmem:[#allocation3 + $0x71] sm:$0xff] }
  0x58   : > { %v1396_v27 = vld [vmem:[#allocation4 + $0x69] sm:$0xff]  ;;  %v1397_v28 = vld [vmem:[#allocation4 + $0x71] sm:$0xff]  ;;  %v12166_v35 = vpack.c.bf16 %v1243_v26, %v1242_v25  ;;  %v1244_v37 = vld [vmem:[#allocation3 + $0x79] sm:$0xff] }
  0x59   : > { %v12168_v36 = vpack.c.bf16 %v1397_v28, %v1396_v27  ;;  %v1245_v38 = vld [vmem:[#allocation3 + $0x81] sm:$0xff]  ;;  %v1398_v39 = vld [vmem:[#allocation4 + $0x79] sm:$0xff]  ;;  %v1399_v40 = vld [vmem:[#allocation4 + $0x81] sm:$0xff] }
  0x5a   : > { %10618 = vmatmul.mubr.msk.bf16.vlgmr.msra.gmra.mxu0 %vm493_vm0, %v12050_v43  ;;  %v12178_v41 = vpack.c.bf16 %v1245_v38, %v1244_v37  ;;  %v12180_v42 = vpack.c.bf16 %v1399_v40, %v1398_v39  ;;  %v2473_v37 = vld [vmem:[#allocation3 + $0x7f] sm:$0xff] }
  0x5b   : > { %10636 = vmatmul.mubr.msk.bf16.vlgmr.msra.gmra.mxu1 %vm493_vm0, %v12052_v44  ;;  %10652 = vmatpush3.bf16.msra.mxu0 %v11922_v47  ;;  %v12086_v47 = vpack.c.bf16 %v683_v61, %v682_v58  ;;  %v1236_v58 = vld [vmem:[#allocation3 + $0x39] sm:$0xff]  ;;  %v1237_v61 = vld [vmem:[#allocation3 + $0x41] sm:$0xff] }
  0x5c   : > { %10670 = vmatpush3.bf16.msra.mxu1 %v11945_v63  ;;  %10621 = vmatprep.mubr.msk.bf16.mxu0 %vm493_vm0, %v12054_v45  ;;  %v975_v63 = vld [vmem:[#allocation4 + $0x58] sm:$0xff]  ;;  %v12146_v13 = vpack.c.bf16 %v1237_v61, %v1236_v58  ;;  %v11572_v58 = vld [vmem:[%s14453_s4 + $0x28] sm:$0xff]  }
  0x5d   : > { %10639 = vmatprep.mubr.msk.bf16.mxu1 %vm493_vm0, %v12056_v46  ;;  %10687 = vmatprep.subr.bf16.mxu0 %v12061_v48  ;;  %v12096_v3 = vpack.c.bf16 %v976_v2, %v975_v63  ;;  %v1390_v63 = vld [vmem:[#allocation4 + $0x39] sm:$0xff]  ;;  %v1391_v2 = vld [vmem:[#allocation4 + $0x41] sm:$0xff]  ;;  %v11573_v61 = vld [vmem:[%s14452_s3 + $0x28] sm:$0xff]  }
  0x5e   : > { %10705 = vmatprep.subr.bf16.mxu1 %v12066_v54  ;;  %v12148_v14 = vpack.c.bf16 %v1391_v2, %v1390_v63  ;;  %v2467_v63 = vld [vmem:[#allocation3 + $0x4f] sm:$0xff] }
  0x62   : > { %10622 = vmatmul.mubr.msk.bf16.gmra.mxu0 %vm493_vm0, %v12080_v62 }
  0x63   : > { %10640 = vmatmul.mubr.msk.bf16.gmra.mxu1 %vm493_vm0, %v12082_v0  ;;  %10625 = vmatprep.mubr.msk.bf16.mxu0 %vm493_vm0, %v12084_v1 }
  0x64   : > { %10643 = vmatprep.mubr.msk.bf16.mxu1 %vm493_vm0, %v12086_v47 }
  0x6a   : > { %10626 = vmatmul.mubr.msk.bf16.gmra.mxu0 %vm493_vm0, %v12096_v3 }
  0x6b   : > { %10644 = vmatmul.mubr.msk.bf16.gmra.mxu1 %vm493_vm0, %v12098_v15  ;;  %10629 = vmatprep.mubr.msk.bf16.mxu0 %vm493_vm0, %v12100_v16 }
  0x6c   : > { %10647 = vmatprep.mubr.msk.bf16.mxu1 %vm493_vm0, %v12102_v20 }
  0x72   : > { %10630 = vmatmul.mubr.msk.bf16.gmra.mxu0 %vm493_vm0, %v12112_v29 }
  0x73   : > { %10648 = vmatmul.mubr.msk.bf16.gmra.mxu1 %vm493_vm0, %v12114_v32  ;;  %10653 = vmatprep.mubr.msk.bf16.mxu0 %vm493_vm0, %v1246_v33  ;;  %v12162_v33 = vpack.c.bf16 %v1241_v22, %v1240_v21  ;;  %v2470_v22 = vld [vmem:[#allocation3 + $0x67] sm:$0xff] }
  0x74   : > { %10671 = vmatprep.mubr.msk.bf16.mxu1 %vm493_vm0, %v1400_v34  ;;  %v12164_v34 = vpack.c.bf16 %v1395_v24, %v1394_v23  ;;  %v2471_v23 = vld [vmem:[#allocation3 + $0x6f] sm:$0xff] }
  0x75   : > { %v2482_v27 = vpack.c.bf16 %v2471_v23, %v2470_v22  ;;  %v2929_v22 = vld [vmem:[#allocation4 + $0x50] sm:$0xff] }
  0x7a   : > { %10654 = vmatmul.mubr.msk.bf16.vlgmr.msra.gmra.mxu0 %vm493_vm0, %v12122_v49 }
  0x7b   : > { %10672 = vmatmul.mubr.msk.bf16.vlgmr.msra.gmra.mxu1 %vm493_vm0, %v12124_v50  ;;  %10688 = vmatpush3.bf16.msra.mxu0 %v12061_v48  ;;  %v12150_v48 = vpack.c.bf16 %v1239_v8, %v1238_v5  ;;  %v12318_v8 = vld [vmem:[%s14453_s4 + $0x40] sm:$0xff]  }
  0x7c   : > { %10706 = vmatpush3.bf16.msra.mxu1 %v12066_v54  ;;  %10657 = vmatprep.mubr.msk.bf16.mxu0 %vm493_vm0, %v12132_v56  ;;  %v12152_v54 = vpack.c.bf16 %v1393_v12, %v1392_v9  ;;  %v12323_v9 = vld [vmem:[%s14452_s3 + $0x40] sm:$0xff]  }
  0x7d   : > { %10675 = vmatprep.mubr.msk.bf16.mxu1 %vm493_vm0, %v12134_v57  ;;  %10723 = vmatprep.subr.bf16.mxu0 %v11570_v51 }
  0x7e   : > { %10741 = vmatprep.subr.bf16.mxu1 %v11571_v55 }
  0x82   : > { %10658 = vmatmul.mubr.msk.bf16.gmra.mxu0 %vm493_vm0, %v12146_v13 }
  0x83   : > { %10676 = vmatmul.mubr.msk.bf16.gmra.mxu1 %vm493_vm0, %v12148_v14  ;;  %10661 = vmatprep.mubr.msk.bf16.mxu0 %vm493_vm0, %v12150_v48 }
  0x84   : > { %10679 = vmatprep.mubr.msk.bf16.mxu1 %vm493_vm0, %v12152_v54 }
  0x8a   : > { %10662 = vmatmul.mubr.msk.bf16.gmra.mxu0 %vm493_vm0, %v12162_v33 }
  0x8b   : > { %10680 = vmatmul.mubr.msk.bf16.gmra.mxu1 %vm493_vm0, %v12164_v34  ;;  %10665 = vmatprep.mubr.msk.bf16.mxu0 %vm493_vm0, %v12166_v35 }
  0x8c   : > { %10683 = vmatprep.mubr.msk.bf16.mxu1 %vm493_vm0, %v12168_v36 }
  0x92   : > { %10666 = vmatmul.mubr.msk.bf16.gmra.mxu0 %vm493_vm0, %v12178_v41 }
  0x93   : > { %10684 = vmatmul.mubr.msk.bf16.gmra.mxu1 %vm493_vm0, %v12180_v42  ;;  %10689 = vmatprep.mubr.msk.bf16.mxu0 %vm493_vm0, %v11933_v53  ;;  %v1552_v53 = vld [vmem:[#allocation3 + $0x87] sm:$0xff] }
  0x94   : > { %10707 = vmatprep.mubr.msk.bf16.mxu1 %vm493_vm0, %v12052_v44 }
  0x9a   : > { %10690 = vmatmul.mubr.msk.bf16.vlgmr.msra.gmra.mxu0 %vm493_vm0, %v11940_v60  ;;  %v1553_v60 = vld [vmem:[#allocation3 + $0x8f] sm:$0xff] }
  0x9b   : > { %10708 = vmatmul.mubr.msk.bf16.vlgmr.msra.gmra.mxu1 %vm493_vm0, %v12056_v46  ;;  %10724 = vmatpush3.bf16.msra.mxu0 %v11570_v51 }
  0x9c   : > { %10742 = vmatpush3.bf16.msra.mxu1 %v11571_v55  ;;  %10693 = vmatprep.mubr.msk.bf16.mxu0 %vm493_vm0, %v11970_v17  ;;  %v1706_v17 = vld [vmem:[#allocation4 + $0x87] sm:$0xff]  ;;  %v2464_v55 = vld [vmem:[#allocation3 + $0x37] sm:$0xff] }
  0x9d   : > { %10711 = vmatprep.mubr.msk.bf16.mxu1 %vm493_vm0, %v12082_v0  ;;  %10759 = vmatprep.subr.bf16.mxu0 %v11572_v58 }
  0x9e   : > { %10777 = vmatprep.subr.bf16.mxu1 %v11573_v61 }
  0xa2   : > { %10694 = vmatmul.mubr.msk.bf16.gmra.mxu0 %vm493_vm0, %v11974_v19  ;;  %v1707_v19 = vld [vmem:[#allocation4 + $0x8f] sm:$0xff] }
  0xa3   : > { %10712 = vmatmul.mubr.msk.bf16.gmra.mxu1 %vm493_vm0, %v12086_v47  ;;  %10697 = vmatprep.mubr.msk.bf16.mxu0 %vm493_vm0, %v12017_v7  ;;  %v12220_v7 = vpack.c.bf16 %v1553_v60, %v1552_v53  ;;  %v12222_v44 = vpack.c.bf16 %v1707_v19, %v1706_v17  ;;  %v2476_v17 = vld [vmem:[#allocation3 + $0x97] sm:$0xff] }
  0xa4   : > { %10715 = vmatprep.mubr.msk.bf16.mxu1 %vm493_vm0, %v12098_v15 }
  0xaa   : > { %10698 = vmatmul.mubr.msk.bf16.gmra.mxu0 %vm493_vm0, %v12022_v11  ;;  %v11574_v11 = vld [vmem:[%s14453_s4 + $0x30] sm:$0xff]  }
  0xab   : > { %10716 = vmatmul.mubr.msk.bf16.gmra.mxu1 %vm493_vm0, %v12102_v20  ;;  %10701 = vmatprep.mubr.msk.bf16.mxu0 %vm493_vm0, %v12041_v31  ;;  %v11575_v31 = vld [vmem:[%s14452_s3 + $0x30] sm:$0xff]  }
  0xac   : > { %10719 = vmatprep.mubr.msk.bf16.mxu1 %vm493_vm0, %v12114_v32 }
  0xb2   : > { %10702 = vmatmul.mubr.msk.bf16.gmra.mxu0 %vm493_vm0, %v12220_v7 }
  0xb3   : > { %10720 = vmatmul.mubr.msk.bf16.gmra.mxu1 %vm493_vm0, %v12222_v44  ;;  %10725 = vmatprep.mubr.msk.bf16.mxu0 %vm493_vm0, %v11931_v52  ;;  %v1860_v52 = vld [vmem:[#allocation3 + $0x88] sm:$0xff] }
  0xb4   : > { %10743 = vmatprep.mubr.msk.bf16.mxu1 %vm493_vm0, %v12050_v43 }
  0xba   : > { %10726 = vmatmul.mubr.msk.bf16.vlgmr.msra.gmra.mxu0 %vm493_vm0, %v11938_v59  ;;  %v1861_v59 = vld [vmem:[#allocation3 + $0x90] sm:$0xff] }
  0xbb   : > { %10744 = vmatmul.mubr.msk.bf16.vlgmr.msra.gmra.mxu1 %vm493_vm0, %v12054_v45  ;;  %10760 = vmatpush3.bf16.msra.mxu0 %v11572_v58  ;;  %v2168_v45 = vld [vmem:[#allocation3 + $0x89] sm:$0xff] }
  0xbc   : > { %10778 = vmatpush3.bf16.msra.mxu1 %v11573_v61  ;;  %10729 = vmatprep.mubr.msk.bf16.mxu0 %vm493_vm0, %v11965_v4  ;;  %v2014_v4 = vld [vmem:[#allocation4 + $0x88] sm:$0xff] }
  0xbd   : > { %10747 = vmatprep.mubr.msk.bf16.mxu1 %vm493_vm0, %v12080_v62  ;;  %10795 = vmatprep.subr.bf16.mxu0 %v11574_v11  ;;  %v2169_v62 = vld [vmem:[#allocation3 + $0x91] sm:$0xff] }
  0xbe   : > { %10813 = vmatprep.subr.bf16.mxu1 %v11575_v31 }
  0xc2   : > { %10730 = vmatmul.mubr.msk.bf16.gmra.mxu0 %vm493_vm0, %v11972_v18  ;;  %v2015_v18 = vld [vmem:[#allocation4 + $0x90] sm:$0xff] }
  0xc3   : > { %10748 = vmatmul.mubr.msk.bf16.gmra.mxu1 %vm493_vm0, %v12084_v1  ;;  %10733 = vmatprep.mubr.msk.bf16.mxu0 %vm493_vm0, %v12015_v6  ;;  %v12262_v6 = vpack.c.bf16 %v1861_v59, %v1860_v52  ;;  %v12264_v43 = vpack.c.bf16 %v2015_v18, %v2014_v4  ;;  %v2322_v1 = vld [vmem:[#allocation4 + $0x89] sm:$0xff]  ;;  %v2771_v18 = vld [vmem:[#allocation3 + $0x30] sm:$0xff] }
  0xc4   : > { %10751 = vmatprep.mubr.msk.bf16.mxu1 %vm493_vm0, %v12096_v3  ;;  %v2323_v3 = vld [vmem:[#allocation4 + $0x91] sm:$0xff] }
  0xc5   : > { %v2770_v52 = vld [vmem:[#allocation3 + $0x28] sm:$0xff] }
  0xca   : > { %10734 = vmatmul.mubr.msk.bf16.gmra.mxu0 %vm493_vm0, %v12020_v10  ;;  %v11576_v10 = vld [vmem:[%s14453_s4 + $0x38] sm:$0xff]  }
  0xcb   : > { %10752 = vmatmul.mubr.msk.bf16.gmra.mxu1 %vm493_vm0, %v12100_v16  ;;  %10737 = vmatprep.mubr.msk.bf16.mxu0 %vm493_vm0, %v12039_v30  ;;  %v11577_v30 = vld [vmem:[%s14452_s3 + $0x38] sm:$0xff]   ;;  %v2462_v16 = vld [vmem:[#allocation3 + $0x27] sm:$0xff] }
  0xcc   : > { %10755 = vmatprep.mubr.msk.bf16.mxu1 %vm493_vm0, %v12112_v29  ;;  %v2463_v29 = vld [vmem:[#allocation3 + $0x2f] sm:$0xff] }
  0xcd   : > { %v2478_v51 = vpack.c.bf16 %v2463_v29, %v2462_v16  ;;  %v2786_v16 = vpack.c.bf16 %v2771_v18, %v2770_v52 }
  0xd2   : > { %10738 = vmatmul.mubr.msk.bf16.gmra.mxu0 %vm493_vm0, %v12262_v6 }
  0xd3   : > { %10756 = vmatmul.mubr.msk.bf16.gmra.mxu1 %vm493_vm0, %v12264_v43  ;;  %10761 = vmatprep.mubr.msk.bf16.mxu0 %vm493_vm0, %v12122_v49  ;;  %v12304_v49 = vpack.c.bf16 %v2169_v62, %v2168_v45 }
  0xd4   : > { %10779 = vmatprep.mubr.msk.bf16.mxu1 %vm493_vm0, %v12124_v50  ;;  %v12306_v50 = vpack.c.bf16 %v2323_v3, %v2322_v1 }
  0xda   : > { %10762 = vmatmul.mubr.msk.bf16.vlgmr.msra.gmra.mxu0 %vm493_vm0, %v12132_v56  ;;  %v2465_v56 = vld [vmem:[#allocation3 + $0x3f] sm:$0xff] }
  0xdb   : > { %10780 = vmatmul.mubr.msk.bf16.vlgmr.msra.gmra.mxu1 %vm493_vm0, %v12134_v57  ;;  %10796 = vmatpush3.bf16.msra.mxu0 %v11574_v11  ;;  %v2466_v57 = vld [vmem:[#allocation3 + $0x47] sm:$0xff]  ;;  %v2479_v2 = vpack.c.bf16 %v2465_v56, %v2464_v55  ;;  %v2630_v11 = vld [vmem:[#allocation4 + $0x97] sm:$0xff]  ;;  %v2772_v56 = vld [vmem:[#allocation3 + $0x38] sm:$0xff] }
  0xdc   : > { %10814 = vmatpush3.bf16.msra.mxu1 %v11575_v31  ;;  %10765 = vmatprep.mubr.msk.bf16.mxu0 %vm493_vm0, %v12146_v13  ;;  %v2480_v5 = vpack.c.bf16 %v2467_v63, %v2466_v57  ;;  %v2631_v31 = vld [vmem:[#allocation4 + $0x9f] sm:$0xff]  ;;  %v2773_v63 = vld [vmem:[#allocation3 + $0x40] sm:$0xff] }
  0xdd   : > { %10783 = vmatprep.mubr.msk.bf16.mxu1 %vm493_vm0, %v12148_v14  ;;  %10831 = vmatprep.subr.bf16.mxu0 %v11576_v10  ;;  %v2468_v14 = vld [vmem:[#allocation3 + $0x57] sm:$0xff]  ;;  %v2639_v3 = vpack.c.bf16 %v2631_v31, %v2630_v11  ;;  %v2933_v11 = vld [vmem:[#allocation4 + $0x70] sm:$0xff] }
  0xde   : > { %10849 = vmatprep.subr.bf16.mxu1 %v11577_v30 }
  0xe2   : > { %10766 = vmatmul.mubr.msk.bf16.gmra.mxu0 %vm493_vm0, %v12150_v48  ;;  %v2469_v48 = vld [vmem:[#allocation3 + $0x5f] sm:$0xff] }
  0xe3   : > { %10784 = vmatmul.mubr.msk.bf16.gmra.mxu1 %vm493_vm0, %v12152_v54  ;;  %10769 = vmatprep.mubr.msk.bf16.mxu0 %vm493_vm0, %v12162_v33  ;;  %v2481_v26 = vpack.c.bf16 %v2469_v48, %v2468_v14  ;;  %v2774_v14 = vld [vmem:[#allocation3 + $0x48] sm:$0xff] }
  0xe4   : > { %10787 = vmatprep.mubr.msk.bf16.mxu1 %vm493_vm0, %v12164_v34 }
  0xea   : > { %10770 = vmatmul.mubr.msk.bf16.gmra.mxu0 %vm493_vm0, %v12166_v35 }
  0xeb   : > { %10788 = vmatmul.mubr.msk.bf16.gmra.mxu1 %vm493_vm0, %v12168_v36  ;;  %10773 = vmatprep.mubr.msk.bf16.mxu0 %vm493_vm0, %v12178_v41  ;;  %v2472_v36 = vld [vmem:[#allocation3 + $0x77] sm:$0xff] }
  0xec   : > { %10791 = vmatprep.mubr.msk.bf16.mxu1 %vm493_vm0, %v12180_v42  ;;  %v2483_v58 = vpack.c.bf16 %v2473_v37, %v2472_v36  ;;  %v12374_v36 = vld [vmem:[%s14451_s2 + $0x8] sm:$0xff]  }
  0xf2   : > { %10774 = vmatmul.mubr.msk.bf16.gmra.mxu0 %vm493_vm0, %v12304_v49 }
  0xf3   : > { %10792 = vmatmul.mubr.msk.bf16.gmra.mxu1 %vm493_vm0, %v12306_v50  ;;  %10797 = vmatprep.mubr.msk.bf16.mxu0 %vm493_vm0, %v2478_v51 }
  0xf4   : > { %10815 = vmatprep.mubr.msk.bf16.mxu1 %vm493_vm0, %v12056_v46 }
  0xfa   : > { %v10583_v12 = vpop.f32.mrf.mxu0  ;;  %10798 = vmatmul.mubr.msk.bf16.vlgmr.msra.gmra.mxu0 %vm493_vm0, %v2479_v2  ;;  %v2926_v2 = vld [vmem:[#allocation4 + $0x38] sm:$0xff] }
  0xfb   : > { %v10601_v13 = vpop.f32.mrf.mxu1  ;;  %10816 = vmatmul.mubr.msk.bf16.vlgmr.msra.gmra.mxu1 %vm493_vm0, %v12082_v0  ;;  %10832 = vmatpush3.bf16.msra.mxu0 %v11576_v10  ;;  %v2924_v10 = vld [vmem:[#allocation4 + $0x28] sm:$0xff] }
  0xfc   : > { %v12328_v46 = vadd.f32 %v10601_v13, %v10583_v12  ;;  %10850 = vmatpush3.bf16.msra.mxu1 %v11577_v30  ;;  %v791_v54 = vpop.f32.mrf.mxu0  ;;  %10801 = vmatprep.mubr.msk.bf16.mxu0 %vm493_vm0, %v2480_v5  ;;  %v2925_v30 = vld [vmem:[#allocation4 + $0x30] sm:$0xff]  ;;  %v2927_v5 = vld [vmem:[#allocation4 + $0x40] sm:$0xff] }
  0xfd   : > { %v910_v21 = vpop.f32.mrf.mxu1  ;;  %10819 = vmatprep.mubr.msk.bf16.mxu1 %vm493_vm0, %v12086_v47  ;;  %10867 = vmatprep.subr.bf16.mxu0 %v12318_v8  ;;  %v2940_v29 = vpack.c.bf16 %v2925_v30, %v2924_v10 }
  0xfe   : > { %v12333_v24 = vadd.f32 %v910_v21, %v791_v54  ;;  %10885 = vmatprep.subr.bf16.mxu1 %v12323_v9  ;;  %v10584_v0 = vpop.f32.mrf.mxu0  ;;  %v2775_v54 = vld [vmem:[#allocation3 + $0x50] sm:$0xff]  ;;  %v2928_v21 = vld [vmem:[#allocation4 + $0x48] sm:$0xff] }
  0xff   : > { %v10602_v25 = vpop.f32.mrf.mxu1 }
 0x100   : > { %v794_v28 = vpop.f32.mrf.mxu0  ;;  %v2787_v25 = vpack.c.bf16 %v2773_v63, %v2772_v56 }
 0x101   : > { %v913_v33 = vpop.f32.mrf.mxu1 }
 0x102   : > { %v10587_v34 = vpop.f32.mrf.mxu0  ;;  %10802 = vmatmul.mubr.msk.bf16.gmra.mxu0 %vm493_vm0, %v2481_v26  ;;  %v2941_v26 = vpack.c.bf16 %v2927_v5, %v2926_v2  ;;  %v2788_v33 = vpack.c.bf16 %v2775_v54, %v2774_v14 }
 0x103   : > { %v10605_v35 = vpop.f32.mrf.mxu1  ;;  %10820 = vmatmul.mubr.msk.bf16.gmra.mxu1 %vm493_vm0, %v12098_v15  ;;  %10805 = vmatprep.mubr.msk.bf16.mxu0 %vm493_vm0, %v2482_v27 }
 0x104   : > { %v12340_v47 = vadd.f32 %v10605_v35, %v10587_v34  ;;  %10823 = vmatprep.mubr.msk.bf16.mxu1 %vm493_vm0, %v12102_v20  ;;  %v805_v38 = vpop.f32.mrf.mxu0  ;;  %v2477_v20 = vld [vmem:[#allocation3 + $0x9f] sm:$0xff]  ;;  %v2942_v34 = vpack.c.bf16 %v2929_v22, %v2928_v21 }
 0x105   : > { %v924_v39 = vpop.f32.mrf.mxu1  ;;  %v2485_v1 = vpack.c.bf16 %v2477_v20, %v2476_v17  ;;  %v12369_v35 = vld [vmem:[%s14451_s2] sm:$0xff]   ;;  %v2779_v17 = vld [vmem:[#allocation3 + $0x70] sm:$0xff]  ;;  %v2784_v21 = vld [vmem:[#allocation3 + $0x98] sm:$0xff] }
 0x106   : > { %v12345_v40 = vadd.f32 %v924_v39, %v805_v38  ;;  %v10588_v41 = vpop.f32.mrf.mxu0  ;;  %v2776_v39 = vld [vmem:[#allocation3 + $0x58] sm:$0xff]  ;;  %v2932_v20 = vld [vmem:[#allocation4 + $0x68] sm:$0xff] }
 0x107   : > { %v10606_v42 = vpop.f32.mrf.mxu1  ;;  %v2777_v41 = vld [vmem:[#allocation3 + $0x60] sm:$0xff]  ;;  %v2944_v18 = vpack.c.bf16 %v2933_v11, %v2932_v20 }
 0x108   : > { %v808_v61 = vpop.f32.mrf.mxu0  ;;  %v2789_v52 = vpack.c.bf16 %v2777_v41, %v2776_v39  ;;  %v2785_v22 = vld [vmem:[#allocation3 + $0xa0] sm:$0xff] }
 0x109   : > { %v927_v53 = vpop.f32.mrf.mxu1  ;;  %v2931_v61 = vld [vmem:[#allocation4 + $0x60] sm:$0xff] }
 0x10a   : > { %v10591_v60 = vpop.f32.mrf.mxu0  ;;  %10806 = vmatmul.mubr.msk.bf16.gmra.mxu0 %vm493_vm0, %v2483_v58  ;;  %v2930_v58 = vld [vmem:[#allocation4 + $0x58] sm:$0xff]  ;;  %v2778_v53 = vld [vmem:[#allocation3 + $0x68] sm:$0xff]  ;;  %v3080_v20 = vld [vmem:[#allocation3 + $0x39] sm:$0xff] }
 0x10b   : > { %v10609_v15 = vpop.f32.mrf.mxu1  ;;  %10824 = vmatmul.mubr.msk.bf16.gmra.mxu1 %vm493_vm0, %v12114_v32  ;;  %10809 = vmatprep.mubr.msk.bf16.mxu0 %vm493_vm0, %v12220_v7 }
 0x10c   : > { %v12350_v19 = vadd.f32 %v10609_v15, %v10591_v60  ;;  %10827 = vmatprep.mubr.msk.bf16.mxu1 %vm493_vm0, %v12222_v44  ;;  %v819_v59 = vpop.f32.mrf.mxu0 }
 0x10d   : > { %v938_v4 = vpop.f32.mrf.mxu1 }
 0x10e   : > { %v12356_v45 = vadd.f32 %v938_v4, %v819_v59  ;;  %v10592_v32 = vpop.f32.mrf.mxu0  ;;  %v2943_v59 = vpack.c.bf16 %v2931_v61, %v2930_v58  ;;  %v2790_v4 = vpack.c.bf16 %v2779_v17, %v2778_v53  ;;  %v2793_v58 = vpack.c.bf16 %v2785_v22, %v2784_v21 }
 0x10f   : > { %v10610_v62 = vpop.f32.mrf.mxu1 }
 0x110   : > { %v822_v7 = vpop.f32.mrf.mxu0 }
 0x111   : > { %v941_v51 = vpop.f32.mrf.mxu1  ;;  %v2935_v7 = vld [vmem:[#allocation4 + $0x80] sm:$0xff] }
 0x112   : > { %v10595_v55 = vpop.f32.mrf.mxu0  ;;  %10810 = vmatmul.mubr.msk.bf16.gmra.mxu0 %vm493_vm0, %v2485_v1  ;;  %v2780_v1 = vld [vmem:[#allocation3 + $0x78] sm:$0xff] }
 0x113   : > { %v10613_v44 = vpop.f32.mrf.mxu1  ;;  %10828 = vmatmul.mubr.msk.bf16.gmra.mxu1 %vm493_vm0, %v2639_v3  ;;  %10833 = vmatprep.mubr.msk.bf16.mxu0 %vm493_vm0, %v2786_v16  ;;  %v2781_v16 = vld [vmem:[#allocation3 + $0x80] sm:$0xff] }
 0x114   : > { %v12360_v57 = vadd.f32 %v10613_v44, %v10595_v55  ;;  %10851 = vmatprep.mubr.msk.bf16.mxu1 %vm493_vm0, %v2940_v29  ;;  %v833_v12 = vpop.f32.mrf.mxu0  ;;  %v2934_v29 = vld [vmem:[#allocation4 + $0x78] sm:$0xff]  ;;  %v2791_v2 = vpack.c.bf16 %v2781_v16, %v2780_v1 }
 0x115   : > { %v952_v13 = vpop.f32.mrf.mxu1  ;;  %v2945_v5 = vpack.c.bf16 %v2935_v7, %v2934_v29 }
 0x116   : > { %v12364_v48 = vadd.f32 %v952_v13, %v833_v12  ;;  %v10596_v23 = vpop.f32.mrf.mxu0 }
 0x117   : > { %v10614_v0 = vpop.f32.mrf.mxu1 }
 0x118   : > { %v836_v27 = vpop.f32.mrf.mxu0  ;;  %v2938_v0 = vld [vmem:[#allocation4 + $0x98] sm:$0xff] }
 0x119   : > { %v955_v28 = vpop.f32.mrf.mxu1 }
 0x11a   : > { %v10619_v37 = vpop.f32.mrf.mxu0  ;;  %10834 = vmatmul.mubr.msk.bf16.vlgmr.msra.gmra.mxu0 %vm493_vm0, %v2787_v25  ;;  %v2939_v25 = vld [vmem:[#allocation4 + $0xa0] sm:$0xff] }
 0x11b   : > { %v10637_v38 = vpop.f32.mrf.mxu1  ;;  %10852 = vmatmul.mubr.msk.bf16.vlgmr.msra.gmra.mxu1 %vm493_vm0, %v2941_v26  ;;  %10868 = vmatpush3.bf16.msra.mxu0 %v12318_v8  ;;  %v3078_v26 = vld [vmem:[#allocation3 + $0x29] sm:$0xff]  ;;  %v2947_v61 = vpack.c.bf16 %v2939_v25, %v2938_v0  ;;  %v3238_v0 = vld [vmem:[#allocation4 + $0x59] sm:$0xff]  ;;  %v3239_v25 = vld [vmem:[#allocation4 + $0x61] sm:$0xff] }
 0x11c   : > { %v12378_v42 = vadd.f32 %v10637_v38, %v10619_v37  ;;  %10886 = vmatpush3.bf16.msra.mxu1 %v12323_v9  ;;  %v1056_v60 = vpop.f32.mrf.mxu0  ;;  %10837 = vmatprep.mubr.msk.bf16.mxu0 %vm493_vm0, %v2788_v33  ;;  %v3079_v33 = vld [vmem:[#allocation3 + $0x31] sm:$0xff]  ;;  %v3233_v37 = vld [vmem:[#allocation4 + $0x31] sm:$0xff] }
 0x11d   : > { %v1175_v15 = vpop.f32.mrf.mxu1  ;;  %10855 = vmatprep.mubr.msk.bf16.mxu1 %vm493_vm0, %v2942_v34  ;;  %10903 = vmatprep.subr.bf16.mxu0 %v12369_v35  ;;  %v3232_v34 = vld [vmem:[#allocation4 + $0x29] sm:$0xff]  ;;  %v3094_v53 = vpack.c.bf16 %v3079_v33, %v3078_v26  ;;  %v3086_v26 = vld [vmem:[#allocation3 + $0x69] sm:$0xff]  ;;  %v3087_v33 = vld [vmem:[#allocation3 + $0x71] sm:$0xff] }
 0x11e   : > { %v12384_v31 = vadd.f32 %v1175_v15, %v1056_v60  ;;  %10921 = vmatprep.subr.bf16.mxu1 %v12374_v36  ;;  %v10620_v8 = vpop.f32.mrf.mxu0  ;;  %v3248_v60 = vpack.c.bf16 %v3233_v37, %v3232_v34  ;;  %v3240_v34 = vld [vmem:[#allocation4 + $0x69] sm:$0xff] }
 0x11f   : > { %v10638_v9 = vpop.f32.mrf.mxu1  ;;  %v3081_v8 = vld [vmem:[#allocation3 + $0x41] sm:$0xff] }
 0x120   : > { %v1059_v10 = vpop.f32.mrf.mxu0  ;;  %v3234_v9 = vld [vmem:[#allocation4 + $0x39] sm:$0xff]  ;;  %v3095_v29 = vpack.c.bf16 %v3081_v8, %v3080_v20  ;;  %v3243_v8 = vld [vmem:[#allocation4 + $0x81] sm:$0xff] }
 0x121   : > { %v1178_v30 = vpop.f32.mrf.mxu1  ;;  %v3242_v20 = vld [vmem:[#allocation4 + $0x79] sm:$0xff] }
 0x122   : > { %v10623_v32 = vpop.f32.mrf.mxu0  ;;  %10838 = vmatmul.mubr.msk.bf16.gmra.mxu0 %vm493_vm0, %v2789_v52  ;;  %v3235_v52 = vld [vmem:[#allocation4 + $0x41] sm:$0xff]  ;;  %v3083_v30 = vld [vmem:[#allocation3 + $0x51] sm:$0xff] }
 0x123   : > { %v10641_v62 = vpop.f32.mrf.mxu1  ;;  %10856 = vmatmul.mubr.msk.bf16.gmra.mxu1 %vm493_vm0, %v2943_v59  ;;  %10841 = vmatprep.mubr.msk.bf16.mxu0 %vm493_vm0, %v2790_v4  ;;  %v3249_v7 = vpack.c.bf16 %v3235_v52, %v3234_v9 }
 0x124   : > { %v12390_v3 = vadd.f32 %v10641_v62, %v10623_v32  ;;  %10859 = vmatprep.mubr.msk.bf16.mxu1 %vm493_vm0, %v2944_v18  ;;  %v1070_v51 = vpop.f32.mrf.mxu0  ;;  %v3082_v18 = vld [vmem:[#allocation3 + $0x49] sm:$0xff]  ;;  %v3236_v32 = vld [vmem:[#allocation4 + $0x49] sm:$0xff] }
 0x125   : > { %v1189_v55 = vpop.f32.mrf.mxu1  ;;  %v3237_v62 = vld [vmem:[#allocation4 + $0x51] sm:$0xff] }
 0x126   : > { %v12394_v44 = vadd.f32 %v1189_v55, %v1070_v51  ;;  %v10624_v56 = vpop.f32.mrf.mxu0 }
 0x127   : > { %v10642_v63 = vpop.f32.mrf.mxu1  ;;  %v3096_v56 = vpack.c.bf16 %v3083_v30, %v3082_v18 }
 0x128   : > { %v1073_v12 = vpop.f32.mrf.mxu0  ;;  %v3250_v63 = vpack.c.bf16 %v3237_v62, %v3236_v32 }
 0x129   : > { %v1192_v13 = vpop.f32.mrf.mxu1 }
 0x12a   : > { %v10627_v14 = vpop.f32.mrf.mxu0  ;;  %10842 = vmatmul.mubr.msk.bf16.gmra.mxu0 %vm493_vm0, %v2791_v2  ;;  %v12417_v2 = vld [vmem:[%s14451_s2 + $0x10] sm:$0xff]  }
 0x12b   : > { %v10645_v54 = vpop.f32.mrf.mxu1  ;;  %10860 = vmatmul.mubr.msk.bf16.gmra.mxu1 %vm493_vm0, %v2945_v5  ;;  %10845 = vmatprep.mubr.msk.bf16.mxu0 %vm493_vm0, %v12262_v6  ;;  %v12422_v5 = vld [vmem:[%s14451_s2 + $0x18] sm:$0xff]  }
 0x12c   : > { %v12398_v23 = vadd.f32 %v10645_v54, %v10627_v14  ;;  %10863 = vmatprep.mubr.msk.bf16.mxu1 %vm493_vm0, %v12264_v43  ;;  %v1084_v27 = vpop.f32.mrf.mxu0  ;;  %v3084_v14 = vld [vmem:[#allocation3 + $0x59] sm:$0xff]  ;;  %v3085_v54 = vld [vmem:[#allocation3 + $0x61] sm:$0xff] }
 0x12d   : > { %v1203_v28 = vpop.f32.mrf.mxu1 }
 0x12e   : > { %v12404_v38 = vadd.f32 %v1203_v28, %v1084_v27  ;;  %v10628_v39 = vpop.f32.mrf.mxu0 }
 0x12f   : > { %v10646_v41 = vpop.f32.mrf.mxu1  ;;  %v3097_v39 = vpack.c.bf16 %v3085_v54, %v3084_v14  ;;  %v3688_v14 = vld [vmem:[#allocation2 + $0x178] sm:$0xff]  ;;  %v3689_v54 = vld [vmem:[#allocation2 + $0x180] sm:$0xff] }
 0x130   : > { %v1087_v6 = vpop.f32.mrf.mxu0  ;;  %v3251_v41 = vpack.c.bf16 %v3239_v25, %v3238_v0 }
 0x131   : > { %v1206_v15 = vpop.f32.mrf.mxu1 }
 0x132   : > { %v10631_v17 = vpop.f32.mrf.mxu0  ;;  %10846 = vmatmul.mubr.msk.bf16.gmra.mxu0 %vm493_vm0, %v2793_v58  ;;  %v3098_v58 = vpack.c.bf16 %v3087_v33, %v3086_v26 }
 0x133   : > { %v10649_v43 = vpop.f32.mrf.mxu1  ;;  %10864 = vmatmul.mubr.msk.bf16.gmra.mxu1 %vm493_vm0, %v2947_v61  ;;  %10869 = vmatprep.mubr.msk.bf16.mxu0 %vm493_vm0, %v3094_v53 }
 0x134   : > { %v12408_v11 = vadd.f32 %v10649_v43, %v10631_v17  ;;  %10887 = vmatprep.mubr.msk.bf16.mxu1 %vm493_vm0, %v3248_v60  ;;  %v1098_v59 = vpop.f32.mrf.mxu0  ;;  %v3089_v43 = vld [vmem:[#allocation3 + $0x81] sm:$0xff] }
 0x135   : > { %v1217_v4 = vpop.f32.mrf.mxu1 }
 0x136   : > { %v12412_v10 = vadd.f32 %v1217_v4, %v1098_v59  ;;  %v10632_v1 = vpop.f32.mrf.mxu0 }
 0x137   : > { %v10650_v16 = vpop.f32.mrf.mxu1 }
 0x138   : > { %v1101_v51 = vpop.f32.mrf.mxu0 }
 0x139   : > { %v1220_v55 = vpop.f32.mrf.mxu1  ;;  %v3246_v51 = vld [vmem:[#allocation4 + $0x99] sm:$0xff] }
 0x13a   : > { %v10655_v12 = vpop.f32.mrf.mxu0  ;;  %10870 = vmatmul.mubr.msk.bf16.vlgmr.msra.gmra.mxu0 %vm493_vm0, %v3095_v29  ;;  %v3092_v29 = vld [vmem:[#allocation3 + $0x99] sm:$0xff] }
 0x13b   : > { %v10673_v13 = vpop.f32.mrf.mxu1  ;;  %10888 = vmatmul.mubr.msk.bf16.vlgmr.msra.gmra.mxu1 %vm493_vm0, %v3249_v7  ;;  %v12427_v21 = vadd.f32 %v10655_v12, %v12328_v46  ;;  %10904 = vmatpush3.bf16.msra.mxu0 %v12369_v35  ;;  %v3241_v46 = vld [vmem:[#allocation4 + $0x71] sm:$0xff]  ;;  %v3093_v7 = vld [vmem:[#allocation3 + $0xa1] sm:$0xff]  ;;  %v3247_v55 = vld [vmem:[#allocation4 + $0xa1] sm:$0xff] }
 0x13c   : > { %v12430_v22 = vadd.f32 %v10673_v13, %v12378_v42  ;;  %10922 = vmatpush3.bf16.msra.mxu1 %v12374_v36  ;;  %v1321_v27 = vpop.f32.mrf.mxu0  ;;  %10873 = vmatprep.mubr.msk.bf16.mxu0 %vm493_vm0, %v3096_v56  ;;  %v3252_v61 = vpack.c.bf16 %v3241_v46, %v3240_v34  ;;  %v3535_v56 = vld [vmem:[#allocation2 + $0x22f] sm:$0xff]  ;;  %v3536_v13 = vld [vmem:[#allocation2 + $0x237] sm:$0xff]  ;;  %v3255_v26 = vpack.c.bf16 %v3247_v55, %v3246_v51 }
 0x13d   : > { %v1475_v28 = vpop.f32.mrf.mxu1  ;;  %10891 = vmatprep.mubr.msk.bf16.mxu1 %vm493_vm0, %v3250_v63  ;;  %v12437_v37 = vadd.f32 %v1321_v27, %v12333_v24  ;;  %10939 = vmatprep.subr.bf16.mxu0 %v12417_v2  ;;  %v3088_v24 = vld [vmem:[#allocation3 + $0x79] sm:$0xff]  ;;  %v3551_v27 = vpack.c.bf16 %v3536_v13, %v3535_v56  ;;  %v3543_v51 = vld [vmem:[#allocation2 + $0x26f] sm:$0xff] }
 0x13e   : > { %v12440_v42 = vadd.f32 %v1475_v28, %v12384_v31  ;;  %10957 = vmatprep.subr.bf16.mxu1 %v12422_v5  ;;  %v10656_v35 = vpop.f32.mrf.mxu0  ;;  %v3099_v30 = vpack.c.bf16 %v3089_v43, %v3088_v24 }
 0x13f   : > { %v10674_v36 = vpop.f32.mrf.mxu1 }
 0x140   : > { %v1324_v53 = vpop.f32.mrf.mxu0  ;;  %v3538_v36 = vld [vmem:[#allocation2 + $0x247] sm:$0xff] }
 0x141   : > { %v1478_v60 = vpop.f32.mrf.mxu1  ;;  %v3539_v53 = vld [vmem:[#allocation2 + $0x24f] sm:$0xff] }
 0x142   : > { %v10659_v6 = vpop.f32.mrf.mxu0  ;;  %10874 = vmatmul.mubr.msk.bf16.gmra.mxu0 %vm493_vm0, %v3097_v39  ;;  %v3690_v39 = vld [vmem:[#allocation2 + $0x188] sm:$0xff] }
 0x143   : > { %v10677_v15 = vpop.f32.mrf.mxu1  ;;  %10892 = vmatmul.mubr.msk.bf16.gmra.mxu1 %vm493_vm0, %v3251_v41  ;;  %v12447_v31 = vadd.f32 %v10659_v6, %v12340_v47  ;;  %10877 = vmatprep.mubr.msk.bf16.mxu0 %vm493_vm0, %v3098_v58  ;;  %v3691_v41 = vld [vmem:[#allocation2 + $0x190] sm:$0xff] }
 0x144   : > { %v12450_v17 = vadd.f32 %v10677_v15, %v12390_v3  ;;  %10895 = vmatprep.mubr.msk.bf16.mxu1 %vm493_vm0, %v3252_v61  ;;  %v1335_v9 = vpop.f32.mrf.mxu0  ;;  %v3253_v3 = vpack.c.bf16 %v3243_v8, %v3242_v20  ;;  %v3540_v6 = vld [vmem:[#allocation2 + $0x257] sm:$0xff]  ;;  %v3693_v15 = vld [vmem:[#allocation2 + $0x1a0] sm:$0xff]  ;;  %v12499_v8 = vpack.c.bf16 %v3691_v41, %v3690_v39 }
 0x145   : > { %v1489_v52 = vpop.f32.mrf.mxu1  ;;  %v12455_v59 = vadd.f32 %v1335_v9, %v12345_v40 }
 0x146   : > { %v12458_v4 = vadd.f32 %v1489_v52, %v12394_v44  ;;  %v10660_v47 = vpop.f32.mrf.mxu0 }
 0x147   : > { %v10678_v18 = vpop.f32.mrf.mxu1  ;;  %v12501_v47 = vpack.c.bf16 %v3540_v6, %v3539_v53  ;;  %v3701_v53 = vld [vmem:[#allocation2 + $0x1e0] sm:$0xff] }
 0x148   : > { %v1338_v32 = vpop.f32.mrf.mxu0 }
 0x149   : > { %v1492_v62 = vpop.f32.mrf.mxu1  ;;  %v3541_v32 = vld [vmem:[#allocation2 + $0x25f] sm:$0xff] }
 0x14a   : > { %v10663_v1 = vpop.f32.mrf.mxu0  ;;  %10878 = vmatmul.mubr.msk.bf16.gmra.mxu0 %vm493_vm0, %v3099_v30  ;;  %v3542_v62 = vld [vmem:[#allocation2 + $0x267] sm:$0xff] }
 0x14b   : > { %v10681_v16 = vpop.f32.mrf.mxu1  ;;  %10896 = vmatmul.mubr.msk.bf16.gmra.mxu1 %vm493_vm0, %v3253_v3  ;;  %v12463_v40 = vadd.f32 %v10663_v1, %v12350_v19  ;;  %10881 = vmatprep.mubr.msk.bf16.mxu0 %vm493_vm0, %v12304_v49  ;;  %v3101_v49 = vpack.c.bf16 %v3093_v7, %v3092_v29  ;;  %v3694_v29 = vld [vmem:[#allocation2 + $0x1a8] sm:$0xff]  ;;  %v3695_v7 = vld [vmem:[#allocation2 + $0x1b0] sm:$0xff] }
 0x14c   : > { %v12466_v44 = vadd.f32 %v10681_v16, %v12398_v23  ;;  %10899 = vmatprep.mubr.msk.bf16.mxu1 %vm493_vm0, %v12306_v50  ;;  %v1349_v63 = vpop.f32.mrf.mxu0  ;;  %v12478_v50 = vpack.c.bf16 %v3689_v54, %v3688_v14  ;;  %v12539_v14 = vpack.c.bf16 %v3542_v62, %v3541_v32  ;;  %v12541_v54 = vpack.c.bf16 %v3695_v7, %v3694_v29  ;;  %v3702_v7 = vld [vmem:[#allocation2 + $0x1e8] sm:$0xff] }
 0x14d   : > { %v1503_v12 = vpop.f32.mrf.mxu1  ;;  %v12473_v19 = vadd.f32 %v1349_v63, %v12356_v45  ;;  %v3537_v45 = vld [vmem:[#allocation2 + $0x23f] sm:$0xff] }
 0x14e   : > { %v12476_v23 = vadd.f32 %v1503_v12, %v12404_v38  ;;  %v10664_v0 = vpop.f32.mrf.mxu0  ;;  %v12497_v20 = vpack.c.bf16 %v3538_v36, %v3537_v45  ;;  %v3696_v63 = vld [vmem:[#allocation2 + $0x1b8] sm:$0xff]  ;;  %v3697_v12 = vld [vmem:[#allocation2 + $0x1c0] sm:$0xff]  ;;  %v3699_v45 = vld [vmem:[#allocation2 + $0x1d0] sm:$0xff] }
 0x14f   : > { %v10682_v25 = vpop.f32.mrf.mxu1  ;;  %v3547_v36 = vld [vmem:[#allocation2 + $0x28f] sm:$0xff] }
 0x150   : > { %v1352_v28 = vpop.f32.mrf.mxu0  ;;  %v12545_v25 = vpack.c.bf16 %v3697_v12, %v3696_v63  ;;  %v3843_v63 = vld [vmem:[#allocation2 + $0x238] sm:$0xff]  ;;  %v3996_v12 = vld [vmem:[#allocation2 + $0xcf] sm:$0xff] }
 0x151   : > { %v1506_v33 = vpop.f32.mrf.mxu1  ;;  %v3546_v28 = vld [vmem:[#allocation2 + $0x287] sm:$0xff] }
 0x152   : > { %v10667_v34 = vpop.f32.mrf.mxu0  ;;  %10882 = vmatmul.mubr.msk.bf16.gmra.mxu0 %vm493_vm0, %v3101_v49 }
 0x153   : > { %v10685_v46 = vpop.f32.mrf.mxu1  ;;  %10900 = vmatmul.mubr.msk.bf16.gmra.mxu1 %vm493_vm0, %v3255_v26  ;;  %v12483_v35 = vadd.f32 %v10667_v34, %v12360_v57  ;;  %10905 = vmatprep.mubr.msk.bf16.mxu0 %vm493_vm0, %v3551_v27 }
 0x154   : > { %v12486_v38 = vadd.f32 %v10685_v46, %v12408_v11  ;;  %10923 = vmatprep.mubr.msk.bf16.mxu1 %vm493_vm0, %v12478_v50  ;;  %v1363_v58 = vpop.f32.mrf.mxu0  ;;  %v3692_v11 = vld [vmem:[#allocation2 + $0x198] sm:$0xff]  ;;  %v3698_v46 = vld [vmem:[#allocation2 + $0x1c8] sm:$0xff] }
 0x155   : > { %v1517_v61 = vpop.f32.mrf.mxu1  ;;  %v12492_v60 = vadd.f32 %v1363_v58, %v12364_v48  ;;  %v12503_v18 = vpack.c.bf16 %v3693_v15, %v3692_v11  ;;  %v12508_v48 = vld [vmem:[%s14451_s2 + $0x20] sm:$0xff]   ;;  %v3548_v58 = vld [vmem:[#allocation2 + $0x297] sm:$0xff] }
 0x156   : > { %v12495_v57 = vadd.f32 %v1517_v61, %v12412_v10  ;;  %v10668_v24 = vpop.f32.mrf.mxu0  ;;  %v12513_v10 = vld [vmem:[%s14451_s2 + $0x28] sm:$0xff]   ;;  %v3700_v61 = vld [vmem:[#allocation2 + $0x1d8] sm:$0xff] }
 0x157   : > { %v10686_v43 = vpop.f32.mrf.mxu1  ;;  %v12569_v24 = vpack.c.bf16 %v3699_v45, %v3698_v46 }
 0x158   : > { %v1366_v9 = vpop.f32.mrf.mxu0  ;;  %v12571_v43 = vpack.c.bf16 %v3548_v58, %v3547_v36  ;;  %v3998_v58 = vld [vmem:[#allocation2 + $0xdf] sm:$0xff] }
 0x159   : > { %v1520_v52 = vpop.f32.mrf.mxu1  ;;  %v12573_v9 = vpack.c.bf16 %v3701_v53, %v3700_v61  ;;  %v3999_v61 = vld [vmem:[#allocation2 + $0xe7] sm:$0xff] }
 0x15a   : > { %v10691_v30 = vpop.f32.mrf.mxu0  ;;  %10906 = vmatmul.mubr.msk.bf16.vlgmr.msra.gmra.mxu0 %vm493_vm0, %v12497_v20 }
 0x15b   : > { %v10709_v3 = vpop.f32.mrf.mxu1  ;;  %10924 = vmatmul.mubr.msk.bf16.vlgmr.msra.gmra.mxu1 %vm493_vm0, %v12499_v8  ;;  %v12520_v1 = vadd.f32 %v10691_v30, %v12427_v21  ;;  %10940 = vmatpush3.bf16.msra.mxu0 %v12417_v2  ;;  %v3544_v21 = vld [vmem:[#allocation2 + $0x277] sm:$0xff] }
 0x15c   : > { %v12523_v16 = vadd.f32 %v10709_v3, %v12430_v22  ;;  %10958 = vmatpush3.bf16.msra.mxu1 %v12422_v5  ;;  %v1629_v55 = vpop.f32.mrf.mxu0  ;;  %10909 = vmatprep.mubr.msk.bf16.mxu0 %vm493_vm0, %v12501_v47  ;;  %v12543_v0 = vpack.c.bf16 %v3544_v21, %v3543_v51  ;;  %v3703_v51 = vld [vmem:[#allocation2 + $0x1f0] sm:$0xff] }
 0x15d   : > { %v1783_v56 = vpop.f32.mrf.mxu1  ;;  %10927 = vmatprep.mubr.msk.bf16.mxu1 %vm493_vm0, %v12503_v18  ;;  %v12532_v22 = vadd.f32 %v1629_v55, %v12437_v37  ;;  %10975 = vmatprep.subr.bf16.mxu0 %v12508_v48  ;;  %v3842_v55 = vld [vmem:[#allocation2 + $0x230] sm:$0xff] }
 0x15e   : > { %v12535_v2 = vadd.f32 %v1783_v56, %v12440_v42  ;;  %10993 = vmatprep.subr.bf16.mxu1 %v12513_v10  ;;  %v10692_v5 = vpop.f32.mrf.mxu0  ;;  %v3545_v42 = vld [vmem:[#allocation2 + $0x27f] sm:$0xff] }
 0x15f   : > { %v10710_v13 = vpop.f32.mrf.mxu1  ;;  %v12567_v15 = vpack.c.bf16 %v3546_v28, %v3545_v42  ;;  %v3997_v5 = vld [vmem:[#allocation2 + $0xd7] sm:$0xff] }
 0x160   : > { %v1632_v49 = vpop.f32.mrf.mxu0  ;;  %v4012_v42 = vpack.c.bf16 %v3997_v5, %v3996_v12  ;;  %v3848_v5 = vld [vmem:[#allocation2 + $0x260] sm:$0xff] }
 0x161   : > { %v1786_v37 = vpop.f32.mrf.mxu1 }
 0x162   : > { %v10695_v26 = vpop.f32.mrf.mxu0  ;;  %10910 = vmatmul.mubr.msk.bf16.gmra.mxu0 %vm493_vm0, %v12539_v14 }
 0x163   : > { %v10713_v27 = vpop.f32.mrf.mxu1  ;;  %10928 = vmatmul.mubr.msk.bf16.gmra.mxu1 %vm493_vm0, %v12541_v54  ;;  %v12552_v33 = vadd.f32 %v10695_v26, %v12447_v31  ;;  %10913 = vmatprep.mubr.msk.bf16.mxu0 %vm493_vm0, %v12543_v0  ;;  %v12597_v26 = vpack.c.bf16 %v3703_v51, %v3702_v7  ;;  %v4013_v7 = vpack.c.bf16 %v3999_v61, %v3998_v58  ;;  %v4005_v58 = vld [vmem:[#allocation2 + $0x117] sm:$0xff] }
 0x164   : > { %v12555_v34 = vadd.f32 %v10713_v27, %v12450_v17  ;;  %10931 = vmatprep.mubr.msk.bf16.mxu1 %vm493_vm0, %v12545_v25  ;;  %v1643_v39 = vpop.f32.mrf.mxu0  ;;  %v12599_v27 = vpack.c.bf16 %v3843_v63, %v3842_v55 }
 0x165   : > { %v1797_v41 = vpop.f32.mrf.mxu1  ;;  %v12562_v31 = vadd.f32 %v1643_v39, %v12455_v59  ;;  %v3549_v59 = vld [vmem:[#allocation2 + $0x29f] sm:$0xff] }
 0x166   : > { %v12565_v17 = vadd.f32 %v1797_v41, %v12458_v4  ;;  %v10696_v6 = vpop.f32.mrf.mxu0  ;;  %v3550_v4 = vld [vmem:[#allocation2 + $0x2a7] sm:$0xff] }
 0x167   : > { %v10714_v11 = vpop.f32.mrf.mxu1  ;;  %v12595_v37 = vpack.c.bf16 %v3550_v4, %v3549_v59  ;;  %v3845_v41 = vld [vmem:[#allocation2 + $0x248] sm:$0xff] }
 0x168   : > { %v1646_v52 = vpop.f32.mrf.mxu0  ;;  %v3846_v11 = vld [vmem:[#allocation2 + $0x250] sm:$0xff] }
 0x169   : > { %v1800_v30 = vpop.f32.mrf.mxu1 }
 0x16a   : > { %v10699_v3 = vpop.f32.mrf.mxu0  ;;  %10914 = vmatmul.mubr.msk.bf16.gmra.mxu0 %vm493_vm0, %v12567_v15  ;;  %v3847_v30 = vld [vmem:[#allocation2 + $0x258] sm:$0xff] }
 0x16b   : > { %v10717_v32 = vpop.f32.mrf.mxu1  ;;  %10932 = vmatmul.mubr.msk.bf16.gmra.mxu1 %vm493_vm0, %v12569_v24  ;;  %v12580_v62 = vadd.f32 %v10699_v3, %v12463_v40  ;;  %10917 = vmatprep.mubr.msk.bf16.mxu0 %vm493_vm0, %v12571_v43  ;;  %v4001_v3 = vld [vmem:[#allocation2 + $0xf7] sm:$0xff] }
 0x16c   : > { %v12583_v29 = vadd.f32 %v10717_v32, %v12466_v44  ;;  %10935 = vmatprep.mubr.msk.bf16.mxu1 %vm493_vm0, %v12573_v9  ;;  %v1657_v56 = vpop.f32.mrf.mxu0 }
 0x16d   : > { %v1811_v21 = vpop.f32.mrf.mxu1  ;;  %v12590_v40 = vadd.f32 %v1657_v56, %v12473_v19  ;;  %v3844_v19 = vld [vmem:[#allocation2 + $0x240] sm:$0xff]  ;;  %v12622_v56 = vpack.c.bf16 %v3847_v30, %v3846_v11 }
 0x16e   : > { %v12593_v44 = vadd.f32 %v1811_v21, %v12476_v23  ;;  %v10700_v13 = vpop.f32.mrf.mxu0  ;;  %v12620_v4 = vpack.c.bf16 %v3845_v41, %v3844_v19  ;;  %v3851_v41 = vld [vmem:[#allocation2 + $0x278] sm:$0xff] }
 0x16f   : > { %v10718_v49 = vpop.f32.mrf.mxu1  ;;  %v3849_v13 = vld [vmem:[#allocation2 + $0x268] sm:$0xff] }
 0x170   : > { %v1660_v28 = vpop.f32.mrf.mxu0 }
 0x171   : > { %v1814_v46 = vpop.f32.mrf.mxu1  ;;  %v4002_v28 = vld [vmem:[#allocation2 + $0xff] sm:$0xff] }
 0x172   : > { %v10703_v45 = vpop.f32.mrf.mxu0  ;;  %10918 = vmatmul.mubr.msk.bf16.gmra.mxu0 %vm493_vm0, %v12595_v37  ;;  %v4003_v46 = vld [vmem:[#allocation2 + $0x107] sm:$0xff] }
 0x173   : > { %v10721_v36 = vpop.f32.mrf.mxu1  ;;  %10936 = vmatmul.mubr.msk.bf16.gmra.mxu1 %vm493_vm0, %v12597_v26  ;;  %v12606_v23 = vadd.f32 %v10703_v45, %v12483_v35  ;;  %10941 = vmatprep.mubr.msk.bf16.mxu0 %vm493_vm0, %v12599_v27  ;;  %v3850_v45 = vld [vmem:[#allocation2 + $0x270] sm:$0xff] }
 0x174   : > { %v12609_v39 = vadd.f32 %v10721_v36, %v12486_v38  ;;  %10959 = vmatprep.mubr.msk.bf16.mxu1 %vm493_vm0, %v4012_v42  ;;  %v1671_v53 = vpop.f32.mrf.mxu0  ;;  %v4000_v38 = vld [vmem:[#allocation2 + $0xef] sm:$0xff]  ;;  %v12658_v11 = vpack.c.bf16 %v3851_v41, %v3850_v45 }
 0x175   : > { %v1825_v6 = vpop.f32.mrf.mxu1  ;;  %v12615_v52 = vadd.f32 %v1671_v53, %v12492_v60  ;;  %v4014_v21 = vpack.c.bf16 %v4001_v3, %v4000_v38  ;;  %v12627_v60 = vld [vmem:[%s14451_s2 + $0x30] sm:$0xff]   ;;  %v12656_v53 = vpack.c.bf16 %v3849_v13, %v3848_v5  ;;  %v3855_v13 = vld [vmem:[#allocation2 + $0x298] sm:$0xff] }
 0x176   : > { %v12618_v35 = vadd.f32 %v1825_v6, %v12495_v57  ;;  %v10704_v32 = vpop.f32.mrf.mxu0  ;;  %v12632_v57 = vld [vmem:[%s14451_s2 + $0x38] sm:$0xff]   ;;  %v4015_v6 = vpack.c.bf16 %v4003_v46, %v4002_v28  ;;  %v4008_v28 = vld [vmem:[#allocation2 + $0x12f] sm:$0xff] }
 0x177   : > { %v10722_v59 = vpop.f32.mrf.mxu1  ;;  %v4009_v46 = vld [vmem:[#allocation2 + $0x137] sm:$0xff] }
 0x178   : > { %v1674_v51 = vpop.f32.mrf.mxu0  ;;  %v3853_v59 = vld [vmem:[#allocation2 + $0x288] sm:$0xff] }
 0x179   : > { %v1828_v55 = vpop.f32.mrf.mxu1 }
 0x17a   : > { %v10727_v63 = vpop.f32.mrf.mxu0  ;;  %10942 = vmatmul.mubr.msk.bf16.vlgmr.msra.gmra.mxu0 %vm493_vm0, %v12620_v4  ;;  %v4006_v55 = vld [vmem:[#allocation2 + $0x11f] sm:$0xff] }
 0x17b   : > { %v10745_v12 = vpop.f32.mrf.mxu1  ;;  %10960 = vmatmul.mubr.msk.bf16.vlgmr.msra.gmra.mxu1 %vm493_vm0, %v4013_v7  ;;  %v12638_v49 = vadd.f32 %v10727_v63, %v12520_v1  ;;  %10976 = vmatpush3.bf16.msra.mxu0 %v12508_v48  ;;  %v4004_v1 = vld [vmem:[#allocation2 + $0x10f] sm:$0xff] }
 0x17c   : > { %v12641_v42 = vadd.f32 %v10745_v12, %v12523_v16  ;;  %10994 = vmatpush3.bf16.msra.mxu1 %v12513_v10  ;;  %v1937_v36 = vpop.f32.mrf.mxu0  ;;  %10945 = vmatprep.mubr.msk.bf16.mxu0 %vm493_vm0, %v12622_v56  ;;  %v4016_v30 = vpack.c.bf16 %v4005_v58, %v4004_v1  ;;  %v3854_v63 = vld [vmem:[#allocation2 + $0x290] sm:$0xff]  ;;  %v4018_v58 = vpack.c.bf16 %v4009_v46, %v4008_v28 }
 0x17d   : > { %v2091_v19 = vpop.f32.mrf.mxu1  ;;  %10963 = vmatprep.mubr.msk.bf16.mxu1 %vm493_vm0, %v4014_v21  ;;  %v12649_v16 = vadd.f32 %v1937_v36, %v12532_v22  ;;  %11011 = vmatprep.subr.bf16.mxu0 %v12627_v60  ;;  %v4007_v21 = vld [vmem:[#allocation2 + $0x127] sm:$0xff]  ;;  %v12680_v1 = vpack.c.bf16 %v3855_v13, %v3854_v63  ;;  %v4304_v63 = vld [vmem:[#allocation2 + $0xd0] sm:$0xff] }
 0x17e   : > { %v12652_v48 = vadd.f32 %v2091_v19, %v12535_v2  ;;  %11029 = vmatprep.subr.bf16.mxu1 %v12632_v57  ;;  %v10728_v10 = vpop.f32.mrf.mxu0  ;;  %v3852_v2 = vld [vmem:[#allocation2 + $0x280] sm:$0xff]  ;;  %v4017_v41 = vpack.c.bf16 %v4007_v21, %v4006_v55 }
 0x17f   : > { %v10746_v61 = vpop.f32.mrf.mxu1  ;;  %v12678_v19 = vpack.c.bf16 %v3853_v59, %v3852_v2  ;;  %v4150_v2 = vld [vmem:[#allocation2 + $0x18] sm:$0xff]  ;;  %v4151_v21 = vld [vmem:[#allocation2 + $0x20] sm:$0xff] }
 0x180   : > { %v1940_v38 = vpop.f32.mrf.mxu0 }
 0x181   : > { %v2094_v3 = vpop.f32.mrf.mxu1 }
 0x182   : > { %v10731_v32 = vpop.f32.mrf.mxu0  ;;  %10946 = vmatmul.mubr.msk.bf16.gmra.mxu0 %vm493_vm0, %v12656_v53 }
 0x183   : > { %v10749_v22 = vpop.f32.mrf.mxu1  ;;  %10964 = vmatmul.mubr.msk.bf16.gmra.mxu1 %vm493_vm0, %v4015_v6  ;;  %v12664_v7 = vadd.f32 %v10731_v32, %v12552_v33  ;;  %10949 = vmatprep.mubr.msk.bf16.mxu0 %vm493_vm0, %v12658_v11  ;;  %v4010_v32 = vld [vmem:[#allocation2 + $0x13f] sm:$0xff] }
 0x184   : > { %v12667_v51 = vadd.f32 %v10749_v22, %v12555_v34  ;;  %10967 = vmatprep.mubr.msk.bf16.mxu1 %vm493_vm0, %v4016_v30  ;;  %v1951_v12 = vpop.f32.mrf.mxu0  ;;  %v4011_v22 = vld [vmem:[#allocation2 + $0x147] sm:$0xff] }
 0x185   : > { %v2105_v5 = vpop.f32.mrf.mxu1  ;;  %v12673_v45 = vadd.f32 %v1951_v12, %v12562_v31  ;;  %v3856_v31 = vld [vmem:[#allocation2 + $0x2a0] sm:$0xff]  ;;  %v4305_v12 = vld [vmem:[#allocation2 + $0xd8] sm:$0xff]  ;;  %v4019_v46 = vpack.c.bf16 %v4011_v22, %v4010_v32 }
 0x186   : > { %v12676_v33 = vadd.f32 %v2105_v5, %v12565_v17  ;;  %v10732_v34 = vpop.f32.mrf.mxu0  ;;  %v3857_v17 = vld [vmem:[#allocation2 + $0x2a8] sm:$0xff] }
 0x187   : > { %v10750_v36 = vpop.f32.mrf.mxu1  ;;  %v12700_v28 = vpack.c.bf16 %v3857_v17, %v3856_v31  ;;  %v12702_v34 = vpack.c.bf16 %v4151_v21, %v4150_v2  ;;  %v4306_v31 = vld [vmem:[#allocation2 + $0xe0] sm:$0xff]  ;;  %v4307_v17 = vld [vmem:[#allocation2 + $0xe8] sm:$0xff]  ;;  %v4154_v2 = vld [vmem:[#allocation2 + $0x38] sm:$0xff] }
 0x188   : > { %v1954_v10 = vpop.f32.mrf.mxu0  ;;  %v12704_v36 = vpack.c.bf16 %v4305_v12, %v4304_v63  ;;  %v4309_v21 = vld [vmem:[#allocation2 + $0xf8] sm:$0xff] }
 0x189   : > { %v2108_v61 = vpop.f32.mrf.mxu1 }
 0x18a   : > { %v10735_v6 = vpop.f32.mrf.mxu0  ;;  %10950 = vmatmul.mubr.msk.bf16.gmra.mxu0 %vm493_vm0, %v12678_v19  ;;  %14511 = vst [vmem:[#allocation5_spill] sm:$0xff] %v12704_v36 }
 0x18b   : > { %v10753_v30 = vpop.f32.mrf.mxu1  ;;  %10968 = vmatmul.mubr.msk.bf16.gmra.mxu1 %vm493_vm0, %v4017_v41  ;;  %v12686_v38 = vadd.f32 %v10735_v6, %v12580_v62  ;;  %10953 = vmatprep.mubr.msk.bf16.mxu0 %vm493_vm0, %v12680_v1 }
 0x18c   : > { %v12689_v3 = vadd.f32 %v10753_v30, %v12583_v29  ;;  %10971 = vmatprep.mubr.msk.bf16.mxu1 %vm493_vm0, %v4018_v58  ;;  %v1965_v59 = vpop.f32.mrf.mxu0  ;;  %v4153_v30 = vld [vmem:[#allocation2 + $0x30] sm:$0xff] }
 0x18d   : > { %v2119_v55 = vpop.f32.mrf.mxu1  ;;  %v12695_v5 = vadd.f32 %v1965_v59, %v12590_v40  ;;  %v4152_v40 = vld [vmem:[#allocation2 + $0x28] sm:$0xff] }
 0x18e   : > { %v12698_v62 = vadd.f32 %v2119_v55, %v12593_v44  ;;  %v10736_v29 = vpop.f32.mrf.mxu0  ;;  %v4308_v55 = vld [vmem:[#allocation2 + $0xf0] sm:$0xff] }
 0x18f   : > { %v10754_v13 = vpop.f32.mrf.mxu1  ;;  %v12725_v29 = vpack.c.bf16 %v4153_v30, %v4152_v40  ;;  %v4156_v30 = vld [vmem:[#allocation2 + $0x48] sm:$0xff] }
 0x190   : > { %v1968_v41 = vpop.f32.mrf.mxu0  ;;  %v12727_v13 = vpack.c.bf16 %v4307_v17, %v4306_v31  ;;  %v4157_v31 = vld [vmem:[#allocation2 + $0x50] sm:$0xff] }
 0x191   : > { %v2122_v58 = vpop.f32.mrf.mxu1  ;;  %14512 = vst [vmem:[#allocation6_spill] sm:$0xff] %v12725_v29 }
 0x192   : > { %v10739_v10 = vpop.f32.mrf.mxu0  ;;  %10954 = vmatmul.mubr.msk.bf16.gmra.mxu0 %vm493_vm0, %v12700_v28  ;;  %14513 = vst [vmem:[#allocation7_spill] sm:$0xff] %v12727_v13 }
 0x193   : > { %v10757_v61 = vpop.f32.mrf.mxu1  ;;  %10972 = vmatmul.mubr.msk.bf16.gmra.mxu1 %vm493_vm0, %v4019_v46  ;;  %v12710_v44 = vadd.f32 %v10739_v10, %v12606_v23  ;;  %10977 = vmatprep.mubr.msk.bf16.mxu0 %vm493_vm0, %v12702_v34  ;;  %v12731_v10 = vpack.c.bf16 %v4309_v21, %v4308_v55 }
 0x194   : > { %v12713_v6 = vadd.f32 %v10757_v61, %v12609_v39  ;;  %10995 = vmatprep.mubr.msk.bf16.mxu1 %vm493_vm0, %v12704_v36  ;;  %v1979_v32 = vpop.f32.mrf.mxu0  ;;  %v4155_v39 = vld [vmem:[#allocation2 + $0x40] sm:$0xff] }
 0x195   : > { %v2133_v22 = vpop.f32.mrf.mxu1  ;;  %v12720_v59 = vadd.f32 %v1979_v32, %v12615_v52  ;;  %v12729_v58 = vpack.c.bf16 %v4155_v39, %v4154_v2  ;;  %14515 = vst [vmem:[#allocation9_spill] sm:$0xff] %v12731_v10  ;;  %v12736_v52 = vld [vmem:[%s14451_s2 + $0x40] sm:$0xff]   ;;  %v4311_v2 = vld [vmem:[#allocation2 + $0x108] sm:$0xff]  ;;  %v4158_v39 = vld [vmem:[#allocation2 + $0x58] sm:$0xff] }
 0x196   : > { %v12723_v23 = vadd.f32 %v2133_v22, %v12618_v35  ;;  %v10740_v63 = vpop.f32.mrf.mxu0  ;;  %v12741_v35 = vld [vmem:[%s14451_s2] sm:$0xff]  }
 0x197   : > { %v10758_v12 = vpop.f32.mrf.mxu1  ;;  %14514 = vst [vmem:[#allocation8_spill] sm:$0xff] %v12729_v58  ;;  %v4310_v22 = vld [vmem:[#allocation2 + $0x100] sm:$0xff]  ;;  %v4312_v63 = vld [vmem:[#allocation2 + $0x110] sm:$0xff] }
 0x198   : > { %v1982_v46 = vpop.f32.mrf.mxu0  ;;  %v4313_v12 = vld [vmem:[#allocation2 + $0x118] sm:$0xff] }
 0x199   : > { %v2136_v41 = vpop.f32.mrf.mxu1 }
 0x19a   : > { %v10763_v61 = vpop.f32.mrf.mxu0  ;;  %10978 = vmatmul.mubr.msk.bf16.vlgmr.msra.gmra.mxu0 %vm493_vm0, %v12725_v29  ;;  %v12767_v41 = vpack.c.bf16 %v4157_v31, %v4156_v30 }
 0x19b   : > { %v10781_v40 = vpop.f32.mrf.mxu1  ;;  %10996 = vmatmul.mubr.msk.bf16.vlgmr.msra.gmra.mxu1 %vm493_vm0, %v12727_v13  ;;  %v12748_v17 = vadd.f32 %v10763_v61, %v12638_v49  ;;  %11012 = vmatpush3.bf16.msra.mxu0 %v12627_v60  ;;  %v4159_v49 = vld [vmem:[#allocation2 + $0x60] sm:$0xff]  ;;  %v12769_v61 = vpack.c.bf16 %v4311_v2, %v4310_v22  ;;  %v4315_v22 = vld [vmem:[#allocation2 + $0x128] sm:$0xff]  ;;  %v4162_v2 = vld [vmem:[#allocation2 + $0x78] sm:$0xff] }
 0x19c   : > { %v12751_v32 = vadd.f32 %v10781_v40, %v12641_v42  ;;  %11030 = vmatpush3.bf16.msra.mxu1 %v12632_v57  ;;  %v2245_v55 = vpop.f32.mrf.mxu0  ;;  %10981 = vmatprep.mubr.msk.bf16.mxu0 %vm493_vm0, %v12729_v58  ;;  %14516 = vst [vmem:[#allocation10_spill] sm:$0xff] %v12767_v41  ;;  %v12771_v40 = vpack.c.bf16 %v4159_v49, %v4158_v39 }
 0x19d   : > { %v2399_v21 = vpop.f32.mrf.mxu1  ;;  %10999 = vmatprep.mubr.msk.bf16.mxu1 %vm493_vm0, %v12731_v10  ;;  %v12760_v42 = vadd.f32 %v2245_v55, %v12649_v16  ;;  %11047 = vmatprep.subr.bf16.mxu0 %v12736_v52  ;;  %14517 = vst [vmem:[#allocation11_spill] sm:$0xff] %v12769_v61  ;;  %v12773_v10 = vpack.c.bf16 %v4313_v12, %v4312_v63  ;;  %v4163_v63 = vld [vmem:[#allocation2 + $0x80] sm:$0xff]  ;;  %v4316_v12 = vld [vmem:[#allocation2 + $0x130] sm:$0xff] }
 0x19e   : > { %v12763_v60 = vadd.f32 %v2399_v21, %v12652_v48  ;;  %11065 = vmatprep.subr.bf16.mxu1 %v12741_v35  ;;  %v10764_v57 = vpop.f32.mrf.mxu0  ;;  %14518 = vst [vmem:[#allocation12_spill] sm:$0xff] %v12771_v40  ;;  %v4160_v48 = vld [vmem:[#allocation2 + $0x68] sm:$0xff]  ;;  %v4161_v21 = vld [vmem:[#allocation2 + $0x70] sm:$0xff] }
 0x19f   : > { %v10782_v46 = vpop.f32.mrf.mxu1  ;;  %14519 = vst [vmem:[#allocation13_spill] sm:$0xff] %v12773_v10  ;;  %v4317_v57 = vld [vmem:[#allocation2 + $0x138] sm:$0xff] }
 0x1a0   : > { %v2248_v58 = vpop.f32.mrf.mxu0 }
 0x1a1   : > { %v2402_v16 = vpop.f32.mrf.mxu1  ;;  %v4314_v58 = vld [vmem:[#allocation2 + $0x120] sm:$0xff] }
 0x1a2   : > { %v10767_v55 = vpop.f32.mrf.mxu0  ;;  %10982 = vmatmul.mubr.msk.bf16.gmra.mxu0 %vm493_vm0, %v12767_v41  ;;  %v12795_v16 = vpack.c.bf16 %v4161_v21, %v4160_v48  ;;  %v4319_v21 = vld [vmem:[#allocation2 + $0x148] sm:$0xff] }
 0x1a3   : > { %v10785_v13 = vpop.f32.mrf.mxu1  ;;  %11000 = vmatmul.mubr.msk.bf16.gmra.mxu1 %vm493_vm0, %v12769_v61  ;;  %v12780_v30 = vadd.f32 %v10767_v55, %v12664_v7  ;;  %10985 = vmatprep.mubr.msk.bf16.mxu0 %vm493_vm0, %v12771_v40  ;;  %v12797_v55 = vpack.c.bf16 %v4315_v22, %v4314_v58  ;;  %v12801_v40 = vpack.c.bf16 %v4317_v57, %v4316_v12 }
 0x1a4   : > { %v12783_v31 = vadd.f32 %v10785_v13, %v12667_v51  ;;  %11003 = vmatprep.mubr.msk.bf16.mxu1 %vm493_vm0, %v12773_v10  ;;  %v2259_v39 = vpop.f32.mrf.mxu0  ;;  %v12799_v10 = vpack.c.bf16 %v4163_v63, %v4162_v2 }
 0x1a5   : > { %v2413_v49 = vpop.f32.mrf.mxu1  ;;  %v12790_v7 = vadd.f32 %v2259_v39, %v12673_v45  ;;  %v4164_v45 = vld [vmem:[#allocation2 + $0x88] sm:$0xff] }
 0x1a6   : > { %v12793_v51 = vadd.f32 %v2413_v49, %v12676_v33  ;;  %v10768_v13 = vpop.f32.mrf.mxu0 }
 0x1a7   : > { %v10786_v46 = vpop.f32.mrf.mxu1 }
 0x1a8   : > { %v2262_v61 = vpop.f32.mrf.mxu0 }
 0x1a9   : > { %v2416_v41 = vpop.f32.mrf.mxu1  ;;  %v4318_v61 = vld [vmem:[#allocation2 + $0x140] sm:$0xff] }
 0x1aa   : > { %v10771_v29 = vpop.f32.mrf.mxu0  ;;  %10986 = vmatmul.mubr.msk.bf16.gmra.mxu0 %vm493_vm0, %v12795_v16  ;;  %v4165_v41 = vld [vmem:[#allocation2 + $0x90] sm:$0xff]  ;;  %v12825_v39 = vpack.c.bf16 %v4319_v21, %v4318_v61 }
 0x1ab   : > { %v10789_v36 = vpop.f32.mrf.mxu1  ;;  %11004 = vmatmul.mubr.msk.bf16.gmra.mxu1 %vm493_vm0, %v12797_v55  ;;  %v12808_v33 = vadd.f32 %v10771_v29, %v12686_v38  ;;  %10989 = vmatprep.mubr.msk.bf16.mxu0 %vm493_vm0, %v12799_v10 }
 0x1ac   : > { %v12811_v48 = vadd.f32 %v10789_v36, %v12689_v3  ;;  %11007 = vmatprep.mubr.msk.bf16.mxu1 %vm493_vm0, %v12801_v40  ;;  %v2273_v58 = vpop.f32.mrf.mxu0  ;;  %v12823_v36 = vpack.c.bf16 %v4165_v41, %v4164_v45 }
 0x1ad   : > { %v2427_v22 = vpop.f32.mrf.mxu1  ;;  %v12818_v2 = vadd.f32 %v2273_v58, %v12695_v5 }
 0x1ae   : > { %v12821_v38 = vadd.f32 %v2427_v22, %v12698_v62  ;;  %v10772_v29 = vpop.f32.mrf.mxu0 }
 0x1af   : > { %v10790_v3 = vpop.f32.mrf.mxu1 }
 0x1b0   : > { %v2276_v49 = vpop.f32.mrf.mxu0 }
 0x1b1   : > { %v2430_v63 = vpop.f32.mrf.mxu1 }
 0x1b2   : > { %v10775_v12 = vpop.f32.mrf.mxu0  ;;  %10990 = vmatmul.mubr.msk.bf16.gmra.mxu0 %vm493_vm0, %v12823_v36 }
 0x1b3   : > { %v10793_v57 = vpop.f32.mrf.mxu1  ;;  %11008 = vmatmul.mubr.msk.bf16.gmra.mxu1 %vm493_vm0, %v12825_v39  ;;  %v12832_v5 = vadd.f32 %v10775_v12, %v12710_v44  ;;  %11013 = vmatprep.mubr.msk.bf16.mxu0 %vm493_vm0, %v12497_v20  ;;  %v12855_v20 = vld [vmem:[%s14451_s2 + $0x10] sm:$0xff]  }
 0x1b4   : > { %v12835_v62 = vadd.f32 %v10793_v57, %v12713_v6  ;;  %11031 = vmatprep.mubr.msk.bf16.mxu1 %vm493_vm0, %v12499_v8  ;;  %v2287_v13 = vpop.f32.mrf.mxu0  ;;  %v12850_v6 = vld [vmem:[%s14451_s2 + $0x8] sm:$0xff]  }
 0x1b5   : > { %v2441_v46 = vpop.f32.mrf.mxu1  ;;  %v12842_v45 = vadd.f32 %v2287_v13, %v12720_v59 }
 0x1b6   : > { %v12845_v41 = vadd.f32 %v2441_v46, %v12723_v23  ;;  %v10776_v61 = vpop.f32.mrf.mxu0 }
 0x1b7   : > { %v10794_v44 = vpop.f32.mrf.mxu1 }
 0x1b8   : > { %v2290_v21 = vpop.f32.mrf.mxu0 }
 0x1b9   : > { %v2444_v58 = vpop.f32.mrf.mxu1 }
 0x1ba   : > { %v10799_v22 = vpop.f32.mrf.mxu0  ;;  %11014 = vmatmul.mubr.msk.bf16.vlgmr.msra.gmra.mxu0 %vm493_vm0, %v12501_v47 }
 0x1bb   : > { %v12857_v59 = vpop.f32.mrf.mxu1  ;;  %11032 = vmatmul.mubr.msk.bf16.vlgmr.msra.gmra.mxu1 %vm493_vm0, %v12503_v18  ;;  %v12864_v23 = vadd.f32 %v10799_v22, %v12748_v17  ;;  %11048 = vmatpush3.bf16.msra.mxu0 %v12736_v52  ;;  %v4626_v22 = vld [vmem:[#allocation2 + $0x1f8] sm:$0xff] }
 0x1bc   : > { %11066 = vmatpush3.bf16.msra.mxu1 %v12741_v35  ;;  %v2553_v29 = vpop.f32.mrf.mxu0  ;;  %11017 = vmatprep.mubr.msk.bf16.mxu0 %vm493_vm0, %v12539_v14 }
 0x1bd   : > { %v12868_v3 = vpop.f32.mrf.mxu1  ;;  %11035 = vmatprep.mubr.msk.bf16.mxu1 %vm493_vm0, %v12541_v54  ;;  %v12875_v47 = vadd.f32 %v2553_v29, %v12760_v42  ;;  %11083 = vmatprep.subr.bf16.mxu0 %v12850_v6  ;;  %v4627_v29 = vld [vmem:[#allocation2 + $0x200] sm:$0xff] }
 0x1be   : > { %11101 = vmatprep.subr.bf16.mxu1 %v12855_v20  ;;  %v10800_v17 = vpop.f32.mrf.mxu0 }
 0x1bf   : > { %v10818_v52 = vpop.f32.mrf.mxu1 }
 0x1c0   : > { %v2556_v49 = vpop.f32.mrf.mxu0 }
 0x1c1   : > { %v2710_v35 = vpop.f32.mrf.mxu1 }
 0x1c2   : > { %v10803_v63 = vpop.f32.mrf.mxu0  ;;  %11018 = vmatmul.mubr.msk.bf16.gmra.mxu0 %vm493_vm0, %v12543_v0 }
 0x1c3   : > { %v12879_v12 = vpop.f32.mrf.mxu1  ;;  %11036 = vmatmul.mubr.msk.bf16.gmra.mxu1 %vm493_vm0, %v12545_v25  ;;  %v12886_v14 = vadd.f32 %v10803_v63, %v12780_v30  ;;  %11021 = vmatprep.mubr.msk.bf16.mxu0 %vm493_vm0, %v12567_v15  ;;  %v4472_v15 = vld [vmem:[#allocation2 + $0x2af] sm:$0xff] }
 0x1c4   : > { %11039 = vmatprep.mubr.msk.bf16.mxu1 %vm493_vm0, %v12569_v24  ;;  %v2567_v42 = vpop.f32.mrf.mxu0 }
 0x1c5   : > { %v12892_v57 = vpop.f32.mrf.mxu1  ;;  %v12895_v13 = vadd.f32 %v2567_v42, %v12790_v7  ;;  %v4473_v7 = vld [vmem:[#allocation2 + $0x2b7] sm:$0xff] }
 0x1c6   : > { %v10804_v46 = vpop.f32.mrf.mxu0  ;;  %v4481_v63 = vpack.c.bf16 %v4473_v7, %v4472_v15 }
 0x1c7   : > { %v10822_v0 = vpop.f32.mrf.mxu1 }
 0x1c8   : > { %v2570_v61 = vpop.f32.mrf.mxu0 }
 0x1c9   : > { %v2724_v44 = vpop.f32.mrf.mxu1 }
 0x1ca   : > { %v10807_v21 = vpop.f32.mrf.mxu0  ;;  %11022 = vmatmul.mubr.msk.bf16.gmra.mxu0 %vm493_vm0, %v12571_v43 }
 0x1cb   : > { %v12897_v58 = vpop.f32.mrf.mxu1  ;;  %11040 = vmatmul.mubr.msk.bf16.gmra.mxu1 %vm493_vm0, %v12573_v9  ;;  %v12904_v30 = vadd.f32 %v10807_v21, %v12808_v33  ;;  %11025 = vmatprep.mubr.msk.bf16.mxu0 %vm493_vm0, %v12595_v37  ;;  %v12915_v33 = vpack.c.bf16 %v4627_v29, %v4626_v22 }
 0x1cc   : > { %11043 = vmatprep.mubr.msk.bf16.mxu1 %vm493_vm0, %v12597_v26  ;;  %v2581_v17 = vpop.f32.mrf.mxu0 }
 0x1cd   : > { %v12910_v52 = vpop.f32.mrf.mxu1  ;;  %v12913_v43 = vadd.f32 %v2581_v17, %v12818_v2  ;;  %v12942_v17 = vld [vmem:[%s14451_s2 + $0x20] sm:$0xff]  }
 0x1ce   : > { %v10808_v49 = vpop.f32.mrf.mxu0 }
 0x1cf   : > { %v10826_v35 = vpop.f32.mrf.mxu1 }
 0x1d0   : > { %v2584_v42 = vpop.f32.mrf.mxu0 }
 0x1d1   : > { %v2738_v46 = vpop.f32.mrf.mxu1 }
 0x1d2   : > { %v10811_v37 = vpop.f32.mrf.mxu0  ;;  %11026 = vmatmul.mubr.msk.bf16.gmra.mxu0 %vm493_vm0, %v4481_v63 }
 0x1d3   : > { %v12917_v0 = vpop.f32.mrf.mxu1  ;;  %11044 = vmatmul.mubr.msk.bf16.gmra.mxu1 %vm493_vm0, %v12915_v33  ;;  %v12923_v61 = vadd.f32 %v10811_v37, %v12832_v5  ;;  %11049 = vmatprep.mubr.msk.bf16.mxu0 %vm493_vm0, %v12620_v4  ;;  %v12937_v5 = vld [vmem:[%s14451_s2 + $0x18] sm:$0xff]  }
 0x1d4   : > { %11067 = vmatprep.mubr.msk.bf16.mxu1 %vm493_vm0, %v12478_v50  ;;  %v2595_v2 = vpop.f32.mrf.mxu0 }
 0x1d5   : > { %v12929_v44 = vpop.f32.mrf.mxu1  ;;  %v12932_v21 = vadd.f32 %v2595_v2, %v12842_v45 }
 0x1d6   : > { %v10812_v15 = vpop.f32.mrf.mxu0 }
 0x1d7   : > { %v10830_v7 = vpop.f32.mrf.mxu1 }
 0x1d8   : > { %v2598_v22 = vpop.f32.mrf.mxu0 }
 0x1d9   : > { %v2752_v29 = vpop.f32.mrf.mxu1 }
 0x1da   : > { %v10835_v50 = vpop.f32.mrf.mxu0  ;;  %11050 = vmatmul.mubr.msk.bf16.vlgmr.msra.gmra.mxu0 %vm493_vm0, %v12622_v56 }
 0x1db   : > { %v12944_v49 = vpop.f32.mrf.mxu1  ;;  %11068 = vmatmul.mubr.msk.bf16.vlgmr.msra.gmra.mxu1 %vm493_vm0, %v12499_v8  ;;  %v12951_v45 = vadd.f32 %v10835_v50, %v12864_v23  ;;  %11084 = vmatpush3.bf16.msra.mxu0 %v12850_v6 }
 0x1dc   : > { %11102 = vmatpush3.bf16.msra.mxu1 %v12855_v20  ;;  %v2861_v35 = vpop.f32.mrf.mxu0  ;;  %11053 = vmatprep.mubr.msk.bf16.mxu0 %vm493_vm0, %v12656_v53 }
 0x1dd   : > { %v12955_v63 = vpop.f32.mrf.mxu1  ;;  %11071 = vmatprep.mubr.msk.bf16.mxu1 %vm493_vm0, %v12503_v18  ;;  %v12962_v42 = vadd.f32 %v2861_v35, %v12875_v47  ;;  %11119 = vmatprep.subr.bf16.mxu0 %v12937_v5 }
 0x1de   : > { %11137 = vmatprep.subr.bf16.mxu1 %v12942_v17  ;;  %v10836_v8 = vpop.f32.mrf.mxu0 }
 0x1df   : > { %v10854_v6 = vpop.f32.mrf.mxu1 }
 0x1e0   : > { %v2864_v23 = vpop.f32.mrf.mxu0 }
 0x1e1   : > { %v3018_v20 = vpop.f32.mrf.mxu1  ;;  %v5278_v23 = vld [vmem:[#allocation2 + $0x179] sm:$0xff] }
 0x1e2   : > { %v10839_v46 = vpop.f32.mrf.mxu0  ;;  %11054 = vmatmul.mubr.msk.bf16.gmra.mxu0 %vm493_vm0, %v12658_v11  ;;  %v5279_v20 = vld [vmem:[#allocation2 + $0x181] sm:$0xff] }
 0x1e3   : > { %v12966_v37 = vpop.f32.mrf.mxu1  ;;  %11072 = vmatmul.mubr.msk.bf16.gmra.mxu1 %vm493_vm0, %v12541_v54  ;;  %v12973_v18 = vadd.f32 %v10839_v46, %v12886_v14  ;;  %11057 = vmatprep.mubr.msk.bf16.mxu0 %vm493_vm0, %v12678_v19  ;;  %v4780_v14 = vld [vmem:[#allocation2 + $0x2b0] sm:$0xff] }
 0x1e4   : > { %11075 = vmatprep.mubr.msk.bf16.mxu1 %vm493_vm0, %v12545_v25  ;;  %v2875_v47 = vpop.f32.mrf.mxu0 }
 0x1e5   : > { %v12979_v2 = vpop.f32.mrf.mxu1  ;;  %v12982_v15 = vadd.f32 %v2875_v47, %v12895_v13  ;;  %v4781_v13 = vld [vmem:[#allocation2 + $0x2b8] sm:$0xff] }
 0x1e6   : > { %v10840_v7 = vpop.f32.mrf.mxu0 }
 0x1e7   : > { %v10858_v22 = vpop.f32.mrf.mxu1  ;;  %v5294_v7 = vpack.c.bf16 %v5279_v20, %v5278_v23  ;;  %v5282_v20 = vld [vmem:[#allocation2 + $0x199] sm:$0xff] }
 0x1e8   : > { %v2878_v29 = vpop.f32.mrf.mxu0 }
 0x1e9   : > { %v3032_v50 = vpop.f32.mrf.mxu1 }
 0x1ea   : > { %v10843_v54 = vpop.f32.mrf.mxu0  ;;  %11058 = vmatmul.mubr.msk.bf16.gmra.mxu0 %vm493_vm0, %v12680_v1 }
 0x1eb   : > { %v12984_v35 = vpop.f32.mrf.mxu1  ;;  %11076 = vmatmul.mubr.msk.bf16.gmra.mxu1 %vm493_vm0, %v12569_v24  ;;  %v12991_v25 = vadd.f32 %v10843_v54, %v12904_v30  ;;  %11061 = vmatprep.mubr.msk.bf16.mxu0 %vm493_vm0, %v12700_v28  ;;  %v13002_v30 = vpack.c.bf16 %v4781_v13, %v4780_v14  ;;  %v5281_v14 = vld [vmem:[#allocation2 + $0x191] sm:$0xff] }
 0x1ec   : > { %11079 = vmatprep.mubr.msk.bf16.mxu1 %vm493_vm0, %v12573_v9  ;;  %v2889_v8 = vpop.f32.mrf.mxu0 }
 0x1ed   : > { %v12997_v6 = vpop.f32.mrf.mxu1  ;;  %v13000_v46 = vadd.f32 %v2889_v8, %v12913_v43  ;;  %14520 = vst [vmem:[#allocation14_spill] sm:$0xff] %v13002_v30  ;;  %v5280_v43 = vld [vmem:[#allocation2 + $0x189] sm:$0xff] }
 0x1ee   : > { %v10844_v24 = vpop.f32.mrf.mxu0 }
 0x1ef   : > { %v10862_v47 = vpop.f32.mrf.mxu1  ;;  %v5283_v24 = vld [vmem:[#allocation2 + $0x1a1] sm:$0xff] }
 0x1f0   : > { %v2892_v22 = vpop.f32.mrf.mxu0 }
 0x1f1   : > { %v3046_v29 = vpop.f32.mrf.mxu1  ;;  %v13021_v22 = vpack.c.bf16 %v5281_v14, %v5280_v43  ;;  %v5285_v14 = vld [vmem:[#allocation2 + $0x1b1] sm:$0xff] }
 0x1f2   : > { %v10847_v50 = vpop.f32.mrf.mxu0  ;;  %11062 = vmatmul.mubr.msk.bf16.gmra.mxu0 %vm493_vm0, %v13002_v30 }
 0x1f3   : > { %v13004_v54 = vpop.f32.mrf.mxu1  ;;  %11080 = vmatmul.mubr.msk.bf16.gmra.mxu1 %vm493_vm0, %v12597_v26  ;;  %v13011_v9 = vadd.f32 %v10847_v50, %v12923_v61  ;;  %11085 = vmatprep.mubr.msk.bf16.mxu0 %vm493_vm0, %v12599_v27  ;;  %v2763_v61 = vadd.f32 %v12857_v59, %v12751_v32  ;;  %v13040_v32 = vld [vmem:[%s14451_s2 + $0x30] sm:$0xff]   ;;  %v2762_v59 = vadd.f32 %v12868_v3, %v12763_v60  ;;  %v5287_v60 = vld [vmem:[#allocation2 + $0x1c1] sm:$0xff] }
 0x1f4   : > { %11103 = vmatprep.mubr.msk.bf16.mxu1 %vm493_vm0, %v5294_v7  ;;  %v2903_v13 = vpop.f32.mrf.mxu0  ;;  %v13025_v7 = vpack.c.bf16 %v5283_v24, %v5282_v20 }
 0x1f5   : > { %v13016_v8 = vpop.f32.mrf.mxu1  ;;  %v13019_v23 = vadd.f32 %v2903_v13, %v12932_v21  ;;  %v3071_v50 = vadd.f32 %v12944_v49, %v2763_v61  ;;  %v13031_v21 = vld [vmem:[%s14451_s2 + $0x28] sm:$0xff]   ;;  %v3070_v3 = vadd.f32 %v12955_v63, %v2762_v59  ;;  %v5289_v59 = vld [vmem:[#allocation2 + $0x1d1] sm:$0xff] }
 0x1f6   : > { %v10848_v47 = vpop.f32.mrf.mxu0 }
 0x1f7   : > { %v10866_v26 = vpop.f32.mrf.mxu1  ;;  %v5286_v47 = vld [vmem:[#allocation2 + $0x1b9] sm:$0xff] }
 0x1f8   : > { %v2906_v27 = vpop.f32.mrf.mxu0  ;;  %v13064_v61 = vpack.c.bf16 %v5287_v60, %v5286_v47 }
 0x1f9   : > { %v3060_v29 = vpop.f32.mrf.mxu1 }
 0x1fa   : > { %v10871_v13 = vpop.f32.mrf.mxu0  ;;  %11086 = vmatmul.mubr.msk.bf16.vlgmr.msra.gmra.mxu0 %vm493_vm0, %v12620_v4  ;;  %v5284_v4 = vld [vmem:[#allocation2 + $0x1a9] sm:$0xff] }
 0x1fb   : > { %v10889_v30 = vpop.f32.mrf.mxu1  ;;  %11104 = vmatmul.mubr.msk.bf16.vlgmr.msra.gmra.mxu1 %vm493_vm0, %v13021_v22  ;;  %v13045_v49 = vadd.f32 %v10871_v13, %v12951_v45  ;;  %11120 = vmatpush3.bf16.msra.mxu0 %v12937_v5 }
 0x1fc   : > { %v3379_v43 = vadd.f32 %v10889_v30, %v3071_v50  ;;  %11138 = vmatpush3.bf16.msra.mxu1 %v12942_v17  ;;  %v3169_v20 = vpop.f32.mrf.mxu0  ;;  %11089 = vmatprep.mubr.msk.bf16.mxu0 %vm493_vm0, %v12622_v56  ;;  %v13059_v30 = vpack.c.bf16 %v5285_v14, %v5284_v4  ;;  %v2765_v56 = vadd.f32 %v12879_v12, %v12783_v31  ;;  %v5290_v4 = vld [vmem:[#allocation2 + $0x1d9] sm:$0xff]  ;;  %v5291_v14 = vld [vmem:[#allocation2 + $0x1e1] sm:$0xff] }
 0x1fd   : > { %14521 = vst [vmem:[#allocation15_spill] sm:$0xff] %v13045_v49  ;;  %v3323_v24 = vpop.f32.mrf.mxu1  ;;  %11107 = vmatprep.mubr.msk.bf16.mxu1 %vm493_vm0, %v13025_v7  ;;  %v13055_v45 = vadd.f32 %v3169_v20, %v12962_v42  ;;  %11155 = vmatprep.subr.bf16.mxu0 %v13031_v21  ;;  %v2764_v31 = vadd.f32 %v12892_v57, %v12793_v51 }
 0x1fe   : > { %3396 = vrot.lane.b32.xlu0 %v3379_v43, %s11629_s26  ;;  %v10872_v5 = vpop.f32.mrf.mxu0  ;;  %11173 = vmatprep.subr.bf16.mxu1 %v13040_v32  ;;  %v3378_v26 = vadd.f32 %v3323_v24, %v3070_v3  ;;  %v3073_v27 = vadd.f32 %v12966_v37, %v2765_v56  ;;  %v5288_v37 = vld [vmem:[#allocation2 + $0x1c9] sm:$0xff]  ;;  %v13090_v60 = vpack.c.bf16 %v5291_v14, %v5290_v4  ;;  %v9557_v14 = vld [vmem:[%s14456_s7] ss:$0 sm:$0xff] }
 0x1ff   : > { %14522 = vst [vmem:[#allocation16_spill] sm:$0xff] %v13055_v45  ;;  %v10890_v17 = vpop.f32.mrf.mxu1  ;;  %v3072_v20 = vadd.f32 %v12979_v2, %v2764_v31  ;;  %v13086_v24 = vpack.c.bf16 %v5289_v59, %v5288_v37  ;;  %v2766_v2 = vadd.f32 %v12910_v52, %v12821_v38  ;;  %v5292_v38 = vld [vmem:[#allocation2 + $0x1e9] sm:$0xff]  ;;  %v5293_v52 = vld [vmem:[#allocation2 + $0x1f1] sm:$0xff]  ;;  %v2768_v31 = vadd.f32 %v12929_v44, %v12845_v41 }
 0x200   : > { %v3172_v63 = vpop.f32.mrf.mxu0  ;;  %v14528_v41 = vld [vmem:[#allocation5_spill] sm:$0xff] }
 0x201   : > { %v3326_v42 = vpop.f32.mrf.mxu1  ;;  %v3076_v59 = vadd.f32 %v13016_v8, %v2768_v31 }
 0x202   : > { %3394 = vrot.lane.b32.xlu0 %v3378_v26, %s11629_s26  ;;  %v10875_v29 = vpop.f32.mrf.mxu0  ;;  %11090 = vmatmul.mubr.msk.bf16.gmra.mxu0 %vm493_vm0, %v12656_v53 }
 0x203   : > { %v10893_v50 = vpop.f32.mrf.mxu1  ;;  %11108 = vmatmul.mubr.msk.bf16.gmra.mxu1 %vm493_vm0, %v13059_v30  ;;  %v13075_v12 = vadd.f32 %v10875_v29, %v12973_v18  ;;  %11093 = vmatprep.mubr.msk.bf16.mxu0 %vm493_vm0, %v12658_v11  ;;  %v2767_v11 = vadd.f32 %v12897_v58, %v12811_v48  ;;  %v3074_v48 = vadd.f32 %v12997_v6, %v2766_v2 }
 0x204   : > { %v3381_v13 = vadd.f32 %v10893_v50, %v3073_v27  ;;  %11111 = vmatprep.mubr.msk.bf16.mxu1 %vm493_vm0, %v13064_v61  ;;  %v3183_v43 = vpop.f32.mrf.mxu0  ;;  %v13112_v27 = vpack.c.bf16 %v5293_v52, %v5292_v38 }
 0x205   : > { %14523 = vst [vmem:[#allocation17_spill] sm:$0xff] %v13075_v12  ;;  %v3337_v53 = vpop.f32.mrf.mxu1  ;;  %v13083_v51 = vadd.f32 %v3183_v43, %v12982_v15  ;;  %v3075_v15 = vadd.f32 %v12984_v35, %v2767_v11  ;;  %v14531_v11 = vld [vmem:[#allocation7_spill] sm:$0xff] }
 0x206   : > { %3400 = vrot.lane.b32.xlu1 %v3381_v13, %s11629_s26  ;;  %v10876_v57 = vpop.f32.mrf.mxu0  ;;  %v3380_v47 = vadd.f32 %v3337_v53, %v3072_v20 }
 0x207   : > { %14524 = vst [vmem:[#allocation18_spill] sm:$0xff] %v13083_v51  ;;  %v10894_v18 = vpop.f32.mrf.mxu1 }
 0x208   : > { %v3186_v3 = vpop.f32.mrf.mxu0  ;;  %v14530_v18 = vld [vmem:[#allocation6_spill] sm:$0xff] }
 0x209   : > { %v3340_v5 = vpop.f32.mrf.mxu1 }
 0x20a   : > { %3398 = vrot.lane.b32.xlu1 %v3380_v47, %s11629_s26  ;;  %v10879_v17 = vpop.f32.mrf.mxu0  ;;  %11094 = vmatmul.mubr.msk.bf16.gmra.mxu0 %vm493_vm0, %v12678_v19  ;;  %v13156_v47 = vld [vmem:[%s14451_s2 + $0x40] sm:$0xff]  }
 0x20b   : > { %v10897_v56 = vpop.f32.mrf.mxu1  ;;  %11112 = vmatmul.mubr.msk.bf16.gmra.mxu1 %vm493_vm0, %v13086_v24  ;;  %v13102_v58 = vadd.f32 %v10879_v17, %v12991_v25  ;;  %11097 = vmatprep.mubr.msk.bf16.mxu0 %vm493_vm0, %v12680_v1  ;;  %v2769_v1 = vadd.f32 %v12917_v0, %v12835_v62 }
 0x20c   : > { %v3383_v26 = vadd.f32 %v10897_v56, %v3075_v15  ;;  %11115 = vmatprep.mubr.msk.bf16.mxu1 %vm493_vm0, %v13090_v60  ;;  %v3197_v35 = vpop.f32.mrf.mxu0  ;;  %v14532_v15 = vld [vmem:[#allocation8_spill] sm:$0xff] }
 0x20d   : > { %14525 = vst [vmem:[#allocation19_spill] sm:$0xff] %v13102_v58  ;;  %v3351_v63 = vpop.f32.mrf.mxu1  ;;  %v13109_v19 = vadd.f32 %v3197_v35, %v13000_v46  ;;  %v3077_v46 = vadd.f32 %v13004_v54, %v2769_v1  ;;  %v14536_v1 = vld [vmem:[#allocation12_spill] sm:$0xff] }
 0x20e   : > { %v3382_v42 = vadd.f32 %v3351_v63, %v3074_v48  ;;  %3404 = vrot.lane.b32.xlu1 %v3383_v26, %s11629_s26  ;;  %v10880_v6 = vpop.f32.mrf.mxu0  ;;  %v14533_v48 = vld [vmem:[#allocation9_spill] sm:$0xff] }
 0x20f   : > { %14526 = vst [vmem:[#allocation20_spill] sm:$0xff] %v13109_v19  ;;  %v10898_v25 = vpop.f32.mrf.mxu1  ;;  %v14535_v6 = vld [vmem:[#allocation11_spill] sm:$0xff] }
 0x210   : > { %3402 = vrot.lane.b32.xlu0 %v3382_v42, %s11629_s26  ;;  %v3200_v29 = vpop.f32.mrf.mxu0  ;;  %v14534_v42 = vld [vmem:[#allocation10_spill] sm:$0xff] }
 0x211   : > { %v3354_v50 = vpop.f32.mrf.mxu1  ;;  %v14537_v29 = vld [vmem:[#allocation13_spill] sm:$0xff] }
 0x212   : > { %v10883_v13 = vpop.f32.mrf.mxu0  ;;  %11098 = vmatmul.mubr.msk.bf16.gmra.mxu0 %vm493_vm0, %v12700_v28 }
 0x213   : > { %v10901_v37 = vpop.f32.mrf.mxu1  ;;  %11116 = vmatmul.mubr.msk.bf16.gmra.mxu1 %vm493_vm0, %v13112_v27  ;;  %v13126_v62 = vadd.f32 %v10883_v13, %v13011_v9  ;;  %11121 = vmatprep.mubr.msk.bf16.mxu0 %vm493_vm0, %v12702_v34  ;;  %v9558_v9 = vld [vmem:[%s14457_s8] ss:$0 sm:$0xff] }
 0x214   : > { %v3385_v0 = vadd.f32 %v10901_v37, %v3077_v46  ;;  %11139 = vmatprep.mubr.msk.bf16.mxu1 %vm493_vm0, %v14528_v41  ;;  %v3211_v44 = vpop.f32.mrf.mxu0 }
 0x215   : > { %14527 = vst [vmem:[#allocation21_spill] sm:$0xff] %v13126_v62  ;;  %v3365_v54 = vpop.f32.mrf.mxu1  ;;  %v13133_v43 = vadd.f32 %v3211_v44, %v13019_v23  ;;  %v13147_v23 = vld [vmem:[%s14451_s2 + $0x38] sm:$0xff]  }
 0x216   : > { %v3384_v28 = vadd.f32 %v3365_v54, %v3076_v59  ;;  %3408 = vrot.lane.b32.xlu1 %v3385_v0, %s11629_s26  ;;  %v10884_v53 = vpop.f32.mrf.mxu0 }
 0x217   : > { %14529 = vst [vmem:[#allocation5_spill] sm:$0xff] %v13133_v43  ;;  %v10902_v8 = vpop.f32.mrf.mxu1 }
 0x218   : > { %3406 = vrot.lane.b32.xlu0 %v3384_v28, %s11629_s26  ;;  %v3214_v34 = vpop.f32.mrf.mxu0  ;;  %v5737_v8 = vld [vmem:[#allocation2 + $0x19] sm:$0xff] }
 0x219   : > { %v3368_v4 = vpop.f32.mrf.mxu1 }
 0x21a   : > { %3449 = vrot.lane.b32.xlu1 %v9558_v9, %s11629_s26  ;;  %v10907_v20 = vpop.f32.mrf.mxu0  ;;  %11122 = vmatmul.mubr.msk.bf16.vlgmr.msra.gmra.mxu0 %vm493_vm0, %v14530_v18  ;;  %v5738_v4 = vld [vmem:[#allocation2 + $0x21] sm:$0xff] }
 0x21b   : > { %v10925_v57 = vpop.f32.mrf.mxu1  ;;  %11140 = vmatmul.mubr.msk.bf16.vlgmr.msra.gmra.mxu1 %vm493_vm0, %v14531_v11  ;;  %v3681_v3 = vadd.f32 %v10907_v20, %v13045_v49  ;;  %11156 = vmatpush3.bf16.msra.mxu0 %v13031_v21  ;;  %v5891_v20 = vld [vmem:[#allocation2 + $0x190] sm:$0xff] }
 0x21c   : > { %3432 = vrot.lane.b32.xlu0 %v9557_v14, %s11629_s26  ;;  %v3625_v5 = vpop.f32.mrf.mxu0  ;;  %11174 = vmatpush3.bf16.msra.mxu1 %v13040_v32  ;;  %v5890_v14 = vld [vmem:[#allocation2 + $0x188] sm:$0xff]  ;;  %s13567_s26 = scalar_lea.vmem %s14458_s9, %s9983_s27 }
 0x21d   : > { %v3779_v2 = vpop.f32.mrf.mxu1  ;;  %11125 = vmatprep.mubr.msk.bf16.mxu0 %vm493_vm0, %v14532_v15  ;;  %v13164_v17 = vadd.f32 %v10925_v57, %v3681_v3  ;;  %v3680_v56 = vadd.f32 %v3625_v5, %v13055_v45  ;;  %11143 = vmatprep.mubr.msk.bf16.mxu1 %vm493_vm0, %v14533_v48  ;;  %v5753_v3 = vpack.c.bf16 %v5738_v4, %v5737_v8 }
 0x21e   : > { %11191 = vmatprep.subr.bf16.mxu0 %v13147_v23  ;;  %v10908_v26 = vpop.f32.mrf.mxu0  ;;  %11209 = vmatprep.subr.bf16.mxu1 %v13156_v47  ;;  %v5906_v5 = vpack.c.bf16 %v5891_v20, %v5890_v14  ;;  %v5896_v14 = vld [vmem:[#allocation2 + $0x1b8] sm:$0xff]  ;;  %v5897_v20 = vld [vmem:[#allocation2 + $0x1c0] sm:$0xff] }
 0x21f   : > { %v10926_v21 = vpop.f32.mrf.mxu1  ;;  %v13171_v38 = vadd.f32 %v3779_v2, %v3680_v56  ;;  %v5739_v56 = vld [vmem:[#allocation2 + $0x29] sm:$0xff]  ;;  %v5740_v26 = vld [vmem:[#allocation2 + $0x31] sm:$0xff] }
 0x220   : > { %v3628_v52 = vpop.f32.mrf.mxu0  ;;  %v5892_v21 = vld [vmem:[#allocation2 + $0x198] sm:$0xff] }
 0x221   : > { %v3782_v32 = vpop.f32.mrf.mxu1  ;;  %v5893_v52 = vld [vmem:[#allocation2 + $0x1a0] sm:$0xff] }
 0x222   : > { %v10911_v35 = vpop.f32.mrf.mxu0  ;;  %11126 = vmatmul.mubr.msk.bf16.gmra.mxu0 %vm493_vm0, %v14534_v42 }
 0x223   : > { %v10929_v63 = vpop.f32.mrf.mxu1  ;;  %11144 = vmatmul.mubr.msk.bf16.gmra.mxu1 %vm493_vm0, %v14535_v6  ;;  %v3683_v25 = vadd.f32 %v10911_v35, %v13075_v12  ;;  %11129 = vmatprep.mubr.msk.bf16.mxu0 %vm493_vm0, %v14536_v1  ;;  %v5742_v6 = vld [vmem:[#allocation2 + $0x41] sm:$0xff] }
 0x224   : > { %11147 = vmatprep.mubr.msk.bf16.mxu1 %vm493_vm0, %v14537_v29  ;;  %v3639_v50 = vpop.f32.mrf.mxu0 }
 0x225   : > { %v3793_v31 = vpop.f32.mrf.mxu1  ;;  %v13182_v46 = vadd.f32 %v10929_v63, %v3683_v25  ;;  %v3682_v13 = vadd.f32 %v3639_v50, %v13083_v51  ;;  %v5741_v63 = vld [vmem:[#allocation2 + $0x39] sm:$0xff]  ;;  %v5894_v25 = vld [vmem:[#allocation2 + $0x1a8] sm:$0xff]  ;;  %v5754_v50 = vpack.c.bf16 %v5740_v26, %v5739_v56 }
 0x226   : > { %v10912_v37 = vpop.f32.mrf.mxu0 }
 0x227   : > { %v10930_v59 = vpop.f32.mrf.mxu1  ;;  %v13185_v0 = vadd.f32 %v3793_v31, %v3682_v13  ;;  %v5907_v31 = vpack.c.bf16 %v5893_v52, %v5892_v21 }
 0x228   : > { %v3642_v41 = vpop.f32.mrf.mxu0 }
 0x229   : > { %v3796_v44 = vpop.f32.mrf.mxu1  ;;  %v5755_v41 = vpack.c.bf16 %v5742_v6, %v5741_v63  ;;  %v5748_v63 = vld [vmem:[#allocation2 + $0x71] sm:$0xff] }
 0x22a   : > { %v10915_v54 = vpop.f32.mrf.mxu0  ;;  %11130 = vmatmul.mubr.msk.bf16.gmra.mxu0 %vm493_vm0, %v12795_v16  ;;  %v5900_v6 = vld [vmem:[#allocation2 + $0x1d8] sm:$0xff] }
 0x22b   : > { %v10933_v28 = vpop.f32.mrf.mxu1  ;;  %11148 = vmatmul.mubr.msk.bf16.gmra.mxu1 %vm493_vm0, %v12797_v55  ;;  %v3685_v53 = vadd.f32 %v10915_v54, %v13102_v58  ;;  %11133 = vmatprep.mubr.msk.bf16.mxu0 %vm493_vm0, %v12799_v10  ;;  %v13216_v54 = vld [vmem:[%s14451_s2] sm:$0xff]  }
 0x22c   : > { %11151 = vmatprep.mubr.msk.bf16.mxu1 %vm493_vm0, %v12801_v40  ;;  %v3653_v9 = vpop.f32.mrf.mxu0 }
 0x22d   : > { %v3807_v34 = vpop.f32.mrf.mxu1  ;;  %v13196_v57 = vadd.f32 %v10933_v28, %v3685_v53  ;;  %v3684_v16 = vadd.f32 %v3653_v9, %v13109_v19  ;;  %v13221_v28 = vld [vmem:[%s14451_s2 + $0x8] sm:$0xff]  }
 0x22e   : > { %v10916_v18 = vpop.f32.mrf.mxu0  ;;  %v5743_v9 = vld [vmem:[#allocation2 + $0x49] sm:$0xff] }
 0x22f   : > { %v10934_v55 = vpop.f32.mrf.mxu1  ;;  %v13199_v11 = vadd.f32 %v3807_v34, %v3684_v16  ;;  %v5744_v34 = vld [vmem:[#allocation2 + $0x51] sm:$0xff]  ;;  %v5745_v16 = vld [vmem:[#allocation2 + $0x59] sm:$0xff] }
 0x230   : > { %v3656_v10 = vpop.f32.mrf.mxu0 }
 0x231   : > { %v3810_v2 = vpop.f32.mrf.mxu1  ;;  %v5899_v10 = vld [vmem:[#allocation2 + $0x1d0] sm:$0xff] }
 0x232   : > { %v10919_v15 = vpop.f32.mrf.mxu0  ;;  %11134 = vmatmul.mubr.msk.bf16.gmra.mxu0 %vm493_vm0, %v12823_v36 }
 0x233   : > { %v10937_v40 = vpop.f32.mrf.mxu1  ;;  %11152 = vmatmul.mubr.msk.bf16.gmra.mxu1 %vm493_vm0, %v12825_v39  ;;  %v3687_v48 = vadd.f32 %v10919_v15, %v13126_v62  ;;  %11157 = vmatprep.mubr.msk.bf16.mxu0 %vm493_vm0, %v5753_v3  ;;  %v5895_v39 = vld [vmem:[#allocation2 + $0x1b0] sm:$0xff]  ;;  %v5746_v3 = vld [vmem:[#allocation2 + $0x61] sm:$0xff]  ;;  %v5756_v15 = vpack.c.bf16 %v5744_v34, %v5743_v9 }
 0x234   : > { %11175 = vmatprep.mubr.msk.bf16.mxu1 %vm493_vm0, %v5906_v5  ;;  %v3667_v32 = vpop.f32.mrf.mxu0  ;;  %v5908_v44 = vpack.c.bf16 %v5895_v39, %v5894_v25  ;;  %v5898_v5 = vld [vmem:[#allocation2 + $0x1c8] sm:$0xff]  ;;  %v5901_v25 = vld [vmem:[#allocation2 + $0x1e0] sm:$0xff] }
 0x235   : > { %v3821_v35 = vpop.f32.mrf.mxu1  ;;  %v13208_v42 = vadd.f32 %v10937_v40, %v3687_v48  ;;  %v3686_v36 = vadd.f32 %v3667_v32, %v13133_v43  ;;  %v5909_v40 = vpack.c.bf16 %v5897_v20, %v5896_v14  ;;  %v5757_v48 = vpack.c.bf16 %v5746_v3, %v5745_v16  ;;  %v5749_v39 = vld [vmem:[#allocation2 + $0x79] sm:$0xff]  ;;  %v5752_v3 = vld [vmem:[#allocation2 + $0x91] sm:$0xff] }
 0x236   : > { %v10920_v1 = vpop.f32.mrf.mxu0  ;;  %v5910_v26 = vpack.c.bf16 %v5899_v10, %v5898_v5 }
 0x237   : > { %v10938_v29 = vpop.f32.mrf.mxu1  ;;  %v13211_v13 = vadd.f32 %v3821_v35, %v3686_v36 }
 0x238   : > { %v3670_v37 = vpop.f32.mrf.mxu0 }
 0x239   : > { %v3824_v59 = vpop.f32.mrf.mxu1  ;;  %v5903_v37 = vld [vmem:[#allocation2 + $0x1f0] sm:$0xff] }
 0x23a   : > { %v10943_v53 = vpop.f32.mrf.mxu0  ;;  %11158 = vmatmul.mubr.msk.bf16.vlgmr.msra.gmra.mxu0 %vm493_vm0, %v5754_v50  ;;  %v5750_v50 = vld [vmem:[#allocation2 + $0x81] sm:$0xff] }
 0x23b   : > { %v10961_v8 = vpop.f32.mrf.mxu1  ;;  %11176 = vmatmul.mubr.msk.bf16.vlgmr.msra.gmra.mxu1 %vm493_vm0, %v5907_v31  ;;  %v3989_v4 = vadd.f32 %v10943_v53, %v13164_v17  ;;  %11192 = vmatpush3.bf16.msra.mxu0 %v13147_v23  ;;  %v5902_v31 = vld [vmem:[#allocation2 + $0x1e8] sm:$0xff]  ;;  %v5759_v34 = vpack.c.bf16 %v5750_v50, %v5749_v39 }
 0x23c   : > { %11210 = vmatpush3.bf16.msra.mxu1 %v13156_v47  ;;  %v3933_v18 = vpop.f32.mrf.mxu0  ;;  %11161 = vmatprep.mubr.msk.bf16.mxu0 %vm493_vm0, %v5755_v41  ;;  %v6048_v50 = vld [vmem:[#allocation2 + $0x268] sm:$0xff] }
 0x23d   : > { %v4087_v55 = vpop.f32.mrf.mxu1  ;;  %11179 = vmatprep.mubr.msk.bf16.mxu1 %vm493_vm0, %v5908_v44  ;;  %v13230_v2 = vadd.f32 %v10961_v8, %v3989_v4  ;;  %v3988_v17 = vadd.f32 %v3933_v18, %v13171_v38  ;;  %11227 = vmatprep.subr.bf16.mxu0 %v13216_v54  ;;  %v5747_v38 = vld [vmem:[#allocation2 + $0x69] sm:$0xff]  ;;  %v5912_v4 = vpack.c.bf16 %v5903_v37, %v5902_v31 }
 0x23e   : > { %11245 = vmatprep.subr.bf16.mxu1 %v13221_v28  ;;  %v10944_v23 = vpop.f32.mrf.mxu0  ;;  %v5758_v8 = vpack.c.bf16 %v5748_v63, %v5747_v38 }
 0x23f   : > { %v10962_v47 = vpop.f32.mrf.mxu1  ;;  %v13235_v56 = vadd.f32 %v4087_v55, %v3988_v17  ;;  %v6043_v17 = vld [vmem:[#allocation2 + $0x240] sm:$0xff]  ;;  %v6044_v23 = vld [vmem:[#allocation2 + $0x248] sm:$0xff] }
 0x240   : > { %v3936_v21 = vpop.f32.mrf.mxu0 }
 0x241   : > { %v4090_v52 = vpop.f32.mrf.mxu1 }
 0x242   : > { %v10947_v32 = vpop.f32.mrf.mxu0  ;;  %11162 = vmatmul.mubr.msk.bf16.gmra.mxu0 %vm493_vm0, %v5756_v15 }
 0x243   : > { %v10965_v35 = vpop.f32.mrf.mxu1  ;;  %11180 = vmatmul.mubr.msk.bf16.gmra.mxu1 %vm493_vm0, %v5909_v40  ;;  %v3991_v36 = vadd.f32 %v10947_v32, %v13182_v46  ;;  %11165 = vmatprep.mubr.msk.bf16.mxu0 %vm493_vm0, %v5757_v48  ;;  %v5911_v46 = vpack.c.bf16 %v5901_v25, %v5900_v6 }
 0x244   : > { %11183 = vmatprep.mubr.msk.bf16.mxu1 %vm493_vm0, %v5910_v26  ;;  %v3947_v1 = vpop.f32.mrf.mxu0 }
 0x245   : > { %v4101_v29 = vpop.f32.mrf.mxu1  ;;  %v13242_v59 = vadd.f32 %v10965_v35, %v3991_v36  ;;  %v3990_v41 = vadd.f32 %v3947_v1, %v13185_v0  ;;  %v5751_v0 = vld [vmem:[#allocation2 + $0x89] sm:$0xff]  ;;  %v6046_v36 = vld [vmem:[#allocation2 + $0x258] sm:$0xff] }
 0x246   : > { %v10948_v44 = vpop.f32.mrf.mxu0  ;;  %v5760_v26 = vpack.c.bf16 %v5752_v3, %v5751_v0 }
 0x247   : > { %v10966_v53 = vpop.f32.mrf.mxu1  ;;  %v13245_v9 = vadd.f32 %v4101_v29, %v3990_v41  ;;  %v6047_v29 = vld [vmem:[#allocation2 + $0x260] sm:$0xff] }
 0x248   : > { %v3950_v14 = vpop.f32.mrf.mxu0  ;;  %v13274_v53 = vpack.c.bf16 %v6048_v50, %v6047_v29  ;;  %v6391_v29 = vld [vmem:[#allocation2 + $0xd7] sm:$0xff] }
 0x249   : > { %v4104_v20 = vpop.f32.mrf.mxu1  ;;  %v6543_v50 = vld [vmem:[#allocation2 + $0x18] sm:$0xff] }
 0x24a   : > { %v10951_v16 = vpop.f32.mrf.mxu0  ;;  %11166 = vmatmul.mubr.msk.bf16.gmra.mxu0 %vm493_vm0, %v5758_v8  ;;  %14542 = vst [vmem:[#allocation10_spill] sm:$0xff] %v13274_v53 }
 0x24b   : > { %v10969_v18 = vpop.f32.mrf.mxu1  ;;  %11184 = vmatmul.mubr.msk.bf16.gmra.mxu1 %vm493_vm0, %v5911_v46  ;;  %v3993_v55 = vadd.f32 %v10951_v16, %v13196_v57  ;;  %11169 = vmatprep.mubr.msk.bf16.mxu0 %vm493_vm0, %v5759_v34  ;;  %v13257_v57 = vpack.c.bf16 %v6044_v23, %v6043_v17  ;;  %v6049_v34 = vld [vmem:[#allocation2 + $0x270] sm:$0xff]  ;;  %v6051_v16 = vld [vmem:[#allocation2 + $0x280] sm:$0xff]  ;;  %v6054_v17 = vld [vmem:[#allocation2 + $0x298] sm:$0xff] }
 0x24c   : > { %11187 = vmatprep.mubr.msk.bf16.mxu1 %vm493_vm0, %v5912_v4  ;;  %v3961_v5 = vpop.f32.mrf.mxu0  ;;  %v6050_v4 = vld [vmem:[#allocation2 + $0x278] sm:$0xff] }
 0x24d   : > { %v4115_v10 = vpop.f32.mrf.mxu1  ;;  %v13252_v47 = vadd.f32 %v10969_v18, %v3993_v55  ;;  %v3992_v15 = vadd.f32 %v3961_v5, %v13199_v11  ;;  %14538 = vst [vmem:[#allocation6_spill] sm:$0xff] %v13257_v57  ;;  %v6045_v11 = vld [vmem:[#allocation2 + $0x250] sm:$0xff]  ;;  %v6052_v18 = vld [vmem:[#allocation2 + $0x288] sm:$0xff] }
 0x24e   : > { %v10952_v40 = vpop.f32.mrf.mxu0  ;;  %v13270_v37 = vpack.c.bf16 %v6046_v36, %v6045_v11  ;;  %v13308_v55 = vpack.c.bf16 %v6052_v18, %v6051_v16  ;;  %v6211_v36 = vld [vmem:[#allocation2 + $0x201] sm:$0xff] }
 0x24f   : > { %v10970_v48 = vpop.f32.mrf.mxu1  ;;  %v13255_v21 = vadd.f32 %v4115_v10, %v3992_v15  ;;  %v6055_v40 = vld [vmem:[#allocation2 + $0x2a0] sm:$0xff] }
 0x250   : > { %v3964_v52 = vpop.f32.mrf.mxu0  ;;  %14540 = vst [vmem:[#allocation8_spill] sm:$0xff] %v13270_v37  ;;  %14544 = vst [vmem:[#allocation12_spill] sm:$0xff] %v13308_v55  ;;  %v6056_v48 = vld [vmem:[#allocation2 + $0x2a8] sm:$0xff] }
 0x251   : > { %v4118_v32 = vpop.f32.mrf.mxu1 }
 0x252   : > { %v10955_v35 = vpop.f32.mrf.mxu0  ;;  %11170 = vmatmul.mubr.msk.bf16.gmra.mxu0 %vm493_vm0, %v5760_v26 }
 0x253   : > { %v10973_v38 = vpop.f32.mrf.mxu1  ;;  %11188 = vmatmul.mubr.msk.bf16.gmra.mxu1 %vm493_vm0, %v12915_v33  ;;  %v3995_v63 = vadd.f32 %v10955_v35, %v13208_v42  ;;  %11193 = vmatprep.mubr.msk.bf16.mxu0 %vm493_vm0, %v13257_v57  ;;  %v13328_v35 = vpack.c.bf16 %v6056_v48, %v6055_v40  ;;  %v6394_v48 = vld [vmem:[#allocation2 + $0xef] sm:$0xff] }
 0x254   : > { %11211 = vmatprep.mubr.msk.bf16.mxu1 %vm493_vm0, %v13021_v22  ;;  %v3975_v6 = vpop.f32.mrf.mxu0  ;;  %v13279_v22 = vld [vmem:[%s14451_s2 + $0x10] sm:$0xff]  }
 0x255   : > { %v4129_v25 = vpop.f32.mrf.mxu1  ;;  %v13267_v39 = vadd.f32 %v10973_v38, %v3995_v63  ;;  %v3994_v1 = vadd.f32 %v3975_v6, %v13211_v13  ;;  %v13284_v13 = vld [vmem:[%s14451_s2 + $0x18] sm:$0xff]   ;;  %14546 = vst [vmem:[#allocation22_spill] sm:$0xff] %v13328_v35  ;;  %v6390_v6 = vld [vmem:[#allocation2 + $0xcf] sm:$0xff] }
 0x256   : > { %v10956_v31 = vpop.f32.mrf.mxu0 }
 0x257   : > { %14539 = vst [vmem:[#allocation7_spill] sm:$0xff] %v13267_v39  ;;  %v10974_v33 = vpop.f32.mrf.mxu1  ;;  %v13272_v42 = vadd.f32 %v4129_v25, %v3994_v1  ;;  %v6544_v31 = vld [vmem:[#allocation2 + $0x20] sm:$0xff] }
 0x258   : > { %v3978_v41 = vpop.f32.mrf.mxu0 }
 0x259   : > { %14541 = vst [vmem:[#allocation9_spill] sm:$0xff] %v13272_v42  ;;  %v4132_v44 = vpop.f32.mrf.mxu1 }
 0x25a   : > { %v13286_v8 = vpop.f32.mrf.mxu0  ;;  %11194 = vmatmul.mubr.msk.bf16.vlgmr.msra.gmra.mxu0 %vm493_vm0, %v13270_v37 }
 0x25b   : > { %v13288_v46 = vpop.f32.mrf.mxu1  ;;  %11212 = vmatmul.mubr.msk.bf16.vlgmr.msra.gmra.mxu1 %vm493_vm0, %v13025_v7  ;;  %11228 = vmatpush3.bf16.msra.mxu0 %v13216_v54 }
 0x25c   : > { %11246 = vmatpush3.bf16.msra.mxu1 %v13221_v28  ;;  %v13296_v14 = vpop.f32.mrf.mxu0  ;;  %11197 = vmatprep.mubr.msk.bf16.mxu0 %vm493_vm0, %v13274_v53  ;;  %v13306_v28 = vpack.c.bf16 %v6050_v4, %v6049_v34  ;;  %v6559_v34 = vpack.c.bf16 %v6544_v31, %v6543_v50 }
 0x25d   : > { %v13298_v20 = vpop.f32.mrf.mxu1  ;;  %11215 = vmatprep.mubr.msk.bf16.mxu1 %vm493_vm0, %v13059_v30  ;;  %11263 = vmatprep.subr.bf16.mxu0 %v13279_v22  ;;  %v6053_v30 = vld [vmem:[#allocation2 + $0x290] sm:$0xff] }
 0x25e   : > { %11281 = vmatprep.subr.bf16.mxu1 %v13284_v13  ;;  %v10980_v7 = vpop.f32.mrf.mxu0  ;;  %14543 = vst [vmem:[#allocation11_spill] sm:$0xff] %v13306_v28  ;;  %v13326_v32 = vpack.c.bf16 %v6054_v17, %v6053_v30  ;;  %v6546_v30 = vld [vmem:[#allocation2 + $0x30] sm:$0xff] }
 0x25f   : > { %v10998_v54 = vpop.f32.mrf.mxu1  ;;  %v14549_v7 = vld [vmem:[#allocation14_spill] sm:$0xff] }
 0x260   : > { %v4244_v0 = vpop.f32.mrf.mxu0  ;;  %14545 = vst [vmem:[#allocation13_spill] sm:$0xff] %v13326_v32  ;;  %v6392_v54 = vld [vmem:[#allocation2 + $0xdf] sm:$0xff] }
 0x261   : > { %v4398_v3 = vpop.f32.mrf.mxu1  ;;  %v6393_v0 = vld [vmem:[#allocation2 + $0xe7] sm:$0xff] }
 0x262   : > { %v13310_v5 = vpop.f32.mrf.mxu0  ;;  %11198 = vmatmul.mubr.msk.bf16.gmra.mxu0 %vm493_vm0, %v13306_v28  ;;  %v6545_v3 = vld [vmem:[#allocation2 + $0x28] sm:$0xff] }
 0x263   : > { %v13312_v10 = vpop.f32.mrf.mxu1  ;;  %11216 = vmatmul.mubr.msk.bf16.gmra.mxu1 %vm493_vm0, %v13064_v61  ;;  %11201 = vmatprep.mubr.msk.bf16.mxu0 %vm493_vm0, %v13308_v55 }
 0x264   : > { %11219 = vmatprep.mubr.msk.bf16.mxu1 %vm493_vm0, %v13086_v24  ;;  %v13322_v23 = vpop.f32.mrf.mxu0  ;;  %v6210_v24 = vld [vmem:[#allocation2 + $0x1f9] sm:$0xff] }
 0x265   : > { %v13324_v15 = vpop.f32.mrf.mxu1  ;;  %v6219_v44 = vpack.c.bf16 %v6211_v36, %v6210_v24  ;;  %v13359_v36 = vpack.c.bf16 %v6393_v0, %v6392_v54  ;;  %v6549_v0 = vld [vmem:[#allocation2 + $0x48] sm:$0xff] }
 0x266   : > { %v10984_v26 = vpop.f32.mrf.mxu0 }
 0x267   : > { %v11002_v52 = vpop.f32.mrf.mxu1  ;;  %v6395_v26 = vld [vmem:[#allocation2 + $0xf7] sm:$0xff]  ;;  %14552 = vst [vmem:[#allocation26_spill] sm:$0xff] %v13359_v36 }
 0x268   : > { %v4258_v61 = vpop.f32.mrf.mxu0  ;;  %v6547_v52 = vld [vmem:[#allocation2 + $0x38] sm:$0xff]  ;;  %v13363_v31 = vpack.c.bf16 %v6395_v26, %v6394_v48 }
 0x269   : > { %v4412_v38 = vpop.f32.mrf.mxu1  ;;  %v6548_v61 = vld [vmem:[#allocation2 + $0x40] sm:$0xff] }
 0x26a   : > { %v13330_v63 = vpop.f32.mrf.mxu0  ;;  %11202 = vmatmul.mubr.msk.bf16.gmra.mxu0 %vm493_vm0, %v13326_v32  ;;  %14554 = vst [vmem:[#allocation28_spill] sm:$0xff] %v13363_v31 }
 0x26b   : > { %v13332_v11 = vpop.f32.mrf.mxu1  ;;  %11220 = vmatmul.mubr.msk.bf16.gmra.mxu1 %vm493_vm0, %v13090_v60  ;;  %11205 = vmatprep.mubr.msk.bf16.mxu0 %vm493_vm0, %v13328_v35  ;;  %v6406_v60 = vpack.c.bf16 %v6391_v29, %v6390_v6  ;;  %v13361_v6 = vpack.c.bf16 %v6546_v30, %v6545_v3  ;;  %v6550_v3 = vld [vmem:[#allocation2 + $0x50] sm:$0xff] }
 0x26c   : > { %11223 = vmatprep.mubr.msk.bf16.mxu1 %vm493_vm0, %v13112_v27  ;;  %v13342_v25 = vpop.f32.mrf.mxu0  ;;  %v6398_v30 = vld [vmem:[#allocation2 + $0x10f] sm:$0xff] }
 0x26d   : > { %v13344_v1 = vpop.f32.mrf.mxu1  ;;  %14553 = vst [vmem:[#allocation27_spill] sm:$0xff] %v13361_v6 }
 0x26e   : > { %v10988_v33 = vpop.f32.mrf.mxu0 }
 0x26f   : > { %v11006_v41 = vpop.f32.mrf.mxu1  ;;  %v13365_v33 = vpack.c.bf16 %v6548_v61, %v6547_v52  ;;  %v6399_v52 = vld [vmem:[#allocation2 + $0x117] sm:$0xff] }
 0x270   : > { %v4272_v4 = vpop.f32.mrf.mxu0  ;;  %v13387_v54 = vpop.permute.xlu0 %3396  ;;  %v6551_v61 = vld [vmem:[#allocation2 + $0x58] sm:$0xff] }
 0x271   : > { %v4426_v16 = vpop.f32.mrf.mxu1  ;;  %14555 = vst [vmem:[#allocation29_spill] sm:$0xff] %v13365_v33 }
 0x272   : > { %v13346_v18 = vpop.f32.mrf.mxu0  ;;  %11206 = vmatmul.mubr.msk.bf16.gmra.mxu0 %vm493_vm0, %v14549_v7  ;;  %v6396_v16 = vld [vmem:[#allocation2 + $0xff] sm:$0xff]  ;;  %v6397_v7 = vld [vmem:[#allocation2 + $0x107] sm:$0xff] }
 0x273   : > { %14547 = vst [vmem:[#allocation23_spill] sm:$0xff] %v13346_v18  ;;  %v13348_v27 = vpop.f32.mrf.mxu1  ;;  %11224 = vmatmul.mubr.msk.bf16.gmra.mxu1 %vm493_vm0, %v6219_v44  ;;  %11229 = vmatprep.mubr.msk.bf16.mxu0 %vm493_vm0, %v6406_v60  ;;  %v13372_v44 = vld [vmem:[%s14451_s2 + $0x20] sm:$0xff]   ;;  %v13377_v60 = vld [vmem:[%s14451_s2 + $0x28] sm:$0xff]  }
 0x274   : > { %14548 = vst [vmem:[#allocation24_spill] sm:$0xff] %v13348_v27  ;;  %11247 = vmatprep.mubr.msk.bf16.mxu1 %vm493_vm0, %v6559_v34  ;;  %v13355_v17 = vpop.f32.mrf.mxu0  ;;  %v3395_v35 = vpop.permute.xlu0 %3394 }
 0x275   : > { %14550 = vst [vmem:[#allocation14_spill] sm:$0xff] %v13355_v17  ;;  %v13357_v40 = vpop.f32.mrf.mxu1  ;;  %v6404_v17 = vld [vmem:[#allocation2 + $0x13f] sm:$0xff] }
 0x276   : > { %14551 = vst [vmem:[#allocation25_spill] sm:$0xff] %v13357_v40  ;;  %v10992_v38 = vpop.f32.mrf.mxu0 }
 0x277   : > { %v11010_v24 = vpop.f32.mrf.mxu1  ;;  %v6552_v38 = vld [vmem:[#allocation2 + $0x60] sm:$0xff] }
 0x278   : > { %v4286_v29 = vpop.f32.mrf.mxu0  ;;  %v13367_v41 = vpop.permute.xlu1 %3400  ;;  %v13401_v24 = vpack.c.bf16 %v6397_v7, %v6396_v16  ;;  %v6400_v16 = vld [vmem:[#allocation2 + $0x11f] sm:$0xff]  ;;  %v6401_v7 = vld [vmem:[#allocation2 + $0x127] sm:$0xff] }
 0x279   : > { %v4440_v50 = vpop.f32.mrf.mxu1  ;;  %v13403_v29 = vpack.c.bf16 %v6550_v3, %v6549_v0  ;;  %v6402_v0 = vld [vmem:[#allocation2 + $0x12f] sm:$0xff]  ;;  %v13425_v28 = vpack.c.bf16 %v6401_v7, %v6400_v16  ;;  %v3418_v7 = vadd.f32 %v3395_v35, %v13055_v45 }
 0x27a   : > { %v13379_v34 = vpop.f32.mrf.mxu0  ;;  %11230 = vmatmul.mubr.msk.bf16.vlgmr.msra.gmra.mxu0 %vm493_vm0, %v13359_v36  ;;  %14556 = vst [vmem:[#allocation30_spill] sm:$0xff] %v13401_v24  ;;  %v6558_v16 = vld [vmem:[#allocation2 + $0x90] sm:$0xff] }
 0x27b   : > { %v13381_v4 = vpop.f32.mrf.mxu1  ;;  %11248 = vmatmul.mubr.msk.bf16.vlgmr.msra.gmra.mxu1 %vm493_vm0, %v13361_v6  ;;  %11264 = vmatpush3.bf16.msra.mxu0 %v13279_v22  ;;  %14557 = vst [vmem:[#allocation31_spill] sm:$0xff] %v13403_v29  ;;  %v13405_v6 = vpack.c.bf16 %v6399_v52, %v6398_v30  ;;  %v6403_v52 = vld [vmem:[#allocation2 + $0x137] sm:$0xff]  ;;  %14560 = vst [vmem:[#allocation34_spill] sm:$0xff] %v13425_v28 }
 0x27c   : > { %11282 = vmatpush3.bf16.msra.mxu1 %v13284_v13  ;;  %v13391_v48 = vpop.f32.mrf.mxu0  ;;  %11233 = vmatprep.mubr.msk.bf16.mxu0 %vm493_vm0, %v13363_v31  ;;  %v3399_v50 = vpop.permute.xlu1 %3398  ;;  %v13407_v31 = vpack.c.bf16 %v6552_v38, %v6551_v61  ;;  %v6555_v61 = vld [vmem:[#allocation2 + $0x78] sm:$0xff]  ;;  %v6556_v38 = vld [vmem:[#allocation2 + $0x80] sm:$0xff]  ;;  %v13429_v53 = vpack.c.bf16 %v6403_v52, %v6402_v0 }
 0x27d   : > { %v13393_v26 = vpop.f32.mrf.mxu1  ;;  %11251 = vmatprep.mubr.msk.bf16.mxu1 %vm493_vm0, %v13365_v33  ;;  %11299 = vmatprep.subr.bf16.mxu0 %v13372_v44  ;;  %14558 = vst [vmem:[#allocation32_spill] sm:$0xff] %v13405_v6 }
 0x27e   : > { %11317 = vmatprep.subr.bf16.mxu1 %v13377_v60  ;;  %v11016_v22 = vpop.f32.mrf.mxu0  ;;  %14559 = vst [vmem:[#allocation33_spill] sm:$0xff] %v13407_v31  ;;  %14562 = vst [vmem:[#allocation36_spill] sm:$0xff] %v13429_v53 }
 0x27f   : > { %v11034_v13 = vpop.f32.mrf.mxu1 }
 0x280   : > { %v4552_v36 = vpop.f32.mrf.mxu0  ;;  %v3405_v22 = vpop.permute.xlu1 %3404 }
 0x281   : > { %v4706_v33 = vpop.f32.mrf.mxu1  ;;  %v6553_v36 = vld [vmem:[#allocation2 + $0x68] sm:$0xff] }
 0x282   : > { %v13409_v32 = vpop.f32.mrf.mxu0  ;;  %11234 = vmatmul.mubr.msk.bf16.gmra.mxu0 %vm493_vm0, %v13401_v24  ;;  %v6554_v33 = vld [vmem:[#allocation2 + $0x70] sm:$0xff]  ;;  %v3403_v13 = vpop.permute.xlu0 %3402 }
 0x283   : > { %v13411_v55 = vpop.f32.mrf.mxu1  ;;  %11252 = vmatmul.mubr.msk.bf16.gmra.mxu1 %vm493_vm0, %v13403_v29  ;;  %11237 = vmatprep.mubr.msk.bf16.mxu0 %vm493_vm0, %v13405_v6  ;;  %v13427_v6 = vpack.c.bf16 %v6554_v33, %v6553_v36  ;;  %v3421_v36 = vadd.f32 %v13367_v41, %v13075_v12  ;;  %v3420_v33 = vadd.f32 %v3399_v50, %v13083_v51  ;;  %v6698_v12 = vld [vmem:[#allocation2 + $0xe0] sm:$0xff]  ;;  %v6699_v50 = vld [vmem:[#allocation2 + $0xe8] sm:$0xff] }
 0x284   : > { %11255 = vmatprep.mubr.msk.bf16.mxu1 %vm493_vm0, %v13407_v31  ;;  %v13421_v3 = vpop.f32.mrf.mxu0  ;;  %v13431_v31 = vpack.c.bf16 %v6556_v38, %v6555_v61  ;;  %v6697_v61 = vld [vmem:[#allocation2 + $0xd8] sm:$0xff] }
 0x285   : > { %v13423_v30 = vpop.f32.mrf.mxu1  ;;  %14561 = vst [vmem:[#allocation35_spill] sm:$0xff] %v13427_v6  ;;  %v6849_v38 = vld [vmem:[#allocation2 + $0x23f] sm:$0xff] }
 0x286   : > { %v11020_v29 = vpop.f32.mrf.mxu0  ;;  %14563 = vst [vmem:[#allocation37_spill] sm:$0xff] %v13431_v31 }
 0x287   : > { %v11038_v24 = vpop.f32.mrf.mxu1  ;;  %v6557_v29 = vld [vmem:[#allocation2 + $0x88] sm:$0xff] }
 0x288   : > { %v4566_v37 = vpop.f32.mrf.mxu0  ;;  %v3409_v40 = vpop.permute.xlu1 %3408  ;;  %v6405_v24 = vld [vmem:[#allocation2 + $0x147] sm:$0xff] }
 0x289   : > { %v4720_v57 = vpop.f32.mrf.mxu1  ;;  %v3419_v37 = vadd.f32 %v13387_v54, %v13045_v49  ;;  %v13459_v54 = vpack.c.bf16 %v6558_v16, %v6557_v29 }
 0x28a   : > { %v3407_v27 = vpop.permute.xlu0 %3406  ;;  %v13433_v42 = vpop.f32.mrf.mxu0  ;;  %11238 = vmatmul.mubr.msk.bf16.gmra.mxu0 %vm493_vm0, %v13425_v28  ;;  %v6696_v57 = vld [vmem:[#allocation2 + $0xd0] sm:$0xff]  ;;  %v13457_v28 = vpack.c.bf16 %v6405_v24, %v6404_v17  ;;  %v4296_v17 = vadd.f32 %v13296_v14, %v13235_v56  ;;  %v3422_v24 = vadd.f32 %v3403_v13, %v13109_v19 }
 0x28b   : > { %14564 = vst [vmem:[#allocation38_spill] sm:$0xff] %v13433_v42  ;;  %v13435_v18 = vpop.f32.mrf.mxu1  ;;  %11256 = vmatmul.mubr.msk.bf16.gmra.mxu1 %vm493_vm0, %v13427_v6  ;;  %11241 = vmatprep.mubr.msk.bf16.mxu0 %vm493_vm0, %v13429_v53  ;;  %v6850_v53 = vld [vmem:[#allocation2 + $0x247] sm:$0xff]  ;;  %v6712_v39 = vpack.c.bf16 %v6697_v61, %v6696_v57  ;;  %v3424_v61 = vadd.f32 %v3407_v27, %v13133_v43 }
 0x28c   : > { %14565 = vst [vmem:[#allocation39_spill] sm:$0xff] %v13435_v18  ;;  %11259 = vmatprep.mubr.msk.bf16.mxu1 %vm493_vm0, %v13431_v31  ;;  %v13451_v0 = vpop.f32.mrf.mxu0  ;;  %v13455_v31 = vpop.permute.xlu1 %3449  ;;  %v6865_v42 = vpack.c.bf16 %v6850_v53, %v6849_v38 }
 0x28d   : > { %14566 = vst [vmem:[#allocation40_spill] sm:$0xff] %v13451_v0  ;;  %v13453_v52 = vpop.f32.mrf.mxu1  ;;  %v3423_v0 = vadd.f32 %v3405_v22, %v13102_v58 }
 0x28e   : > { %14567 = vst [vmem:[#allocation41_spill] sm:$0xff] %v13453_v52  ;;  %v3433_v6 = vpop.permute.xlu0 %3432  ;;  %v11024_v35 = vpop.f32.mrf.mxu0  ;;  %v4297_v52 = vadd.f32 %v13286_v8, %v13230_v2 }
 0x28f   : > { %v11042_v45 = vpop.f32.mrf.mxu1  ;;  %v3436_v49 = vmul.f32 %v3433_v6, %v3419_v37  ;;  %v3435_v41 = vmul.f32 %v3433_v6, %v3418_v7  ;;  %v3438_v51 = vmul.f32 %v3433_v6, %v3421_v36  ;;  %v3437_v18 = vmul.f32 %v3433_v6, %v3420_v33  ;;  %v6851_v7 = vld [vmem:[#allocation2 + $0x24f] sm:$0xff]  ;;  %v6852_v36 = vld [vmem:[#allocation2 + $0x257] sm:$0xff] }
 0x290   : > { %v4580_v29 = vpop.f32.mrf.mxu0  ;;  %v13469_v33 = vpack.c.bf16 %v6699_v50, %v6698_v12  ;;  %v3440_v8 = vmul.f32 %v3433_v6, %v3423_v0  ;;  %v3439_v13 = vmul.f32 %v3433_v6, %v3422_v24  ;;  %v4451_v12 = vadd.f32 %v13288_v46, %v4297_v52  ;;  %v6700_v50 = vld [vmem:[#allocation2 + $0xf0] sm:$0xff]  ;;  %v6853_v24 = vld [vmem:[#allocation2 + $0x25f] sm:$0xff] }
 0x291   : > { %v4734_v45 = vpop.f32.mrf.mxu1  ;;  %v3453_v16 = vadd.f32 %v13455_v31, %v3436_v49  ;;  %v3452_v37 = vadd.f32 %v13455_v31, %v3435_v41  ;;  %v3455_v2 = vadd.f32 %v13455_v31, %v3438_v51  ;;  %v3454_v14 = vadd.f32 %v13455_v31, %v3437_v18 }
 0x292   : > { %v13472_v22 = vpop.f32.mrf.mxu0  ;;  %11242 = vmatmul.mubr.msk.bf16.gmra.mxu0 %vm493_vm0, %v13457_v28  ;;  %v3425_v51 = vadd.f32 %v3409_v40, %v13126_v62  ;;  %v6866_v57 = vpack.c.bf16 %v6852_v36, %v6851_v7  ;;  %v4450_v0 = vadd.f32 %v13298_v20, %v4296_v17  ;;  %v4605_v46 = vadd.f32 %v13379_v34, %v4451_v12  ;;  %v6702_v12 = vld [vmem:[#allocation2 + $0x100] sm:$0xff] }
 0x293   : > { %v13474_v53 = vpop.f32.mrf.mxu1  ;;  %11260 = vmatmul.mubr.msk.bf16.gmra.mxu1 %vm493_vm0, %v13459_v54  ;;  %v3461_v49 = vmax.f32 %v3453_v16, 0.0  ;;  %v3460_v56 = vmax.f32 %v3452_v37, 0.0  ;;  %11265 = vmatprep.mubr.msk.bf16.mxu0 %vm493_vm0, %v6712_v39  ;;  %v3463_v52 = vmax.f32 %v3455_v2, 0.0  ;;  %v3457_v40 = vadd.f32 %v13455_v31, %v3440_v8  ;;  %v6701_v39 = vld [vmem:[#allocation2 + $0xf8] sm:$0xff] }
 0x294   : > { %11283 = vmatprep.mubr.msk.bf16.mxu1 %vm493_vm0, %v6865_v42  ;;  %v13487_v38 = vpop.f32.mrf.mxu0  ;;  %v6854_v42 = vld [vmem:[#allocation2 + $0x267] sm:$0xff]  ;;  %v3442_v29 = vmul.f32 %v3433_v6, %v3425_v51  ;;  %v4299_v20 = vadd.f32 %v13310_v5, %v13242_v59  ;;  %v3462_v45 = vmax.f32 %v3454_v14, 0.0  ;;  %v3456_v34 = vadd.f32 %v13455_v31, %v3439_v13 }
 0x295   : > { %v13489_v35 = vpop.f32.mrf.mxu1  ;;  %v9988_v41 = vpack.c.bf16 %v3461_v49, %v3461_v49  ;;  %v9987_v18 = vpack.c.bf16 %v3460_v56, %v3460_v56  ;;  %v3441_v16 = vmul.f32 %v3433_v6, %v3424_v61  ;;  %v4604_v37 = vadd.f32 %v13391_v48, %v4450_v0  ;;  %v6703_v51 = vld [vmem:[#allocation2 + $0x108] sm:$0xff]  ;;  %v13509_v48 = vld [vmem:[%s14454_s5] ss:$0 sm:$0xff]  ;;  %v13525_v61 = vld [vmem:[%s14451_s2 + $0x38] sm:$0xff]  }
 0x296   : > { %v11028_v27 = vpop.f32.mrf.mxu0  ;;  %v4298_v7 = vadd.f32 %v13322_v23, %v13245_v9  ;;  %v13501_v8 = vpack.c.bf16 %v6701_v39, %v6700_v50  ;;  %v6867_v59 = vpack.c.bf16 %v6854_v42, %v6853_v24  ;;  %v4759_v5 = vadd.f32 %v13381_v4, %v4605_v46  ;;  %v6856_v50 = vld [vmem:[#allocation2 + $0x277] sm:$0xff] }
 0x297   : > { %v11046_v17 = vpop.f32.mrf.mxu1  ;;  %3502 = vrot.lane.b32.xlu1 %v9988_v41, %s11630_s12  ;;  %3500 = vrot.lane.b32.xlu0 %v9987_v18, %s11630_s12  ;;  %v9990_v49 = vpack.c.bf16 %v3463_v52, %v3463_v52  ;;  %v3465_v56 = vmax.f32 %v3457_v40, 0.0  ;;  %v3459_v14 = vadd.f32 %v13455_v31, %v3442_v29  ;;  %v4453_v6 = vadd.f32 %v13312_v10, %v4299_v20  ;;  %v13520_v10 = vld [vmem:[%s14451_s2 + $0x30] sm:$0xff]   ;;  %v13535_v52 = vld [vmem:[%s14455_s6] ss:$0 sm:$0xff]  ;;  %v6705_v24 = vld [vmem:[#allocation2 + $0x118] sm:$0xff] }
 0x298   : > { %v4594_v36 = vpop.f32.mrf.mxu0  ;;  %v9989_v4 = vpack.c.bf16 %v3462_v45, %v3462_v45  ;;  %v3464_v13 = vmax.f32 %v3456_v34, 0.0  ;;  %v3458_v0 = vadd.f32 %v13455_v31, %v3441_v16  ;;  %v4758_v41 = vadd.f32 %v13393_v26, %v4604_v37  ;;  %v6704_v39 = vld [vmem:[#allocation2 + $0x110] sm:$0xff]  ;;  %v6857_v20 = vld [vmem:[#allocation2 + $0x27f] sm:$0xff]  ;;  %v6858_v27 = vld [vmem:[#allocation2 + $0x287] sm:$0xff] }
 0x299   : > { %v4748_v2 = vpop.f32.mrf.mxu1  ;;  %v4452_v31 = vadd.f32 %v13324_v15, %v4298_v7  ;;  %v4607_v46 = vadd.f32 %v13409_v32, %v4453_v6  ;;  %v9992_v32 = vpack.c.bf16 %v3465_v56, %v3465_v56  ;;  %v3467_v29 = vmax.f32 %v3459_v14, 0.0  ;;  %v6706_v6 = vld [vmem:[#allocation2 + $0x120] sm:$0xff] }
 0x29a   : > { %v11051_v9 = vpop.f32.mrf.mxu0  ;;  %11266 = vmatmul.mubr.msk.bf16.vlgmr.msra.gmra.mxu0 %vm493_vm0, %v13469_v33  ;;  %v4301_v17 = vadd.f32 %v13330_v63, %v13252_v47  ;;  %v9991_v34 = vpack.c.bf16 %v3464_v13, %v3464_v13  ;;  %v3466_v37 = vmax.f32 %v3458_v0, 0.0  ;;  %v4300_v47 = vadd.f32 %v13342_v25, %v13255_v21 }
 0x29b   : > { %v13511_v23 = vpop.f32.mrf.mxu1  ;;  %11284 = vmatmul.mubr.msk.bf16.vlgmr.msra.gmra.mxu1 %vm493_vm0, %v6866_v57  ;;  %v4913_v18 = vadd.f32 %v11051_v9, %v4759_v5  ;;  %11300 = vmatpush3.bf16.msra.mxu0 %v13372_v44  ;;  %v6855_v57 = vld [vmem:[#allocation2 + $0x26f] sm:$0xff]  ;;  %v13541_v44 = vpack.c.bf16 %v6703_v51, %v6702_v12  ;;  %v4606_v7 = vadd.f32 %v13421_v3, %v4452_v31 }
 0x29c   : > { %3506 = vrot.lane.b32.xlu1 %v9990_v49, %s11630_s12  ;;  %3504 = vrot.lane.b32.xlu0 %v9989_v4, %s11630_s12  ;;  %v4857_v40 = vpop.f32.mrf.mxu0  ;;  %v6868_v16 = vpack.c.bf16 %v6856_v50, %v6855_v57  ;;  %v6869_v49 = vpack.c.bf16 %v6858_v27, %v6857_v20  ;;  %v4761_v56 = vadd.f32 %v13411_v55, %v4607_v46  ;;  %v6707_v9 = vld [vmem:[#allocation2 + $0x128] sm:$0xff]  ;;  %v6708_v57 = vld [vmem:[#allocation2 + $0x130] sm:$0xff]  ;;  %v6709_v50 = vld [vmem:[#allocation2 + $0x138] sm:$0xff] }
 0x29d   : > { %v13538_v26 = vpop.f32.mrf.mxu1  ;;  %11318 = vmatpush3.bf16.msra.mxu1 %v13377_v60  ;;  %v4927_v15 = vmul.f32 %v13509_v48, %v4913_v18  ;;  %v4912_v42 = vadd.f32 %v4857_v40, %v4758_v41  ;;  %11269 = vmatprep.mubr.msk.bf16.mxu0 %vm493_vm0, %v13501_v8  ;;  %v9994_v51 = vpack.c.bf16 %v3467_v29, %v3467_v29  ;;  %v6859_v4 = vld [vmem:[#allocation2 + $0x28f] sm:$0xff]  ;;  %v14569_v20 = vld [vmem:[#allocation7_spill] sm:$0xff] }
 0x29e   : > { %11287 = vmatprep.mubr.msk.bf16.mxu1 %vm493_vm0, %v6867_v59  ;;  %v11052_v60 = vpop.f32.mrf.mxu0  ;;  %11335 = vmatprep.subr.bf16.mxu0 %v13520_v10  ;;  %v13555_v59 = vpack.c.bf16 %v6705_v24, %v6704_v39  ;;  %v4455_v14 = vadd.f32 %v13332_v11, %v4301_v17  ;;  %v9993_v55 = vpack.c.bf16 %v3466_v37, %v3466_v37  ;;  %v6860_v11 = vld [vmem:[#allocation2 + $0x297] sm:$0xff]  ;;  %v6862_v39 = vld [vmem:[#allocation2 + $0x2a7] sm:$0xff] }
 0x29f   : > { %v11070_v45 = vpop.f32.mrf.mxu1  ;;  %11353 = vmatprep.subr.bf16.mxu1 %v13525_v61  ;;  %v4941_v36 = vadd.f32 %v13535_v52, %v4927_v15  ;;  %v4926_v2 = vmul.f32 %v13509_v48, %v4912_v42  ;;  %v4760_v13 = vadd.f32 %v13423_v30, %v4606_v7  ;;  %v4454_v31 = vadd.f32 %v13344_v1, %v4300_v47  ;;  %v6861_v30 = vld [vmem:[#allocation2 + $0x29f] sm:$0xff]  ;;  %v14571_v37 = vld [vmem:[#allocation40_spill] sm:$0xff] }
 0x2a0   : > { %3510 = vrot.lane.b32.xlu1 %v9992_v32, %s11630_s12  ;;  %3508 = vrot.lane.b32.xlu0 %v9991_v34, %s11630_s12  ;;  %v4860_v63 = vpop.f32.mrf.mxu0  ;;  %v14568_v24 = vld [vmem:[#allocation38_spill] sm:$0xff]  ;;  %v14570_v1 = vld [vmem:[#allocation23_spill] sm:$0xff]  ;;  %v13590_v45 = vpack.c.bf16 %v6707_v9, %v6706_v6  ;;  %v6870_v34 = vpack.c.bf16 %v6860_v11, %v6859_v4  ;;  %v6871_v47 = vpack.c.bf16 %v6862_v39, %v6861_v30  ;;  %v14577_v30 = vld [vmem:[#allocation25_spill] sm:$0xff] }
 0x2a1   : > { %v5065_v5 = vpop.f32.mrf.mxu1  ;;  %v4949_v12 = vmax.f32 %v4941_v36, 0.0  ;;  %v4940_v3 = vadd.f32 %v13535_v52, %v4926_v2  ;;  %v4609_v15 = vadd.f32 %v14568_v24, %v4455_v14  ;;  %v4303_v27 = vadd.f32 %v14570_v1, %v14569_v20  ;;  %v14572_v63 = vld [vmem:[#allocation9_spill] sm:$0xff] }
 0x2a2   : > { %v11055_v21 = vpop.f32.mrf.mxu0  ;;  %11270 = vmatmul.mubr.msk.bf16.gmra.mxu0 %vm493_vm0, %v13541_v44  ;;  %v4608_v7 = vadd.f32 %v14571_v37, %v4454_v31  ;;  %v14573_v5 = vld [vmem:[#allocation14_spill] sm:$0xff]  ;;  %v6863_v31 = vld [vmem:[#allocation2 + $0x2af] sm:$0xff] }
 0x2a3   : > { %v13570_v25 = vpop.f32.mrf.mxu1  ;;  %11288 = vmatmul.mubr.msk.bf16.gmra.mxu1 %vm493_vm0, %v6868_v16  ;;  %v4957_v0 = vpack.c.bf16 %v4949_v12, %v4949_v12  ;;  %v4948_v41 = vmax.f32 %v4940_v3, 0.0  ;;  %v4915_v18 = vadd.f32 %v11055_v21, %v4761_v56  ;;  %11273 = vmatprep.mubr.msk.bf16.mxu0 %vm493_vm0, %v13555_v59  ;;  %v13592_v16 = vpack.c.bf16 %v6709_v50, %v6708_v57  ;;  %v14574_v3 = vld [vmem:[#allocation39_spill] sm:$0xff]  ;;  %v6711_v50 = vld [vmem:[#allocation2 + $0x148] sm:$0xff] }
 0x2a4   : > { %3514 = vrot.lane.b32.xlu1 %v9994_v51, %s11630_s12  ;;  %3512 = vrot.lane.b32.xlu0 %v9993_v55, %s11630_s12  ;;  %v4871_v46 = vpop.f32.mrf.mxu0  ;;  %v4763_v51 = vadd.f32 %v14574_v3, %v4609_v15  ;;  %v14575_v55 = vld [vmem:[#allocation24_spill] sm:$0xff] }
 0x2a5   : > { %v13581_v40 = vpop.f32.mrf.mxu1  ;;  %11291 = vmatprep.mubr.msk.bf16.mxu1 %vm493_vm0, %v6869_v49  ;;  %4965 = vst.msk [vmem:[%s13567_s26 + $0x4] sm:$0xf] %vm3524_vm1, %v4957_v0  ;;  %v4956_v42 = vpack.c.bf16 %v4948_v41, %v4948_v41  ;;  %v4929_v32 = vmul.f32 %v13509_v48, %v4915_v18  ;;  %v4914_v29 = vadd.f32 %v4871_v46, %v4760_v13  ;;  %v6710_v13 = vld [vmem:[#allocation2 + $0x140] sm:$0xff]  ;;  %v14576_v0 = vld [vmem:[#allocation41_spill] sm:$0xff] }
 0x2a6   : > { %v11056_v17 = vpop.f32.mrf.mxu0  ;;  %v4302_v49 = vadd.f32 %v14573_v5, %v14572_v63  ;;  %v4457_v6 = vadd.f32 %v14575_v55, %v4303_v27  ;;  %v4762_v41 = vadd.f32 %v14576_v0, %v4608_v7  ;;  %v6864_v46 = vld [vmem:[#allocation2 + $0x2b7] sm:$0xff] }
 0x2a7   : > { %v11074_v60 = vpop.f32.mrf.mxu1  ;;  %4964 = vst.msk [vmem:[%s13567_s26] sm:$0xf] %vm3524_vm1, %v4956_v42  ;;  %v4943_v36 = vadd.f32 %v13535_v52, %v4929_v32  ;;  %v4928_v2 = vmul.f32 %v13509_v48, %v4914_v29  ;;  %v7002_v42 = vld [vmem:[#allocation2 + $0x188] sm:$0xff]  ;;  %v7003_v32 = vld [vmem:[#allocation2 + $0x190] sm:$0xff]  ;;  %v6872_v37 = vpack.c.bf16 %v6864_v46, %v6863_v31  ;;  %v7004_v55 = vld [vmem:[#allocation2 + $0x198] sm:$0xff] }
 0x2a8   : > { %v4874_v56 = vpop.f32.mrf.mxu0  ;;  %v4456_v39 = vadd.f32 %v14577_v30, %v4302_v49  ;;  %v4611_v29 = vadd.f32 %v13472_v22, %v4457_v6  ;;  %v7018_v22 = vpack.c.bf16 %v7003_v32, %v7002_v42  ;;  %v7005_v6 = vld [vmem:[#allocation2 + $0x1a0] sm:$0xff] }
 0x2a9   : > { %v5079_v12 = vpop.f32.mrf.mxu1  ;;  %v4951_v14 = vmax.f32 %v4943_v36, 0.0  ;;  %v4942_v21 = vadd.f32 %v13535_v52, %v4928_v2  ;;  %v7019_v31 = vpack.c.bf16 %v7005_v6, %v7004_v55  ;;  %v14579_v32 = vld [vmem:[#allocation15_spill] sm:$0xff] }
 0x2aa   : > { %v11059_v9 = vpop.f32.mrf.mxu0  ;;  %11274 = vmatmul.mubr.msk.bf16.gmra.mxu0 %vm493_vm0, %v13590_v45  ;;  %v4610_v7 = vadd.f32 %v13487_v38, %v4456_v39  ;;  %v4765_v5 = vadd.f32 %v13474_v53, %v4611_v29  ;;  %v14578_v53 = vld [vmem:[#allocation6_spill] sm:$0xff]  ;;  %v5118_v29 = vadd.f32 %v13511_v23, %v14579_v32  ;;  %v14581_v23 = vld [vmem:[#allocation16_spill] sm:$0xff] }
 0x2ab   : > { %v13604_v4 = vpop.f32.mrf.mxu1  ;;  %11292 = vmatmul.mubr.msk.bf16.gmra.mxu1 %vm493_vm0, %v6870_v34  ;;  %v4959_v18 = vpack.c.bf16 %v4951_v14, %v4951_v14  ;;  %v4950_v11 = vmax.f32 %v4942_v21, 0.0  ;;  %v4917_v57 = vadd.f32 %v11059_v9, %v4763_v51  ;;  %11277 = vmatprep.mubr.msk.bf16.mxu0 %vm493_vm0, %v13592_v16  ;;  %v13620_v34 = vpack.c.bf16 %v6711_v50, %v6710_v13 }
 0x2ac   : > { %11295 = vmatprep.mubr.msk.bf16.mxu1 %vm493_vm0, %v6871_v47  ;;  %v4885_v24 = vpop.f32.mrf.mxu0  ;;  %v4764_v38 = vadd.f32 %v13489_v35, %v4610_v7  ;;  %v14580_v7 = vld [vmem:[#allocation8_spill] sm:$0xff] }
 0x2ad   : > { %v13614_v15 = vpop.f32.mrf.mxu1  ;;  %4967 = vst.msk [vmem:[%s13567_s26 + $0xc] sm:$0xf] %vm3524_vm1, %v4959_v18  ;;  %v4958_v20 = vpack.c.bf16 %v4950_v11, %v4950_v11  ;;  %v4931_v1 = vmul.f32 %v13509_v48, %v4917_v57  ;;  %v4916_v27 = vadd.f32 %v4885_v24, %v4762_v41  ;;  %v7006_v18 = vld [vmem:[#allocation2 + $0x1a8] sm:$0xff]  ;;  %v7007_v11 = vld [vmem:[#allocation2 + $0x1b0] sm:$0xff] }
 0x2ae   : > { %v11060_v17 = vpop.f32.mrf.mxu0  ;;  %v7020_v42 = vpack.c.bf16 %v7007_v11, %v7006_v18 }
 0x2af   : > { %v11078_v60 = vpop.f32.mrf.mxu1  ;;  %4966 = vst.msk [vmem:[%s13567_s26 + $0x8] sm:$0xf] %vm3524_vm1, %v4958_v20  ;;  %v4945_v36 = vadd.f32 %v13535_v52, %v4931_v1  ;;  %v4930_v2 = vmul.f32 %v13509_v48, %v4916_v27  ;;  %v13653_v27 = vld [vmem:[%s14451_s2 + $0x40] sm:$0xff]  }
 0x2b0   : > { %v4888_v47 = vpop.f32.mrf.mxu0  ;;  %v13658_v17 = vld [vmem:[%s14451_s2] sm:$0xff]  }
 0x2b1   : > { %v5093_v63 = vpop.f32.mrf.mxu1  ;;  %v4953_v49 = vmax.f32 %v4945_v36, 0.0  ;;  %v4944_v56 = vadd.f32 %v13535_v52, %v4930_v2  ;;  %v5117_v36 = vadd.f32 %v13538_v26, %v14581_v23 }
 0x2b2   : > { %v11063_v12 = vpop.f32.mrf.mxu0  ;;  %11278 = vmatmul.mubr.msk.bf16.gmra.mxu0 %vm493_vm0, %v13620_v34  ;;  %v7008_v63 = vld [vmem:[#allocation2 + $0x1b8] sm:$0xff] }
 0x2b3   : > { %v13629_v3 = vpop.f32.mrf.mxu1  ;;  %11296 = vmatmul.mubr.msk.bf16.gmra.mxu1 %vm493_vm0, %v6872_v37  ;;  %v4961_v51 = vpack.c.bf16 %v4953_v49, %v4953_v49  ;;  %v4952_v14 = vmax.f32 %v4944_v56, 0.0  ;;  %v4919_v21 = vadd.f32 %v11063_v12, %v4765_v5  ;;  %11301 = vmatprep.mubr.msk.bf16.mxu0 %vm493_vm0, %v7018_v22  ;;  %v7009_v5 = vld [vmem:[#allocation2 + $0x1c0] sm:$0xff]  ;;  %v14582_v12 = vld [vmem:[#allocation10_spill] sm:$0xff] }
 0x2b4   : > { %11319 = vmatprep.mubr.msk.bf16.mxu1 %vm493_vm0, %v14578_v53  ;;  %v4899_v9 = vpop.f32.mrf.mxu0  ;;  %v7021_v53 = vpack.c.bf16 %v7009_v5, %v7008_v63  ;;  %v5122_v63 = vadd.f32 %v13604_v4, %v13102_v58  ;;  %v7170_v4 = vld [vmem:[#allocation2 + $0x2b8] sm:$0xff] }
 0x2b5   : > { %v13638_v13 = vpop.f32.mrf.mxu1  ;;  %4969 = vst.msk [vmem:[%s13567_s26 + $0x14] sm:$0xf] %vm3524_vm1, %v4961_v51  ;;  %v4960_v0 = vpack.c.bf16 %v4952_v14, %v4952_v14  ;;  %v4933_v41 = vmul.f32 %v13509_v48, %v4919_v21  ;;  %v4918_v35 = vadd.f32 %v4899_v9, %v4764_v38  ;;  %v7010_v38 = vld [vmem:[#allocation2 + $0x1c8] sm:$0xff]  ;;  %v7011_v51 = vld [vmem:[#allocation2 + $0x1d0] sm:$0xff] }
 0x2b6   : > { %v11064_v57 = vpop.f32.mrf.mxu0  ;;  %v7022_v6 = vpack.c.bf16 %v7011_v51, %v7010_v38  ;;  %v5121_v38 = vadd.f32 %v13614_v15, %v13109_v19 }
 0x2b7   : > { %v11082_v50 = vpop.f32.mrf.mxu1  ;;  %4968 = vst.msk [vmem:[%s13567_s26 + $0x10] sm:$0xf] %vm3524_vm1, %v4960_v0  ;;  %v4947_v46 = vadd.f32 %v13535_v52, %v4933_v41  ;;  %v4932_v30 = vmul.f32 %v13509_v48, %v4918_v35  ;;  %v14583_v41 = vld [vmem:[#allocation17_spill] sm:$0xff]  ;;  %v14584_v57 = vld [vmem:[#allocation11_spill] sm:$0xff] }
 0x2b8   : > { %v4902_v39 = vpop.f32.mrf.mxu0  ;;  %v5120_v35 = vadd.f32 %v13570_v25, %v14583_v41  ;;  %v14585_v50 = vld [vmem:[#allocation18_spill] sm:$0xff] }
 0x2b9   : > { %v5107_v24 = vpop.f32.mrf.mxu1  ;;  %v4955_v20 = vmax.f32 %v4947_v46, 0.0  ;;  %v4946_v1 = vadd.f32 %v13535_v52, %v4932_v30  ;;  %v14586_v30 = vld [vmem:[#allocation12_spill] sm:$0xff]  ;;  %v7012_v39 = vld [vmem:[#allocation2 + $0x1d8] sm:$0xff] }
 0x2ba   : > { %v11087_v60 = vpop.f32.mrf.mxu0  ;;  %11302 = vmatmul.mubr.msk.bf16.vlgmr.msra.gmra.mxu0 %vm493_vm0, %v7019_v31  ;;  %v5119_v31 = vadd.f32 %v13581_v40, %v14585_v50  ;;  %v7013_v24 = vld [vmem:[#allocation2 + $0x1e0] sm:$0xff] }
 0x2bb   : > { %v11105_v37 = vpop.f32.mrf.mxu1  ;;  %11320 = vmatmul.mubr.msk.bf16.vlgmr.msra.gmra.mxu1 %vm493_vm0, %v14580_v7  ;;  %v4963_v2 = vpack.c.bf16 %v4955_v20, %v4955_v20  ;;  %v4954_v22 = vmax.f32 %v4946_v1, 0.0  ;;  %v5271_v47 = vadd.f32 %v11087_v60, %v5118_v29  ;;  %11336 = vmatpush3.bf16.msra.mxu0 %v13520_v10  ;;  %v7014_v29 = vld [vmem:[#allocation2 + $0x1e8] sm:$0xff]  ;;  %v7015_v20 = vld [vmem:[#allocation2 + $0x1f0] sm:$0xff] }
 0x2bc   : > { %11354 = vmatpush3.bf16.msra.mxu1 %v13525_v61  ;;  %v5215_v49 = vpop.f32.mrf.mxu0  ;;  %11305 = vmatprep.mubr.msk.bf16.mxu0 %vm493_vm0, %v7020_v42  ;;  %v7024_v40 = vpack.c.bf16 %v7015_v20, %v7014_v29  ;;  %v14590_v29 = vld [vmem:[#allocation27_spill] sm:$0xff] }
 0x2bd   : > { %v5368_v56 = vpop.f32.mrf.mxu1  ;;  %11323 = vmatprep.mubr.msk.bf16.mxu1 %vm493_vm0, %v14582_v12  ;;  %4971 = vst.msk [vmem:[%s13567_s26 + $0x1c] sm:$0xf] %vm3524_vm1, %v4963_v2  ;;  %v4962_v26 = vpack.c.bf16 %v4954_v22, %v4954_v22  ;;  %v13672_v14 = vadd.f32 %v11105_v37, %v5271_v47  ;;  %v5270_v10 = vadd.f32 %v5215_v49, %v5117_v36  ;;  %v7016_v12 = vld [vmem:[#allocation2 + $0x1f8] sm:$0xff] }
 0x2be   : > { %11371 = vmatprep.subr.bf16.mxu0 %v13653_v27  ;;  %11389 = vmatprep.subr.bf16.mxu1 %v13658_v17  ;;  %v11088_v61 = vpop.f32.mrf.mxu0  ;;  %v7023_v36 = vpack.c.bf16 %v7013_v24, %v7012_v39  ;;  %v5123_v24 = vadd.f32 %v13638_v13, %v13133_v43  ;;  %v13725_v13 = vld [vmem:[%s14451_s2 + $0x8] sm:$0xff]  }
 0x2bf   : > { %v11106_v21 = vpop.f32.mrf.mxu1  ;;  %4970 = vst.msk [vmem:[%s13567_s26 + $0x18] sm:$0xf] %vm3524_vm1, %v4962_v26  ;;  %v13678_v55 = vadd.f32 %v5368_v56, %v5270_v10  ;;  %v14587_v56 = vld [vmem:[#allocation13_spill] sm:$0xff]  ;;  %v14588_v26 = vld [vmem:[#allocation22_spill] sm:$0xff]  ;;  %v7017_v10 = vld [vmem:[#allocation2 + $0x200] sm:$0xff] }
 0x2c0   : > { %v5218_v9 = vpop.f32.mrf.mxu0  ;;  %v7169_v61 = vld [vmem:[#allocation2 + $0x2b0] sm:$0xff] }
 0x2c1   : > { %v5371_v0 = vpop.f32.mrf.mxu1 }
 0x2c2   : > { %v11091_v18 = vpop.f32.mrf.mxu0  ;;  %11306 = vmatmul.mubr.msk.bf16.gmra.mxu0 %vm493_vm0, %v7021_v53 }
 0x2c3   : > { %v11109_v11 = vpop.f32.mrf.mxu1  ;;  %11324 = vmatmul.mubr.msk.bf16.gmra.mxu1 %vm493_vm0, %v14584_v57  ;;  %v5273_v46 = vadd.f32 %v11091_v18, %v5120_v35  ;;  %11309 = vmatprep.mubr.msk.bf16.mxu0 %vm493_vm0, %v7022_v6  ;;  %v7025_v18 = vpack.c.bf16 %v7017_v10, %v7016_v12  ;;  %v14592_v12 = vld [vmem:[#allocation29_spill] sm:$0xff]  ;;  %v14594_v10 = vld [vmem:[#allocation31_spill] sm:$0xff] }
 0x2c4   : > { %11327 = vmatprep.mubr.msk.bf16.mxu1 %vm493_vm0, %v14586_v30  ;;  %v5229_v42 = vpop.f32.mrf.mxu0 }
 0x2c5   : > { %v5382_v25 = vpop.f32.mrf.mxu1  ;;  %v13690_v1 = vadd.f32 %v11109_v11, %v5273_v46  ;;  %v5272_v60 = vadd.f32 %v5229_v42, %v5119_v31  ;;  %v7178_v11 = vpack.c.bf16 %v7170_v4, %v7169_v61  ;;  %v5124_v46 = vadd.f32 %v13629_v3, %v13126_v62 }
 0x2c6   : > { %v11092_v37 = vpop.f32.mrf.mxu0 }
 0x2c7   : > { %v11110_v7 = vpop.f32.mrf.mxu1  ;;  %v13692_v2 = vadd.f32 %v5382_v25, %v5272_v60  ;;  %v14589_v25 = vld [vmem:[#allocation26_spill] sm:$0xff] }
 0x2c8   : > { %v5232_v22 = vpop.f32.mrf.mxu0 }
 0x2c9   : > { %v5385_v47 = vpop.f32.mrf.mxu1 }
 0x2ca   : > { %v11095_v5 = vpop.f32.mrf.mxu0  ;;  %11310 = vmatmul.mubr.msk.bf16.gmra.mxu0 %vm493_vm0, %v7023_v36 }
 0x2cb   : > { %v11113_v49 = vpop.f32.mrf.mxu1  ;;  %11328 = vmatmul.mubr.msk.bf16.gmra.mxu1 %vm493_vm0, %v14587_v56  ;;  %v5275_v51 = vadd.f32 %v11095_v5, %v5122_v63  ;;  %11313 = vmatprep.mubr.msk.bf16.mxu0 %vm493_vm0, %v7024_v40  ;;  %v13730_v63 = vld [vmem:[%s14451_s2 + $0x10] sm:$0xff]   ;;  %v14591_v56 = vld [vmem:[#allocation28_spill] sm:$0xff] }
 0x2cc   : > { %11331 = vmatprep.mubr.msk.bf16.mxu1 %vm493_vm0, %v14588_v26  ;;  %v5243_v21 = vpop.f32.mrf.mxu0  ;;  %v14593_v26 = vld [vmem:[#allocation30_spill] sm:$0xff] }
 0x2cd   : > { %v5396_v53 = vpop.f32.mrf.mxu1  ;;  %v13704_v6 = vadd.f32 %v11113_v49, %v5275_v51  ;;  %v5274_v9 = vadd.f32 %v5243_v21, %v5121_v38 }
 0x2ce   : > { %v11096_v0 = vpop.f32.mrf.mxu0 }
 0x2cf   : > { %v11114_v35 = vpop.f32.mrf.mxu1  ;;  %v13706_v57 = vadd.f32 %v5396_v53, %v5274_v9  ;;  %v14595_v9 = vld [vmem:[#allocation32_spill] sm:$0xff]  ;;  %v14596_v0 = vld [vmem:[#allocation33_spill] sm:$0xff] }
 0x2d0   : > { %v5246_v15 = vpop.f32.mrf.mxu0  ;;  %v14597_v35 = vld [vmem:[#allocation34_spill] sm:$0xff] }
 0x2d1   : > { %v5399_v31 = vpop.f32.mrf.mxu1 }
 0x2d2   : > { %v11099_v30 = vpop.f32.mrf.mxu0  ;;  %11314 = vmatmul.mubr.msk.bf16.gmra.mxu0 %vm493_vm0, %v7025_v18  ;;  %v14598_v18 = vld [vmem:[#allocation35_spill] sm:$0xff] }
 0x2d3   : > { %v11117_v39 = vpop.f32.mrf.mxu1  ;;  %11332 = vmatmul.mubr.msk.bf16.gmra.mxu1 %vm493_vm0, %v7178_v11  ;;  %v5277_v42 = vadd.f32 %v11099_v30, %v5124_v46  ;;  %11337 = vmatprep.mubr.msk.bf16.mxu0 %vm493_vm0, %v14589_v25  ;;  %v14599_v25 = vld [vmem:[#allocation36_spill] sm:$0xff] }
 0x2d4   : > { %11355 = vmatprep.mubr.msk.bf16.mxu1 %vm493_vm0, %v14590_v29  ;;  %v5257_v20 = vpop.f32.mrf.mxu0  ;;  %v14600_v29 = vld [vmem:[#allocation37_spill] sm:$0xff] }
 0x2d5   : > { %v5410_v60 = vpop.f32.mrf.mxu1  ;;  %v13718_v37 = vadd.f32 %v11117_v39, %v5277_v42  ;;  %v5276_v3 = vadd.f32 %v5257_v20, %v5123_v24  ;;  %v7322_v20 = vld [vmem:[#allocation2 + $0x14f] sm:$0xff] }
 0x2d6   : > { %v11100_v7 = vpop.f32.mrf.mxu0 }
 0x2d7   : > { %v11118_v36 = vpop.f32.mrf.mxu1  ;;  %v13720_v40 = vadd.f32 %v5410_v60, %v5276_v3  ;;  %v7323_v60 = vld [vmem:[#allocation2 + $0x157] sm:$0xff]  ;;  %v7476_v7 = vld [vmem:[#allocation2 + $0xa0] sm:$0xff] }
 0x2d8   : > { %v5260_v22 = vpop.f32.mrf.mxu0  ;;  %v7475_v3 = vld [vmem:[#allocation2 + $0x98] sm:$0xff] }
 0x2d9   : > { %v5413_v47 = vpop.f32.mrf.mxu1 }
 0x2da   : > { %v13732_v5 = vpop.f32.mrf.mxu0  ;;  %11338 = vmatmul.mubr.msk.bf16.vlgmr.msra.gmra.mxu0 %vm493_vm0, %v14591_v56  ;;  %v7808_v47 = vld [vmem:[#allocation2 + $0x18] sm:$0xff]  ;;  %v7809_v56 = vld [vmem:[#allocation2 + $0x20] sm:$0xff] }
 0x2db   : > { %v13734_v49 = vpop.f32.mrf.mxu1  ;;  %11356 = vmatmul.mubr.msk.bf16.vlgmr.msra.gmra.mxu1 %vm493_vm0, %v14592_v12  ;;  %11372 = vmatpush3.bf16.msra.mxu0 %v13653_v27 }
 0x2dc   : > { %11390 = vmatpush3.bf16.msra.mxu1 %v13658_v17  ;;  %v13742_v38 = vpop.f32.mrf.mxu0  ;;  %11341 = vmatprep.mubr.msk.bf16.mxu0 %vm493_vm0, %v14593_v26 }
 0x2dd   : > { %v13744_v51 = vpop.f32.mrf.mxu1  ;;  %11359 = vmatprep.mubr.msk.bf16.mxu1 %vm493_vm0, %v14594_v10  ;;  %11407 = vmatprep.subr.bf16.mxu0 %v13725_v13  ;;  %v7331_v10 = vpack.c.bf16 %v7323_v60, %v7322_v20  ;;  %v5576_v19 = vadd.f32 %v13742_v38, %v13678_v55  ;;  %v8116_v55 = vld [vmem:[#allocation2 + $0x29] sm:$0xff]  ;;  %v8117_v38 = vld [vmem:[#allocation2 + $0x31] sm:$0xff] }
 0x2de   : > { %11425 = vmatprep.subr.bf16.mxu1 %v13730_v63  ;;  %v11124_v61 = vpop.f32.mrf.mxu0 }
 0x2df   : > { %v11142_v4 = vpop.f32.mrf.mxu1  ;;  %v7484_v61 = vpack.c.bf16 %v7476_v7, %v7475_v3  ;;  %v13809_v3 = vld [vmem:[%s14451_s2 + $0x20] sm:$0xff]  }
 0x2e0   : > { %v5524_v21 = vpop.f32.mrf.mxu0  ;;  %v7824_v4 = vpack.c.bf16 %v7809_v56, %v7808_v47  ;;  %v7814_v56 = vld [vmem:[#allocation2 + $0x48] sm:$0xff] }
 0x2e1   : > { %v5677_v27 = vpop.f32.mrf.mxu1 }
 0x2e2   : > { %v13752_v53 = vpop.f32.mrf.mxu0  ;;  %11342 = vmatmul.mubr.msk.bf16.gmra.mxu0 %vm493_vm0, %v14595_v9 }
 0x2e3   : > { %v13754_v17 = vpop.f32.mrf.mxu1  ;;  %11360 = vmatmul.mubr.msk.bf16.gmra.mxu1 %vm493_vm0, %v14596_v0  ;;  %11345 = vmatprep.mubr.msk.bf16.mxu0 %vm493_vm0, %v14597_v35  ;;  %v7811_v0 = vld [vmem:[#allocation2 + $0x30] sm:$0xff] }
 0x2e4   : > { %11363 = vmatprep.mubr.msk.bf16.mxu1 %vm493_vm0, %v14598_v18  ;;  %v13764_v11 = vpop.f32.mrf.mxu0 }
 0x2e5   : > { %v13766_v15 = vpop.f32.mrf.mxu1 }
 0x2e6   : > { %v11128_v31 = vpop.f32.mrf.mxu0 }
 0x2e7   : > { %v11146_v46 = vpop.f32.mrf.mxu1  ;;  %v7812_v31 = vld [vmem:[#allocation2 + $0x38] sm:$0xff] }
 0x2e8   : > { %v5538_v30 = vpop.f32.mrf.mxu0  ;;  %v7813_v46 = vld [vmem:[#allocation2 + $0x40] sm:$0xff] }
 0x2e9   : > { %v5691_v39 = vpop.f32.mrf.mxu1  ;;  %v13799_v60 = vpack.c.bf16 %v7813_v46, %v7812_v31  ;;  %v7818_v31 = vld [vmem:[#allocation2 + $0x68] sm:$0xff]  ;;  %v7819_v46 = vld [vmem:[#allocation2 + $0x70] sm:$0xff] }
 0x2ea   : > { %v13768_v24 = vpop.f32.mrf.mxu0  ;;  %11346 = vmatmul.mubr.msk.bf16.gmra.mxu0 %vm493_vm0, %v14599_v25 }
 0x2eb   : > { %v13770_v42 = vpop.f32.mrf.mxu1  ;;  %11364 = vmatmul.mubr.msk.bf16.gmra.mxu1 %vm493_vm0, %v14600_v29  ;;  %11349 = vmatprep.mubr.msk.bf16.mxu0 %vm493_vm0, %v13457_v28  ;;  %14602 = vst [vmem:[#allocation7_spill] sm:$0xff] %v13799_v60 }
 0x2ec   : > { %11367 = vmatprep.mubr.msk.bf16.mxu1 %vm493_vm0, %v13459_v54  ;;  %v13780_v36 = vpop.f32.mrf.mxu0  ;;  %v7810_v54 = vld [vmem:[#allocation2 + $0x28] sm:$0xff] }
 0x2ed   : > { %v13782_v22 = vpop.f32.mrf.mxu1  ;;  %v13797_v25 = vpack.c.bf16 %v7811_v0, %v7810_v54 }
 0x2ee   : > { %v11132_v12 = vpop.f32.mrf.mxu0 }
 0x2ef   : > { %v11150_v26 = vpop.f32.mrf.mxu1  ;;  %14601 = vst [vmem:[#allocation38_spill] sm:$0xff] %v13797_v25  ;;  %v7815_v12 = vld [vmem:[#allocation2 + $0x50] sm:$0xff] }
 0x2f0   : > { %v5552_v21 = vpop.f32.mrf.mxu0 }
 0x2f1   : > { %v5705_v27 = vpop.f32.mrf.mxu1 }
 0x2f2   : > { %v13784_v28 = vpop.f32.mrf.mxu0  ;;  %11350 = vmatmul.mubr.msk.bf16.gmra.mxu0 %vm493_vm0, %v7331_v10 }
 0x2f3   : > { %v13786_v9 = vpop.f32.mrf.mxu1  ;;  %11368 = vmatmul.mubr.msk.bf16.gmra.mxu1 %vm493_vm0, %v7484_v61  ;;  %11373 = vmatprep.mubr.msk.bf16.mxu0 %vm493_vm0, %v13469_v33  ;;  %v13804_v33 = vld [vmem:[%s14451_s2 + $0x18] sm:$0xff]   ;;  %v7817_v61 = vld [vmem:[#allocation2 + $0x60] sm:$0xff] }
 0x2f4   : > { %11391 = vmatprep.mubr.msk.bf16.mxu1 %vm493_vm0, %v7824_v4  ;;  %v13793_v35 = vpop.f32.mrf.mxu0  ;;  %v13831_v4 = vpack.c.bf16 %v7815_v12, %v7814_v56 }
 0x2f5   : > { %v13795_v18 = vpop.f32.mrf.mxu1 }
 0x2f6   : > { %v11136_v30 = vpop.f32.mrf.mxu0  ;;  %14603 = vst [vmem:[#allocation23_spill] sm:$0xff] %v13831_v4 }
 0x2f7   : > { %v11154_v39 = vpop.f32.mrf.mxu1 }
 0x2f8   : > { %v5566_v29 = vpop.f32.mrf.mxu0 }
 0x2f9   : > { %v5719_v20 = vpop.f32.mrf.mxu1  ;;  %v7820_v29 = vld [vmem:[#allocation2 + $0x78] sm:$0xff] }
 0x2fa   : > { %v13811_v7 = vpop.f32.mrf.mxu0  ;;  %11374 = vmatmul.mubr.msk.bf16.vlgmr.msra.gmra.mxu0 %vm493_vm0, %v13501_v8  ;;  %v7816_v8 = vld [vmem:[#allocation2 + $0x58] sm:$0xff]  ;;  %v7821_v20 = vld [vmem:[#allocation2 + $0x80] sm:$0xff] }
 0x2fb   : > { %v13813_v47 = vpop.f32.mrf.mxu1  ;;  %11392 = vmatmul.mubr.msk.bf16.vlgmr.msra.gmra.mxu1 %vm493_vm0, %v13797_v25  ;;  %11408 = vmatpush3.bf16.msra.mxu0 %v13725_v13  ;;  %v13833_v21 = vpack.c.bf16 %v7817_v61, %v7816_v8 }
 0x2fc   : > { %11426 = vmatpush3.bf16.msra.mxu1 %v13730_v63  ;;  %v13821_v26 = vpop.f32.mrf.mxu0  ;;  %11377 = vmatprep.mubr.msk.bf16.mxu0 %vm493_vm0, %v13541_v44 }
 0x2fd   : > { %v13823_v10 = vpop.f32.mrf.mxu1  ;;  %11395 = vmatprep.mubr.msk.bf16.mxu1 %vm493_vm0, %v13799_v60  ;;  %11443 = vmatprep.subr.bf16.mxu0 %v13804_v33  ;;  %14604 = vst [vmem:[#allocation40_spill] sm:$0xff] %v13833_v21 }
 0x2fe   : > { %11461 = vmatprep.subr.bf16.mxu1 %v13809_v3  ;;  %v11160_v13 = vpop.f32.mrf.mxu0 }
 0x2ff   : > { %v11178_v63 = vpop.f32.mrf.mxu1 }
 0x300   : > { %v5830_v27 = vpop.f32.mrf.mxu0 }
 0x301   : > { %v5983_v54 = vpop.f32.mrf.mxu1 }
 0x302   : > { %v13835_v0 = vpop.f32.mrf.mxu0  ;;  %11378 = vmatmul.mubr.msk.bf16.gmra.mxu0 %vm493_vm0, %v13555_v59  ;;  %v13851_v59 = vpack.c.bf16 %v7819_v46, %v7818_v31  ;;  %v7628_v31 = vld [vmem:[#allocation2 + $0x150] sm:$0xff]  ;;  %v7629_v46 = vld [vmem:[#allocation2 + $0x158] sm:$0xff] }
 0x303   : > { %v13837_v44 = vpop.f32.mrf.mxu1  ;;  %11396 = vmatmul.mubr.msk.bf16.gmra.mxu1 %vm493_vm0, %v13831_v4  ;;  %11381 = vmatprep.mubr.msk.bf16.mxu0 %vm493_vm0, %v13590_v45  ;;  %v13860_v45 = vpack.c.bf16 %v7821_v20, %v7820_v29  ;;  %v7822_v29 = vld [vmem:[#allocation2 + $0x88] sm:$0xff]  ;;  %v7823_v20 = vld [vmem:[#allocation2 + $0x90] sm:$0xff] }
 0x304   : > { %11399 = vmatprep.mubr.msk.bf16.mxu1 %vm493_vm0, %v13833_v21  ;;  %v13847_v30 = vpop.f32.mrf.mxu0  ;;  %14605 = vst [vmem:[#allocation9_spill] sm:$0xff] %v13851_v59  ;;  %v7637_v21 = vpack.c.bf16 %v7629_v46, %v7628_v31  ;;  %v13884_v4 = vpack.c.bf16 %v7823_v20, %v7822_v29  ;;  %v7966_v20 = vld [vmem:[#allocation2 + $0xf8] sm:$0xff] }
 0x305   : > { %v13849_v39 = vpop.f32.mrf.mxu1  ;;  %14606 = vst [vmem:[#allocation14_spill] sm:$0xff] %v13860_v45 }
 0x306   : > { %v11164_v56 = vpop.f32.mrf.mxu0 }
 0x307   : > { %v11182_v12 = vpop.f32.mrf.mxu1  ;;  %v7961_v56 = vld [vmem:[#allocation2 + $0xd0] sm:$0xff] }
 0x308   : > { %v5844_v8 = vpop.f32.mrf.mxu0 }
 0x309   : > { %v5997_v61 = vpop.f32.mrf.mxu1  ;;  %v3503_v13 = vpop.permute.xlu1 %3502 }
 0x30a   : > { %v3501_v63 = vpop.permute.xlu0 %3500  ;;  %3526 = vst.msk [vmem:[%s13858_s24 + $0x4] sm:$0xf] %vm3524_vm1, %v3503_v13  ;;  %v13866_v27 = vpop.f32.mrf.mxu0  ;;  %11382 = vmatmul.mubr.msk.bf16.gmra.mxu0 %vm493_vm0, %v13592_v16  ;;  %v7962_v16 = vld [vmem:[#allocation2 + $0xd8] sm:$0xff]  ;;  %v8115_v13 = vld [vmem:[#allocation2 + $0x21] sm:$0xff] }
 0x30b   : > { %3525 = vst.msk [vmem:[%s13858_s24] sm:$0xf] %vm3524_vm1, %v3501_v63  ;;  %v13868_v54 = vpop.f32.mrf.mxu1  ;;  %11400 = vmatmul.mubr.msk.bf16.gmra.mxu1 %vm493_vm0, %v13851_v59  ;;  %11385 = vmatprep.mubr.msk.bf16.mxu0 %vm493_vm0, %v13620_v34  ;;  %v8114_v61 = vld [vmem:[#allocation2 + $0x19] sm:$0xff]  ;;  %v7977_v43 = vpack.c.bf16 %v7962_v16, %v7961_v56  ;;  %v8119_v16 = vld [vmem:[#allocation2 + $0x41] sm:$0xff] }
 0x30c   : > { %11403 = vmatprep.mubr.msk.bf16.mxu1 %vm493_vm0, %v13860_v45  ;;  %v13878_v12 = vpop.f32.mrf.mxu0  ;;  %v5577_v45 = vadd.f32 %v13732_v5, %v13672_v14  ;;  %v8130_v25 = vpack.c.bf16 %v8115_v13, %v8114_v61  ;;  %v7963_v14 = vld [vmem:[#allocation2 + $0xe0] sm:$0xff]  ;;  %v13916_v13 = vpack.c.bf16 %v8117_v38, %v8116_v55 }
 0x30d   : > { %v13880_v8 = vpop.f32.mrf.mxu1  ;;  %v8118_v56 = vld [vmem:[#allocation2 + $0x39] sm:$0xff] }
 0x30e   : > { %v3507_v63 = vpop.permute.xlu1 %3506  ;;  %v3505_v59 = vpop.permute.xlu0 %3504  ;;  %v5730_v5 = vadd.f32 %v13734_v49, %v5577_v45 }
 0x30f   : > { %3528 = vst.msk [vmem:[%s13858_s24 + $0xc] sm:$0xf] %vm3524_vm1, %v3507_v63  ;;  %v11168_v34 = vpop.f32.mrf.mxu0  ;;  %3527 = vst.msk [vmem:[%s13858_s24 + $0x8] sm:$0xf] %vm3524_vm1, %v3505_v59  ;;  %v11186_v60 = vpop.f32.mrf.mxu1  ;;  %v5729_v59 = vadd.f32 %v13744_v51, %v5576_v19 }
 0x310   : > { %v5883_v49 = vadd.f32 %v13811_v7, %v5730_v5  ;;  %v5579_v34 = vadd.f32 %v13752_v53, %v13690_v1  ;;  %v5578_v7 = vadd.f32 %v13764_v11, %v13692_v2  ;;  %v13927_v5 = vpack.c.bf16 %v8119_v16, %v8118_v56  ;;  %v13933_v1 = vld [vmem:[%s14451_s2 + $0x28] sm:$0xff]   ;;  %v13938_v53 = vld [vmem:[%s14451_s2 + $0x30] sm:$0xff]   ;;  %v7967_v2 = vld [vmem:[#allocation2 + $0x100] sm:$0xff] }
 0x311   : > { %v5858_v62 = vpop.f32.mrf.mxu0  ;;  %v6011_v58 = vpop.f32.mrf.mxu1  ;;  %v5882_v19 = vadd.f32 %v13821_v26, %v5729_v59  ;;  %v7968_v11 = vld [vmem:[#allocation2 + $0x108] sm:$0xff] }
 0x312   : > { %v3511_v63 = vpop.permute.xlu1 %3510  ;;  %v3509_v31 = vpop.permute.xlu0 %3508  ;;  %11386 = vmatmul.mubr.msk.bf16.gmra.mxu0 %vm493_vm0, %v7637_v21  ;;  %v7964_v58 = vld [vmem:[#allocation2 + $0xe8] sm:$0xff]  ;;  %v7965_v21 = vld [vmem:[#allocation2 + $0xf0] sm:$0xff]  ;;  %v5732_v55 = vadd.f32 %v13754_v17, %v5579_v34  ;;  %v5731_v56 = vadd.f32 %v13766_v15, %v5578_v7  ;;  %v8122_v17 = vld [vmem:[#allocation2 + $0x59] sm:$0xff]  ;;  %v5581_v15 = vadd.f32 %v13768_v24, %v13704_v6 }
 0x313   : > { %3530 = vst.msk [vmem:[%s13858_s24 + $0x14] sm:$0xf] %vm3524_vm1, %v3511_v63  ;;  %v13894_v46 = vpop.f32.mrf.mxu0  ;;  %11404 = vmatmul.mubr.msk.bf16.gmra.mxu1 %vm493_vm0, %v13884_v4  ;;  %3529 = vst.msk [vmem:[%s13858_s24 + $0x10] sm:$0xf] %vm3524_vm1, %v3509_v31  ;;  %v13902_v62 = vpop.f32.mrf.mxu1  ;;  %11409 = vmatprep.mubr.msk.bf16.mxu0 %vm493_vm0, %v7977_v43  ;;  %v13914_v61 = vpack.c.bf16 %v7964_v58, %v7963_v14  ;;  %v13925_v31 = vpack.c.bf16 %v7966_v20, %v7965_v21  ;;  %v7970_v20 = vld [vmem:[#allocation2 + $0x118] sm:$0xff] }
 0x314   : > { %11427 = vmatprep.mubr.msk.bf16.mxu1 %vm493_vm0, %v8130_v25  ;;  %v6036_v14 = vadd.f32 %v13813_v47, %v5883_v49  ;;  %v8120_v47 = vld [vmem:[#allocation2 + $0x49] sm:$0xff]  ;;  %v6035_v38 = vadd.f32 %v13823_v10, %v5882_v19  ;;  %v8121_v49 = vld [vmem:[#allocation2 + $0x51] sm:$0xff]  ;;  %v8123_v10 = vld [vmem:[#allocation2 + $0x61] sm:$0xff]  ;;  %v13958_v19 = vpack.c.bf16 %v7968_v11, %v7967_v2 }
 0x315   : > { %v13906_v60 = vpop.f32.mrf.mxu0  ;;  %v13910_v45 = vpop.f32.mrf.mxu1 }
 0x316   : > { %v3515_v29 = vpop.permute.xlu1 %3514  ;;  %v3513_v43 = vpop.permute.xlu0 %3512 }
 0x317   : > { %3532 = vst.msk [vmem:[%s13858_s24 + $0x1c] sm:$0xf] %vm3524_vm1, %v3515_v29  ;;  %v11172_v25 = vpop.f32.mrf.mxu0  ;;  %3531 = vst.msk [vmem:[%s13858_s24 + $0x18] sm:$0xf] %vm3524_vm1, %v3513_v43  ;;  %v11190_v51 = vpop.f32.mrf.mxu1  ;;  %v7969_v29 = vld [vmem:[#allocation2 + $0x110] sm:$0xff]  ;;  %v5885_v43 = vadd.f32 %v13835_v0, %v5732_v55  ;;  %v5580_v55 = vadd.f32 %v13780_v36, %v13706_v57 }
 0x318   : > { %v13960_v51 = vpack.c.bf16 %v8121_v49, %v8120_v47  ;;  %v13962_v7 = vpack.c.bf16 %v7970_v20, %v7969_v29  ;;  %v7971_v47 = vld [vmem:[#allocation2 + $0x120] sm:$0xff]  ;;  %v8124_v57 = vld [vmem:[#allocation2 + $0x69] sm:$0xff]  ;;  %v8125_v36 = vld [vmem:[#allocation2 + $0x71] sm:$0xff] }
 0x319   : > { %v5872_v63 = vpop.f32.mrf.mxu0  ;;  %v6025_v58 = vpop.f32.mrf.mxu1  ;;  %v6038_v6 = vadd.f32 %v13837_v44, %v5885_v43  ;;  %v7973_v49 = vld [vmem:[#allocation2 + $0x130] sm:$0xff] }
 0x31a   : > { %11410 = vmatmul.mubr.msk.bf16.vlgmr.msra.gmra.mxu0 %vm493_vm0, %v13914_v61  ;;  %v5884_v63 = vadd.f32 %v13847_v30, %v5731_v56  ;;  %v5734_v30 = vadd.f32 %v13770_v42, %v5581_v15  ;;  %v7974_v42 = vld [vmem:[#allocation2 + $0x138] sm:$0xff] }
 0x31b   : > { %v11195_v26 = vpop.f32.mrf.mxu0  ;;  %11428 = vmatmul.mubr.msk.bf16.vlgmr.msra.gmra.mxu1 %vm493_vm0, %v13916_v13  ;;  %v11213_v59 = vpop.f32.mrf.mxu1  ;;  %11444 = vmatpush3.bf16.msra.mxu0 %v13804_v33 }
 0x31c   : > { %v6189_v21 = vadd.f32 %v11195_v26, %v6036_v14  ;;  %11462 = vmatpush3.bf16.msra.mxu1 %v13809_v3  ;;  %11413 = vmatprep.mubr.msk.bf16.mxu0 %vm493_vm0, %v13925_v31  ;;  %v13966_v26 = vpack.c.bf16 %v8123_v10, %v8122_v17  ;;  %v6037_v44 = vadd.f32 %v13849_v39, %v5884_v63  ;;  %v8127_v17 = vld [vmem:[#allocation2 + $0x81] sm:$0xff] }
 0x31d   : > { %v6133_v16 = vpop.f32.mrf.mxu0  ;;  %11431 = vmatprep.mubr.msk.bf16.mxu1 %vm493_vm0, %v13927_v5  ;;  %v6286_v34 = vpop.f32.mrf.mxu1  ;;  %11479 = vmatprep.subr.bf16.mxu0 %v13933_v1  ;;  %v5733_v10 = vadd.f32 %v13782_v22, %v5580_v55  ;;  %v5887_v43 = vadd.f32 %v13866_v27, %v5734_v30  ;;  %v5583_v63 = vadd.f32 %v13784_v28, %v13718_v37 }
 0x31e   : > { %v6342_v25 = vadd.f32 %v11213_v59, %v6189_v21  ;;  %v6188_v33 = vadd.f32 %v6133_v16, %v6035_v38  ;;  %11497 = vmatprep.subr.bf16.mxu1 %v13938_v53  ;;  %v7972_v21 = vld [vmem:[#allocation2 + $0x128] sm:$0xff]  ;;  %v8126_v16 = vld [vmem:[#allocation2 + $0x79] sm:$0xff] }
 0x31f   : > { %v11196_v3 = vpop.f32.mrf.mxu0  ;;  %v11214_v58 = vpop.f32.mrf.mxu1  ;;  %v13994_v22 = vpack.c.bf16 %v8127_v17, %v8126_v16  ;;  %v5886_v27 = vadd.f32 %v13878_v12, %v5733_v10  ;;  %v14013_v12 = vld [vmem:[%s14455_s6] ss:$0 sm:$0xff]  ;;  %v8421_v16 = vld [vmem:[#allocation2 + $0x248] sm:$0xff] }
 0x320   : > { %v6350_v0 = vmul.f32 %v13509_v48, %v6342_v25  ;;  %v6341_v14 = vadd.f32 %v6286_v34, %v6188_v33  ;;  %v13986_v25 = vpack.c.bf16 %v7972_v21, %v7971_v47  ;;  %v13992_v58 = vpack.c.bf16 %v7974_v42, %v7973_v49  ;;  %v8267_v49 = vld [vmem:[#allocation2 + $0x188] sm:$0xff]  ;;  %v8420_v42 = vld [vmem:[#allocation2 + $0x240] sm:$0xff] }
 0x321   : > { %v6136_v38 = vpop.f32.mrf.mxu0  ;;  %v6289_v11 = vpop.f32.mrf.mxu1 }
 0x322   : > { %v6358_v24 = vadd.f32 %v13535_v52, %v6350_v0  ;;  %v6349_v2 = vmul.f32 %v13509_v48, %v6341_v14  ;;  %11414 = vmatmul.mubr.msk.bf16.gmra.mxu0 %vm493_vm0, %v13958_v19  ;;  %v13990_v14 = vpack.c.bf16 %v8125_v36, %v8124_v57  ;;  %v14002_v38 = vld [vmem:[%s14454_s5] ss:$0 sm:$0xff]  ;;  %v6040_v11 = vadd.f32 %v13868_v54, %v5887_v43  ;;  %v7976_v57 = vld [vmem:[#allocation2 + $0x148] sm:$0xff]  ;;  %v8129_v54 = vld [vmem:[#allocation2 + $0x91] sm:$0xff] }
 0x323   : > { %v11199_v59 = vpop.f32.mrf.mxu0  ;;  %11432 = vmatmul.mubr.msk.bf16.gmra.mxu1 %vm493_vm0, %v13960_v51  ;;  %v11217_v56 = vpop.f32.mrf.mxu1  ;;  %11417 = vmatprep.mubr.msk.bf16.mxu0 %vm493_vm0, %v13962_v7  ;;  %v5736_v36 = vadd.f32 %v13786_v9, %v5583_v63  ;;  %v8268_v9 = vld [vmem:[#allocation2 + $0x190] sm:$0xff] }
 0x324   : > { %v6366_v29 = vmax.f32 %v6358_v24, 0.0  ;;  %v6357_v48 = vadd.f32 %v13535_v52, %v6349_v2  ;;  %v6191_v20 = vadd.f32 %v11199_v59, %v6038_v6  ;;  %11435 = vmatprep.mubr.msk.bf16.mxu1 %vm493_vm0, %v13966_v26  ;;  %v5582_v24 = vadd.f32 %v13793_v35, %v13720_v40  ;;  %v7975_v59 = vld [vmem:[#allocation2 + $0x140] sm:$0xff]  ;;  %v8128_v35 = vld [vmem:[#allocation2 + $0x89] sm:$0xff] }
 0x325   : > { %v6147_v39 = vpop.f32.mrf.mxu0  ;;  %v6300_v3 = vpop.f32.mrf.mxu1  ;;  %v5889_v10 = vadd.f32 %v13894_v46, %v5736_v36  ;;  %v14032_v63 = vpack.c.bf16 %v8129_v54, %v8128_v35  ;;  %v8422_v35 = vld [vmem:[#allocation2 + $0x250] sm:$0xff]  ;;  %v8423_v54 = vld [vmem:[#allocation2 + $0x258] sm:$0xff] }
 0x326   : > { %v6374_v52 = vpack.c.bf16 %v6366_v29, %v6366_v29  ;;  %v6365_v33 = vmax.f32 %v6357_v48, 0.0  ;;  %v6344_v34 = vadd.f32 %v11217_v56, %v6191_v20  ;;  %v6190_v15 = vadd.f32 %v6147_v39, %v6037_v44 }
 0x327   : > { %v11200_v0 = vpop.f32.mrf.mxu0  ;;  %v11218_v28 = vpop.f32.mrf.mxu1  ;;  %v6039_v44 = vadd.f32 %v13880_v8, %v5886_v27  ;;  %v5735_v17 = vadd.f32 %v13795_v18, %v5582_v24  ;;  %v8436_v27 = vpack.c.bf16 %v8421_v16, %v8420_v42  ;;  %v6042_v24 = vadd.f32 %v13902_v62, %v5889_v10  ;;  %v8424_v42 = vld [vmem:[#allocation2 + $0x260] sm:$0xff]  ;;  %v8425_v16 = vld [vmem:[#allocation2 + $0x268] sm:$0xff] }
 0x328   : > { %9764 = vst.msk [vmem:[%s13567_s26 + $0x24] sm:$0xf] %vm3524_vm1, %v6374_v52  ;;  %v6373_v55 = vpack.c.bf16 %v6365_v33, %v6365_v33  ;;  %v6352_v6 = vmul.f32 %v14002_v38, %v6344_v34  ;;  %v6343_v37 = vadd.f32 %v6300_v3, %v6190_v15  ;;  %v14030_v3 = vpack.c.bf16 %v7976_v57, %v7975_v59 }
 0x329   : > { %v6150_v2 = vpop.f32.mrf.mxu0  ;;  %v6303_v30 = vpop.f32.mrf.mxu1  ;;  %v8283_v0 = vpack.c.bf16 %v8268_v9, %v8267_v49  ;;  %v8272_v9 = vld [vmem:[#allocation2 + $0x1b0] sm:$0xff] }
 0x32a   : > { %9763 = vst.msk [vmem:[%s13567_s26 + $0x20] sm:$0xf] %vm3524_vm1, %v6373_v55  ;;  %v6360_v47 = vadd.f32 %v14013_v12, %v6352_v6  ;;  %v6351_v21 = vmul.f32 %v14002_v38, %v6343_v37  ;;  %11418 = vmatmul.mubr.msk.bf16.gmra.mxu0 %vm493_vm0, %v13986_v25  ;;  %v5888_v55 = vadd.f32 %v13906_v60, %v5735_v17  ;;  %v8269_v60 = vld [vmem:[#allocation2 + $0x198] sm:$0xff] }
 0x32b   : > { %v11203_v40 = vpop.f32.mrf.mxu0  ;;  %11436 = vmatmul.mubr.msk.bf16.gmra.mxu1 %vm493_vm0, %v13990_v14  ;;  %v11221_v56 = vpop.f32.mrf.mxu1  ;;  %11421 = vmatprep.mubr.msk.bf16.mxu0 %vm493_vm0, %v13992_v58 }
 0x32c   : > { %v6368_v29 = vmax.f32 %v6360_v47, 0.0  ;;  %v6359_v48 = vadd.f32 %v14013_v12, %v6351_v21  ;;  %v6193_v20 = vadd.f32 %v11203_v40, %v6040_v11  ;;  %11439 = vmatprep.mubr.msk.bf16.mxu1 %vm493_vm0, %v13994_v22  ;;  %v6041_v30 = vadd.f32 %v13910_v45, %v5888_v55  ;;  %v8270_v40 = vld [vmem:[#allocation2 + $0x1a0] sm:$0xff] }
 0x32d   : > { %v6161_v8 = vpop.f32.mrf.mxu0  ;;  %v6314_v34 = vpop.f32.mrf.mxu1  ;;  %v8284_v10 = vpack.c.bf16 %v8270_v40, %v8269_v60  ;;  %v8426_v60 = vld [vmem:[#allocation2 + $0x270] sm:$0xff]  ;;  %v8429_v40 = vld [vmem:[#allocation2 + $0x288] sm:$0xff] }
 0x32e   : > { %v6376_v43 = vpack.c.bf16 %v6368_v29, %v6368_v29  ;;  %v6367_v39 = vmax.f32 %v6359_v48, 0.0  ;;  %v6346_v52 = vadd.f32 %v11221_v56, %v6193_v20  ;;  %v6192_v33 = vadd.f32 %v6161_v8, %v6039_v44  ;;  %v8271_v44 = vld [vmem:[#allocation2 + $0x1a8] sm:$0xff] }
 0x32f   : > { %v11204_v15 = vpop.f32.mrf.mxu0  ;;  %v11222_v37 = vpop.f32.mrf.mxu1  ;;  %v8437_v8 = vpack.c.bf16 %v8423_v54, %v8422_v35 }
 0x330   : > { %9766 = vst.msk [vmem:[%s13567_s26 + $0x2c] sm:$0xf] %vm3524_vm1, %v6376_v43  ;;  %v6375_v18 = vpack.c.bf16 %v6367_v39, %v6367_v39  ;;  %v6354_v46 = vmul.f32 %v14002_v38, %v6346_v52  ;;  %v6345_v6 = vadd.f32 %v6314_v34, %v6192_v33  ;;  %v8285_v15 = vpack.c.bf16 %v8272_v9, %v8271_v44 }
 0x331   : > { %v6164_v28 = vpop.f32.mrf.mxu0  ;;  %v6317_v47 = vpop.f32.mrf.mxu1 }
 0x332   : > { %9765 = vst.msk [vmem:[%s13567_s26 + $0x28] sm:$0xf] %vm3524_vm1, %v6375_v18  ;;  %v6362_v2 = vadd.f32 %v14013_v12, %v6354_v46  ;;  %v6353_v11 = vmul.f32 %v14002_v38, %v6345_v6  ;;  %11422 = vmatmul.mubr.msk.bf16.gmra.mxu0 %vm493_vm0, %v14030_v3  ;;  %v14061_v46 = vld [vmem:[%s14451_s2 + $0x38] sm:$0xff]   ;;  %v14066_v6 = vld [vmem:[%s14451_s2 + $0x40] sm:$0xff]  }
 0x333   : > { %v11207_v21 = vpop.f32.mrf.mxu0  ;;  %11440 = vmatmul.mubr.msk.bf16.gmra.mxu1 %vm493_vm0, %v14032_v63  ;;  %v11225_v36 = vpop.f32.mrf.mxu1  ;;  %11445 = vmatprep.mubr.msk.bf16.mxu0 %vm493_vm0, %v8283_v0  ;;  %v8438_v0 = vpack.c.bf16 %v8425_v16, %v8424_v42  ;;  %v8273_v28 = vld [vmem:[#allocation2 + $0x1b8] sm:$0xff] }
 0x334   : > { %v6370_v59 = vmax.f32 %v6362_v2, 0.0  ;;  %v6361_v62 = vadd.f32 %v14013_v12, %v6353_v11  ;;  %v6195_v57 = vadd.f32 %v11207_v21, %v6042_v24  ;;  %11463 = vmatprep.mubr.msk.bf16.mxu1 %vm493_vm0, %v8436_v27  ;;  %v8274_v24 = vld [vmem:[#allocation2 + $0x1c0] sm:$0xff] }
 0x335   : > { %v6175_v49 = vpop.f32.mrf.mxu0  ;;  %v6328_v45 = vpop.f32.mrf.mxu1 }
 0x336   : > { %v6378_v29 = vpack.c.bf16 %v6370_v59, %v6370_v59  ;;  %v6369_v48 = vmax.f32 %v6361_v62, 0.0  ;;  %v6348_v20 = vadd.f32 %v11225_v36, %v6195_v57  ;;  %v6194_v56 = vadd.f32 %v6175_v49, %v6041_v30  ;;  %v8427_v30 = vld [vmem:[#allocation2 + $0x278] sm:$0xff]  ;;  %v8275_v59 = vld [vmem:[#allocation2 + $0x1c8] sm:$0xff]  ;;  %v8276_v57 = vld [vmem:[#allocation2 + $0x1d0] sm:$0xff] }
 0x337   : > { %v11208_v17 = vpop.f32.mrf.mxu0  ;;  %v11226_v33 = vpop.f32.mrf.mxu1  ;;  %v8428_v36 = vld [vmem:[#allocation2 + $0x280] sm:$0xff]  ;;  %v8287_v9 = vpack.c.bf16 %v8276_v57, %v8275_v59 }
 0x338   : > { %9768 = vst.msk [vmem:[%s13567_s26 + $0x34] sm:$0xf] %vm3524_vm1, %v6378_v29  ;;  %v6377_v43 = vpack.c.bf16 %v6369_v48, %v6369_v48  ;;  %v6356_v39 = vmul.f32 %v14002_v38, %v6348_v20  ;;  %v6347_v52 = vadd.f32 %v6328_v45, %v6194_v56  ;;  %v8286_v29 = vpack.c.bf16 %v8274_v24, %v8273_v28  ;;  %v8430_v33 = vld [vmem:[#allocation2 + $0x290] sm:$0xff] }
 0x339   : > { %v6178_v34 = vpop.f32.mrf.mxu0  ;;  %v6331_v18 = vpop.f32.mrf.mxu1  ;;  %v8439_v48 = vpack.c.bf16 %v8427_v30, %v8426_v60  ;;  %v8440_v42 = vpack.c.bf16 %v8429_v40, %v8428_v36  ;;  %v8281_v40 = vld [vmem:[#allocation2 + $0x1f8] sm:$0xff] }
 0x33a   : > { %9767 = vst.msk [vmem:[%s13567_s26 + $0x30] sm:$0xf] %vm3524_vm1, %v6377_v43  ;;  %v6364_v27 = vadd.f32 %v14013_v12, %v6356_v39  ;;  %v6355_v55 = vmul.f32 %v14002_v38, %v6347_v52  ;;  %11446 = vmatmul.mubr.msk.bf16.vlgmr.msra.gmra.mxu0 %vm493_vm0, %v8284_v10  ;;  %v8278_v43 = vld [vmem:[#allocation2 + $0x1e0] sm:$0xff]  ;;  %v8431_v34 = vld [vmem:[#allocation2 + $0x298] sm:$0xff]  ;;  %v8433_v18 = vld [vmem:[#allocation2 + $0x2a8] sm:$0xff] }
 0x33b   : > { %v11231_v37 = vpop.f32.mrf.mxu0  ;;  %11464 = vmatmul.mubr.msk.bf16.vlgmr.msra.gmra.mxu1 %vm493_vm0, %v8437_v8  ;;  %v11249_v21 = vpop.f32.mrf.mxu1  ;;  %11480 = vmatpush3.bf16.msra.mxu0 %v13933_v1  ;;  %v8277_v8 = vld [vmem:[#allocation2 + $0x1d8] sm:$0xff] }
 0x33c   : > { %v6372_v2 = vmax.f32 %v6364_v27, 0.0  ;;  %v6363_v11 = vadd.f32 %v14013_v12, %v6355_v55  ;;  %v6536_v47 = vadd.f32 %v11231_v37, %v14579_v32  ;;  %11498 = vmatpush3.bf16.msra.mxu1 %v13938_v53  ;;  %11449 = vmatprep.mubr.msk.bf16.mxu0 %vm493_vm0, %v8285_v15  ;;  %v8279_v15 = vld [vmem:[#allocation2 + $0x1e8] sm:$0xff]  ;;  %v8280_v27 = vld [vmem:[#allocation2 + $0x1f0] sm:$0xff]  ;;  %v8432_v55 = vld [vmem:[#allocation2 + $0x2a0] sm:$0xff] }
 0x33d   : > { %v6480_v62 = vpop.f32.mrf.mxu0  ;;  %11467 = vmatprep.mubr.msk.bf16.mxu1 %vm493_vm0, %v8438_v0  ;;  %v6633_v53 = vpop.f32.mrf.mxu1  ;;  %11515 = vmatprep.subr.bf16.mxu0 %v14061_v46  ;;  %v8289_v30 = vpack.c.bf16 %v8280_v27, %v8279_v15  ;;  %v8442_v59 = vpack.c.bf16 %v8433_v18, %v8432_v55  ;;  %v14609_v27 = vld [vmem:[#allocation21_spill] sm:$0xff] }
 0x33e   : > { %v6380_v35 = vpack.c.bf16 %v6372_v2, %v6372_v2  ;;  %v6371_v54 = vmax.f32 %v6363_v11, 0.0  ;;  %v14076_v49 = vadd.f32 %v11249_v21, %v6536_v47  ;;  %v6535_v1 = vadd.f32 %v6480_v62, %v14581_v23  ;;  %11533 = vmatprep.subr.bf16.mxu1 %v14066_v6 }
 0x33f   : > { %v11232_v44 = vpop.f32.mrf.mxu0  ;;  %v11250_v45 = vpop.f32.mrf.mxu1  ;;  %v8288_v11 = vpack.c.bf16 %v8278_v43, %v8277_v8  ;;  %v8441_v47 = vpack.c.bf16 %v8431_v34, %v8430_v33 }
 0x340   : > { %9770 = vst.msk [vmem:[%s13567_s26 + $0x3c] sm:$0xf] %vm3524_vm1, %v6380_v35  ;;  %v6379_v20 = vpack.c.bf16 %v6371_v54, %v6371_v54  ;;  %v14083_v56 = vadd.f32 %v6633_v53, %v6535_v1  ;;  %v14607_v35 = vld [vmem:[#allocation19_spill] sm:$0xff]  ;;  %v8434_v44 = vld [vmem:[#allocation2 + $0x2b0] sm:$0xff] }
 0x341   : > { %v6483_v16 = vpop.f32.mrf.mxu0  ;;  %v6636_v17 = vpop.f32.mrf.mxu1  ;;  %v8282_v53 = vld [vmem:[#allocation2 + $0x200] sm:$0xff]  ;;  %v8574_v45 = vld [vmem:[#allocation2 + $0x191] sm:$0xff] }
 0x342   : > { %9769 = vst.msk [vmem:[%s13567_s26 + $0x38] sm:$0xf] %vm3524_vm1, %v6379_v20  ;;  %11450 = vmatmul.mubr.msk.bf16.gmra.mxu0 %vm493_vm0, %v8286_v29  ;;  %v8435_v29 = vld [vmem:[#allocation2 + $0x2b8] sm:$0xff]  ;;  %v8573_v20 = vld [vmem:[#allocation2 + $0x189] sm:$0xff]  ;;  %v8290_v8 = vpack.c.bf16 %v8282_v53, %v8281_v40 }
 0x343   : > { %v11235_v10 = vpop.f32.mrf.mxu0  ;;  %11468 = vmatmul.mubr.msk.bf16.gmra.mxu1 %vm493_vm0, %v8439_v48  ;;  %v11253_v52 = vpop.f32.mrf.mxu1  ;;  %11453 = vmatprep.mubr.msk.bf16.mxu0 %vm493_vm0, %v8287_v9  ;;  %v8443_v43 = vpack.c.bf16 %v8435_v29, %v8434_v44  ;;  %v8589_v33 = vpack.c.bf16 %v8574_v45, %v8573_v20  ;;  %v14612_v20 = vld [vmem:[#allocation7_spill] sm:$0xff] }
 0x344   : > { %v6538_v39 = vadd.f32 %v11235_v10, %v14583_v41  ;;  %11471 = vmatprep.mubr.msk.bf16.mxu1 %vm493_vm0, %v8440_v42  ;;  %v14608_v42 = vld [vmem:[#allocation20_spill] sm:$0xff] }
 0x345   : > { %v6494_v0 = vpop.f32.mrf.mxu0  ;;  %v6647_v24 = vpop.f32.mrf.mxu1 }
 0x346   : > { %v14092_v37 = vadd.f32 %v11253_v52, %v6538_v39  ;;  %v6537_v28 = vadd.f32 %v6494_v0, %v14585_v50 }
 0x347   : > { %v11236_v2 = vpop.f32.mrf.mxu0  ;;  %v11254_v60 = vpop.f32.mrf.mxu1 }
 0x348   : > { %v14095_v21 = vadd.f32 %v6647_v24, %v6537_v28  ;;  %v14610_v28 = vld [vmem:[#allocation38_spill] sm:$0xff]  ;;  %v8576_v2 = vld [vmem:[#allocation2 + $0x1a1] sm:$0xff]  ;;  %v14611_v60 = vld [vmem:[#allocation5_spill] sm:$0xff] }
 0x349   : > { %v6497_v62 = vpop.f32.mrf.mxu0  ;;  %v6650_v57 = vpop.f32.mrf.mxu1  ;;  %v8575_v24 = vld [vmem:[#allocation2 + $0x199] sm:$0xff] }
 0x34a   : > { %11454 = vmatmul.mubr.msk.bf16.gmra.mxu0 %vm493_vm0, %v8288_v11  ;;  %v8577_v62 = vld [vmem:[#allocation2 + $0x1a9] sm:$0xff]  ;;  %v8578_v57 = vld [vmem:[#allocation2 + $0x1b1] sm:$0xff]  ;;  %v8590_v40 = vpack.c.bf16 %v8576_v2, %v8575_v24 }
 0x34b   : > { %v11239_v36 = vpop.f32.mrf.mxu0  ;;  %11472 = vmatmul.mubr.msk.bf16.gmra.mxu1 %vm493_vm0, %v8441_v47  ;;  %v11257_v1 = vpop.f32.mrf.mxu1  ;;  %11457 = vmatprep.mubr.msk.bf16.mxu0 %vm493_vm0, %v8289_v30  ;;  %v8591_v44 = vpack.c.bf16 %v8578_v57, %v8577_v62  ;;  %v8583_v62 = vld [vmem:[#allocation2 + $0x1d9] sm:$0xff]  ;;  %v8584_v57 = vld [vmem:[#allocation2 + $0x1e1] sm:$0xff] }
 0x34c   : > { %v6540_v54 = vadd.f32 %v11239_v36, %v14607_v35  ;;  %11475 = vmatprep.mubr.msk.bf16.mxu1 %vm493_vm0, %v8442_v59 }
 0x34d   : > { %v6508_v48 = vpop.f32.mrf.mxu0  ;;  %v6661_v17 = vpop.f32.mrf.mxu1 }
 0x34e   : > { %v14102_v9 = vadd.f32 %v11257_v1, %v6540_v54  ;;  %v6539_v16 = vadd.f32 %v6508_v48, %v14608_v42 }
 0x34f   : > { %v11240_v10 = vpop.f32.mrf.mxu0  ;;  %v11258_v52 = vpop.f32.mrf.mxu1 }
 0x350   : > { %v14105_v39 = vadd.f32 %v6661_v17, %v6539_v16  ;;  %v8579_v17 = vld [vmem:[#allocation2 + $0x1b9] sm:$0xff]  ;;  %v8580_v10 = vld [vmem:[#allocation2 + $0x1c1] sm:$0xff]  ;;  %v8581_v52 = vld [vmem:[#allocation2 + $0x1c9] sm:$0xff] }
 0x351   : > { %v6511_v34 = vpop.f32.mrf.mxu0  ;;  %v6664_v15 = vpop.f32.mrf.mxu1 }
 0x352   : > { %11458 = vmatmul.mubr.msk.bf16.gmra.mxu0 %vm493_vm0, %v8290_v8 }
 0x353   : > { %v11243_v0 = vpop.f32.mrf.mxu0  ;;  %11476 = vmatmul.mubr.msk.bf16.gmra.mxu1 %vm493_vm0, %v8443_v43  ;;  %v11261_v18 = vpop.f32.mrf.mxu1  ;;  %11481 = vmatprep.mubr.msk.bf16.mxu0 %vm493_vm0, %v8589_v33  ;;  %v14613_v43 = vld [vmem:[#allocation23_spill] sm:$0xff]  ;;  %v8582_v33 = vld [vmem:[#allocation2 + $0x1d1] sm:$0xff] }
 0x354   : > { %v6542_v55 = vadd.f32 %v11243_v0, %v14609_v27  ;;  %11499 = vmatprep.mubr.msk.bf16.mxu1 %vm493_vm0, %v14610_v28 }
 0x355   : > { %v6522_v11 = vpop.f32.mrf.mxu0  ;;  %v6675_v59 = vpop.f32.mrf.mxu1 }
 0x356   : > { %v14113_v47 = vadd.f32 %v11261_v18, %v6542_v55  ;;  %v6541_v30 = vadd.f32 %v6522_v11, %v14611_v60  ;;  %v8592_v55 = vpack.c.bf16 %v8580_v10, %v8579_v17  ;;  %v8593_v18 = vpack.c.bf16 %v8582_v33, %v8581_v52  ;;  %v14614_v11 = vld [vmem:[#allocation40_spill] sm:$0xff]  ;;  %v8587_v52 = vld [vmem:[#allocation2 + $0x1f9] sm:$0xff] }
 0x357   : > { %v11244_v36 = vpop.f32.mrf.mxu0  ;;  %v11262_v1 = vpop.f32.mrf.mxu1 }
 0x358   : > { %v14116_v54 = vadd.f32 %v6675_v59, %v6541_v30  ;;  %v8586_v1 = vld [vmem:[#allocation2 + $0x1f1] sm:$0xff] }
 0x359   : > { %v6525_v53 = vpop.f32.mrf.mxu0  ;;  %v6678_v29 = vpop.f32.mrf.mxu1 }
 0x35a   : > { %11482 = vmatmul.mubr.msk.bf16.vlgmr.msra.gmra.mxu0 %vm493_vm0, %v8590_v40  ;;  %v8585_v40 = vld [vmem:[#allocation2 + $0x1e9] sm:$0xff] }
 0x35b   : > { %v11267_v48 = vpop.f32.mrf.mxu0  ;;  %11500 = vmatmul.mubr.msk.bf16.vlgmr.msra.gmra.mxu1 %vm493_vm0, %v14612_v20  ;;  %v11285_v16 = vpop.f32.mrf.mxu1  ;;  %11516 = vmatpush3.bf16.msra.mxu0 %v14061_v46  ;;  %v8594_v20 = vpack.c.bf16 %v8584_v57, %v8583_v62 }
 0x35c   : > { %v6842_v45 = vadd.f32 %v11267_v48, %v14076_v49  ;;  %11534 = vmatpush3.bf16.msra.mxu1 %v14066_v6  ;;  %11485 = vmatprep.mubr.msk.bf16.mxu0 %vm493_vm0, %v8591_v44 }
 0x35d   : > { %v6786_v8 = vpop.f32.mrf.mxu0  ;;  %11503 = vmatprep.mubr.msk.bf16.mxu1 %vm493_vm0, %v14613_v43  ;;  %v6939_v49 = vpop.f32.mrf.mxu1  ;;  %v14616_v43 = vld [vmem:[#allocation14_spill] sm:$0xff] }
 0x35e   : > { %v14127_v34 = vadd.f32 %v11285_v16, %v6842_v45  ;;  %v6841_v15 = vadd.f32 %v6786_v8, %v14083_v56  ;;  %v14615_v56 = vld [vmem:[#allocation9_spill] sm:$0xff]  ;;  %v8595_v16 = vpack.c.bf16 %v8586_v1, %v8585_v40 }
 0x35f   : > { %v11268_v0 = vpop.f32.mrf.mxu0  ;;  %v11286_v6 = vpop.f32.mrf.mxu1 }
 0x360   : > { %v14130_v46 = vadd.f32 %v6939_v49, %v6841_v15  ;;  %v8740_v49 = vld [vmem:[#allocation2 + $0x98] sm:$0xff]  ;;  %v8741_v0 = vld [vmem:[#allocation2 + $0xa0] sm:$0xff] }
 0x361   : > { %v6789_v28 = vpop.f32.mrf.mxu0  ;;  %v6942_v24 = vpop.f32.mrf.mxu1 }
 0x362   : > { %11486 = vmatmul.mubr.msk.bf16.gmra.mxu0 %vm493_vm0, %v8592_v55 }
 0x363   : > { %v11271_v2 = vpop.f32.mrf.mxu0  ;;  %11504 = vmatmul.mubr.msk.bf16.gmra.mxu1 %vm493_vm0, %v14614_v11  ;;  %v11289_v59 = vpop.f32.mrf.mxu1  ;;  %11489 = vmatprep.mubr.msk.bf16.mxu0 %vm493_vm0, %v8593_v18  ;;  %v8749_v11 = vpack.c.bf16 %v8741_v0, %v8740_v49  ;;  %v9047_v49 = vld [vmem:[#allocation2 + $0xa1] sm:$0xff] }
 0x364   : > { %v6844_v30 = vadd.f32 %v11271_v2, %v14092_v37  ;;  %11507 = vmatprep.mubr.msk.bf16.mxu1 %vm493_vm0, %v14615_v56 }
 0x365   : > { %v6800_v36 = vpop.f32.mrf.mxu0  ;;  %v6953_v29 = vpop.f32.mrf.mxu1 }
 0x366   : > { %v14139_v53 = vadd.f32 %v11289_v59, %v6844_v30  ;;  %v6843_v44 = vadd.f32 %v6800_v36, %v14095_v21  ;;  %v8588_v21 = vld [vmem:[#allocation2 + $0x201] sm:$0xff] }
 0x367   : > { %v11272_v48 = vpop.f32.mrf.mxu0  ;;  %v11290_v37 = vpop.f32.mrf.mxu1  ;;  %v8596_v2 = vpack.c.bf16 %v8588_v21, %v8587_v52  ;;  %v9046_v21 = vld [vmem:[#allocation2 + $0x99] sm:$0xff] }
 0x368   : > { %v14142_v45 = vadd.f32 %v6953_v29, %v6843_v44 }
 0x369   : > { %v6803_v17 = vpop.f32.mrf.mxu0  ;;  %v6956_v10 = vpop.f32.mrf.mxu1 }
 0x36a   : > { %11490 = vmatmul.mubr.msk.bf16.gmra.mxu0 %vm493_vm0, %v8594_v20 }
 0x36b   : > { %v11275_v8 = vpop.f32.mrf.mxu0  ;;  %11508 = vmatmul.mubr.msk.bf16.gmra.mxu1 %vm493_vm0, %v14616_v43  ;;  %v11293_v15 = vpop.f32.mrf.mxu1  ;;  %11493 = vmatprep.mubr.msk.bf16.mxu0 %vm493_vm0, %v8595_v16 }
 0x36c   : > { %v6846_v33 = vadd.f32 %v11275_v8, %v14102_v9  ;;  %11511 = vmatprep.mubr.msk.bf16.mxu1 %vm493_vm0, %v13884_v4 }
 0x36d   : > { %v6814_v55 = vpop.f32.mrf.mxu0  ;;  %v6967_v28 = vpop.f32.mrf.mxu1 }
 0x36e   : > { %v14151_v6 = vadd.f32 %v11293_v15, %v6846_v33  ;;  %v6845_v18 = vadd.f32 %v6814_v55, %v14105_v39 }
 0x36f   : > { %v11276_v24 = vpop.f32.mrf.mxu0  ;;  %v11294_v9 = vpop.f32.mrf.mxu1 }
 0x370   : > { %v14154_v30 = vadd.f32 %v6967_v28, %v6845_v18  ;;  %v9055_v28 = vpack.c.bf16 %v9047_v49, %v9046_v21 }
 0x371   : > { %v6817_v59 = vpop.f32.mrf.mxu0  ;;  %v6970_v56 = vpop.f32.mrf.mxu1 }
 0x372   : > { %11494 = vmatmul.mubr.msk.bf16.gmra.mxu0 %vm493_vm0, %v8596_v2 }
 0x373   : > { %v11279_v62 = vpop.f32.mrf.mxu0  ;;  %11512 = vmatmul.mubr.msk.bf16.gmra.mxu1 %vm493_vm0, %v8749_v11  ;;  %v11297_v57 = vpop.f32.mrf.mxu1  ;;  %11517 = vmatprep.mubr.msk.bf16.mxu0 %vm493_vm0, %v13914_v61 }
 0x374   : > { %v6848_v4 = vadd.f32 %v11279_v62, %v14113_v47  ;;  %11535 = vmatprep.mubr.msk.bf16.mxu1 %vm493_vm0, %v13916_v13 }
 0x375   : > { %v6828_v39 = vpop.f32.mrf.mxu0  ;;  %v6981_v1 = vpop.f32.mrf.mxu1 }
 0x376   : > { %v14163_v36 = vadd.f32 %v11297_v57, %v6848_v4  ;;  %v6847_v40 = vadd.f32 %v6828_v39, %v14116_v54 }
 0x377   : > { %v11280_v44 = vpop.f32.mrf.mxu0  ;;  %v11298_v48 = vpop.f32.mrf.mxu1 }
 0x378   : > { %v14166_v29 = vadd.f32 %v6981_v1, %v6847_v40 }
 0x379   : > { %v6831_v20 = vpop.f32.mrf.mxu0  ;;  %v6984_v37 = vpop.f32.mrf.mxu1 }
 0x37a   : > { %11518 = vmatmul.mubr.msk.bf16.vlgmr.msra.gmra.mxu0 %vm493_vm0, %v13925_v31 }
 0x37b   : > { %v14168_v47 = vpop.f32.mrf.mxu0  ;;  %11536 = vmatmul.mubr.msk.bf16.vlgmr.msra.gmra.mxu1 %vm493_vm0, %v13927_v5  ;;  %v14174_v61 = vpop.f32.mrf.mxu1  ;;  %11521 = vmatprep.mubr.msk.bf16.mxu0 %vm493_vm0, %v13958_v19 }
 0x37c   : > { %11539 = vmatprep.mubr.msk.bf16.mxu1 %vm493_vm0, %v13960_v51 }
 0x37d   : > { %v14180_v13 = vpop.f32.mrf.mxu0  ;;  %v14182_v54 = vpop.f32.mrf.mxu1 }
 0x37f   : > { %v11304_v16 = vpop.f32.mrf.mxu0  ;;  %v11322_v17 = vpop.f32.mrf.mxu1 }
 0x381   : > { %v7095_v10 = vpop.f32.mrf.mxu0  ;;  %v7248_v8 = vpop.f32.mrf.mxu1 }
 0x382   : > { %11522 = vmatmul.mubr.msk.bf16.gmra.mxu0 %vm493_vm0, %v13962_v7 }
 0x383   : > { %v14184_v31 = vpop.f32.mrf.mxu0  ;;  %11540 = vmatmul.mubr.msk.bf16.gmra.mxu1 %vm493_vm0, %v13966_v26  ;;  %v14190_v5 = vpop.f32.mrf.mxu1  ;;  %11525 = vmatprep.mubr.msk.bf16.mxu0 %vm493_vm0, %v13986_v25  ;;  %v8893_v26 = vld [vmem:[#allocation2 + $0x150] sm:$0xff] }
 0x384   : > { %11543 = vmatprep.mubr.msk.bf16.mxu1 %vm493_vm0, %v13990_v14  ;;  %v8894_v14 = vld [vmem:[#allocation2 + $0x158] sm:$0xff] }
 0x385   : > { %v14196_v19 = vpop.f32.mrf.mxu0  ;;  %v14198_v51 = vpop.f32.mrf.mxu1  ;;  %v8902_v18 = vpack.c.bf16 %v8894_v14, %v8893_v26 }
 0x387   : > { %v11308_v43 = vpop.f32.mrf.mxu0  ;;  %v11326_v52 = vpop.f32.mrf.mxu1 }
 0x389   : > { %v7109_v33 = vpop.f32.mrf.mxu0  ;;  %v7262_v15 = vpop.f32.mrf.mxu1 }
 0x38a   : > { %11526 = vmatmul.mubr.msk.bf16.gmra.mxu0 %vm493_vm0, %v13992_v58 }
 0x38b   : > { %v14200_v7 = vpop.f32.mrf.mxu0  ;;  %11544 = vmatmul.mubr.msk.bf16.gmra.mxu1 %vm493_vm0, %v13994_v22  ;;  %v14206_v25 = vpop.f32.mrf.mxu1  ;;  %11529 = vmatprep.mubr.msk.bf16.mxu0 %vm493_vm0, %v14030_v3 }
 0x38c   : > { %11547 = vmatprep.mubr.msk.bf16.mxu1 %vm493_vm0, %v14032_v63 }
 0x38d   : > { %v14212_v0 = vpop.f32.mrf.mxu0  ;;  %v14214_v55 = vpop.f32.mrf.mxu1 }
 0x38f   : > { %v11312_v58 = vpop.f32.mrf.mxu0  ;;  %v11330_v22 = vpop.f32.mrf.mxu1 }
 0x391   : > { %v7123_v24 = vpop.f32.mrf.mxu0  ;;  %v7276_v2 = vpop.f32.mrf.mxu1 }
 0x392   : > { %11530 = vmatmul.mubr.msk.bf16.gmra.mxu0 %vm493_vm0, %v8902_v18  ;;  %v7148_v18 = vadd.f32 %v14168_v47, %v14127_v34  ;;  %v7147_v24 = vadd.f32 %v14180_v13, %v14130_v46  ;;  %v7150_v47 = vadd.f32 %v14184_v31, %v14139_v53 }
 0x393   : > { %v14216_v11 = vpop.f32.mrf.mxu0  ;;  %11548 = vmatmul.mubr.msk.bf16.gmra.mxu1 %vm493_vm0, %v9055_v28  ;;  %v14220_v3 = vpop.f32.mrf.mxu1 }
 0x395   : > { %v14222_v63 = vpop.f32.mrf.mxu0  ;;  %v14224_v9 = vpop.f32.mrf.mxu1 }
 0x397   : > { %v11316_v59 = vpop.f32.mrf.mxu0  ;;  %v11334_v56 = vpop.f32.mrf.mxu1 }
 0x398   : > { %v7301_v56 = vadd.f32 %v14174_v61, %v7148_v18 }
 0x399   : > { %v7137_v62 = vpop.f32.mrf.mxu0  ;;  %v7290_v4 = vpop.f32.mrf.mxu1 }
 0x39b   : > { %v11339_v57 = vpop.f32.mrf.mxu0  ;;  %v11357_v39 = vpop.f32.mrf.mxu1 }
 0x39d   : > { %v7398_v40 = vpop.f32.mrf.mxu0  ;;  %v7551_v1 = vpop.f32.mrf.mxu1 }
 0x39f   : > { %v11340_v44 = vpop.f32.mrf.mxu0  ;;  %v11358_v48 = vpop.f32.mrf.mxu1 }
 0x3a0   : > { %v7300_v44 = vadd.f32 %v14182_v54, %v7147_v24  ;;  %v7454_v48 = vadd.f32 %v11339_v57, %v7301_v56 }
 0x3a1   : > { %v7401_v20 = vpop.f32.mrf.mxu0  ;;  %v7554_v37 = vpop.f32.mrf.mxu1 }
 0x3a2   : > { %v7453_v37 = vadd.f32 %v7398_v40, %v7300_v44  ;;  %v7607_v61 = vadd.f32 %v11357_v39, %v7454_v48 }
 0x3a3   : > { %v11343_v16 = vpop.f32.mrf.mxu0  ;;  %v11361_v17 = vpop.f32.mrf.mxu1 }
 0x3a5   : > { %v7412_v10 = vpop.f32.mrf.mxu0  ;;  %v7565_v8 = vpop.f32.mrf.mxu1 }
 0x3a7   : > { %v11344_v43 = vpop.f32.mrf.mxu0  ;;  %v11362_v52 = vpop.f32.mrf.mxu1 }
 0x3a8   : > { %v7149_v43 = vadd.f32 %v14196_v19, %v14142_v45  ;;  %v7152_v45 = vadd.f32 %v14200_v7, %v14151_v6 }
 0x3a9   : > { %v7415_v33 = vpop.f32.mrf.mxu0  ;;  %v7568_v15 = vpop.f32.mrf.mxu1 }
 0x3aa   : > { %v7303_v15 = vadd.f32 %v14190_v5, %v7150_v47 }
 0x3ab   : > { %v11347_v26 = vpop.f32.mrf.mxu0  ;;  %v14226_v14 = vpop.f32.mrf.mxu1 }
 0x3ad   : > { %v14228_v21 = vpop.f32.mrf.mxu0  ;;  %v14230_v49 = vpop.f32.mrf.mxu1 }
 0x3af   : > { %v11348_v58 = vpop.f32.mrf.mxu0  ;;  %v11366_v28 = vpop.f32.mrf.mxu1 }
 0x3b0   : > { %v7606_v58 = vadd.f32 %v7551_v1, %v7453_v37  ;;  %v7302_v28 = vadd.f32 %v14198_v51, %v7149_v43 }
 0x3b1   : > { %v7429_v22 = vpop.f32.mrf.mxu0  ;;  %v7582_v2 = vpop.f32.mrf.mxu1 }
 0x3b2   : > { %v7456_v22 = vadd.f32 %v11343_v16, %v7303_v15  ;;  %v7455_v39 = vadd.f32 %v7412_v10, %v7302_v28  ;;  %v7151_v2 = vadd.f32 %v14212_v0, %v14154_v30 }
 0x3b3   : > { %v14236_v59 = vpop.f32.mrf.mxu0  ;;  %v14239_v62 = vpop.f32.mrf.mxu1 }
 0x3b4   : > { %v7609_v16 = vadd.f32 %v11361_v17, %v7456_v22  ;;  %v7608_v7 = vadd.f32 %v7565_v8, %v7455_v39 }
 0x3b5   : > { %v14241_v4 = vpop.f32.mrf.mxu0  ;;  %v14244_v20 = vpop.f32.mrf.mxu1 }
 0x3b7   : > { %v11352_v34 = vpop.f32.mrf.mxu0  ;;  %v11370_v46 = vpop.f32.mrf.mxu1 }
 0x3b8   : > { %v7305_v34 = vadd.f32 %v14206_v25, %v7152_v45  ;;  %v7154_v25 = vadd.f32 %v14216_v11, %v14163_v36 }
 0x3b9   : > { %v7443_v13 = vpop.f32.mrf.mxu0  ;;  %v7596_v52 = vpop.f32.mrf.mxu1 }
 0x3ba   : > { %v7304_v13 = vadd.f32 %v14214_v55, %v7151_v2  ;;  %v7458_v0 = vadd.f32 %v11347_v26, %v7305_v34 }
 0x3bb   : > { %v11375_v33 = vpop.f32.mrf.mxu0  ;;  %v14251_v57 = vpop.f32.mrf.mxu1 }
 0x3bc   : > { %v7760_v54 = vadd.f32 %v11375_v33, %v7607_v61  ;;  %v7457_v33 = vadd.f32 %v14228_v21, %v7304_v13  ;;  %v7307_v21 = vadd.f32 %v14220_v3, %v7154_v25 }
 0x3bd   : > { %v7704_v18 = vpop.f32.mrf.mxu0  ;;  %v14255_v40 = vpop.f32.mrf.mxu1 }
 0x3be   : > { %v7768_v53 = vmul.f32 %v14002_v38, %v7760_v54  ;;  %v7759_v31 = vadd.f32 %v7704_v18, %v7606_v58  ;;  %v7153_v58 = vadd.f32 %v14222_v63, %v14166_v29  ;;  %v7611_v18 = vadd.f32 %v14226_v14, %v7458_v0 }
 0x3bf   : > { %v11376_v19 = vpop.f32.mrf.mxu0  ;;  %v11394_v24 = vpop.f32.mrf.mxu1  ;;  %v7460_v14 = vadd.f32 %v14236_v59, %v7307_v21 }
 0x3c0   : > { %v7776_v5 = vadd.f32 %v14013_v12, %v7768_v53  ;;  %v7767_v1 = vmul.f32 %v14002_v38, %v7759_v31  ;;  %v7610_v53 = vadd.f32 %v14230_v49, %v7457_v33  ;;  %v7306_v29 = vadd.f32 %v14224_v9, %v7153_v58 }
 0x3c1   : > { %v7707_v51 = vpop.f32.mrf.mxu0  ;;  %v7901_v48 = vpop.f32.mrf.mxu1  ;;  %v7954_v33 = vadd.f32 %v14251_v57, %v14579_v32 }
 0x3c2   : > { %v7784_v56 = vmax.f32 %v7776_v5, 0.0  ;;  %v7775_v44 = vadd.f32 %v14013_v12, %v7767_v1  ;;  %v7459_v49 = vadd.f32 %v14241_v4, %v7306_v29 }
 0x3c3   : > { %v11379_v6 = vpop.f32.mrf.mxu0  ;;  %v14265_v46 = vpop.f32.mrf.mxu1 }
 0x3c4   : > { %v7792_v10 = vpack.c.bf16 %v7784_v56, %v7784_v56  ;;  %v7783_v47 = vmax.f32 %v7775_v44, 0.0  ;;  %v7762_v37 = vadd.f32 %v11379_v6, %v7609_v16  ;;  %v7613_v56 = vadd.f32 %v14239_v62, %v7460_v14 }
 0x3c5   : > { %v7718_v30 = vpop.f32.mrf.mxu0  ;;  %v14271_v52 = vpop.f32.mrf.mxu1 }
 0x3c6   : > { %9869 = vst.msk [vmem:[%s13567_s26 + $0x44] sm:$0xf] %vm3524_vm1, %v7792_v10  ;;  %v7791_v17 = vpack.c.bf16 %v7783_v47, %v7783_v47  ;;  %v7770_v43 = vmul.f32 %v14002_v38, %v7762_v37  ;;  %v7761_v61 = vadd.f32 %v7718_v30, %v7608_v7  ;;  %v7612_v7 = vadd.f32 %v14244_v20, %v7459_v49 }
 0x3c7   : > { %v11380_v8 = vpop.f32.mrf.mxu0  ;;  %v11398_v15 = vpop.f32.mrf.mxu1  ;;  %v7955_v29 = vadd.f32 %v14271_v52, %v14585_v50 }
 0x3c8   : > { %9868 = vst.msk [vmem:[%s13567_s26 + $0x40] sm:$0xf] %vm3524_vm1, %v7791_v17  ;;  %v7778_v55 = vadd.f32 %v14013_v12, %v7770_v43  ;;  %v7769_v26 = vmul.f32 %v14002_v38, %v7761_v61 }
 0x3c9   : > { %v7721_v54 = vpop.f32.mrf.mxu0  ;;  %v7915_v11 = vpop.f32.mrf.mxu1 }
 0x3ca   : > { %v7786_v28 = vmax.f32 %v7778_v55, 0.0  ;;  %v7777_v36 = vadd.f32 %v14013_v12, %v7769_v26  ;;  %v7953_v54 = vadd.f32 %v14255_v40, %v14581_v23  ;;  %v7956_v23 = vadd.f32 %v14265_v46, %v14583_v41 }
 0x3cb   : > { %v11383_v22 = vpop.f32.mrf.mxu0  ;;  %v14286_v39 = vpop.f32.mrf.mxu1 }
 0x3cc   : > { %v7794_v31 = vpack.c.bf16 %v7786_v28, %v7786_v28  ;;  %v7785_v45 = vmax.f32 %v7777_v36, 0.0  ;;  %v7764_v19 = vadd.f32 %v11383_v22, %v7611_v18  ;;  %v7958_v41 = vadd.f32 %v14286_v39, %v14607_v35 }
 0x3cd   : > { %v7732_v63 = vpop.f32.mrf.mxu0  ;;  %v14293_v24 = vpop.f32.mrf.mxu1 }
 0x3ce   : > { %9871 = vst.msk [vmem:[%s13567_s26 + $0x4c] sm:$0xf] %vm3524_vm1, %v7794_v31  ;;  %v7793_v5 = vpack.c.bf16 %v7785_v45, %v7785_v45  ;;  %v7772_v1 = vmul.f32 %v14002_v38, %v7764_v19  ;;  %v7763_v3 = vadd.f32 %v7732_v63, %v7610_v53  ;;  %v7957_v50 = vadd.f32 %v14293_v24, %v14608_v42 }
 0x3cf   : > { %v11384_v2 = vpop.f32.mrf.mxu0  ;;  %v11402_v16 = vpop.f32.mrf.mxu1 }
 0x3d0   : > { %9870 = vst.msk [vmem:[%s13567_s26 + $0x48] sm:$0xf] %vm3524_vm1, %v7793_v5  ;;  %v7780_v51 = vadd.f32 %v14013_v12, %v7772_v1  ;;  %v7771_v9 = vmul.f32 %v14002_v38, %v7763_v3 }
 0x3d1   : > { %v7735_v59 = vpop.f32.mrf.mxu0  ;;  %v7929_v34 = vpop.f32.mrf.mxu1 }
 0x3d2   : > { %v7788_v44 = vmax.f32 %v7780_v51, 0.0  ;;  %v7779_v48 = vadd.f32 %v14013_v12, %v7771_v9 }
 0x3d3   : > { %v11387_v6 = vpop.f32.mrf.mxu0  ;;  %v11405_v37 = vpop.f32.mrf.mxu1 }
 0x3d4   : > { %v7796_v4 = vpack.c.bf16 %v7788_v44, %v7788_v44  ;;  %v7787_v10 = vmax.f32 %v7779_v48, 0.0  ;;  %v7766_v47 = vadd.f32 %v11387_v6, %v7613_v56 }
 0x3d5   : > { %v7746_v13 = vpop.f32.mrf.mxu0  ;;  %v7940_v62 = vpop.f32.mrf.mxu1 }
 0x3d6   : > { %9873 = vst.msk [vmem:[%s13567_s26 + $0x54] sm:$0xf] %vm3524_vm1, %v7796_v4  ;;  %v7795_v30 = vpack.c.bf16 %v7787_v10, %v7787_v10  ;;  %v7774_v0 = vmul.f32 %v14002_v38, %v7766_v47  ;;  %v7765_v17 = vadd.f32 %v7746_v13, %v7612_v7  ;;  %v7960_v13 = vadd.f32 %v11405_v37, %v14609_v27 }
 0x3d7   : > { %v11388_v43 = vpop.f32.mrf.mxu0  ;;  %v11406_v25 = vpop.f32.mrf.mxu1 }
 0x3d8   : > { %9872 = vst.msk [vmem:[%s13567_s26 + $0x50] sm:$0xf] %vm3524_vm1, %v7795_v30  ;;  %v7782_v61 = vadd.f32 %v14013_v12, %v7774_v0  ;;  %v7773_v20 = vmul.f32 %v14002_v38, %v7765_v17  ;;  %v7959_v30 = vadd.f32 %v7940_v62, %v14611_v60 }
 0x3d9   : > { %v7749_v8 = vpop.f32.mrf.mxu0  ;;  %v7943_v15 = vpop.f32.mrf.mxu1 }
 0x3da   : > { %v7790_v55 = vmax.f32 %v7782_v61, 0.0  ;;  %v7781_v26 = vadd.f32 %v14013_v12, %v7773_v20 }
 0x3db   : > { %v11411_v58 = vpop.f32.mrf.mxu0  ;;  %v11429_v11 = vpop.f32.mrf.mxu1 }
 0x3dc   : > { %v7798_v18 = vpack.c.bf16 %v7790_v55, %v7790_v55  ;;  %v7789_v28 = vmax.f32 %v7781_v26, 0.0  ;;  %v8107_v36 = vadd.f32 %v11411_v58, %v7954_v33 }
 0x3dd   : > { %v8051_v21 = vpop.f32.mrf.mxu0  ;;  %v8204_v57 = vpop.f32.mrf.mxu1 }
 0x3de   : > { %9875 = vst.msk [vmem:[%s13567_s26 + $0x5c] sm:$0xf] %vm3524_vm1, %v7798_v18  ;;  %v7797_v38 = vpack.c.bf16 %v7789_v28, %v7789_v28  ;;  %v14317_v22 = vadd.f32 %v11429_v11, %v8107_v36  ;;  %v8106_v32 = vadd.f32 %v8051_v21, %v7953_v54 }
 0x3df   : > { %v11412_v53 = vpop.f32.mrf.mxu0  ;;  %v11430_v31 = vpop.f32.mrf.mxu1 }
 0x3e0   : > { %9874 = vst.msk [vmem:[%s13567_s26 + $0x58] sm:$0xf] %vm3524_vm1, %v7797_v38  ;;  %v14321_v12 = vadd.f32 %v8204_v57, %v8106_v32 }
 0x3e1   : > { %v8054_v45 = vpop.f32.mrf.mxu0  ;;  %v8207_v40 = vpop.f32.mrf.mxu1 }
 0x3e3   : > { %v11415_v19 = vpop.f32.mrf.mxu0  ;;  %v11433_v14 = vpop.f32.mrf.mxu1 }
 0x3e4   : > { %v8109_v63 = vadd.f32 %v11415_v19, %v7956_v23 }
 0x3e5   : > { %v8065_v5 = vpop.f32.mrf.mxu0  ;;  %v8218_v2 = vpop.f32.mrf.mxu1 }
 0x3e6   : > { %v14327_v1 = vadd.f32 %v11433_v14, %v8109_v63  ;;  %v8108_v3 = vadd.f32 %v8065_v5, %v7955_v29 }
 0x3e7   : > { %v11416_v49 = vpop.f32.mrf.mxu0  ;;  %v11434_v9 = vpop.f32.mrf.mxu1 }
 0x3e8   : > { %v14329_v51 = vadd.f32 %v8218_v2, %v8108_v3 }
 0x3e9   : > { %v8068_v16 = vpop.f32.mrf.mxu0  ;;  %v8221_v46 = vpop.f32.mrf.mxu1 }
 0x3eb   : > { %v11419_v59 = vpop.f32.mrf.mxu0  ;;  %v11437_v56 = vpop.f32.mrf.mxu1 }
 0x3ec   : > { %v8111_v52 = vadd.f32 %v11419_v59, %v7958_v41 }
 0x3ed   : > { %v8079_v44 = vpop.f32.mrf.mxu0  ;;  %v8232_v6 = vpop.f32.mrf.mxu1 }
 0x3ee   : > { %v14335_v48 = vadd.f32 %v11437_v56, %v8111_v52  ;;  %v8110_v34 = vadd.f32 %v8079_v44, %v7957_v50 }
 0x3ef   : > { %v11420_v7 = vpop.f32.mrf.mxu0  ;;  %v11438_v10 = vpop.f32.mrf.mxu1 }
 0x3f0   : > { %v14337_v4 = vadd.f32 %v8232_v6, %v8110_v34 }
 0x3f1   : > { %v8082_v47 = vpop.f32.mrf.mxu0  ;;  %v8235_v35 = vpop.f32.mrf.mxu1 }
 0x3f3   : > { %v11423_v39 = vpop.f32.mrf.mxu0  ;;  %v11441_v42 = vpop.f32.mrf.mxu1 }
 0x3f4   : > { %v8113_v0 = vadd.f32 %v11423_v39, %v7960_v13 }
 0x3f5   : > { %v8093_v24 = vpop.f32.mrf.mxu0  ;;  %v8246_v61 = vpop.f32.mrf.mxu1 }
 0x3f6   : > { %v14341_v17 = vadd.f32 %v11441_v42, %v8113_v0  ;;  %v8112_v43 = vadd.f32 %v8093_v24, %v7959_v30 }
 0x3f7   : > { %v11424_v20 = vpop.f32.mrf.mxu0  ;;  %v11442_v8 = vpop.f32.mrf.mxu1 }
 0x3f8   : > { %v14343_v25 = vadd.f32 %v8246_v61, %v8112_v43 }
 0x3f9   : > { %v8096_v33 = vpop.f32.mrf.mxu0  ;;  %v8249_v55 = vpop.f32.mrf.mxu1 }
 0x3fb   : > { %v11447_v26 = vpop.f32.mrf.mxu0  ;;  %v11465_v15 = vpop.f32.mrf.mxu1 }
 0x3fc   : > { %v8413_v8 = vadd.f32 %v11447_v26, %v14317_v22 }
 0x3fd   : > { %v8357_v27 = vpop.f32.mrf.mxu0  ;;  %v8510_v37 = vpop.f32.mrf.mxu1 }
 0x3ff   : > { %v11448_v58 = vpop.f32.mrf.mxu0  ;;  %v11466_v54 = vpop.f32.mrf.mxu1 }
 0x400   : > { %v8412_v58 = vadd.f32 %v8357_v27, %v14321_v12 }
 0x401   : > { %v8360_v60 = vpop.f32.mrf.mxu0  ;;  %v8513_v62 = vpop.f32.mrf.mxu1 }
 0x402   : > { %v8566_v62 = vadd.f32 %v11465_v15, %v8413_v8 }
 0x403   : > { %v11451_v18 = vpop.f32.mrf.mxu0  ;;  %v14345_v28 = vpop.f32.mrf.mxu1 }
 0x405   : > { %v8371_v36 = vpop.f32.mrf.mxu0  ;;  %v14347_v11 = vpop.f32.mrf.mxu1 }
 0x406   : > { %v8414_v12 = vadd.f32 %v8371_v36, %v14329_v51  ;;  %v14390_v36 = vld [vmem:[%s14454_s5] ss:$0 sm:$0xff] }
 0x407   : > { %v11452_v21 = vpop.f32.mrf.mxu0  ;;  %v11470_v38 = vpop.f32.mrf.mxu1 }
 0x409   : > { %v8374_v32 = vpop.f32.mrf.mxu0  ;;  %v8527_v57 = vpop.f32.mrf.mxu1 }
 0x40a   : > { %v8565_v32 = vadd.f32 %v8510_v37, %v8412_v58 }
 0x40b   : > { %v14349_v53 = vpop.f32.mrf.mxu0  ;;  %v14351_v31 = vpop.f32.mrf.mxu1 }
 0x40d   : > { %v14353_v45 = vpop.f32.mrf.mxu0  ;;  %v14355_v23 = vpop.f32.mrf.mxu1 }
 0x40f   : > { %v11456_v40 = vpop.f32.mrf.mxu0  ;;  %v11474_v19 = vpop.f32.mrf.mxu1 }
 0x411   : > { %v8388_v29 = vpop.f32.mrf.mxu0  ;;  %v8541_v63 = vpop.f32.mrf.mxu1 }
 0x412   : > { %v8415_v29 = vadd.f32 %v11451_v18, %v14327_v1  ;;  %v8417_v18 = vadd.f32 %v14349_v53, %v14335_v48  ;;  %v14398_v48 = vld [vmem:[%s14455_s6] ss:$0 sm:$0xff] }
 0x413   : > { %v14357_v14 = vpop.f32.mrf.mxu0  ;;  %v14359_v5 = vpop.f32.mrf.mxu1 }
 0x414   : > { %v8568_v15 = vadd.f32 %v14345_v28, %v8415_v29 }
 0x415   : > { %v14361_v3 = vpop.f32.mrf.mxu0  ;;  %v14363_v2 = vpop.f32.mrf.mxu1 }
 0x417   : > { %v11460_v49 = vpop.f32.mrf.mxu0  ;;  %v11478_v9 = vpop.f32.mrf.mxu1 }
 0x419   : > { %v8402_v16 = vpop.f32.mrf.mxu0  ;;  %v8555_v41 = vpop.f32.mrf.mxu1 }
 0x41b   : > { %v11483_v46 = vpop.f32.mrf.mxu0  ;;  %v11501_v59 = vpop.f32.mrf.mxu1 }
 0x41c   : > { %v8719_v57 = vadd.f32 %v11483_v46, %v8566_v62  ;;  %v8567_v46 = vadd.f32 %v14347_v11, %v8414_v12  ;;  %v8416_v11 = vadd.f32 %v14353_v45, %v14337_v4 }
 0x41d   : > { %v8663_v50 = vpop.f32.mrf.mxu0  ;;  %v8816_v52 = vpop.f32.mrf.mxu1 }
 0x41e   : > { %v8718_v22 = vadd.f32 %v8663_v50, %v8565_v32  ;;  %v8872_v27 = vadd.f32 %v11501_v59, %v8719_v57 }
 0x41f   : > { %v11484_v56 = vpop.f32.mrf.mxu0  ;;  %v11502_v44 = vpop.f32.mrf.mxu1 }
 0x420   : > { %v8871_v16 = vadd.f32 %v8816_v52, %v8718_v22 }
 0x421   : > { %v8666_v34 = vpop.f32.mrf.mxu0  ;;  %v8819_v6 = vpop.f32.mrf.mxu1 }
 0x423   : > { %v11487_v7 = vpop.f32.mrf.mxu0  ;;  %v11505_v10 = vpop.f32.mrf.mxu1 }
 0x424   : > { %v8721_v44 = vadd.f32 %v11487_v7, %v8568_v15 }
 0x425   : > { %v8677_v47 = vpop.f32.mrf.mxu0  ;;  %v8830_v13 = vpop.f32.mrf.mxu1 }
 0x426   : > { %v8720_v51 = vadd.f32 %v8677_v47, %v8567_v46 }
 0x427   : > { %v11488_v35 = vpop.f32.mrf.mxu0  ;;  %v11506_v39 = vpop.f32.mrf.mxu1 }
 0x428   : > { %v8874_v35 = vadd.f32 %v11505_v10, %v8721_v44 }
 0x429   : > { %v8680_v30 = vpop.f32.mrf.mxu0  ;;  %v8833_v0 = vpop.f32.mrf.mxu1 }
 0x42a   : > { %v8570_v30 = vadd.f32 %v14351_v31, %v8417_v18  ;;  %v8419_v31 = vadd.f32 %v14357_v14, %v14341_v17 }
 0x42b   : > { %v11491_v42 = vpop.f32.mrf.mxu0  ;;  %v14365_v24 = vpop.f32.mrf.mxu1 }
 0x42d   : > { %v14367_v43 = vpop.f32.mrf.mxu0  ;;  %v14369_v61 = vpop.f32.mrf.mxu1 }
 0x42f   : > { %v11492_v20 = vpop.f32.mrf.mxu0  ;;  %v11510_v33 = vpop.f32.mrf.mxu1 }
 0x430   : > { %v8873_v20 = vadd.f32 %v8830_v13, %v8720_v51  ;;  %v8569_v33 = vadd.f32 %v14355_v23, %v8416_v11 }
 0x431   : > { %v8694_v55 = vpop.f32.mrf.mxu0  ;;  %v8847_v54 = vpop.f32.mrf.mxu1 }
 0x432   : > { %v8723_v55 = vadd.f32 %v11491_v42, %v8570_v30  ;;  %v8722_v29 = vadd.f32 %v14367_v43, %v8569_v33 }
 0x433   : > { %v14373_v60 = vpop.f32.mrf.mxu0  ;;  %v14375_v21 = vpop.f32.mrf.mxu1 }
 0x434   : > { %v8875_v15 = vadd.f32 %v14369_v61, %v8722_v29 }
 0x435   : > { %v14377_v38 = vpop.f32.mrf.mxu0  ;;  %v14379_v40 = vpop.f32.mrf.mxu1 }
 0x437   : > { %v11496_v19 = vpop.f32.mrf.mxu0  ;;  %v11514_v26 = vpop.f32.mrf.mxu1 }
 0x439   : > { %v8708_v63 = vpop.f32.mrf.mxu0  ;;  %v8861_v49 = vpop.f32.mrf.mxu1 }
 0x43a   : > { %v8418_v63 = vadd.f32 %v14361_v3, %v14343_v25  ;;  %v8572_v49 = vadd.f32 %v14359_v5, %v8419_v31 }
 0x43b   : > { %v11519_v9 = vpop.f32.mrf.mxu0  ;;  %v11537_v56 = vpop.f32.mrf.mxu1 }
 0x43c   : > { %v9025_v41 = vadd.f32 %v11519_v9, %v8872_v27  ;;  %v8876_v27 = vadd.f32 %v14365_v24, %v8723_v55  ;;  %v8571_v24 = vadd.f32 %v14363_v2, %v8418_v63 }
 0x43d   : > { %v8969_v37 = vpop.f32.mrf.mxu0  ;;  %v9122_v1 = vpop.f32.mrf.mxu1 }
 0x43e   : > { %v9178_v34 = vadd.f32 %v11537_v56, %v9025_v41  ;;  %v9024_v6 = vadd.f32 %v8969_v37, %v8871_v16  ;;  %v8725_v56 = vadd.f32 %v14373_v60, %v8572_v49  ;;  %v8724_v18 = vadd.f32 %v14377_v38, %v8571_v24 }
 0x43f   : > { %v11520_v50 = vpop.f32.mrf.mxu0  ;;  %v11538_v52 = vpop.f32.mrf.mxu1 }
 0x440   : > { %v9186_v28 = vmul.f32 %v14390_v36, %v9178_v34  ;;  %v9177_v59 = vadd.f32 %v9122_v1, %v9024_v6  ;;  %v8878_v60 = vadd.f32 %v14375_v21, %v8725_v56  ;;  %v8877_v38 = vadd.f32 %v14379_v40, %v8724_v18 }
 0x441   : > { %v8972_v7 = vpop.f32.mrf.mxu0  ;;  %v9125_v39 = vpop.f32.mrf.mxu1 }
 0x442   : > { %v9194_v53 = vadd.f32 %v14398_v48, %v9186_v28  ;;  %v9185_v47 = vmul.f32 %v14390_v36, %v9177_v59 }
 0x443   : > { %v11523_v0 = vpop.f32.mrf.mxu0  ;;  %v11541_v10 = vpop.f32.mrf.mxu1 }
 0x444   : > { %v9202_v8 = vmax.f32 %v9194_v53, 0.0  ;;  %v9193_v4 = vadd.f32 %v14398_v48, %v9185_v47  ;;  %v9027_v45 = vadd.f32 %v11523_v0, %v8874_v35 }
 0x445   : > { %v8983_v58 = vpop.f32.mrf.mxu0  ;;  %v9136_v19 = vpop.f32.mrf.mxu1 }
 0x446   : > { %v9210_v54 = vpack.c.bf16 %v9202_v8, %v9202_v8  ;;  %v9201_v62 = vmax.f32 %v9193_v4, 0.0  ;;  %v9180_v32 = vadd.f32 %v11541_v10, %v9027_v45  ;;  %v9026_v57 = vadd.f32 %v8983_v58, %v8873_v20 }
 0x447   : > { %v11524_v13 = vpop.f32.mrf.mxu0  ;;  %v11542_v42 = vpop.f32.mrf.mxu1 }
 0x448   : > { %9974 = vst.msk [vmem:[%s13567_s26 + $0x64] sm:$0xf] %vm3524_vm1, %v9210_v54  ;;  %v9209_v22 = vpack.c.bf16 %v9201_v62, %v9201_v62  ;;  %v9188_v26 = vmul.f32 %v14390_v36, %v9180_v32  ;;  %v9179_v23 = vadd.f32 %v9136_v19, %v9026_v57 }
 0x449   : > { %v8986_v12 = vpop.f32.mrf.mxu0  ;;  %v9139_v43 = vpop.f32.mrf.mxu1 }
 0x44a   : > { %9973 = vst.msk [vmem:[%s13567_s26 + $0x60] sm:$0xf] %vm3524_vm1, %v9209_v22  ;;  %v9196_v17 = vadd.f32 %v14398_v48, %v9188_v26  ;;  %v9187_v14 = vmul.f32 %v14390_v36, %v9179_v23 }
 0x44b   : > { %v11527_v9 = vpop.f32.mrf.mxu0  ;;  %v11545_v3 = vpop.f32.mrf.mxu1 }
 0x44c   : > { %v9204_v16 = vmax.f32 %v9196_v17, 0.0  ;;  %v9195_v41 = vadd.f32 %v14398_v48, %v9187_v14  ;;  %v9029_v25 = vadd.f32 %v11527_v9, %v8876_v27 }
 0x44d   : > { %v8997_v37 = vpop.f32.mrf.mxu0  ;;  %v9150_v5 = vpop.f32.mrf.mxu1 }
 0x44e   : > { %v9212_v46 = vpack.c.bf16 %v9204_v16, %v9204_v16  ;;  %v9203_v44 = vmax.f32 %v9195_v41, 0.0  ;;  %v9182_v34 = vadd.f32 %v11545_v3, %v9029_v25  ;;  %v9028_v6 = vadd.f32 %v8997_v37, %v8875_v15 }
 0x44f   : > { %v11528_v1 = vpop.f32.mrf.mxu0  ;;  %v11546_v28 = vpop.f32.mrf.mxu1 }
 0x450   : > { %9976 = vst.msk [vmem:[%s13567_s26 + $0x6c] sm:$0xf] %vm3524_vm1, %v9212_v46  ;;  %v9211_v61 = vpack.c.bf16 %v9203_v44, %v9203_v44  ;;  %v9190_v50 = vmul.f32 %v14390_v36, %v9182_v34  ;;  %v9181_v51 = vadd.f32 %v9150_v5, %v9028_v6 }
 0x451   : > { %v9000_v2 = vpop.f32.mrf.mxu0  ;;  %v9153_v11 = vpop.f32.mrf.mxu1 }
 0x452   : > { %9975 = vst.msk [vmem:[%s13567_s26 + $0x68] sm:$0xf] %vm3524_vm1, %v9211_v61  ;;  %v9198_v59 = vadd.f32 %v14398_v48, %v9190_v50  ;;  %v9189_v52 = vmul.f32 %v14390_v36, %v9181_v51 }
 0x453   : > { %v11531_v7 = vpop.f32.mrf.mxu0  ;;  %v11549_v39 = vpop.f32.mrf.mxu1 }
 0x454   : > { %v9206_v35 = vmax.f32 %v9198_v59, 0.0  ;;  %v9197_v53 = vadd.f32 %v14398_v48, %v9189_v52  ;;  %v9031_v47 = vadd.f32 %v11531_v7, %v8878_v60 }
 0x455   : > { %v9011_v30 = vpop.f32.mrf.mxu0  ;;  %v9164_v4 = vpop.f32.mrf.mxu1 }
 0x456   : > { %v9214_v0 = vpack.c.bf16 %v9206_v35, %v9206_v35  ;;  %v9205_v21 = vmax.f32 %v9197_v53, 0.0  ;;  %v9184_v20 = vadd.f32 %v11549_v39, %v9031_v47  ;;  %v9030_v8 = vadd.f32 %v9011_v30, %v8877_v38 }
 0x457   : > { %v11532_v45 = vpop.f32.mrf.mxu0  ;;  %v11550_v55 = vpop.f32.mrf.mxu1 }
 0x458   : > { %9978 = vst.msk [vmem:[%s13567_s26 + $0x74] sm:$0xf] %vm3524_vm1, %v9214_v0  ;;  %v9213_v10 = vpack.c.bf16 %v9205_v21, %v9205_v21  ;;  %v9192_v40 = vmul.f32 %v14390_v36, %v9184_v20  ;;  %v9183_v33 = vadd.f32 %v9164_v4, %v9030_v8 }
 0x459   : > { %v9014_v58 = vpop.f32.mrf.mxu0  ;;  %v9167_v32 = vpop.f32.mrf.mxu1 }
 0x45a   : > { %9977 = vst.msk [vmem:[%s13567_s26 + $0x70] sm:$0xf] %vm3524_vm1, %v9213_v10  ;;  %v9200_v54 = vadd.f32 %v14398_v48, %v9192_v40  ;;  %v9191_v62 = vmul.f32 %v14390_v36, %v9183_v33 }
 0x45c   : > { %v9208_v57 = vmax.f32 %v9200_v54, 0.0  ;;  %v9199_v19 = vadd.f32 %v14398_v48, %v9191_v62 }
 0x45e   : > { %v9216_v31 = vpack.c.bf16 %v9208_v57, %v9208_v57  ;;  %v9207_v13 = vmax.f32 %v9199_v19, 0.0 }
 0x460   : > { %9980 = vst.msk [vmem:[%s13567_s26 + $0x7c] sm:$0xf] %vm3524_vm1, %v9216_v31  ;;  %v9215_v29 = vpack.c.bf16 %v9207_v13, %v9207_v13 }
 0x462   : > { %9979 = vst.msk [vmem:[%s13567_s26 + $0x78] sm:$0xf] %vm3524_vm1, %v9215_v29 }
 0x463 PF: > { %s21_s13 = sadd.s32 1, %s11626_s13  }
 0x464   : > { %p18_p4 = scmp.ge.s32.totalorder %s21_s13, 4  }
 0x466   :  { %20 = sbr.rel (!%p18_p4) target bundleno = 1 (0x1), region = 131 }

</bundles_post_ra>
